<compile_context>
chip_gen: v6e
topology: v6e:2x2x1
jax: 0.10.0
libtpu: 0.0.40
codegen_flags: <defaults>
</compile_context>

<pallas_src>
import functools

import numpy as np
import jax
import jax.numpy as jnp
from jax import lax
from jax.experimental import pallas as pl
from jax.experimental.pallas import tpu as pltpu


# --------------------------------------------------------------------------- #
# The single fused Pallas kernel
# --------------------------------------------------------------------------- #
def crnn_kernel(*refs, T, B, H, nh, conv_meta, L, n_fnn, has_attn, final_act):
    """Entire CRNN forward in one VMEM-resident kernel (single grid point).

    refs = (x_slab ((T+2)*B, F0*Cin) f32  -- time-padded, time-major rows (t, b),
            [per conv block: w3 (3, K, Nc) bf16, scale (1, Nc), shift (1, Nc)],
            [per GRU layer : wih_cat (D, 6H) bf16, bx_cat (1, 6H),
                             whh_cat (2H, 6H) bf16 (block-diag), bhn_cat (1, 2H)],
            [if attention  : wqkv (H, 3H) bf16 (q pre-scaled), bqkv (1, 3H),
                             attn_bias (N, N), wo (H, H) bf16, bo (1, H)],
            [per FNN layer : w bf16, b],
            w_final bf16, b_final,
            out (N, out_dim),
            scratch: [per conv block >= 1: time-padded slab ((T+2)*B, K) f32],
                     gx_fwd (N, 3H), gx_bwd (N, 3H), y_fwd (N, H), y_bwd (N, H))
    Rows everywhere are time-major: row = t*B + b.
    """
    f32, bf16 = jnp.float32, jnp.bfloat16
    N = T * B
    H2, H3, H6 = 2 * H, 3 * H, 6 * H

    n_conv = len(conv_meta)
    n_in = 1 + 3 * n_conv + 4 * L + (5 if has_attn else 0) + 2 * n_fnn + 2
    in_refs, out_ref, scratch = refs[:n_in], refs[n_in], refs[n_in + 1:]
    slab_refs = scratch[:n_conv - 1]
    gxf_ref, gxb_ref, yf_ref, yb_ref = scratch[n_conv - 1:]

    idx = 0
    x_ref = in_refs[idx]; idx += 1
    conv_refs = [in_refs[idx + 3 * i: idx + 3 * i + 3] for i in range(n_conv)]
    idx += 3 * n_conv
    gru_refs = [in_refs[idx + 4 * i: idx + 4 * i + 4] for i in range(L)]
    idx += 4 * L
    if has_attn:
        wqkv_ref, bqkv_ref, bias_ref, wo_ref, bo_ref = in_refs[idx:idx + 5]
        idx += 5
    fnn_refs = [in_refs[idx + 2 * i: idx + 2 * i + 2] for i in range(n_fnn)]
    idx += 2 * n_fnn
    wf_ref, bf_ref = in_refs[idx], in_refs[idx + 1]

    # ---------------- Conv blocks ------------------------------------------ #
    # 3x3 conv (+ folded BN + ReLU + (1, fp) mel max-pool) == three kh-shifted
    # block-Toeplitz matmuls on a time-padded row slab (shift = kh*B rows).
    x = None
    for i, ((fp, fo_c), (w_ref, sc_ref, sh_ref)) in enumerate(zip(conv_meta,
                                                                  conv_refs)):
        if i == 0:
            slab = x_ref                                  # padded outside (f32)
            center = slab[B:B + N, :].astype(bf16)
        else:
            slab = slab_refs[i - 1]
            kdim = slab.shape[1]
            slab[0:B, :] = jnp.zeros((B, kdim), f32)      # zero time-pad rows
            slab[B + N:2 * B + N, :] = jnp.zeros((B, kdim), f32)
            slab[B:B + N, :] = x
            center = x.astype(bf16)
        acc = jnp.dot(center, w_ref[1], preferred_element_type=f32)
        acc = acc + jnp.dot(slab[0:N, :].astype(bf16), w_ref[0],
                            preferred_element_type=f32)
        acc = acc + jnp.dot(slab[2 * B:2 * B + N, :].astype(bf16), w_ref[2],
                            preferred_element_type=f32)
        y = jnp.maximum(acc * sc_ref[...] + sh_ref[...], 0.0)   # BN + ReLU
        x = y[:, 0:fo_c]
        for j in range(1, fp):                                  # mel max-pool
            x = jnp.maximum(x, y[:, j * fo_c:(j + 1) * fo_c])
    # TODO(synk): MaxPool over time (t_pool_size > 1) is not implemented; the
    # configuration used here has t_pool_size = [1, 1].  Dropout2d = identity.

    # ---------------- Bidirectional multi-layer GRU ------------------------- #
    # Input projections hoisted to one matmul per layer (fwd|bwd fused); the fully
    # unrolled serial recurrence does ONE bf16 (B,2H)@(2H,6H) MXU dot per step that
    # feeds all 3 gates of both directions (block-diagonal packed W_hh).
    xin = x.astype(bf16)
    for l in range(L):
        wih_ref, bx_ref, whh_ref, bhn_ref = gru_refs[l]
        gx = jnp.dot(xin, wih_ref[...], preferred_element_type=f32) + bx_ref[...]
        gxf_ref[...] = gx[:, 0:H3]
        gxb_ref[...] = gx[:, H3:H6]
        whh = whh_ref[...]
        bhn = bhn_ref[...]
        bhn_f, bhn_b = bhn[:, 0:H], bhn[:, H:H2]
        h_f = jnp.zeros((B, H), f32)
        h_b = jnp.zeros((B, H), f32)
        for t in range(T):                       # static unroll: all slices static
            rf = t * B
            rb = (T - 1 - t) * B
            gxf_t = gxf_ref[rf:rf + B, :]
            gxb_t = gxb_ref[rb:rb + B, :]
            hcat = jnp.concatenate([h_f, h_b], axis=1).astype(bf16)
            gh = jnp.dot(hcat, whh, preferred_element_type=f32)        # (B, 6H)
            # forward direction
            r = jax.nn.sigmoid(gxf_t[:, 0:H] + gh[:, 0:H])
            z = jax.nn.sigmoid(gxf_t[:, H:H2] + gh[:, H:H2])
            n = jnp.tanh(gxf_t[:, H2:H3] + r * (gh[:, H2:H3] + bhn_f))
            h_f = (1.0 - z) * n + z * h_f
            # backward direction (time-reversed row indexing)
            r = jax.nn.sigmoid(gxb_t[:, 0:H] + gh[:, H3:H3 + H])
            z = jax.nn.sigmoid(gxb_t[:, H:H2] + gh[:, H3 + H:H3 + H2])
            n = jnp.tanh(gxb_t[:, H2:H3] + r * (gh[:, H3 + H2:H6] + bhn_b))
            h_b = (1.0 - z) * n + z * h_b
            yf_ref[rf:rf + B, :] = h_f
            yb_ref[rb:rb + B, :] = h_b
        if l + 1 < L:
            xin = jnp.concatenate([yf_ref[...], yb_ref[...]], axis=1).astype(bf16)
        # inter-layer GRU dropout is the identity at inference.

    # Fused gate: x = tanh(gru_out); out = x[:, H:] * x[:, :H]  (backward * forward)
    gated = jnp.tanh(yb_ref[...]) * jnp.tanh(yf_ref[...])               # (N, H)

    # ---------------- Multi-head self-attention + FNN + final --------------- #
    if has_attn:
        hd = H // nh
        qkv = (jnp.dot(gated.astype(bf16), wqkv_ref[...],
                       preferred_element_type=f32) + bqkv_ref[...])
        q = qkv[:, 0:H].astype(bf16)        # 1/sqrt(hd) folded into wq at prep time
        k = qkv[:, H:H2].astype(bf16)
        v = qkv[:, H2:H3].astype(bf16)
        bias = bias_ref[...]                # 0 same-batch / -1e30 cross-batch rows
        heads = []
        for h in range(nh):
            sl = slice(h * hd, (h + 1) * hd)
            e = lax.dot_general(q[:, sl], k[:, sl], (((1,), (1,)), ((), ())),
                                preferred_element_type=f32) + bias
            e = e - jnp.max(e, axis=-1, keepdims=True)
            pr = jnp.exp(e)                 # masked entries underflow to exactly 0
            pr = pr * pl.reciprocal(jnp.sum(pr, axis=-1, keepdims=True), approx=True)
            heads.append(jnp.dot(pr.astype(bf16), v[:, sl],
                                 preferred_element_type=f32))
        # NOTE: (N, N) logits are fully VMEM-resident; if T*B scales up this needs a
        # flash-style blocked softmax (first thing to blow 64 MiB VMEM on v7x).
        ctx = jnp.concatenate(heads, axis=-1)
        xr = jnp.tanh(jnp.dot(ctx.astype(bf16), wo_ref[...],
                              preferred_element_type=f32) + bo_ref[...])
    else:
        xr = gated

    for w_ref, b_ref in fnn_refs:           # FNN layers: Linear only (as in ref)
        xr = jnp.dot(xr.astype(bf16), w_ref[...],
                     preferred_element_type=f32) + b_ref[...]
    yout = jnp.dot(xr.astype(bf16), wf_ref[...],
                   preferred_element_type=f32) + bf_ref[...]
    if final_act == "tanh":
        yout = jnp.tanh(yout)
    else:
        yout = jnp.maximum(yout, 0.0)
        # TODO(synk): only_dist with permutation_2/3 (ReLU/Sigmoid column split) is
        # not implemented; the configuration exercised uses only_dist=False.
    out_ref[...] = yout


# --------------------------------------------------------------------------- #
# pallas_call wrapper + minimal XLA glue
# --------------------------------------------------------------------------- #
def crnn_fused_call(x_slab, p, T, B):
    H = p["rnn_size"]
    N = T * B
    conv = p["conv"]
    out_dim = int(p["final"][0].shape[1])
    conv_meta = tuple((blk["fp"], blk["fo_c"]) for blk in conv)
    has_attn = bool(p["self_attn"])

    flat = [x_slab]
    for blk in conv:
        flat += [blk["w"], blk["scale"], blk["shift"]]
    for layer in p["gru_layers"]:
        flat += list(layer)
    if has_attn:
        a = p["attn"]
        flat += [a["wqkv"], a["bqkv"], a["bias"], a["wo"], a["bo"]]
    for w, b in p["fnn"]:
        flat += [w, b]
    flat += [p["final"][0], p["final"][1]]

    scratch = [pltpu.VMEM(((T + 2) * B, blk["k_in"]), jnp.float32)
               for blk in conv[1:]]                       # conv time-padded slabs
    scratch += [pltpu.VMEM((N, 3 * H), jnp.float32),      # gx fwd (hoisted x proj)
                pltpu.VMEM((N, 3 * H), jnp.float32),      # gx bwd
                pltpu.VMEM((N, H), jnp.float32),          # y fwd
                pltpu.VMEM((N, H), jnp.float32)]          # y bwd

    kernel = functools.partial(
        crnn_kernel, T=T, B=B, H=H, nh=p["nb_heads"], conv_meta=conv_meta,
        L=len(p["gru_layers"]), n_fnn=len(p["fnn"]), has_attn=has_attn,
        final_act="relu" if p["only_dist"] else "tanh")

    # Everything (weights + activations) is far below VMEM limits, so the whole
    # network runs as a single grid point with all operands VMEM-resident.
    return pl.pallas_call(
        kernel,
        out_shape=jax.ShapeDtypeStruct((N, out_dim), jnp.float32),
        scratch_shapes=scratch,
    )(*flat)


def crnn_forward(x, p):
    """input: (batch, mic_channels, time, mel) -> (batch, time, label_dim)."""
    B, _, T, _ = x.shape
    # (B, Cin, T, F) -> time-major rows (t, b), features (mel, channel), plus B zero
    # rows of time padding on each side so conv kh taps become simple row shifts.
    x2d = jnp.transpose(x, (2, 0, 3, 1)).reshape(T * B, -1)
    x_slab = jnp.pad(x2d, ((B, B), (0, 0)))
    out_tm = crnn_fused_call(x_slab, p, T, B)                       # (T*B, out_dim)
    return jnp.transpose(out_tm.reshape(T, B, -1), (1, 0, 2))       # (B, T, out_dim)


# --------------------------------------------------------------------------- #
# Deterministic synthetic parameters (PyTorch-style), then kernel-ready packing
# --------------------------------------------------------------------------- #
def init_raw_params(key, in_feat_shape, out_dim, cfg):
    keys = jax.random.split(key, 128)
    kit = iter(keys)

    def nrm(shape, s=0.1):
        return jax.random.normal(next(kit), shape, jnp.float32) * s

    raw = {}
    conv = []
    cin = in_feat_shape[1]
    C = cfg["nb_cnn2d_filt"]
    for tp, fp in zip(cfg["t_pool_size"], cfg["f_pool_size"]):
        assert tp == 1, "t_pool_size > 1 not implemented (see TODO in conv section)"
        conv.append(dict(w=nrm((3, 3, cin, C), 0.2), b=nrm((C,), 0.1),
                         gamma=1.0 + nrm((C,), 0.1), beta=nrm((C,), 0.1),
                         mean=nrm((C,), 0.1), var=1.0 + jnp.abs(nrm((C,), 0.1)),
                         fp=fp))
        cin = C
    raw["conv"] = conv

    H = cfg["rnn_size"]
    d0 = C * (in_feat_shape[3] // int(np.prod(cfg["f_pool_size"])))
    gru = []
    for l in range(cfg["nb_rnn_layers"]):
        d = d0 if l == 0 else 2 * H
        dirs = []
        for _ in range(2):
            dirs.append(dict(wih=nrm((d, 3 * H)), whh=nrm((H, 3 * H)),
                             bih=nrm((1, 3 * H)), bhh=nrm((1, 3 * H))))
        gru.append(dirs)
    raw["gru"] = gru

    raw["attn"] = dict(wq=nrm((H, H)), bq=nrm((1, H)), wk=nrm((H, H)), bk=nrm((1, H)),
                       wv=nrm((H, H)), bv=nrm((1, H)), wo=nrm((H, H)), bo=nrm((1, H)))
    fnn = []
    dprev = H
    for _ in range(cfg["nb_fnn_layers"]):
        fnn.append((nrm((dprev, cfg["fnn_size"])), nrm((1, cfg["fnn_size"]))))
        dprev = cfg["fnn_size"]
    raw["fnn"] = fnn
    raw["final"] = (nrm((dprev, out_dim)), nrm((1, out_dim)))
    return raw


def make_conv_w3(w4, F, fp):
    """(3,3,Cin,Cout) conv weight -> per-kh block-Toeplitz (3, F*Cin, fp*Fo*Cout).

    Mel (kw) taps are folded into the columns; padded mel positions have no rows
    (their input is zero), so the kernel needs no mel padding at all.  Columns are
    ordered (pool_offset j, pooled_mel fo, channel c) so the mel max-pool is a max
    over fp contiguous column blocks.
    """
    _, _, cin, cout = w4.shape
    Fo = F // fp
    W = np.zeros((3, F * cin, fp * Fo * cout), np.float32)
    for f in range(F):
        fo, j = f // fp, f % fp
        if fo >= Fo:                     # mel bins dropped by floor-mode MaxPool
            continue
        col0 = (j * Fo + fo) * cout
        for kh in range(3):
            for kw in range(3):
                f_in = f + kw - 1
                if 0 <= f_in < F:
                    W[kh, f_in * cin:(f_in + 1) * cin, col0:col0 + cout] = w4[kh, kw]
    return W


def prepare_params(raw, cfg, in_feat_shape):
    eps = 1e-5
    H = cfg["rnn_size"]
    C = cfg["nb_cnn2d_filt"]
    B, T = in_feat_shape[0], in_feat_shape[2]
    N = T * B
    p = {"rnn_size": H, "nb_heads": cfg["nb_heads"], "only_dist": cfg["only_dist"],
         "self_attn": cfg["self_attn"]}

    # Conv blocks: fold BN (+ conv bias), build per-kh block-Toeplitz weights (bf16).
    conv = []
    f_cur = in_feat_shape[3]
    for blk in raw["conv"]:
        fp = blk["fp"]
        fo = f_cur // fp
        scale = np.asarray(blk["gamma"]) / np.sqrt(np.asarray(blk["var"]) + eps)
        shift = (np.asarray(blk["beta"]) - np.asarray(blk["mean"]) * scale
                 + np.asarray(blk["b"]) * scale)
        w3 = make_conv_w3(np.asarray(blk["w"]), f_cur, fp)
        conv.append(dict(w=jnp.asarray(w3, jnp.bfloat16),
                         scale=jnp.asarray(np.tile(scale, fp * fo)[None, :],
                                           jnp.float32),
                         shift=jnp.asarray(np.tile(shift, fp * fo)[None, :],
                                           jnp.float32),
                         fp=fp, fo_c=fo * C, k_in=w3.shape[1]))
        f_cur = fo
    p["conv"] = conv

    # GRU: permute layer-0 input rows from PyTorch's channel-major flatten (c*Fo+fo)
    # to the conv kernel's (fo*Cout+c) layout; fold r/z hidden biases into the input
    # projection; pack fwd|bwd input weights side-by-side and W_hh block-diagonally.
    fo_last = f_cur
    perm = np.array([c * fo_last + f for f in range(fo_last) for c in range(C)],
                    np.int32)
    layers = []
    for l, dirs in enumerate(raw["gru"]):
        wihs, bxs, whhs, bhns = [], [], [], []
        for d in dirs:
            wih = np.asarray(d["wih"])
            if l == 0:
                wih = wih[perm, :]
            bih, bhh = np.asarray(d["bih"]), np.asarray(d["bhh"])
            bxs.append(np.concatenate([bih[:, :2 * H] + bhh[:, :2 * H],
                                       bih[:, 2 * H:]], axis=1))
            wihs.append(wih)
            whhs.append(np.asarray(d["whh"]))
            bhns.append(bhh[:, 2 * H:])
        wih_cat = np.concatenate(wihs, axis=1)                        # (Dl, 6H)
        bx_cat = np.concatenate(bxs, axis=1)                          # (1, 6H)
        whh_cat = np.zeros((2 * H, 6 * H), np.float32)                # block-diag
        whh_cat[0:H, 0:3 * H] = whhs[0]
        whh_cat[H:2 * H, 3 * H:6 * H] = whhs[1]
        bhn_cat = np.concatenate(bhns, axis=1)                        # (1, 2H)
        layers.append((jnp.asarray(wih_cat, jnp.bfloat16),
                       jnp.asarray(bx_cat, jnp.float32),
                       jnp.asarray(whh_cat, jnp.bfloat16),
                       jnp.asarray(bhn_cat, jnp.float32)))
    p["gru_layers"] = layers

    # Attention: fused QKV weight with 1/sqrt(head_dim) folded into q; precomputed
    # additive cross-batch mask for time-major rows (t, b).
    a = raw["attn"]
    hd = H // cfg["nb_heads"]
    qs = 1.0 / float(np.sqrt(hd))
    wqkv = np.concatenate([np.asarray(a["wq"]) * qs, np.asarray(a["wk"]),
                           np.asarray(a["wv"])], axis=1)
    bqkv = np.concatenate([np.asarray(a["bq"]) * qs, np.asarray(a["bk"]),
                           np.asarray(a["bv"])], axis=1)
    bi = np.arange(N) % B
    bias = np.where(bi[:, None] == bi[None, :], 0.0, -1e30).astype(np.float32)
    p["attn"] = dict(wqkv=jnp.asarray(wqkv, jnp.bfloat16),
                     bqkv=jnp.asarray(bqkv, jnp.float32),
                     bias=jnp.asarray(bias),
                     wo=jnp.asarray(np.asarray(a["wo"]), jnp.bfloat16),
                     bo=jnp.asarray(np.asarray(a["bo"]), jnp.float32))

    p["fnn"] = [(jnp.asarray(np.asarray(w), jnp.bfloat16),
                 jnp.asarray(np.asarray(b), jnp.float32)) for (w, b) in raw["fnn"]]
    p["final"] = (jnp.asarray(np.asarray(raw["final"][0]), jnp.bfloat16),
                  jnp.asarray(np.asarray(raw["final"][1]), jnp.float32))
    return p


# --------------------------------------------------------------------------- #
if __name__ == "__main__":
    cfg = dict(
        nb_cnn2d_filt=8,
        f_pool_size=[2, 2],
        t_pool_size=[1, 1],
        rnn_size=32,
        nb_rnn_layers=2,
        self_attn=True,
        nb_heads=4,
        nb_fnn_layers=1,
        fnn_size=32,
        dropout_rate=0.05,       # identity at inference
        unique_classes=4,
        only_dist=False,
        permutation_2=False,
        permutation_3=False,
    )
    B, Cmic, T, MEL = 2, 4, 16, 16
    in_feat_shape = (B, Cmic, T, MEL)
    out_dim = 12                 # out_shape[-1]

    key = jax.random.PRNGKey(0)
    kx, kp = jax.random.split(key)
    x = jax.random.normal(kx, in_feat_shape, jnp.float32)
    raw = init_raw_params(kp, in_feat_shape, out_dim, cfg)
    params = prepare_params(raw, cfg, in_feat_shape)

    fwd = jax.jit(lambda xx: crnn_forward(xx, params))
    out = jax.block_until_ready(fwd(x))

    assert out.shape == (B, T, out_dim), out.shape
    assert bool(jnp.all(jnp.isfinite(out)))
    print("KERNEL_OK")
</pallas_src>

<mosaic_0001>
module attributes {stable_mosaic.version = 11 : i64} {
  func.func @crnn_kernel(%arg0: memref<36x64xf32, #tpu.memory_space<vmem>>, %arg1: memref<3x64x128xbf16, #tpu.memory_space<vmem>>, %arg2: memref<1x128xf32, #tpu.memory_space<vmem>>, %arg3: memref<1x128xf32, #tpu.memory_space<vmem>>, %arg4: memref<3x64x64xbf16, #tpu.memory_space<vmem>>, %arg5: memref<1x64xf32, #tpu.memory_space<vmem>>, %arg6: memref<1x64xf32, #tpu.memory_space<vmem>>, %arg7: memref<32x192xbf16, #tpu.memory_space<vmem>>, %arg8: memref<1x192xf32, #tpu.memory_space<vmem>>, %arg9: memref<64x192xbf16, #tpu.memory_space<vmem>>, %arg10: memref<1x64xf32, #tpu.memory_space<vmem>>, %arg11: memref<64x192xbf16, #tpu.memory_space<vmem>>, %arg12: memref<1x192xf32, #tpu.memory_space<vmem>>, %arg13: memref<64x192xbf16, #tpu.memory_space<vmem>>, %arg14: memref<1x64xf32, #tpu.memory_space<vmem>>, %arg15: memref<32x96xbf16, #tpu.memory_space<vmem>>, %arg16: memref<1x96xf32, #tpu.memory_space<vmem>>, %arg17: memref<32x32xf32, #tpu.memory_space<vmem>>, %arg18: memref<32x32xbf16, #tpu.memory_space<vmem>>, %arg19: memref<1x32xf32, #tpu.memory_space<vmem>>, %arg20: memref<32x32xbf16, #tpu.memory_space<vmem>>, %arg21: memref<1x32xf32, #tpu.memory_space<vmem>>, %arg22: memref<32x12xbf16, #tpu.memory_space<vmem>>, %arg23: memref<1x12xf32, #tpu.memory_space<vmem>>, %arg24: memref<32x12xf32, #tpu.memory_space<vmem>>, %arg25: memref<36x64xf32, #tpu.memory_space<vmem>>, %arg26: memref<32x96xf32, #tpu.memory_space<vmem>>, %arg27: memref<32x96xf32, #tpu.memory_space<vmem>>, %arg28: memref<32x32xf32, #tpu.memory_space<vmem>>, %arg29: memref<32x32xf32, #tpu.memory_space<vmem>>) attributes {dimension_semantics = [], scalar_prefetch = 0 : i64, scratch_operands = 5 : i64, tpu.core_type = #tpu.core_type<tc>} {
    %c2 = arith.constant 2 : index
    %c0 = arith.constant 0 : index
    %0 = vector.load %arg0[%c2, %c0] : memref<36x64xf32, #tpu.memory_space<vmem>>, vector<32x64xf32>
    %1 = arith.truncf %0 : vector<32x64xf32> to vector<32x64xbf16>
    %c1 = arith.constant 1 : index
    %c0_0 = arith.constant 0 : index
    %c0_1 = arith.constant 0 : index
    %2 = vector.load %arg1[%c1, %c0_0, %c0_1] : memref<3x64x128xbf16, #tpu.memory_space<vmem>>, vector<1x64x128xbf16>
    %3 = vector.shape_cast %2 : vector<1x64x128xbf16> to vector<64x128xbf16>
    %cst = arith.constant dense<0.000000e+00> : vector<32x128xf32>
    %4 = tpu.matmul %1, %3, %cst {dimension_numbers = #tpu.dot_dimension_numbers<[1], [0], [0], [1], [0, 0, 1, 1], [], []>} : vector<32x64xbf16>, vector<64x128xbf16>, vector<32x128xf32> -> vector<32x128xf32>
    %c0_2 = arith.constant 0 : index
    %c0_3 = arith.constant 0 : index
    %5 = vector.load %arg0[%c0_2, %c0_3] : memref<36x64xf32, #tpu.memory_space<vmem>>, vector<32x64xf32>
    %6 = arith.truncf %5 : vector<32x64xf32> to vector<32x64xbf16>
    %c0_4 = arith.constant 0 : index
    %c0_5 = arith.constant 0 : index
    %c0_6 = arith.constant 0 : index
    %7 = vector.load %arg1[%c0_4, %c0_5, %c0_6] : memref<3x64x128xbf16, #tpu.memory_space<vmem>>, vector<1x64x128xbf16>
    %8 = vector.shape_cast %7 : vector<1x64x128xbf16> to vector<64x128xbf16>
    %cst_7 = arith.constant dense<0.000000e+00> : vector<32x128xf32>
    %9 = tpu.matmul %6, %8, %cst_7 {dimension_numbers = #tpu.dot_dimension_numbers<[1], [0], [0], [1], [0, 0, 1, 1], [], []>} : vector<32x64xbf16>, vector<64x128xbf16>, vector<32x128xf32> -> vector<32x128xf32>
    %10 = arith.addf %4, %9 : vector<32x128xf32>
    %c4 = arith.constant 4 : index
    %c0_8 = arith.constant 0 : index
    %11 = vector.load %arg0[%c4, %c0_8] : memref<36x64xf32, #tpu.memory_space<vmem>>, vector<32x64xf32>
    %12 = arith.truncf %11 : vector<32x64xf32> to vector<32x64xbf16>
    %c2_9 = arith.constant 2 : index
    %c0_10 = arith.constant 0 : index
    %c0_11 = arith.constant 0 : index
    %13 = vector.load %arg1[%c2_9, %c0_10, %c0_11] : memref<3x64x128xbf16, #tpu.memory_space<vmem>>, vector<1x64x128xbf16>
    %14 = vector.shape_cast %13 : vector<1x64x128xbf16> to vector<64x128xbf16>
    %cst_12 = arith.constant dense<0.000000e+00> : vector<32x128xf32>
    %15 = tpu.matmul %12, %14, %cst_12 {dimension_numbers = #tpu.dot_dimension_numbers<[1], [0], [0], [1], [0, 0, 1, 1], [], []>} : vector<32x64xbf16>, vector<64x128xbf16>, vector<32x128xf32> -> vector<32x128xf32>
    %16 = arith.addf %10, %15 : vector<32x128xf32>
    %c0_13 = arith.constant 0 : index
    %c0_14 = arith.constant 0 : index
    %17 = vector.load %arg2[%c0_13, %c0_14] : memref<1x128xf32, #tpu.memory_space<vmem>>, vector<1x128xf32>
    %18 = vector.broadcast %17 : vector<1x128xf32> to vector<32x128xf32>
    %19 = arith.mulf %16, %18 : vector<32x128xf32>
    %c0_15 = arith.constant 0 : index
    %c0_16 = arith.constant 0 : index
    %20 = vector.load %arg3[%c0_15, %c0_16] : memref<1x128xf32, #tpu.memory_space<vmem>>, vector<1x128xf32>
    %21 = vector.broadcast %20 : vector<1x128xf32> to vector<32x128xf32>
    %22 = arith.addf %19, %21 : vector<32x128xf32>
    %cst_17 = arith.constant 0.000000e+00 : f32
    %23 = vector.broadcast %cst_17 : f32 to vector<32x128xf32>
    %24 = arith.maximumf %22, %23 : vector<32x128xf32>
    %25 = vector.extract_strided_slice %24 {offsets = [0, 0], sizes = [32, 64], strides = [1, 1]} : vector<32x128xf32> to vector<32x64xf32>
    %26 = vector.extract_strided_slice %24 {offsets = [0, 64], sizes = [32, 64], strides = [1, 1]} : vector<32x128xf32> to vector<32x64xf32>
    %27 = arith.maximumf %25, %26 : vector<32x64xf32>
    %cst_18 = arith.constant 0.000000e+00 : f32
    %28 = vector.broadcast %cst_18 : f32 to vector<2x64xf32>
    %c0_19 = arith.constant 0 : index
    %c0_20 = arith.constant 0 : index
    %29 = vector.load %arg25[%c0_19, %c0_20] : memref<36x64xf32, #tpu.memory_space<vmem>>, vector<2x64xf32>
    tpu.vector_store %arg25[%c0_19, %c0_20], %28 {strides = array<i32>} : memref<36x64xf32, #tpu.memory_space<vmem>>, vector<2x64xf32>,
    %cst_21 = arith.constant 0.000000e+00 : f32
    %30 = vector.broadcast %cst_21 : f32 to vector<2x64xf32>
    %c34 = arith.constant 34 : index
    %c0_22 = arith.constant 0 : index
    %31 = vector.load %arg25[%c34, %c0_22] : memref<36x64xf32, #tpu.memory_space<vmem>>, vector<2x64xf32>
    tpu.vector_store %arg25[%c34, %c0_22], %30 {strides = array<i32>} : memref<36x64xf32, #tpu.memory_space<vmem>>, vector<2x64xf32>,
    %c2_23 = arith.constant 2 : index
    %c0_24 = arith.constant 0 : index
    %32 = vector.load %arg25[%c2_23, %c0_24] : memref<36x64xf32, #tpu.memory_space<vmem>>, vector<32x64xf32>
    tpu.vector_store %arg25[%c2_23, %c0_24], %27 {strides = array<i32>} : memref<36x64xf32, #tpu.memory_space<vmem>>, vector<32x64xf32>,
    %33 = arith.truncf %27 : vector<32x64xf32> to vector<32x64xbf16>
    %c1_25 = arith.constant 1 : index
    %c0_26 = arith.constant 0 : index
    %c0_27 = arith.constant 0 : index
    %34 = vector.load %arg4[%c1_25, %c0_26, %c0_27] : memref<3x64x64xbf16, #tpu.memory_space<vmem>>, vector<1x64x64xbf16>
    %35 = vector.shape_cast %34 : vector<1x64x64xbf16> to vector<64x64xbf16>
    %cst_28 = arith.constant dense<0.000000e+00> : vector<32x64xf32>
    %36 = tpu.matmul %33, %35, %cst_28 {dimension_numbers = #tpu.dot_dimension_numbers<[1], [0], [0], [1], [0, 0, 1, 1], [], []>} : vector<32x64xbf16>, vector<64x64xbf16>, vector<32x64xf32> -> vector<32x64xf32>
    %c0_29 = arith.constant 0 : index
    %c0_30 = arith.constant 0 : index
    %37 = vector.load %arg25[%c0_29, %c0_30] : memref<36x64xf32, #tpu.memory_space<vmem>>, vector<32x64xf32>
    %38 = arith.truncf %37 : vector<32x64xf32> to vector<32x64xbf16>
    %c0_31 = arith.constant 0 : index
    %c0_32 = arith.constant 0 : index
    %c0_33 = arith.constant 0 : index
    %39 = vector.load %arg4[%c0_31, %c0_32, %c0_33] : memref<3x64x64xbf16, #tpu.memory_space<vmem>>, vector<1x64x64xbf16>
    %40 = vector.shape_cast %39 : vector<1x64x64xbf16> to vector<64x64xbf16>
    %cst_34 = arith.constant dense<0.000000e+00> : vector<32x64xf32>
    %41 = tpu.matmul %38, %40, %cst_34 {dimension_numbers = #tpu.dot_dimension_numbers<[1], [0], [0], [1], [0, 0, 1, 1], [], []>} : vector<32x64xbf16>, vector<64x64xbf16>, vector<32x64xf32> -> vector<32x64xf32>
    %42 = arith.addf %36, %41 : vector<32x64xf32>
    %c4_35 = arith.constant 4 : index
    %c0_36 = arith.constant 0 : index
    %43 = vector.load %arg25[%c4_35, %c0_36] : memref<36x64xf32, #tpu.memory_space<vmem>>, vector<32x64xf32>
    %44 = arith.truncf %43 : vector<32x64xf32> to vector<32x64xbf16>
    %c2_37 = arith.constant 2 : index
    %c0_38 = arith.constant 0 : index
    %c0_39 = arith.constant 0 : index
    %45 = vector.load %arg4[%c2_37, %c0_38, %c0_39] : memref<3x64x64xbf16, #tpu.memory_space<vmem>>, vector<1x64x64xbf16>
    %46 = vector.shape_cast %45 : vector<1x64x64xbf16> to vector<64x64xbf16>
    %cst_40 = arith.constant dense<0.000000e+00> : vector<32x64xf32>
    %47 = tpu.matmul %44, %46, %cst_40 {dimension_numbers = #tpu.dot_dimension_numbers<[1], [0], [0], [1], [0, 0, 1, 1], [], []>} : vector<32x64xbf16>, vector<64x64xbf16>, vector<32x64xf32> -> vector<32x64xf32>
    %48 = arith.addf %42, %47 : vector<32x64xf32>
    %c0_41 = arith.constant 0 : index
    %c0_42 = arith.constant 0 : index
    %49 = vector.load %arg5[%c0_41, %c0_42] : memref<1x64xf32, #tpu.memory_space<vmem>>, vector<1x64xf32>
    %50 = vector.broadcast %49 : vector<1x64xf32> to vector<32x64xf32>
    %51 = arith.mulf %48, %50 : vector<32x64xf32>
    %c0_43 = arith.constant 0 : index
    %c0_44 = arith.constant 0 : index
    %52 = vector.load %arg6[%c0_43, %c0_44] : memref<1x64xf32, #tpu.memory_space<vmem>>, vector<1x64xf32>
    %53 = vector.broadcast %52 : vector<1x64xf32> to vector<32x64xf32>
    %54 = arith.addf %51, %53 : vector<32x64xf32>
    %cst_45 = arith.constant 0.000000e+00 : f32
    %55 = vector.broadcast %cst_45 : f32 to vector<32x64xf32>
    %56 = arith.maximumf %54, %55 : vector<32x64xf32>
    %57 = vector.extract_strided_slice %56 {offsets = [0, 0], sizes = [32, 32], strides = [1, 1]} : vector<32x64xf32> to vector<32x32xf32>
    %58 = vector.extract_strided_slice %56 {offsets = [0, 32], sizes = [32, 32], strides = [1, 1]} : vector<32x64xf32> to vector<32x32xf32>
    %59 = arith.maximumf %57, %58 : vector<32x32xf32>
    %60 = arith.truncf %59 : vector<32x32xf32> to vector<32x32xbf16>
    %c0_46 = arith.constant 0 : index
    %c0_47 = arith.constant 0 : index
    %61 = vector.load %arg7[%c0_46, %c0_47] : memref<32x192xbf16, #tpu.memory_space<vmem>>, vector<32x192xbf16>
    %cst_48 = arith.constant dense<0.000000e+00> : vector<32x192xf32>
    %62 = tpu.matmul %60, %61, %cst_48 {dimension_numbers = #tpu.dot_dimension_numbers<[1], [0], [0], [1], [0, 0, 1, 1], [], []>} : vector<32x32xbf16>, vector<32x192xbf16>, vector<32x192xf32> -> vector<32x192xf32>
    %c0_49 = arith.constant 0 : index
    %c0_50 = arith.constant 0 : index
    %63 = vector.load %arg8[%c0_49, %c0_50] : memref<1x192xf32, #tpu.memory_space<vmem>>, vector<1x192xf32>
    %64 = vector.broadcast %63 : vector<1x192xf32> to vector<32x192xf32>
    %65 = arith.addf %62, %64 : vector<32x192xf32>
    %66 = vector.extract_strided_slice %65 {offsets = [0, 0], sizes = [32, 96], strides = [1, 1]} : vector<32x192xf32> to vector<32x96xf32>
    %c0_51 = arith.constant 0 : index
    %c0_52 = arith.constant 0 : index
    %67 = vector.load %arg26[%c0_51, %c0_52] : memref<32x96xf32, #tpu.memory_space<vmem>>, vector<32x96xf32>
    tpu.vector_store %arg26[%c0_51, %c0_52], %66 {strides = array<i32>} : memref<32x96xf32, #tpu.memory_space<vmem>>, vector<32x96xf32>,
    %68 = vector.extract_strided_slice %65 {offsets = [0, 96], sizes = [32, 96], strides = [1, 1]} : vector<32x192xf32> to vector<32x96xf32>
    %c0_53 = arith.constant 0 : index
    %c0_54 = arith.constant 0 : index
    %69 = vector.load %arg27[%c0_53, %c0_54] : memref<32x96xf32, #tpu.memory_space<vmem>>, vector<32x96xf32>
    tpu.vector_store %arg27[%c0_53, %c0_54], %68 {strides = array<i32>} : memref<32x96xf32, #tpu.memory_space<vmem>>, vector<32x96xf32>,
    %c0_55 = arith.constant 0 : index
    %c0_56 = arith.constant 0 : index
    %70 = vector.load %arg9[%c0_55, %c0_56] : memref<64x192xbf16, #tpu.memory_space<vmem>>, vector<64x192xbf16>
    %c0_57 = arith.constant 0 : index
    %c0_58 = arith.constant 0 : index
    %71 = vector.load %arg10[%c0_57, %c0_58] : memref<1x64xf32, #tpu.memory_space<vmem>>, vector<1x64xf32>
    %72 = vector.extract_strided_slice %71 {offsets = [0, 0], sizes = [1, 32], strides = [1, 1]} : vector<1x64xf32> to vector<1x32xf32>
    %73 = vector.extract_strided_slice %71 {offsets = [0, 32], sizes = [1, 32], strides = [1, 1]} : vector<1x64xf32> to vector<1x32xf32>
    %cst_59 = arith.constant 0.000000e+00 : f32
    %74 = vector.broadcast %cst_59 : f32 to vector<2x32xf32>
    %cst_60 = arith.constant 0.000000e+00 : f32
    %75 = vector.broadcast %cst_60 : f32 to vector<2x32xf32>
    %c0_61 = arith.constant 0 : index
    %c0_62 = arith.constant 0 : index
    %76 = vector.load %arg26[%c0_61, %c0_62] : memref<32x96xf32, #tpu.memory_space<vmem>>, vector<2x96xf32>
    %c30 = arith.constant 30 : index
    %c0_63 = arith.constant 0 : index
    %77 = vector.load %arg27[%c30, %c0_63] : memref<32x96xf32, #tpu.memory_space<vmem>>, vector<2x96xf32>
    %78 = tpu.concatenate %74, %75 in 1 : vector<2x32xf32>, vector<2x32xf32> -> vector<2x64xf32>
    %79 = arith.truncf %78 : vector<2x64xf32> to vector<2x64xbf16>
    %cst_64 = arith.constant dense<0.000000e+00> : vector<2x192xf32>
    %80 = tpu.matmul %79, %70, %cst_64 {dimension_numbers = #tpu.dot_dimension_numbers<[1], [0], [0], [1], [0, 0, 1, 1], [], []>} : vector<2x64xbf16>, vector<64x192xbf16>, vector<2x192xf32> -> vector<2x192xf32>
    %81 = vector.extract_strided_slice %76 {offsets = [0, 0], sizes = [2, 32], strides = [1, 1]} : vector<2x96xf32> to vector<2x32xf32>
    %82 = vector.extract_strided_slice %80 {offsets = [0, 0], sizes = [2, 32], strides = [1, 1]} : vector<2x192xf32> to vector<2x32xf32>
    %83 = arith.addf %81, %82 : vector<2x32xf32>
    %84 = arith.negf %83 : vector<2x32xf32>
    %85 = math.exp %84 : vector<2x32xf32>
    %cst_65 = arith.constant 1.000000e+00 : f32
    %86 = vector.broadcast %cst_65 : f32 to vector<2x32xf32>
    %87 = arith.addf %86, %85 : vector<2x32xf32>
    %88 = arith.divf %86, %87 : vector<2x32xf32>
    %89 = vector.extract_strided_slice %76 {offsets = [0, 32], sizes = [2, 32], strides = [1, 1]} : vector<2x96xf32> to vector<2x32xf32>
    %90 = vector.extract_strided_slice %80 {offsets = [0, 32], sizes = [2, 32], strides = [1, 1]} : vector<2x192xf32> to vector<2x32xf32>
    %91 = arith.addf %89, %90 : vector<2x32xf32>
    %92 = arith.negf %91 : vector<2x32xf32>
    %93 = math.exp %92 : vector<2x32xf32>
    %cst_66 = arith.constant 1.000000e+00 : f32
    %94 = vector.broadcast %cst_66 : f32 to vector<2x32xf32>
    %95 = arith.addf %94, %93 : vector<2x32xf32>
    %96 = arith.divf %94, %95 : vector<2x32xf32>
    %97 = vector.extract_strided_slice %76 {offsets = [0, 64], sizes = [2, 32], strides = [1, 1]} : vector<2x96xf32> to vector<2x32xf32>
    %98 = vector.extract_strided_slice %80 {offsets = [0, 64], sizes = [2, 32], strides = [1, 1]} : vector<2x192xf32> to vector<2x32xf32>
    %99 = vector.broadcast %72 : vector<1x32xf32> to vector<2x32xf32>
    %100 = arith.addf %98, %99 : vector<2x32xf32>
    %101 = arith.mulf %88, %100 : vector<2x32xf32>
    %102 = arith.addf %97, %101 : vector<2x32xf32>
    %103 = math.tanh %102 : vector<2x32xf32>
    %cst_67 = arith.constant 1.000000e+00 : f32
    %104 = vector.broadcast %cst_67 : f32 to vector<2x32xf32>
    %105 = arith.subf %104, %96 : vector<2x32xf32>
    %106 = arith.mulf %105, %103 : vector<2x32xf32>
    %107 = arith.mulf %96, %74 : vector<2x32xf32>
    %108 = arith.addf %106, %107 : vector<2x32xf32>
    %109 = vector.extract_strided_slice %77 {offsets = [0, 0], sizes = [2, 32], strides = [1, 1]} : vector<2x96xf32> to vector<2x32xf32>
    %110 = vector.extract_strided_slice %80 {offsets = [0, 96], sizes = [2, 32], strides = [1, 1]} : vector<2x192xf32> to vector<2x32xf32>
    %111 = arith.addf %109, %110 : vector<2x32xf32>
    %112 = arith.negf %111 : vector<2x32xf32>
    %113 = math.exp %112 : vector<2x32xf32>
    %cst_68 = arith.constant 1.000000e+00 : f32
    %114 = vector.broadcast %cst_68 : f32 to vector<2x32xf32>
    %115 = arith.addf %114, %113 : vector<2x32xf32>
    %116 = arith.divf %114, %115 : vector<2x32xf32>
    %117 = vector.extract_strided_slice %77 {offsets = [0, 32], sizes = [2, 32], strides = [1, 1]} : vector<2x96xf32> to vector<2x32xf32>
    %118 = vector.extract_strided_slice %80 {offsets = [0, 128], sizes = [2, 32], strides = [1, 1]} : vector<2x192xf32> to vector<2x32xf32>
    %119 = arith.addf %117, %118 : vector<2x32xf32>
    %120 = arith.negf %119 : vector<2x32xf32>
    %121 = math.exp %120 : vector<2x32xf32>
    %cst_69 = arith.constant 1.000000e+00 : f32
    %122 = vector.broadcast %cst_69 : f32 to vector<2x32xf32>
    %123 = arith.addf %122, %121 : vector<2x32xf32>
    %124 = arith.divf %122, %123 : vector<2x32xf32>
    %125 = vector.extract_strided_slice %77 {offsets = [0, 64], sizes = [2, 32], strides = [1, 1]} : vector<2x96xf32> to vector<2x32xf32>
    %126 = vector.extract_strided_slice %80 {offsets = [0, 160], sizes = [2, 32], strides = [1, 1]} : vector<2x192xf32> to vector<2x32xf32>
    %127 = vector.broadcast %73 : vector<1x32xf32> to vector<2x32xf32>
    %128 = arith.addf %126, %127 : vector<2x32xf32>
    %129 = arith.mulf %116, %128 : vector<2x32xf32>
    %130 = arith.addf %125, %129 : vector<2x32xf32>
    %131 = math.tanh %130 : vector<2x32xf32>
    %cst_70 = arith.constant 1.000000e+00 : f32
    %132 = vector.broadcast %cst_70 : f32 to vector<2x32xf32>
    %133 = arith.subf %132, %124 : vector<2x32xf32>
    %134 = arith.mulf %133, %131 : vector<2x32xf32>
    %135 = arith.mulf %124, %75 : vector<2x32xf32>
    %136 = arith.addf %134, %135 : vector<2x32xf32>
    %c0_71 = arith.constant 0 : index
    %c0_72 = arith.constant 0 : index
    %137 = vector.load %arg28[%c0_71, %c0_72] : memref<32x32xf32, #tpu.memory_space<vmem>>, vector<2x32xf32>
    tpu.vector_store %arg28[%c0_71, %c0_72], %108 {strides = array<i32>} : memref<32x32xf32, #tpu.memory_space<vmem>>, vector<2x32xf32>,
    %c30_73 = arith.constant 30 : index
    %c0_74 = arith.constant 0 : index
    %138 = vector.load %arg29[%c30_73, %c0_74] : memref<32x32xf32, #tpu.memory_space<vmem>>, vector<2x32xf32>
    tpu.vector_store %arg29[%c30_73, %c0_74], %136 {strides = array<i32>} : memref<32x32xf32, #tpu.memory_space<vmem>>, vector<2x32xf32>,
    %c2_75 = arith.constant 2 : index
    %c0_76 = arith.constant 0 : index
    %139 = vector.load %arg26[%c2_75, %c0_76] : memref<32x96xf32, #tpu.memory_space<vmem>>, vector<2x96xf32>
    %c28 = arith.constant 28 : index
    %c0_77 = arith.constant 0 : index
    %140 = vector.load %arg27[%c28, %c0_77] : memref<32x96xf32, #tpu.memory_space<vmem>>, vector<2x96xf32>
    %141 = tpu.concatenate %108, %136 in 1 : vector<2x32xf32>, vector<2x32xf32> -> vector<2x64xf32>
    %142 = arith.truncf %141 : vector<2x64xf32> to vector<2x64xbf16>
    %cst_78 = arith.constant dense<0.000000e+00> : vector<2x192xf32>
    %143 = tpu.matmul %142, %70, %cst_78 {dimension_numbers = #tpu.dot_dimension_numbers<[1], [0], [0], [1], [0, 0, 1, 1], [], []>} : vector<2x64xbf16>, vector<64x192xbf16>, vector<2x192xf32> -> vector<2x192xf32>
    %144 = vector.extract_strided_slice %139 {offsets = [0, 0], sizes = [2, 32], strides = [1, 1]} : vector<2x96xf32> to vector<2x32xf32>
    %145 = vector.extract_strided_slice %143 {offsets = [0, 0], sizes = [2, 32], strides = [1, 1]} : vector<2x192xf32> to vector<2x32xf32>
    %146 = arith.addf %144, %145 : vector<2x32xf32>
    %147 = arith.negf %146 : vector<2x32xf32>
    %148 = math.exp %147 : vector<2x32xf32>
    %cst_79 = arith.constant 1.000000e+00 : f32
    %149 = vector.broadcast %cst_79 : f32 to vector<2x32xf32>
    %150 = arith.addf %149, %148 : vector<2x32xf32>
    %151 = arith.divf %149, %150 : vector<2x32xf32>
    %152 = vector.extract_strided_slice %139 {offsets = [0, 32], sizes = [2, 32], strides = [1, 1]} : vector<2x96xf32> to vector<2x32xf32>
    %153 = vector.extract_strided_slice %143 {offsets = [0, 32], sizes = [2, 32], strides = [1, 1]} : vector<2x192xf32> to vector<2x32xf32>
    %154 = arith.addf %152, %153 : vector<2x32xf32>
    %155 = arith.negf %154 : vector<2x32xf32>
    %156 = math.exp %155 : vector<2x32xf32>
    %cst_80 = arith.constant 1.000000e+00 : f32
    %157 = vector.broadcast %cst_80 : f32 to vector<2x32xf32>
    %158 = arith.addf %157, %156 : vector<2x32xf32>
    %159 = arith.divf %157, %158 : vector<2x32xf32>
    %160 = vector.extract_strided_slice %139 {offsets = [0, 64], sizes = [2, 32], strides = [1, 1]} : vector<2x96xf32> to vector<2x32xf32>
    %161 = vector.extract_strided_slice %143 {offsets = [0, 64], sizes = [2, 32], strides = [1, 1]} : vector<2x192xf32> to vector<2x32xf32>
    %162 = vector.broadcast %72 : vector<1x32xf32> to vector<2x32xf32>
    %163 = arith.addf %161, %162 : vector<2x32xf32>
    %164 = arith.mulf %151, %163 : vector<2x32xf32>
    %165 = arith.addf %160, %164 : vector<2x32xf32>
    %166 = math.tanh %165 : vector<2x32xf32>
    %cst_81 = arith.constant 1.000000e+00 : f32
    %167 = vector.broadcast %cst_81 : f32 to vector<2x32xf32>
    %168 = arith.subf %167, %159 : vector<2x32xf32>
    %169 = arith.mulf %168, %166 : vector<2x32xf32>
    %170 = arith.mulf %159, %108 : vector<2x32xf32>
    %171 = arith.addf %169, %170 : vector<2x32xf32>
    %172 = vector.extract_strided_slice %140 {offsets = [0, 0], sizes = [2, 32], strides = [1, 1]} : vector<2x96xf32> to vector<2x32xf32>
    %173 = vector.extract_strided_slice %143 {offsets = [0, 96], sizes = [2, 32], strides = [1, 1]} : vector<2x192xf32> to vector<2x32xf32>
    %174 = arith.addf %172, %173 : vector<2x32xf32>
    %175 = arith.negf %174 : vector<2x32xf32>
    %176 = math.exp %175 : vector<2x32xf32>
    %cst_82 = arith.constant 1.000000e+00 : f32
    %177 = vector.broadcast %cst_82 : f32 to vector<2x32xf32>
    %178 = arith.addf %177, %176 : vector<2x32xf32>
    %179 = arith.divf %177, %178 : vector<2x32xf32>
    %180 = vector.extract_strided_slice %140 {offsets = [0, 32], sizes = [2, 32], strides = [1, 1]} : vector<2x96xf32> to vector<2x32xf32>
    %181 = vector.extract_strided_slice %143 {offsets = [0, 128], sizes = [2, 32], strides = [1, 1]} : vector<2x192xf32> to vector<2x32xf32>
    %182 = arith.addf %180, %181 : vector<2x32xf32>
    %183 = arith.negf %182 : vector<2x32xf32>
    %184 = math.exp %183 : vector<2x32xf32>
    %cst_83 = arith.constant 1.000000e+00 : f32
    %185 = vector.broadcast %cst_83 : f32 to vector<2x32xf32>
    %186 = arith.addf %185, %184 : vector<2x32xf32>
    %187 = arith.divf %185, %186 : vector<2x32xf32>
    %188 = vector.extract_strided_slice %140 {offsets = [0, 64], sizes = [2, 32], strides = [1, 1]} : vector<2x96xf32> to vector<2x32xf32>
    %189 = vector.extract_strided_slice %143 {offsets = [0, 160], sizes = [2, 32], strides = [1, 1]} : vector<2x192xf32> to vector<2x32xf32>
    %190 = vector.broadcast %73 : vector<1x32xf32> to vector<2x32xf32>
    %191 = arith.addf %189, %190 : vector<2x32xf32>
    %192 = arith.mulf %179, %191 : vector<2x32xf32>
    %193 = arith.addf %188, %192 : vector<2x32xf32>
    %194 = math.tanh %193 : vector<2x32xf32>
    %cst_84 = arith.constant 1.000000e+00 : f32
    %195 = vector.broadcast %cst_84 : f32 to vector<2x32xf32>
    %196 = arith.subf %195, %187 : vector<2x32xf32>
    %197 = arith.mulf %196, %194 : vector<2x32xf32>
    %198 = arith.mulf %187, %136 : vector<2x32xf32>
    %199 = arith.addf %197, %198 : vector<2x32xf32>
    %c2_85 = arith.constant 2 : index
    %c0_86 = arith.constant 0 : index
    %200 = vector.load %arg28[%c2_85, %c0_86] : memref<32x32xf32, #tpu.memory_space<vmem>>, vector<2x32xf32>
    tpu.vector_store %arg28[%c2_85, %c0_86], %171 {strides = array<i32>} : memref<32x32xf32, #tpu.memory_space<vmem>>, vector<2x32xf32>,
    %c28_87 = arith.constant 28 : index
    %c0_88 = arith.constant 0 : index
    %201 = vector.load %arg29[%c28_87, %c0_88] : memref<32x32xf32, #tpu.memory_space<vmem>>, vector<2x32xf32>
    tpu.vector_store %arg29[%c28_87, %c0_88], %199 {strides = array<i32>} : memref<32x32xf32, #tpu.memory_space<vmem>>, vector<2x32xf32>,
    %c4_89 = arith.constant 4 : index
    %c0_90 = arith.constant 0 : index
    %202 = vector.load %arg26[%c4_89, %c0_90] : memref<32x96xf32, #tpu.memory_space<vmem>>, vector<2x96xf32>
    %c26 = arith.constant 26 : index
    %c0_91 = arith.constant 0 : index
    %203 = vector.load %arg27[%c26, %c0_91] : memref<32x96xf32, #tpu.memory_space<vmem>>, vector<2x96xf32>
    %204 = tpu.concatenate %171, %199 in 1 : vector<2x32xf32>, vector<2x32xf32> -> vector<2x64xf32>
    %205 = arith.truncf %204 : vector<2x64xf32> to vector<2x64xbf16>
    %cst_92 = arith.constant dense<0.000000e+00> : vector<2x192xf32>
    %206 = tpu.matmul %205, %70, %cst_92 {dimension_numbers = #tpu.dot_dimension_numbers<[1], [0], [0], [1], [0, 0, 1, 1], [], []>} : vector<2x64xbf16>, vector<64x192xbf16>, vector<2x192xf32> -> vector<2x192xf32>
    %207 = vector.extract_strided_slice %202 {offsets = [0, 0], sizes = [2, 32], strides = [1, 1]} : vector<2x96xf32> to vector<2x32xf32>
    %208 = vector.extract_strided_slice %206 {offsets = [0, 0], sizes = [2, 32], strides = [1, 1]} : vector<2x192xf32> to vector<2x32xf32>
    %209 = arith.addf %207, %208 : vector<2x32xf32>
    %210 = arith.negf %209 : vector<2x32xf32>
    %211 = math.exp %210 : vector<2x32xf32>
    %cst_93 = arith.constant 1.000000e+00 : f32
    %212 = vector.broadcast %cst_93 : f32 to vector<2x32xf32>
    %213 = arith.addf %212, %211 : vector<2x32xf32>
    %214 = arith.divf %212, %213 : vector<2x32xf32>
    %215 = vector.extract_strided_slice %202 {offsets = [0, 32], sizes = [2, 32], strides = [1, 1]} : vector<2x96xf32> to vector<2x32xf32>
    %216 = vector.extract_strided_slice %206 {offsets = [0, 32], sizes = [2, 32], strides = [1, 1]} : vector<2x192xf32> to vector<2x32xf32>
    %217 = arith.addf %215, %216 : vector<2x32xf32>
    %218 = arith.negf %217 : vector<2x32xf32>
    %219 = math.exp %218 : vector<2x32xf32>
    %cst_94 = arith.constant 1.000000e+00 : f32
    %220 = vector.broadcast %cst_94 : f32 to vector<2x32xf32>
    %221 = arith.addf %220, %219 : vector<2x32xf32>
    %222 = arith.divf %220, %221 : vector<2x32xf32>
    %223 = vector.extract_strided_slice %202 {offsets = [0, 64], sizes = [2, 32], strides = [1, 1]} : vector<2x96xf32> to vector<2x32xf32>
    %224 = vector.extract_strided_slice %206 {offsets = [0, 64], sizes = [2, 32], strides = [1, 1]} : vector<2x192xf32> to vector<2x32xf32>
    %225 = vector.broadcast %72 : vector<1x32xf32> to vector<2x32xf32>
    %226 = arith.addf %224, %225 : vector<2x32xf32>
    %227 = arith.mulf %214, %226 : vector<2x32xf32>
    %228 = arith.addf %223, %227 : vector<2x32xf32>
    %229 = math.tanh %228 : vector<2x32xf32>
    %cst_95 = arith.constant 1.000000e+00 : f32
    %230 = vector.broadcast %cst_95 : f32 to vector<2x32xf32>
    %231 = arith.subf %230, %222 : vector<2x32xf32>
    %232 = arith.mulf %231, %229 : vector<2x32xf32>
    %233 = arith.mulf %222, %171 : vector<2x32xf32>
    %234 = arith.addf %232, %233 : vector<2x32xf32>
    %235 = vector.extract_strided_slice %203 {offsets = [0, 0], sizes = [2, 32], strides = [1, 1]} : vector<2x96xf32> to vector<2x32xf32>
    %236 = vector.extract_strided_slice %206 {offsets = [0, 96], sizes = [2, 32], strides = [1, 1]} : vector<2x192xf32> to vector<2x32xf32>
    %237 = arith.addf %235, %236 : vector<2x32xf32>
    %238 = arith.negf %237 : vector<2x32xf32>
    %239 = math.exp %238 : vector<2x32xf32>
    %cst_96 = arith.constant 1.000000e+00 : f32
    %240 = vector.broadcast %cst_96 : f32 to vector<2x32xf32>
    %241 = arith.addf %240, %239 : vector<2x32xf32>
    %242 = arith.divf %240, %241 : vector<2x32xf32>
    %243 = vector.extract_strided_slice %203 {offsets = [0, 32], sizes = [2, 32], strides = [1, 1]} : vector<2x96xf32> to vector<2x32xf32>
    %244 = vector.extract_strided_slice %206 {offsets = [0, 128], sizes = [2, 32], strides = [1, 1]} : vector<2x192xf32> to vector<2x32xf32>
    %245 = arith.addf %243, %244 : vector<2x32xf32>
    %246 = arith.negf %245 : vector<2x32xf32>
    %247 = math.exp %246 : vector<2x32xf32>
    %cst_97 = arith.constant 1.000000e+00 : f32
    %248 = vector.broadcast %cst_97 : f32 to vector<2x32xf32>
    %249 = arith.addf %248, %247 : vector<2x32xf32>
    %250 = arith.divf %248, %249 : vector<2x32xf32>
    %251 = vector.extract_strided_slice %203 {offsets = [0, 64], sizes = [2, 32], strides = [1, 1]} : vector<2x96xf32> to vector<2x32xf32>
    %252 = vector.extract_strided_slice %206 {offsets = [0, 160], sizes = [2, 32], strides = [1, 1]} : vector<2x192xf32> to vector<2x32xf32>
    %253 = vector.broadcast %73 : vector<1x32xf32> to vector<2x32xf32>
    %254 = arith.addf %252, %253 : vector<2x32xf32>
    %255 = arith.mulf %242, %254 : vector<2x32xf32>
    %256 = arith.addf %251, %255 : vector<2x32xf32>
    %257 = math.tanh %256 : vector<2x32xf32>
    %cst_98 = arith.constant 1.000000e+00 : f32
    %258 = vector.broadcast %cst_98 : f32 to vector<2x32xf32>
    %259 = arith.subf %258, %250 : vector<2x32xf32>
    %260 = arith.mulf %259, %257 : vector<2x32xf32>
    %261 = arith.mulf %250, %199 : vector<2x32xf32>
    %262 = arith.addf %260, %261 : vector<2x32xf32>
    %c4_99 = arith.constant 4 : index
    %c0_100 = arith.constant 0 : index
    %263 = vector.load %arg28[%c4_99, %c0_100] : memref<32x32xf32, #tpu.memory_space<vmem>>, vector<2x32xf32>
    tpu.vector_store %arg28[%c4_99, %c0_100], %234 {strides = array<i32>} : memref<32x32xf32, #tpu.memory_space<vmem>>, vector<2x32xf32>,
    %c26_101 = arith.constant 26 : index
    %c0_102 = arith.constant 0 : index
    %264 = vector.load %arg29[%c26_101, %c0_102] : memref<32x32xf32, #tpu.memory_space<vmem>>, vector<2x32xf32>
    tpu.vector_store %arg29[%c26_101, %c0_102], %262 {strides = array<i32>} : memref<32x32xf32, #tpu.memory_space<vmem>>, vector<2x32xf32>,
    %c6 = arith.constant 6 : index
    %c0_103 = arith.constant 0 : index
    %265 = vector.load %arg26[%c6, %c0_103] : memref<32x96xf32, #tpu.memory_space<vmem>>, vector<2x96xf32>
    %c24 = arith.constant 24 : index
    %c0_104 = arith.constant 0 : index
    %266 = vector.load %arg27[%c24, %c0_104] : memref<32x96xf32, #tpu.memory_space<vmem>>, vector<2x96xf32>
    %267 = tpu.concatenate %234, %262 in 1 : vector<2x32xf32>, vector<2x32xf32> -> vector<2x64xf32>
    %268 = arith.truncf %267 : vector<2x64xf32> to vector<2x64xbf16>
    %cst_105 = arith.constant dense<0.000000e+00> : vector<2x192xf32>
    %269 = tpu.matmul %268, %70, %cst_105 {dimension_numbers = #tpu.dot_dimension_numbers<[1], [0], [0], [1], [0, 0, 1, 1], [], []>} : vector<2x64xbf16>, vector<64x192xbf16>, vector<2x192xf32> -> vector<2x192xf32>
    %270 = vector.extract_strided_slice %265 {offsets = [0, 0], sizes = [2, 32], strides = [1, 1]} : vector<2x96xf32> to vector<2x32xf32>
    %271 = vector.extract_strided_slice %269 {offsets = [0, 0], sizes = [2, 32], strides = [1, 1]} : vector<2x192xf32> to vector<2x32xf32>
    %272 = arith.addf %270, %271 : vector<2x32xf32>
    %273 = arith.negf %272 : vector<2x32xf32>
    %274 = math.exp %273 : vector<2x32xf32>
    %cst_106 = arith.constant 1.000000e+00 : f32
    %275 = vector.broadcast %cst_106 : f32 to vector<2x32xf32>
    %276 = arith.addf %275, %274 : vector<2x32xf32>
    %277 = arith.divf %275, %276 : vector<2x32xf32>
    %278 = vector.extract_strided_slice %265 {offsets = [0, 32], sizes = [2, 32], strides = [1, 1]} : vector<2x96xf32> to vector<2x32xf32>
    %279 = vector.extract_strided_slice %269 {offsets = [0, 32], sizes = [2, 32], strides = [1, 1]} : vector<2x192xf32> to vector<2x32xf32>
    %280 = arith.addf %278, %279 : vector<2x32xf32>
    %281 = arith.negf %280 : vector<2x32xf32>
    %282 = math.exp %281 : vector<2x32xf32>
    %cst_107 = arith.constant 1.000000e+00 : f32
    %283 = vector.broadcast %cst_107 : f32 to vector<2x32xf32>
    %284 = arith.addf %283, %282 : vector<2x32xf32>
    %285 = arith.divf %283, %284 : vector<2x32xf32>
    %286 = vector.extract_strided_slice %265 {offsets = [0, 64], sizes = [2, 32], strides = [1, 1]} : vector<2x96xf32> to vector<2x32xf32>
    %287 = vector.extract_strided_slice %269 {offsets = [0, 64], sizes = [2, 32], strides = [1, 1]} : vector<2x192xf32> to vector<2x32xf32>
    %288 = vector.broadcast %72 : vector<1x32xf32> to vector<2x32xf32>
    %289 = arith.addf %287, %288 : vector<2x32xf32>
    %290 = arith.mulf %277, %289 : vector<2x32xf32>
    %291 = arith.addf %286, %290 : vector<2x32xf32>
    %292 = math.tanh %291 : vector<2x32xf32>
    %cst_108 = arith.constant 1.000000e+00 : f32
    %293 = vector.broadcast %cst_108 : f32 to vector<2x32xf32>
    %294 = arith.subf %293, %285 : vector<2x32xf32>
    %295 = arith.mulf %294, %292 : vector<2x32xf32>
    %296 = arith.mulf %285, %234 : vector<2x32xf32>
    %297 = arith.addf %295, %296 : vector<2x32xf32>
    %298 = vector.extract_strided_slice %266 {offsets = [0, 0], sizes = [2, 32], strides = [1, 1]} : vector<2x96xf32> to vector<2x32xf32>
    %299 = vector.extract_strided_slice %269 {offsets = [0, 96], sizes = [2, 32], strides = [1, 1]} : vector<2x192xf32> to vector<2x32xf32>
    %300 = arith.addf %298, %299 : vector<2x32xf32>
    %301 = arith.negf %300 : vector<2x32xf32>
    %302 = math.exp %301 : vector<2x32xf32>
    %cst_109 = arith.constant 1.000000e+00 : f32
    %303 = vector.broadcast %cst_109 : f32 to vector<2x32xf32>
    %304 = arith.addf %303, %302 : vector<2x32xf32>
    %305 = arith.divf %303, %304 : vector<2x32xf32>
    %306 = vector.extract_strided_slice %266 {offsets = [0, 32], sizes = [2, 32], strides = [1, 1]} : vector<2x96xf32> to vector<2x32xf32>
    %307 = vector.extract_strided_slice %269 {offsets = [0, 128], sizes = [2, 32], strides = [1, 1]} : vector<2x192xf32> to vector<2x32xf32>
    %308 = arith.addf %306, %307 : vector<2x32xf32>
    %309 = arith.negf %308 : vector<2x32xf32>
    %310 = math.exp %309 : vector<2x32xf32>
    %cst_110 = arith.constant 1.000000e+00 : f32
    %311 = vector.broadcast %cst_110 : f32 to vector<2x32xf32>
    %312 = arith.addf %311, %310 : vector<2x32xf32>
    %313 = arith.divf %311, %312 : vector<2x32xf32>
    %314 = vector.extract_strided_slice %266 {offsets = [0, 64], sizes = [2, 32], strides = [1, 1]} : vector<2x96xf32> to vector<2x32xf32>
    %315 = vector.extract_strided_slice %269 {offsets = [0, 160], sizes = [2, 32], strides = [1, 1]} : vector<2x192xf32> to vector<2x32xf32>
    %316 = vector.broadcast %73 : vector<1x32xf32> to vector<2x32xf32>
    %317 = arith.addf %315, %316 : vector<2x32xf32>
    %318 = arith.mulf %305, %317 : vector<2x32xf32>
    %319 = arith.addf %314, %318 : vector<2x32xf32>
    %320 = math.tanh %319 : vector<2x32xf32>
    %cst_111 = arith.constant 1.000000e+00 : f32
    %321 = vector.broadcast %cst_111 : f32 to vector<2x32xf32>
    %322 = arith.subf %321, %313 : vector<2x32xf32>
    %323 = arith.mulf %322, %320 : vector<2x32xf32>
    %324 = arith.mulf %313, %262 : vector<2x32xf32>
    %325 = arith.addf %323, %324 : vector<2x32xf32>
    %c6_112 = arith.constant 6 : index
    %c0_113 = arith.constant 0 : index
    %326 = vector.load %arg28[%c6_112, %c0_113] : memref<32x32xf32, #tpu.memory_space<vmem>>, vector<2x32xf32>
    tpu.vector_store %arg28[%c6_112, %c0_113], %297 {strides = array<i32>} : memref<32x32xf32, #tpu.memory_space<vmem>>, vector<2x32xf32>,
    %c24_114 = arith.constant 24 : index
    %c0_115 = arith.constant 0 : index
    %327 = vector.load %arg29[%c24_114, %c0_115] : memref<32x32xf32, #tpu.memory_space<vmem>>, vector<2x32xf32>
    tpu.vector_store %arg29[%c24_114, %c0_115], %325 {strides = array<i32>} : memref<32x32xf32, #tpu.memory_space<vmem>>, vector<2x32xf32>,
    %c8 = arith.constant 8 : index
    %c0_116 = arith.constant 0 : index
    %328 = vector.load %arg26[%c8, %c0_116] : memref<32x96xf32, #tpu.memory_space<vmem>>, vector<2x96xf32>
    %c22 = arith.constant 22 : index
    %c0_117 = arith.constant 0 : index
    %329 = vector.load %arg27[%c22, %c0_117] : memref<32x96xf32, #tpu.memory_space<vmem>>, vector<2x96xf32>
    %330 = tpu.concatenate %297, %325 in 1 : vector<2x32xf32>, vector<2x32xf32> -> vector<2x64xf32>
    %331 = arith.truncf %330 : vector<2x64xf32> to vector<2x64xbf16>
    %cst_118 = arith.constant dense<0.000000e+00> : vector<2x192xf32>
    %332 = tpu.matmul %331, %70, %cst_118 {dimension_numbers = #tpu.dot_dimension_numbers<[1], [0], [0], [1], [0, 0, 1, 1], [], []>} : vector<2x64xbf16>, vector<64x192xbf16>, vector<2x192xf32> -> vector<2x192xf32>
    %333 = vector.extract_strided_slice %328 {offsets = [0, 0], sizes = [2, 32], strides = [1, 1]} : vector<2x96xf32> to vector<2x32xf32>
    %334 = vector.extract_strided_slice %332 {offsets = [0, 0], sizes = [2, 32], strides = [1, 1]} : vector<2x192xf32> to vector<2x32xf32>
    %335 = arith.addf %333, %334 : vector<2x32xf32>
    %336 = arith.negf %335 : vector<2x32xf32>
    %337 = math.exp %336 : vector<2x32xf32>
    %cst_119 = arith.constant 1.000000e+00 : f32
    %338 = vector.broadcast %cst_119 : f32 to vector<2x32xf32>
    %339 = arith.addf %338, %337 : vector<2x32xf32>
    %340 = arith.divf %338, %339 : vector<2x32xf32>
    %341 = vector.extract_strided_slice %328 {offsets = [0, 32], sizes = [2, 32], strides = [1, 1]} : vector<2x96xf32> to vector<2x32xf32>
    %342 = vector.extract_strided_slice %332 {offsets = [0, 32], sizes = [2, 32], strides = [1, 1]} : vector<2x192xf32> to vector<2x32xf32>
    %343 = arith.addf %341, %342 : vector<2x32xf32>
    %344 = arith.negf %343 : vector<2x32xf32>
    %345 = math.exp %344 : vector<2x32xf32>
    %cst_120 = arith.constant 1.000000e+00 : f32
    %346 = vector.broadcast %cst_120 : f32 to vector<2x32xf32>
    %347 = arith.addf %346, %345 : vector<2x32xf32>
    %348 = arith.divf %346, %347 : vector<2x32xf32>
    %349 = vector.extract_strided_slice %328 {offsets = [0, 64], sizes = [2, 32], strides = [1, 1]} : vector<2x96xf32> to vector<2x32xf32>
    %350 = vector.extract_strided_slice %332 {offsets = [0, 64], sizes = [2, 32], strides = [1, 1]} : vector<2x192xf32> to vector<2x32xf32>
    %351 = vector.broadcast %72 : vector<1x32xf32> to vector<2x32xf32>
    %352 = arith.addf %350, %351 : vector<2x32xf32>
    %353 = arith.mulf %340, %352 : vector<2x32xf32>
    %354 = arith.addf %349, %353 : vector<2x32xf32>
    %355 = math.tanh %354 : vector<2x32xf32>
    %cst_121 = arith.constant 1.000000e+00 : f32
    %356 = vector.broadcast %cst_121 : f32 to vector<2x32xf32>
    %357 = arith.subf %356, %348 : vector<2x32xf32>
    %358 = arith.mulf %357, %355 : vector<2x32xf32>
    %359 = arith.mulf %348, %297 : vector<2x32xf32>
    %360 = arith.addf %358, %359 : vector<2x32xf32>
    %361 = vector.extract_strided_slice %329 {offsets = [0, 0], sizes = [2, 32], strides = [1, 1]} : vector<2x96xf32> to vector<2x32xf32>
    %362 = vector.extract_strided_slice %332 {offsets = [0, 96], sizes = [2, 32], strides = [1, 1]} : vector<2x192xf32> to vector<2x32xf32>
    %363 = arith.addf %361, %362 : vector<2x32xf32>
    %364 = arith.negf %363 : vector<2x32xf32>
    %365 = math.exp %364 : vector<2x32xf32>
    %cst_122 = arith.constant 1.000000e+00 : f32
    %366 = vector.broadcast %cst_122 : f32 to vector<2x32xf32>
    %367 = arith.addf %366, %365 : vector<2x32xf32>
    %368 = arith.divf %366, %367 : vector<2x32xf32>
    %369 = vector.extract_strided_slice %329 {offsets = [0, 32], sizes = [2, 32], strides = [1, 1]} : vector<2x96xf32> to vector<2x32xf32>
    %370 = vector.extract_strided_slice %332 {offsets = [0, 128], sizes = [2, 32], strides = [1, 1]} : vector<2x192xf32> to vector<2x32xf32>
    %371 = arith.addf %369, %370 : vector<2x32xf32>
    %372 = arith.negf %371 : vector<2x32xf32>
    %373 = math.exp %372 : vector<2x32xf32>
    %cst_123 = arith.constant 1.000000e+00 : f32
    %374 = vector.broadcast %cst_123 : f32 to vector<2x32xf32>
    %375 = arith.addf %374, %373 : vector<2x32xf32>
    %376 = arith.divf %374, %375 : vector<2x32xf32>
    %377 = vector.extract_strided_slice %329 {offsets = [0, 64], sizes = [2, 32], strides = [1, 1]} : vector<2x96xf32> to vector<2x32xf32>
    %378 = vector.extract_strided_slice %332 {offsets = [0, 160], sizes = [2, 32], strides = [1, 1]} : vector<2x192xf32> to vector<2x32xf32>
    %379 = vector.broadcast %73 : vector<1x32xf32> to vector<2x32xf32>
    %380 = arith.addf %378, %379 : vector<2x32xf32>
    %381 = arith.mulf %368, %380 : vector<2x32xf32>
    %382 = arith.addf %377, %381 : vector<2x32xf32>
    %383 = math.tanh %382 : vector<2x32xf32>
    %cst_124 = arith.constant 1.000000e+00 : f32
    %384 = vector.broadcast %cst_124 : f32 to vector<2x32xf32>
    %385 = arith.subf %384, %376 : vector<2x32xf32>
    %386 = arith.mulf %385, %383 : vector<2x32xf32>
    %387 = arith.mulf %376, %325 : vector<2x32xf32>
    %388 = arith.addf %386, %387 : vector<2x32xf32>
    %c8_125 = arith.constant 8 : index
    %c0_126 = arith.constant 0 : index
    %389 = vector.load %arg28[%c8_125, %c0_126] : memref<32x32xf32, #tpu.memory_space<vmem>>, vector<2x32xf32>
    tpu.vector_store %arg28[%c8_125, %c0_126], %360 {strides = array<i32>} : memref<32x32xf32, #tpu.memory_space<vmem>>, vector<2x32xf32>,
    %c22_127 = arith.constant 22 : index
    %c0_128 = arith.constant 0 : index
    %390 = vector.load %arg29[%c22_127, %c0_128] : memref<32x32xf32, #tpu.memory_space<vmem>>, vector<2x32xf32>
    tpu.vector_store %arg29[%c22_127, %c0_128], %388 {strides = array<i32>} : memref<32x32xf32, #tpu.memory_space<vmem>>, vector<2x32xf32>,
    %c10 = arith.constant 10 : index
    %c0_129 = arith.constant 0 : index
    %391 = vector.load %arg26[%c10, %c0_129] : memref<32x96xf32, #tpu.memory_space<vmem>>, vector<2x96xf32>
    %c20 = arith.constant 20 : index
    %c0_130 = arith.constant 0 : index
    %392 = vector.load %arg27[%c20, %c0_130] : memref<32x96xf32, #tpu.memory_space<vmem>>, vector<2x96xf32>
    %393 = tpu.concatenate %360, %388 in 1 : vector<2x32xf32>, vector<2x32xf32> -> vector<2x64xf32>
    %394 = arith.truncf %393 : vector<2x64xf32> to vector<2x64xbf16>
    %cst_131 = arith.constant dense<0.000000e+00> : vector<2x192xf32>
    %395 = tpu.matmul %394, %70, %cst_131 {dimension_numbers = #tpu.dot_dimension_numbers<[1], [0], [0], [1], [0, 0, 1, 1], [], []>} : vector<2x64xbf16>, vector<64x192xbf16>, vector<2x192xf32> -> vector<2x192xf32>
    %396 = vector.extract_strided_slice %391 {offsets = [0, 0], sizes = [2, 32], strides = [1, 1]} : vector<2x96xf32> to vector<2x32xf32>
    %397 = vector.extract_strided_slice %395 {offsets = [0, 0], sizes = [2, 32], strides = [1, 1]} : vector<2x192xf32> to vector<2x32xf32>
    %398 = arith.addf %396, %397 : vector<2x32xf32>
    %399 = arith.negf %398 : vector<2x32xf32>
    %400 = math.exp %399 : vector<2x32xf32>
    %cst_132 = arith.constant 1.000000e+00 : f32
    %401 = vector.broadcast %cst_132 : f32 to vector<2x32xf32>
    %402 = arith.addf %401, %400 : vector<2x32xf32>
    %403 = arith.divf %401, %402 : vector<2x32xf32>
    %404 = vector.extract_strided_slice %391 {offsets = [0, 32], sizes = [2, 32], strides = [1, 1]} : vector<2x96xf32> to vector<2x32xf32>
    %405 = vector.extract_strided_slice %395 {offsets = [0, 32], sizes = [2, 32], strides = [1, 1]} : vector<2x192xf32> to vector<2x32xf32>
    %406 = arith.addf %404, %405 : vector<2x32xf32>
    %407 = arith.negf %406 : vector<2x32xf32>
    %408 = math.exp %407 : vector<2x32xf32>
    %cst_133 = arith.constant 1.000000e+00 : f32
    %409 = vector.broadcast %cst_133 : f32 to vector<2x32xf32>
    %410 = arith.addf %409, %408 : vector<2x32xf32>
    %411 = arith.divf %409, %410 : vector<2x32xf32>
    %412 = vector.extract_strided_slice %391 {offsets = [0, 64], sizes = [2, 32], strides = [1, 1]} : vector<2x96xf32> to vector<2x32xf32>
    %413 = vector.extract_strided_slice %395 {offsets = [0, 64], sizes = [2, 32], strides = [1, 1]} : vector<2x192xf32> to vector<2x32xf32>
    %414 = vector.broadcast %72 : vector<1x32xf32> to vector<2x32xf32>
    %415 = arith.addf %413, %414 : vector<2x32xf32>
    %416 = arith.mulf %403, %415 : vector<2x32xf32>
    %417 = arith.addf %412, %416 : vector<2x32xf32>
    %418 = math.tanh %417 : vector<2x32xf32>
    %cst_134 = arith.constant 1.000000e+00 : f32
    %419 = vector.broadcast %cst_134 : f32 to vector<2x32xf32>
    %420 = arith.subf %419, %411 : vector<2x32xf32>
    %421 = arith.mulf %420, %418 : vector<2x32xf32>
    %422 = arith.mulf %411, %360 : vector<2x32xf32>
    %423 = arith.addf %421, %422 : vector<2x32xf32>
    %424 = vector.extract_strided_slice %392 {offsets = [0, 0], sizes = [2, 32], strides = [1, 1]} : vector<2x96xf32> to vector<2x32xf32>
    %425 = vector.extract_strided_slice %395 {offsets = [0, 96], sizes = [2, 32], strides = [1, 1]} : vector<2x192xf32> to vector<2x32xf32>
    %426 = arith.addf %424, %425 : vector<2x32xf32>
    %427 = arith.negf %426 : vector<2x32xf32>
    %428 = math.exp %427 : vector<2x32xf32>
    %cst_135 = arith.constant 1.000000e+00 : f32
    %429 = vector.broadcast %cst_135 : f32 to vector<2x32xf32>
    %430 = arith.addf %429, %428 : vector<2x32xf32>
    %431 = arith.divf %429, %430 : vector<2x32xf32>
    %432 = vector.extract_strided_slice %392 {offsets = [0, 32], sizes = [2, 32], strides = [1, 1]} : vector<2x96xf32> to vector<2x32xf32>
    %433 = vector.extract_strided_slice %395 {offsets = [0, 128], sizes = [2, 32], strides = [1, 1]} : vector<2x192xf32> to vector<2x32xf32>
    %434 = arith.addf %432, %433 : vector<2x32xf32>
    %435 = arith.negf %434 : vector<2x32xf32>
    %436 = math.exp %435 : vector<2x32xf32>
    %cst_136 = arith.constant 1.000000e+00 : f32
    %437 = vector.broadcast %cst_136 : f32 to vector<2x32xf32>
    %438 = arith.addf %437, %436 : vector<2x32xf32>
    %439 = arith.divf %437, %438 : vector<2x32xf32>
    %440 = vector.extract_strided_slice %392 {offsets = [0, 64], sizes = [2, 32], strides = [1, 1]} : vector<2x96xf32> to vector<2x32xf32>
    %441 = vector.extract_strided_slice %395 {offsets = [0, 160], sizes = [2, 32], strides = [1, 1]} : vector<2x192xf32> to vector<2x32xf32>
    %442 = vector.broadcast %73 : vector<1x32xf32> to vector<2x32xf32>
    %443 = arith.addf %441, %442 : vector<2x32xf32>
    %444 = arith.mulf %431, %443 : vector<2x32xf32>
    %445 = arith.addf %440, %444 : vector<2x32xf32>
    %446 = math.tanh %445 : vector<2x32xf32>
    %cst_137 = arith.constant 1.000000e+00 : f32
    %447 = vector.broadcast %cst_137 : f32 to vector<2x32xf32>
    %448 = arith.subf %447, %439 : vector<2x32xf32>
    %449 = arith.mulf %448, %446 : vector<2x32xf32>
    %450 = arith.mulf %439, %388 : vector<2x32xf32>
    %451 = arith.addf %449, %450 : vector<2x32xf32>
    %c10_138 = arith.constant 10 : index
    %c0_139 = arith.constant 0 : index
    %452 = vector.load %arg28[%c10_138, %c0_139] : memref<32x32xf32, #tpu.memory_space<vmem>>, vector<2x32xf32>
    tpu.vector_store %arg28[%c10_138, %c0_139], %423 {strides = array<i32>} : memref<32x32xf32, #tpu.memory_space<vmem>>, vector<2x32xf32>,
    %c20_140 = arith.constant 20 : index
    %c0_141 = arith.constant 0 : index
    %453 = vector.load %arg29[%c20_140, %c0_141] : memref<32x32xf32, #tpu.memory_space<vmem>>, vector<2x32xf32>
    tpu.vector_store %arg29[%c20_140, %c0_141], %451 {strides = array<i32>} : memref<32x32xf32, #tpu.memory_space<vmem>>, vector<2x32xf32>,
    %c12 = arith.constant 12 : index
    %c0_142 = arith.constant 0 : index
    %454 = vector.load %arg26[%c12, %c0_142] : memref<32x96xf32, #tpu.memory_space<vmem>>, vector<2x96xf32>
    %c18 = arith.constant 18 : index
    %c0_143 = arith.constant 0 : index
    %455 = vector.load %arg27[%c18, %c0_143] : memref<32x96xf32, #tpu.memory_space<vmem>>, vector<2x96xf32>
    %456 = tpu.concatenate %423, %451 in 1 : vector<2x32xf32>, vector<2x32xf32> -> vector<2x64xf32>
    %457 = arith.truncf %456 : vector<2x64xf32> to vector<2x64xbf16>
    %cst_144 = arith.constant dense<0.000000e+00> : vector<2x192xf32>
    %458 = tpu.matmul %457, %70, %cst_144 {dimension_numbers = #tpu.dot_dimension_numbers<[1], [0], [0], [1], [0, 0, 1, 1], [], []>} : vector<2x64xbf16>, vector<64x192xbf16>, vector<2x192xf32> -> vector<2x192xf32>
    %459 = vector.extract_strided_slice %454 {offsets = [0, 0], sizes = [2, 32], strides = [1, 1]} : vector<2x96xf32> to vector<2x32xf32>
    %460 = vector.extract_strided_slice %458 {offsets = [0, 0], sizes = [2, 32], strides = [1, 1]} : vector<2x192xf32> to vector<2x32xf32>
    %461 = arith.addf %459, %460 : vector<2x32xf32>
    %462 = arith.negf %461 : vector<2x32xf32>
    %463 = math.exp %462 : vector<2x32xf32>
    %cst_145 = arith.constant 1.000000e+00 : f32
    %464 = vector.broadcast %cst_145 : f32 to vector<2x32xf32>
    %465 = arith.addf %464, %463 : vector<2x32xf32>
    %466 = arith.divf %464, %465 : vector<2x32xf32>
    %467 = vector.extract_strided_slice %454 {offsets = [0, 32], sizes = [2, 32], strides = [1, 1]} : vector<2x96xf32> to vector<2x32xf32>
    %468 = vector.extract_strided_slice %458 {offsets = [0, 32], sizes = [2, 32], strides = [1, 1]} : vector<2x192xf32> to vector<2x32xf32>
    %469 = arith.addf %467, %468 : vector<2x32xf32>
    %470 = arith.negf %469 : vector<2x32xf32>
    %471 = math.exp %470 : vector<2x32xf32>
    %cst_146 = arith.constant 1.000000e+00 : f32
    %472 = vector.broadcast %cst_146 : f32 to vector<2x32xf32>
    %473 = arith.addf %472, %471 : vector<2x32xf32>
    %474 = arith.divf %472, %473 : vector<2x32xf32>
    %475 = vector.extract_strided_slice %454 {offsets = [0, 64], sizes = [2, 32], strides = [1, 1]} : vector<2x96xf32> to vector<2x32xf32>
    %476 = vector.extract_strided_slice %458 {offsets = [0, 64], sizes = [2, 32], strides = [1, 1]} : vector<2x192xf32> to vector<2x32xf32>
    %477 = vector.broadcast %72 : vector<1x32xf32> to vector<2x32xf32>
    %478 = arith.addf %476, %477 : vector<2x32xf32>
    %479 = arith.mulf %466, %478 : vector<2x32xf32>
    %480 = arith.addf %475, %479 : vector<2x32xf32>
    %481 = math.tanh %480 : vector<2x32xf32>
    %cst_147 = arith.constant 1.000000e+00 : f32
    %482 = vector.broadcast %cst_147 : f32 to vector<2x32xf32>
    %483 = arith.subf %482, %474 : vector<2x32xf32>
    %484 = arith.mulf %483, %481 : vector<2x32xf32>
    %485 = arith.mulf %474, %423 : vector<2x32xf32>
    %486 = arith.addf %484, %485 : vector<2x32xf32>
    %487 = vector.extract_strided_slice %455 {offsets = [0, 0], sizes = [2, 32], strides = [1, 1]} : vector<2x96xf32> to vector<2x32xf32>
    %488 = vector.extract_strided_slice %458 {offsets = [0, 96], sizes = [2, 32], strides = [1, 1]} : vector<2x192xf32> to vector<2x32xf32>
    %489 = arith.addf %487, %488 : vector<2x32xf32>
    %490 = arith.negf %489 : vector<2x32xf32>
    %491 = math.exp %490 : vector<2x32xf32>
    %cst_148 = arith.constant 1.000000e+00 : f32
    %492 = vector.broadcast %cst_148 : f32 to vector<2x32xf32>
    %493 = arith.addf %492, %491 : vector<2x32xf32>
    %494 = arith.divf %492, %493 : vector<2x32xf32>
    %495 = vector.extract_strided_slice %455 {offsets = [0, 32], sizes = [2, 32], strides = [1, 1]} : vector<2x96xf32> to vector<2x32xf32>
    %496 = vector.extract_strided_slice %458 {offsets = [0, 128], sizes = [2, 32], strides = [1, 1]} : vector<2x192xf32> to vector<2x32xf32>
    %497 = arith.addf %495, %496 : vector<2x32xf32>
    %498 = arith.negf %497 : vector<2x32xf32>
    %499 = math.exp %498 : vector<2x32xf32>
    %cst_149 = arith.constant 1.000000e+00 : f32
    %500 = vector.broadcast %cst_149 : f32 to vector<2x32xf32>
    %501 = arith.addf %500, %499 : vector<2x32xf32>
    %502 = arith.divf %500, %501 : vector<2x32xf32>
    %503 = vector.extract_strided_slice %455 {offsets = [0, 64], sizes = [2, 32], strides = [1, 1]} : vector<2x96xf32> to vector<2x32xf32>
    %504 = vector.extract_strided_slice %458 {offsets = [0, 160], sizes = [2, 32], strides = [1, 1]} : vector<2x192xf32> to vector<2x32xf32>
    %505 = vector.broadcast %73 : vector<1x32xf32> to vector<2x32xf32>
    %506 = arith.addf %504, %505 : vector<2x32xf32>
    %507 = arith.mulf %494, %506 : vector<2x32xf32>
    %508 = arith.addf %503, %507 : vector<2x32xf32>
    %509 = math.tanh %508 : vector<2x32xf32>
    %cst_150 = arith.constant 1.000000e+00 : f32
    %510 = vector.broadcast %cst_150 : f32 to vector<2x32xf32>
    %511 = arith.subf %510, %502 : vector<2x32xf32>
    %512 = arith.mulf %511, %509 : vector<2x32xf32>
    %513 = arith.mulf %502, %451 : vector<2x32xf32>
    %514 = arith.addf %512, %513 : vector<2x32xf32>
    %c12_151 = arith.constant 12 : index
    %c0_152 = arith.constant 0 : index
    %515 = vector.load %arg28[%c12_151, %c0_152] : memref<32x32xf32, #tpu.memory_space<vmem>>, vector<2x32xf32>
    tpu.vector_store %arg28[%c12_151, %c0_152], %486 {strides = array<i32>} : memref<32x32xf32, #tpu.memory_space<vmem>>, vector<2x32xf32>,
    %c18_153 = arith.constant 18 : index
    %c0_154 = arith.constant 0 : index
    %516 = vector.load %arg29[%c18_153, %c0_154] : memref<32x32xf32, #tpu.memory_space<vmem>>, vector<2x32xf32>
    tpu.vector_store %arg29[%c18_153, %c0_154], %514 {strides = array<i32>} : memref<32x32xf32, #tpu.memory_space<vmem>>, vector<2x32xf32>,
    %c14 = arith.constant 14 : index
    %c0_155 = arith.constant 0 : index
    %517 = vector.load %arg26[%c14, %c0_155] : memref<32x96xf32, #tpu.memory_space<vmem>>, vector<2x96xf32>
    %c16 = arith.constant 16 : index
    %c0_156 = arith.constant 0 : index
    %518 = vector.load %arg27[%c16, %c0_156] : memref<32x96xf32, #tpu.memory_space<vmem>>, vector<2x96xf32>
    %519 = tpu.concatenate %486, %514 in 1 : vector<2x32xf32>, vector<2x32xf32> -> vector<2x64xf32>
    %520 = arith.truncf %519 : vector<2x64xf32> to vector<2x64xbf16>
    %cst_157 = arith.constant dense<0.000000e+00> : vector<2x192xf32>
    %521 = tpu.matmul %520, %70, %cst_157 {dimension_numbers = #tpu.dot_dimension_numbers<[1], [0], [0], [1], [0, 0, 1, 1], [], []>} : vector<2x64xbf16>, vector<64x192xbf16>, vector<2x192xf32> -> vector<2x192xf32>
    %522 = vector.extract_strided_slice %517 {offsets = [0, 0], sizes = [2, 32], strides = [1, 1]} : vector<2x96xf32> to vector<2x32xf32>
    %523 = vector.extract_strided_slice %521 {offsets = [0, 0], sizes = [2, 32], strides = [1, 1]} : vector<2x192xf32> to vector<2x32xf32>
    %524 = arith.addf %522, %523 : vector<2x32xf32>
    %525 = arith.negf %524 : vector<2x32xf32>
    %526 = math.exp %525 : vector<2x32xf32>
    %cst_158 = arith.constant 1.000000e+00 : f32
    %527 = vector.broadcast %cst_158 : f32 to vector<2x32xf32>
    %528 = arith.addf %527, %526 : vector<2x32xf32>
    %529 = arith.divf %527, %528 : vector<2x32xf32>
    %530 = vector.extract_strided_slice %517 {offsets = [0, 32], sizes = [2, 32], strides = [1, 1]} : vector<2x96xf32> to vector<2x32xf32>
    %531 = vector.extract_strided_slice %521 {offsets = [0, 32], sizes = [2, 32], strides = [1, 1]} : vector<2x192xf32> to vector<2x32xf32>
    %532 = arith.addf %530, %531 : vector<2x32xf32>
    %533 = arith.negf %532 : vector<2x32xf32>
    %534 = math.exp %533 : vector<2x32xf32>
    %cst_159 = arith.constant 1.000000e+00 : f32
    %535 = vector.broadcast %cst_159 : f32 to vector<2x32xf32>
    %536 = arith.addf %535, %534 : vector<2x32xf32>
    %537 = arith.divf %535, %536 : vector<2x32xf32>
    %538 = vector.extract_strided_slice %517 {offsets = [0, 64], sizes = [2, 32], strides = [1, 1]} : vector<2x96xf32> to vector<2x32xf32>
    %539 = vector.extract_strided_slice %521 {offsets = [0, 64], sizes = [2, 32], strides = [1, 1]} : vector<2x192xf32> to vector<2x32xf32>
    %540 = vector.broadcast %72 : vector<1x32xf32> to vector<2x32xf32>
    %541 = arith.addf %539, %540 : vector<2x32xf32>
    %542 = arith.mulf %529, %541 : vector<2x32xf32>
    %543 = arith.addf %538, %542 : vector<2x32xf32>
    %544 = math.tanh %543 : vector<2x32xf32>
    %cst_160 = arith.constant 1.000000e+00 : f32
    %545 = vector.broadcast %cst_160 : f32 to vector<2x32xf32>
    %546 = arith.subf %545, %537 : vector<2x32xf32>
    %547 = arith.mulf %546, %544 : vector<2x32xf32>
    %548 = arith.mulf %537, %486 : vector<2x32xf32>
    %549 = arith.addf %547, %548 : vector<2x32xf32>
    %550 = vector.extract_strided_slice %518 {offsets = [0, 0], sizes = [2, 32], strides = [1, 1]} : vector<2x96xf32> to vector<2x32xf32>
    %551 = vector.extract_strided_slice %521 {offsets = [0, 96], sizes = [2, 32], strides = [1, 1]} : vector<2x192xf32> to vector<2x32xf32>
    %552 = arith.addf %550, %551 : vector<2x32xf32>
    %553 = arith.negf %552 : vector<2x32xf32>
    %554 = math.exp %553 : vector<2x32xf32>
    %cst_161 = arith.constant 1.000000e+00 : f32
    %555 = vector.broadcast %cst_161 : f32 to vector<2x32xf32>
    %556 = arith.addf %555, %554 : vector<2x32xf32>
    %557 = arith.divf %555, %556 : vector<2x32xf32>
    %558 = vector.extract_strided_slice %518 {offsets = [0, 32], sizes = [2, 32], strides = [1, 1]} : vector<2x96xf32> to vector<2x32xf32>
    %559 = vector.extract_strided_slice %521 {offsets = [0, 128], sizes = [2, 32], strides = [1, 1]} : vector<2x192xf32> to vector<2x32xf32>
    %560 = arith.addf %558, %559 : vector<2x32xf32>
    %561 = arith.negf %560 : vector<2x32xf32>
    %562 = math.exp %561 : vector<2x32xf32>
    %cst_162 = arith.constant 1.000000e+00 : f32
    %563 = vector.broadcast %cst_162 : f32 to vector<2x32xf32>
    %564 = arith.addf %563, %562 : vector<2x32xf32>
    %565 = arith.divf %563, %564 : vector<2x32xf32>
    %566 = vector.extract_strided_slice %518 {offsets = [0, 64], sizes = [2, 32], strides = [1, 1]} : vector<2x96xf32> to vector<2x32xf32>
    %567 = vector.extract_strided_slice %521 {offsets = [0, 160], sizes = [2, 32], strides = [1, 1]} : vector<2x192xf32> to vector<2x32xf32>
    %568 = vector.broadcast %73 : vector<1x32xf32> to vector<2x32xf32>
    %569 = arith.addf %567, %568 : vector<2x32xf32>
    %570 = arith.mulf %557, %569 : vector<2x32xf32>
    %571 = arith.addf %566, %570 : vector<2x32xf32>
    %572 = math.tanh %571 : vector<2x32xf32>
    %cst_163 = arith.constant 1.000000e+00 : f32
    %573 = vector.broadcast %cst_163 : f32 to vector<2x32xf32>
    %574 = arith.subf %573, %565 : vector<2x32xf32>
    %575 = arith.mulf %574, %572 : vector<2x32xf32>
    %576 = arith.mulf %565, %514 : vector<2x32xf32>
    %577 = arith.addf %575, %576 : vector<2x32xf32>
    %c14_164 = arith.constant 14 : index
    %c0_165 = arith.constant 0 : index
    %578 = vector.load %arg28[%c14_164, %c0_165] : memref<32x32xf32, #tpu.memory_space<vmem>>, vector<2x32xf32>
    tpu.vector_store %arg28[%c14_164, %c0_165], %549 {strides = array<i32>} : memref<32x32xf32, #tpu.memory_space<vmem>>, vector<2x32xf32>,
    %c16_166 = arith.constant 16 : index
    %c0_167 = arith.constant 0 : index
    %579 = vector.load %arg29[%c16_166, %c0_167] : memref<32x32xf32, #tpu.memory_space<vmem>>, vector<2x32xf32>
    tpu.vector_store %arg29[%c16_166, %c0_167], %577 {strides = array<i32>} : memref<32x32xf32, #tpu.memory_space<vmem>>, vector<2x32xf32>,
    %c16_168 = arith.constant 16 : index
    %c0_169 = arith.constant 0 : index
    %580 = vector.load %arg26[%c16_168, %c0_169] : memref<32x96xf32, #tpu.memory_space<vmem>>, vector<2x96xf32>
    %c14_170 = arith.constant 14 : index
    %c0_171 = arith.constant 0 : index
    %581 = vector.load %arg27[%c14_170, %c0_171] : memref<32x96xf32, #tpu.memory_space<vmem>>, vector<2x96xf32>
    %582 = tpu.concatenate %549, %577 in 1 : vector<2x32xf32>, vector<2x32xf32> -> vector<2x64xf32>
    %583 = arith.truncf %582 : vector<2x64xf32> to vector<2x64xbf16>
    %cst_172 = arith.constant dense<0.000000e+00> : vector<2x192xf32>
    %584 = tpu.matmul %583, %70, %cst_172 {dimension_numbers = #tpu.dot_dimension_numbers<[1], [0], [0], [1], [0, 0, 1, 1], [], []>} : vector<2x64xbf16>, vector<64x192xbf16>, vector<2x192xf32> -> vector<2x192xf32>
    %585 = vector.extract_strided_slice %580 {offsets = [0, 0], sizes = [2, 32], strides = [1, 1]} : vector<2x96xf32> to vector<2x32xf32>
    %586 = vector.extract_strided_slice %584 {offsets = [0, 0], sizes = [2, 32], strides = [1, 1]} : vector<2x192xf32> to vector<2x32xf32>
    %587 = arith.addf %585, %586 : vector<2x32xf32>
    %588 = arith.negf %587 : vector<2x32xf32>
    %589 = math.exp %588 : vector<2x32xf32>
    %cst_173 = arith.constant 1.000000e+00 : f32
    %590 = vector.broadcast %cst_173 : f32 to vector<2x32xf32>
    %591 = arith.addf %590, %589 : vector<2x32xf32>
    %592 = arith.divf %590, %591 : vector<2x32xf32>
    %593 = vector.extract_strided_slice %580 {offsets = [0, 32], sizes = [2, 32], strides = [1, 1]} : vector<2x96xf32> to vector<2x32xf32>
    %594 = vector.extract_strided_slice %584 {offsets = [0, 32], sizes = [2, 32], strides = [1, 1]} : vector<2x192xf32> to vector<2x32xf32>
    %595 = arith.addf %593, %594 : vector<2x32xf32>
    %596 = arith.negf %595 : vector<2x32xf32>
    %597 = math.exp %596 : vector<2x32xf32>
    %cst_174 = arith.constant 1.000000e+00 : f32
    %598 = vector.broadcast %cst_174 : f32 to vector<2x32xf32>
    %599 = arith.addf %598, %597 : vector<2x32xf32>
    %600 = arith.divf %598, %599 : vector<2x32xf32>
    %601 = vector.extract_strided_slice %580 {offsets = [0, 64], sizes = [2, 32], strides = [1, 1]} : vector<2x96xf32> to vector<2x32xf32>
    %602 = vector.extract_strided_slice %584 {offsets = [0, 64], sizes = [2, 32], strides = [1, 1]} : vector<2x192xf32> to vector<2x32xf32>
    %603 = vector.broadcast %72 : vector<1x32xf32> to vector<2x32xf32>
    %604 = arith.addf %602, %603 : vector<2x32xf32>
    %605 = arith.mulf %592, %604 : vector<2x32xf32>
    %606 = arith.addf %601, %605 : vector<2x32xf32>
    %607 = math.tanh %606 : vector<2x32xf32>
    %cst_175 = arith.constant 1.000000e+00 : f32
    %608 = vector.broadcast %cst_175 : f32 to vector<2x32xf32>
    %609 = arith.subf %608, %600 : vector<2x32xf32>
    %610 = arith.mulf %609, %607 : vector<2x32xf32>
    %611 = arith.mulf %600, %549 : vector<2x32xf32>
    %612 = arith.addf %610, %611 : vector<2x32xf32>
    %613 = vector.extract_strided_slice %581 {offsets = [0, 0], sizes = [2, 32], strides = [1, 1]} : vector<2x96xf32> to vector<2x32xf32>
    %614 = vector.extract_strided_slice %584 {offsets = [0, 96], sizes = [2, 32], strides = [1, 1]} : vector<2x192xf32> to vector<2x32xf32>
    %615 = arith.addf %613, %614 : vector<2x32xf32>
    %616 = arith.negf %615 : vector<2x32xf32>
    %617 = math.exp %616 : vector<2x32xf32>
    %cst_176 = arith.constant 1.000000e+00 : f32
    %618 = vector.broadcast %cst_176 : f32 to vector<2x32xf32>
    %619 = arith.addf %618, %617 : vector<2x32xf32>
    %620 = arith.divf %618, %619 : vector<2x32xf32>
    %621 = vector.extract_strided_slice %581 {offsets = [0, 32], sizes = [2, 32], strides = [1, 1]} : vector<2x96xf32> to vector<2x32xf32>
    %622 = vector.extract_strided_slice %584 {offsets = [0, 128], sizes = [2, 32], strides = [1, 1]} : vector<2x192xf32> to vector<2x32xf32>
    %623 = arith.addf %621, %622 : vector<2x32xf32>
    %624 = arith.negf %623 : vector<2x32xf32>
    %625 = math.exp %624 : vector<2x32xf32>
    %cst_177 = arith.constant 1.000000e+00 : f32
    %626 = vector.broadcast %cst_177 : f32 to vector<2x32xf32>
    %627 = arith.addf %626, %625 : vector<2x32xf32>
    %628 = arith.divf %626, %627 : vector<2x32xf32>
    %629 = vector.extract_strided_slice %581 {offsets = [0, 64], sizes = [2, 32], strides = [1, 1]} : vector<2x96xf32> to vector<2x32xf32>
    %630 = vector.extract_strided_slice %584 {offsets = [0, 160], sizes = [2, 32], strides = [1, 1]} : vector<2x192xf32> to vector<2x32xf32>
    %631 = vector.broadcast %73 : vector<1x32xf32> to vector<2x32xf32>
    %632 = arith.addf %630, %631 : vector<2x32xf32>
    %633 = arith.mulf %620, %632 : vector<2x32xf32>
    %634 = arith.addf %629, %633 : vector<2x32xf32>
    %635 = math.tanh %634 : vector<2x32xf32>
    %cst_178 = arith.constant 1.000000e+00 : f32
    %636 = vector.broadcast %cst_178 : f32 to vector<2x32xf32>
    %637 = arith.subf %636, %628 : vector<2x32xf32>
    %638 = arith.mulf %637, %635 : vector<2x32xf32>
    %639 = arith.mulf %628, %577 : vector<2x32xf32>
    %640 = arith.addf %638, %639 : vector<2x32xf32>
    %c16_179 = arith.constant 16 : index
    %c0_180 = arith.constant 0 : index
    %641 = vector.load %arg28[%c16_179, %c0_180] : memref<32x32xf32, #tpu.memory_space<vmem>>, vector<2x32xf32>
    tpu.vector_store %arg28[%c16_179, %c0_180], %612 {strides = array<i32>} : memref<32x32xf32, #tpu.memory_space<vmem>>, vector<2x32xf32>,
    %c14_181 = arith.constant 14 : index
    %c0_182 = arith.constant 0 : index
    %642 = vector.load %arg29[%c14_181, %c0_182] : memref<32x32xf32, #tpu.memory_space<vmem>>, vector<2x32xf32>
    tpu.vector_store %arg29[%c14_181, %c0_182], %640 {strides = array<i32>} : memref<32x32xf32, #tpu.memory_space<vmem>>, vector<2x32xf32>,
    %c18_183 = arith.constant 18 : index
    %c0_184 = arith.constant 0 : index
    %643 = vector.load %arg26[%c18_183, %c0_184] : memref<32x96xf32, #tpu.memory_space<vmem>>, vector<2x96xf32>
    %c12_185 = arith.constant 12 : index
    %c0_186 = arith.constant 0 : index
    %644 = vector.load %arg27[%c12_185, %c0_186] : memref<32x96xf32, #tpu.memory_space<vmem>>, vector<2x96xf32>
    %645 = tpu.concatenate %612, %640 in 1 : vector<2x32xf32>, vector<2x32xf32> -> vector<2x64xf32>
    %646 = arith.truncf %645 : vector<2x64xf32> to vector<2x64xbf16>
    %cst_187 = arith.constant dense<0.000000e+00> : vector<2x192xf32>
    %647 = tpu.matmul %646, %70, %cst_187 {dimension_numbers = #tpu.dot_dimension_numbers<[1], [0], [0], [1], [0, 0, 1, 1], [], []>} : vector<2x64xbf16>, vector<64x192xbf16>, vector<2x192xf32> -> vector<2x192xf32>
    %648 = vector.extract_strided_slice %643 {offsets = [0, 0], sizes = [2, 32], strides = [1, 1]} : vector<2x96xf32> to vector<2x32xf32>
    %649 = vector.extract_strided_slice %647 {offsets = [0, 0], sizes = [2, 32], strides = [1, 1]} : vector<2x192xf32> to vector<2x32xf32>
    %650 = arith.addf %648, %649 : vector<2x32xf32>
    %651 = arith.negf %650 : vector<2x32xf32>
    %652 = math.exp %651 : vector<2x32xf32>
    %cst_188 = arith.constant 1.000000e+00 : f32
    %653 = vector.broadcast %cst_188 : f32 to vector<2x32xf32>
    %654 = arith.addf %653, %652 : vector<2x32xf32>
    %655 = arith.divf %653, %654 : vector<2x32xf32>
    %656 = vector.extract_strided_slice %643 {offsets = [0, 32], sizes = [2, 32], strides = [1, 1]} : vector<2x96xf32> to vector<2x32xf32>
    %657 = vector.extract_strided_slice %647 {offsets = [0, 32], sizes = [2, 32], strides = [1, 1]} : vector<2x192xf32> to vector<2x32xf32>
    %658 = arith.addf %656, %657 : vector<2x32xf32>
    %659 = arith.negf %658 : vector<2x32xf32>
    %660 = math.exp %659 : vector<2x32xf32>
    %cst_189 = arith.constant 1.000000e+00 : f32
    %661 = vector.broadcast %cst_189 : f32 to vector<2x32xf32>
    %662 = arith.addf %661, %660 : vector<2x32xf32>
    %663 = arith.divf %661, %662 : vector<2x32xf32>
    %664 = vector.extract_strided_slice %643 {offsets = [0, 64], sizes = [2, 32], strides = [1, 1]} : vector<2x96xf32> to vector<2x32xf32>
    %665 = vector.extract_strided_slice %647 {offsets = [0, 64], sizes = [2, 32], strides = [1, 1]} : vector<2x192xf32> to vector<2x32xf32>
    %666 = vector.broadcast %72 : vector<1x32xf32> to vector<2x32xf32>
    %667 = arith.addf %665, %666 : vector<2x32xf32>
    %668 = arith.mulf %655, %667 : vector<2x32xf32>
    %669 = arith.addf %664, %668 : vector<2x32xf32>
    %670 = math.tanh %669 : vector<2x32xf32>
    %cst_190 = arith.constant 1.000000e+00 : f32
    %671 = vector.broadcast %cst_190 : f32 to vector<2x32xf32>
    %672 = arith.subf %671, %663 : vector<2x32xf32>
    %673 = arith.mulf %672, %670 : vector<2x32xf32>
    %674 = arith.mulf %663, %612 : vector<2x32xf32>
    %675 = arith.addf %673, %674 : vector<2x32xf32>
    %676 = vector.extract_strided_slice %644 {offsets = [0, 0], sizes = [2, 32], strides = [1, 1]} : vector<2x96xf32> to vector<2x32xf32>
    %677 = vector.extract_strided_slice %647 {offsets = [0, 96], sizes = [2, 32], strides = [1, 1]} : vector<2x192xf32> to vector<2x32xf32>
    %678 = arith.addf %676, %677 : vector<2x32xf32>
    %679 = arith.negf %678 : vector<2x32xf32>
    %680 = math.exp %679 : vector<2x32xf32>
    %cst_191 = arith.constant 1.000000e+00 : f32
    %681 = vector.broadcast %cst_191 : f32 to vector<2x32xf32>
    %682 = arith.addf %681, %680 : vector<2x32xf32>
    %683 = arith.divf %681, %682 : vector<2x32xf32>
    %684 = vector.extract_strided_slice %644 {offsets = [0, 32], sizes = [2, 32], strides = [1, 1]} : vector<2x96xf32> to vector<2x32xf32>
    %685 = vector.extract_strided_slice %647 {offsets = [0, 128], sizes = [2, 32], strides = [1, 1]} : vector<2x192xf32> to vector<2x32xf32>
    %686 = arith.addf %684, %685 : vector<2x32xf32>
    %687 = arith.negf %686 : vector<2x32xf32>
    %688 = math.exp %687 : vector<2x32xf32>
    %cst_192 = arith.constant 1.000000e+00 : f32
    %689 = vector.broadcast %cst_192 : f32 to vector<2x32xf32>
    %690 = arith.addf %689, %688 : vector<2x32xf32>
    %691 = arith.divf %689, %690 : vector<2x32xf32>
    %692 = vector.extract_strided_slice %644 {offsets = [0, 64], sizes = [2, 32], strides = [1, 1]} : vector<2x96xf32> to vector<2x32xf32>
    %693 = vector.extract_strided_slice %647 {offsets = [0, 160], sizes = [2, 32], strides = [1, 1]} : vector<2x192xf32> to vector<2x32xf32>
    %694 = vector.broadcast %73 : vector<1x32xf32> to vector<2x32xf32>
    %695 = arith.addf %693, %694 : vector<2x32xf32>
    %696 = arith.mulf %683, %695 : vector<2x32xf32>
    %697 = arith.addf %692, %696 : vector<2x32xf32>
    %698 = math.tanh %697 : vector<2x32xf32>
    %cst_193 = arith.constant 1.000000e+00 : f32
    %699 = vector.broadcast %cst_193 : f32 to vector<2x32xf32>
    %700 = arith.subf %699, %691 : vector<2x32xf32>
    %701 = arith.mulf %700, %698 : vector<2x32xf32>
    %702 = arith.mulf %691, %640 : vector<2x32xf32>
    %703 = arith.addf %701, %702 : vector<2x32xf32>
    %c18_194 = arith.constant 18 : index
    %c0_195 = arith.constant 0 : index
    %704 = vector.load %arg28[%c18_194, %c0_195] : memref<32x32xf32, #tpu.memory_space<vmem>>, vector<2x32xf32>
    tpu.vector_store %arg28[%c18_194, %c0_195], %675 {strides = array<i32>} : memref<32x32xf32, #tpu.memory_space<vmem>>, vector<2x32xf32>,
    %c12_196 = arith.constant 12 : index
    %c0_197 = arith.constant 0 : index
    %705 = vector.load %arg29[%c12_196, %c0_197] : memref<32x32xf32, #tpu.memory_space<vmem>>, vector<2x32xf32>
    tpu.vector_store %arg29[%c12_196, %c0_197], %703 {strides = array<i32>} : memref<32x32xf32, #tpu.memory_space<vmem>>, vector<2x32xf32>,
    %c20_198 = arith.constant 20 : index
    %c0_199 = arith.constant 0 : index
    %706 = vector.load %arg26[%c20_198, %c0_199] : memref<32x96xf32, #tpu.memory_space<vmem>>, vector<2x96xf32>
    %c10_200 = arith.constant 10 : index
    %c0_201 = arith.constant 0 : index
    %707 = vector.load %arg27[%c10_200, %c0_201] : memref<32x96xf32, #tpu.memory_space<vmem>>, vector<2x96xf32>
    %708 = tpu.concatenate %675, %703 in 1 : vector<2x32xf32>, vector<2x32xf32> -> vector<2x64xf32>
    %709 = arith.truncf %708 : vector<2x64xf32> to vector<2x64xbf16>
    %cst_202 = arith.constant dense<0.000000e+00> : vector<2x192xf32>
    %710 = tpu.matmul %709, %70, %cst_202 {dimension_numbers = #tpu.dot_dimension_numbers<[1], [0], [0], [1], [0, 0, 1, 1], [], []>} : vector<2x64xbf16>, vector<64x192xbf16>, vector<2x192xf32> -> vector<2x192xf32>
    %711 = vector.extract_strided_slice %706 {offsets = [0, 0], sizes = [2, 32], strides = [1, 1]} : vector<2x96xf32> to vector<2x32xf32>
    %712 = vector.extract_strided_slice %710 {offsets = [0, 0], sizes = [2, 32], strides = [1, 1]} : vector<2x192xf32> to vector<2x32xf32>
    %713 = arith.addf %711, %712 : vector<2x32xf32>
    %714 = arith.negf %713 : vector<2x32xf32>
    %715 = math.exp %714 : vector<2x32xf32>
    %cst_203 = arith.constant 1.000000e+00 : f32
    %716 = vector.broadcast %cst_203 : f32 to vector<2x32xf32>
    %717 = arith.addf %716, %715 : vector<2x32xf32>
    %718 = arith.divf %716, %717 : vector<2x32xf32>
    %719 = vector.extract_strided_slice %706 {offsets = [0, 32], sizes = [2, 32], strides = [1, 1]} : vector<2x96xf32> to vector<2x32xf32>
    %720 = vector.extract_strided_slice %710 {offsets = [0, 32], sizes = [2, 32], strides = [1, 1]} : vector<2x192xf32> to vector<2x32xf32>
    %721 = arith.addf %719, %720 : vector<2x32xf32>
    %722 = arith.negf %721 : vector<2x32xf32>
    %723 = math.exp %722 : vector<2x32xf32>
    %cst_204 = arith.constant 1.000000e+00 : f32
    %724 = vector.broadcast %cst_204 : f32 to vector<2x32xf32>
    %725 = arith.addf %724, %723 : vector<2x32xf32>
    %726 = arith.divf %724, %725 : vector<2x32xf32>
    %727 = vector.extract_strided_slice %706 {offsets = [0, 64], sizes = [2, 32], strides = [1, 1]} : vector<2x96xf32> to vector<2x32xf32>
    %728 = vector.extract_strided_slice %710 {offsets = [0, 64], sizes = [2, 32], strides = [1, 1]} : vector<2x192xf32> to vector<2x32xf32>
    %729 = vector.broadcast %72 : vector<1x32xf32> to vector<2x32xf32>
    %730 = arith.addf %728, %729 : vector<2x32xf32>
    %731 = arith.mulf %718, %730 : vector<2x32xf32>
    %732 = arith.addf %727, %731 : vector<2x32xf32>
    %733 = math.tanh %732 : vector<2x32xf32>
    %cst_205 = arith.constant 1.000000e+00 : f32
    %734 = vector.broadcast %cst_205 : f32 to vector<2x32xf32>
    %735 = arith.subf %734, %726 : vector<2x32xf32>
    %736 = arith.mulf %735, %733 : vector<2x32xf32>
    %737 = arith.mulf %726, %675 : vector<2x32xf32>
    %738 = arith.addf %736, %737 : vector<2x32xf32>
    %739 = vector.extract_strided_slice %707 {offsets = [0, 0], sizes = [2, 32], strides = [1, 1]} : vector<2x96xf32> to vector<2x32xf32>
    %740 = vector.extract_strided_slice %710 {offsets = [0, 96], sizes = [2, 32], strides = [1, 1]} : vector<2x192xf32> to vector<2x32xf32>
    %741 = arith.addf %739, %740 : vector<2x32xf32>
    %742 = arith.negf %741 : vector<2x32xf32>
    %743 = math.exp %742 : vector<2x32xf32>
    %cst_206 = arith.constant 1.000000e+00 : f32
    %744 = vector.broadcast %cst_206 : f32 to vector<2x32xf32>
    %745 = arith.addf %744, %743 : vector<2x32xf32>
    %746 = arith.divf %744, %745 : vector<2x32xf32>
    %747 = vector.extract_strided_slice %707 {offsets = [0, 32], sizes = [2, 32], strides = [1, 1]} : vector<2x96xf32> to vector<2x32xf32>
    %748 = vector.extract_strided_slice %710 {offsets = [0, 128], sizes = [2, 32], strides = [1, 1]} : vector<2x192xf32> to vector<2x32xf32>
    %749 = arith.addf %747, %748 : vector<2x32xf32>
    %750 = arith.negf %749 : vector<2x32xf32>
    %751 = math.exp %750 : vector<2x32xf32>
    %cst_207 = arith.constant 1.000000e+00 : f32
    %752 = vector.broadcast %cst_207 : f32 to vector<2x32xf32>
    %753 = arith.addf %752, %751 : vector<2x32xf32>
    %754 = arith.divf %752, %753 : vector<2x32xf32>
    %755 = vector.extract_strided_slice %707 {offsets = [0, 64], sizes = [2, 32], strides = [1, 1]} : vector<2x96xf32> to vector<2x32xf32>
    %756 = vector.extract_strided_slice %710 {offsets = [0, 160], sizes = [2, 32], strides = [1, 1]} : vector<2x192xf32> to vector<2x32xf32>
    %757 = vector.broadcast %73 : vector<1x32xf32> to vector<2x32xf32>
    %758 = arith.addf %756, %757 : vector<2x32xf32>
    %759 = arith.mulf %746, %758 : vector<2x32xf32>
    %760 = arith.addf %755, %759 : vector<2x32xf32>
    %761 = math.tanh %760 : vector<2x32xf32>
    %cst_208 = arith.constant 1.000000e+00 : f32
    %762 = vector.broadcast %cst_208 : f32 to vector<2x32xf32>
    %763 = arith.subf %762, %754 : vector<2x32xf32>
    %764 = arith.mulf %763, %761 : vector<2x32xf32>
    %765 = arith.mulf %754, %703 : vector<2x32xf32>
    %766 = arith.addf %764, %765 : vector<2x32xf32>
    %c20_209 = arith.constant 20 : index
    %c0_210 = arith.constant 0 : index
    %767 = vector.load %arg28[%c20_209, %c0_210] : memref<32x32xf32, #tpu.memory_space<vmem>>, vector<2x32xf32>
    tpu.vector_store %arg28[%c20_209, %c0_210], %738 {strides = array<i32>} : memref<32x32xf32, #tpu.memory_space<vmem>>, vector<2x32xf32>,
    %c10_211 = arith.constant 10 : index
    %c0_212 = arith.constant 0 : index
    %768 = vector.load %arg29[%c10_211, %c0_212] : memref<32x32xf32, #tpu.memory_space<vmem>>, vector<2x32xf32>
    tpu.vector_store %arg29[%c10_211, %c0_212], %766 {strides = array<i32>} : memref<32x32xf32, #tpu.memory_space<vmem>>, vector<2x32xf32>,
    %c22_213 = arith.constant 22 : index
    %c0_214 = arith.constant 0 : index
    %769 = vector.load %arg26[%c22_213, %c0_214] : memref<32x96xf32, #tpu.memory_space<vmem>>, vector<2x96xf32>
    %c8_215 = arith.constant 8 : index
    %c0_216 = arith.constant 0 : index
    %770 = vector.load %arg27[%c8_215, %c0_216] : memref<32x96xf32, #tpu.memory_space<vmem>>, vector<2x96xf32>
    %771 = tpu.concatenate %738, %766 in 1 : vector<2x32xf32>, vector<2x32xf32> -> vector<2x64xf32>
    %772 = arith.truncf %771 : vector<2x64xf32> to vector<2x64xbf16>
    %cst_217 = arith.constant dense<0.000000e+00> : vector<2x192xf32>
    %773 = tpu.matmul %772, %70, %cst_217 {dimension_numbers = #tpu.dot_dimension_numbers<[1], [0], [0], [1], [0, 0, 1, 1], [], []>} : vector<2x64xbf16>, vector<64x192xbf16>, vector<2x192xf32> -> vector<2x192xf32>
    %774 = vector.extract_strided_slice %769 {offsets = [0, 0], sizes = [2, 32], strides = [1, 1]} : vector<2x96xf32> to vector<2x32xf32>
    %775 = vector.extract_strided_slice %773 {offsets = [0, 0], sizes = [2, 32], strides = [1, 1]} : vector<2x192xf32> to vector<2x32xf32>
    %776 = arith.addf %774, %775 : vector<2x32xf32>
    %777 = arith.negf %776 : vector<2x32xf32>
    %778 = math.exp %777 : vector<2x32xf32>
    %cst_218 = arith.constant 1.000000e+00 : f32
    %779 = vector.broadcast %cst_218 : f32 to vector<2x32xf32>
    %780 = arith.addf %779, %778 : vector<2x32xf32>
    %781 = arith.divf %779, %780 : vector<2x32xf32>
    %782 = vector.extract_strided_slice %769 {offsets = [0, 32], sizes = [2, 32], strides = [1, 1]} : vector<2x96xf32> to vector<2x32xf32>
    %783 = vector.extract_strided_slice %773 {offsets = [0, 32], sizes = [2, 32], strides = [1, 1]} : vector<2x192xf32> to vector<2x32xf32>
    %784 = arith.addf %782, %783 : vector<2x32xf32>
    %785 = arith.negf %784 : vector<2x32xf32>
    %786 = math.exp %785 : vector<2x32xf32>
    %cst_219 = arith.constant 1.000000e+00 : f32
    %787 = vector.broadcast %cst_219 : f32 to vector<2x32xf32>
    %788 = arith.addf %787, %786 : vector<2x32xf32>
    %789 = arith.divf %787, %788 : vector<2x32xf32>
    %790 = vector.extract_strided_slice %769 {offsets = [0, 64], sizes = [2, 32], strides = [1, 1]} : vector<2x96xf32> to vector<2x32xf32>
    %791 = vector.extract_strided_slice %773 {offsets = [0, 64], sizes = [2, 32], strides = [1, 1]} : vector<2x192xf32> to vector<2x32xf32>
    %792 = vector.broadcast %72 : vector<1x32xf32> to vector<2x32xf32>
    %793 = arith.addf %791, %792 : vector<2x32xf32>
    %794 = arith.mulf %781, %793 : vector<2x32xf32>
    %795 = arith.addf %790, %794 : vector<2x32xf32>
    %796 = math.tanh %795 : vector<2x32xf32>
    %cst_220 = arith.constant 1.000000e+00 : f32
    %797 = vector.broadcast %cst_220 : f32 to vector<2x32xf32>
    %798 = arith.subf %797, %789 : vector<2x32xf32>
    %799 = arith.mulf %798, %796 : vector<2x32xf32>
    %800 = arith.mulf %789, %738 : vector<2x32xf32>
    %801 = arith.addf %799, %800 : vector<2x32xf32>
    %802 = vector.extract_strided_slice %770 {offsets = [0, 0], sizes = [2, 32], strides = [1, 1]} : vector<2x96xf32> to vector<2x32xf32>
    %803 = vector.extract_strided_slice %773 {offsets = [0, 96], sizes = [2, 32], strides = [1, 1]} : vector<2x192xf32> to vector<2x32xf32>
    %804 = arith.addf %802, %803 : vector<2x32xf32>
    %805 = arith.negf %804 : vector<2x32xf32>
    %806 = math.exp %805 : vector<2x32xf32>
    %cst_221 = arith.constant 1.000000e+00 : f32
    %807 = vector.broadcast %cst_221 : f32 to vector<2x32xf32>
    %808 = arith.addf %807, %806 : vector<2x32xf32>
    %809 = arith.divf %807, %808 : vector<2x32xf32>
    %810 = vector.extract_strided_slice %770 {offsets = [0, 32], sizes = [2, 32], strides = [1, 1]} : vector<2x96xf32> to vector<2x32xf32>
    %811 = vector.extract_strided_slice %773 {offsets = [0, 128], sizes = [2, 32], strides = [1, 1]} : vector<2x192xf32> to vector<2x32xf32>
    %812 = arith.addf %810, %811 : vector<2x32xf32>
    %813 = arith.negf %812 : vector<2x32xf32>
    %814 = math.exp %813 : vector<2x32xf32>
    %cst_222 = arith.constant 1.000000e+00 : f32
    %815 = vector.broadcast %cst_222 : f32 to vector<2x32xf32>
    %816 = arith.addf %815, %814 : vector<2x32xf32>
    %817 = arith.divf %815, %816 : vector<2x32xf32>
    %818 = vector.extract_strided_slice %770 {offsets = [0, 64], sizes = [2, 32], strides = [1, 1]} : vector<2x96xf32> to vector<2x32xf32>
    %819 = vector.extract_strided_slice %773 {offsets = [0, 160], sizes = [2, 32], strides = [1, 1]} : vector<2x192xf32> to vector<2x32xf32>
    %820 = vector.broadcast %73 : vector<1x32xf32> to vector<2x32xf32>
    %821 = arith.addf %819, %820 : vector<2x32xf32>
    %822 = arith.mulf %809, %821 : vector<2x32xf32>
    %823 = arith.addf %818, %822 : vector<2x32xf32>
    %824 = math.tanh %823 : vector<2x32xf32>
    %cst_223 = arith.constant 1.000000e+00 : f32
    %825 = vector.broadcast %cst_223 : f32 to vector<2x32xf32>
    %826 = arith.subf %825, %817 : vector<2x32xf32>
    %827 = arith.mulf %826, %824 : vector<2x32xf32>
    %828 = arith.mulf %817, %766 : vector<2x32xf32>
    %829 = arith.addf %827, %828 : vector<2x32xf32>
    %c22_224 = arith.constant 22 : index
    %c0_225 = arith.constant 0 : index
    %830 = vector.load %arg28[%c22_224, %c0_225] : memref<32x32xf32, #tpu.memory_space<vmem>>, vector<2x32xf32>
    tpu.vector_store %arg28[%c22_224, %c0_225], %801 {strides = array<i32>} : memref<32x32xf32, #tpu.memory_space<vmem>>, vector<2x32xf32>,
    %c8_226 = arith.constant 8 : index
    %c0_227 = arith.constant 0 : index
    %831 = vector.load %arg29[%c8_226, %c0_227] : memref<32x32xf32, #tpu.memory_space<vmem>>, vector<2x32xf32>
    tpu.vector_store %arg29[%c8_226, %c0_227], %829 {strides = array<i32>} : memref<32x32xf32, #tpu.memory_space<vmem>>, vector<2x32xf32>,
    %c24_228 = arith.constant 24 : index
    %c0_229 = arith.constant 0 : index
    %832 = vector.load %arg26[%c24_228, %c0_229] : memref<32x96xf32, #tpu.memory_space<vmem>>, vector<2x96xf32>
    %c6_230 = arith.constant 6 : index
    %c0_231 = arith.constant 0 : index
    %833 = vector.load %arg27[%c6_230, %c0_231] : memref<32x96xf32, #tpu.memory_space<vmem>>, vector<2x96xf32>
    %834 = tpu.concatenate %801, %829 in 1 : vector<2x32xf32>, vector<2x32xf32> -> vector<2x64xf32>
    %835 = arith.truncf %834 : vector<2x64xf32> to vector<2x64xbf16>
    %cst_232 = arith.constant dense<0.000000e+00> : vector<2x192xf32>
    %836 = tpu.matmul %835, %70, %cst_232 {dimension_numbers = #tpu.dot_dimension_numbers<[1], [0], [0], [1], [0, 0, 1, 1], [], []>} : vector<2x64xbf16>, vector<64x192xbf16>, vector<2x192xf32> -> vector<2x192xf32>
    %837 = vector.extract_strided_slice %832 {offsets = [0, 0], sizes = [2, 32], strides = [1, 1]} : vector<2x96xf32> to vector<2x32xf32>
    %838 = vector.extract_strided_slice %836 {offsets = [0, 0], sizes = [2, 32], strides = [1, 1]} : vector<2x192xf32> to vector<2x32xf32>
    %839 = arith.addf %837, %838 : vector<2x32xf32>
    %840 = arith.negf %839 : vector<2x32xf32>
    %841 = math.exp %840 : vector<2x32xf32>
    %cst_233 = arith.constant 1.000000e+00 : f32
    %842 = vector.broadcast %cst_233 : f32 to vector<2x32xf32>
    %843 = arith.addf %842, %841 : vector<2x32xf32>
    %844 = arith.divf %842, %843 : vector<2x32xf32>
    %845 = vector.extract_strided_slice %832 {offsets = [0, 32], sizes = [2, 32], strides = [1, 1]} : vector<2x96xf32> to vector<2x32xf32>
    %846 = vector.extract_strided_slice %836 {offsets = [0, 32], sizes = [2, 32], strides = [1, 1]} : vector<2x192xf32> to vector<2x32xf32>
    %847 = arith.addf %845, %846 : vector<2x32xf32>
    %848 = arith.negf %847 : vector<2x32xf32>
    %849 = math.exp %848 : vector<2x32xf32>
    %cst_234 = arith.constant 1.000000e+00 : f32
    %850 = vector.broadcast %cst_234 : f32 to vector<2x32xf32>
    %851 = arith.addf %850, %849 : vector<2x32xf32>
    %852 = arith.divf %850, %851 : vector<2x32xf32>
    %853 = vector.extract_strided_slice %832 {offsets = [0, 64], sizes = [2, 32], strides = [1, 1]} : vector<2x96xf32> to vector<2x32xf32>
    %854 = vector.extract_strided_slice %836 {offsets = [0, 64], sizes = [2, 32], strides = [1, 1]} : vector<2x192xf32> to vector<2x32xf32>
    %855 = vector.broadcast %72 : vector<1x32xf32> to vector<2x32xf32>
    %856 = arith.addf %854, %855 : vector<2x32xf32>
    %857 = arith.mulf %844, %856 : vector<2x32xf32>
    %858 = arith.addf %853, %857 : vector<2x32xf32>
    %859 = math.tanh %858 : vector<2x32xf32>
    %cst_235 = arith.constant 1.000000e+00 : f32
    %860 = vector.broadcast %cst_235 : f32 to vector<2x32xf32>
    %861 = arith.subf %860, %852 : vector<2x32xf32>
    %862 = arith.mulf %861, %859 : vector<2x32xf32>
    %863 = arith.mulf %852, %801 : vector<2x32xf32>
    %864 = arith.addf %862, %863 : vector<2x32xf32>
    %865 = vector.extract_strided_slice %833 {offsets = [0, 0], sizes = [2, 32], strides = [1, 1]} : vector<2x96xf32> to vector<2x32xf32>
    %866 = vector.extract_strided_slice %836 {offsets = [0, 96], sizes = [2, 32], strides = [1, 1]} : vector<2x192xf32> to vector<2x32xf32>
    %867 = arith.addf %865, %866 : vector<2x32xf32>
    %868 = arith.negf %867 : vector<2x32xf32>
    %869 = math.exp %868 : vector<2x32xf32>
    %cst_236 = arith.constant 1.000000e+00 : f32
    %870 = vector.broadcast %cst_236 : f32 to vector<2x32xf32>
    %871 = arith.addf %870, %869 : vector<2x32xf32>
    %872 = arith.divf %870, %871 : vector<2x32xf32>
    %873 = vector.extract_strided_slice %833 {offsets = [0, 32], sizes = [2, 32], strides = [1, 1]} : vector<2x96xf32> to vector<2x32xf32>
    %874 = vector.extract_strided_slice %836 {offsets = [0, 128], sizes = [2, 32], strides = [1, 1]} : vector<2x192xf32> to vector<2x32xf32>
    %875 = arith.addf %873, %874 : vector<2x32xf32>
    %876 = arith.negf %875 : vector<2x32xf32>
    %877 = math.exp %876 : vector<2x32xf32>
    %cst_237 = arith.constant 1.000000e+00 : f32
    %878 = vector.broadcast %cst_237 : f32 to vector<2x32xf32>
    %879 = arith.addf %878, %877 : vector<2x32xf32>
    %880 = arith.divf %878, %879 : vector<2x32xf32>
    %881 = vector.extract_strided_slice %833 {offsets = [0, 64], sizes = [2, 32], strides = [1, 1]} : vector<2x96xf32> to vector<2x32xf32>
    %882 = vector.extract_strided_slice %836 {offsets = [0, 160], sizes = [2, 32], strides = [1, 1]} : vector<2x192xf32> to vector<2x32xf32>
    %883 = vector.broadcast %73 : vector<1x32xf32> to vector<2x32xf32>
    %884 = arith.addf %882, %883 : vector<2x32xf32>
    %885 = arith.mulf %872, %884 : vector<2x32xf32>
    %886 = arith.addf %881, %885 : vector<2x32xf32>
    %887 = math.tanh %886 : vector<2x32xf32>
    %cst_238 = arith.constant 1.000000e+00 : f32
    %888 = vector.broadcast %cst_238 : f32 to vector<2x32xf32>
    %889 = arith.subf %888, %880 : vector<2x32xf32>
    %890 = arith.mulf %889, %887 : vector<2x32xf32>
    %891 = arith.mulf %880, %829 : vector<2x32xf32>
    %892 = arith.addf %890, %891 : vector<2x32xf32>
    %c24_239 = arith.constant 24 : index
    %c0_240 = arith.constant 0 : index
    %893 = vector.load %arg28[%c24_239, %c0_240] : memref<32x32xf32, #tpu.memory_space<vmem>>, vector<2x32xf32>
    tpu.vector_store %arg28[%c24_239, %c0_240], %864 {strides = array<i32>} : memref<32x32xf32, #tpu.memory_space<vmem>>, vector<2x32xf32>,
    %c6_241 = arith.constant 6 : index
    %c0_242 = arith.constant 0 : index
    %894 = vector.load %arg29[%c6_241, %c0_242] : memref<32x32xf32, #tpu.memory_space<vmem>>, vector<2x32xf32>
    tpu.vector_store %arg29[%c6_241, %c0_242], %892 {strides = array<i32>} : memref<32x32xf32, #tpu.memory_space<vmem>>, vector<2x32xf32>,
    %c26_243 = arith.constant 26 : index
    %c0_244 = arith.constant 0 : index
    %895 = vector.load %arg26[%c26_243, %c0_244] : memref<32x96xf32, #tpu.memory_space<vmem>>, vector<2x96xf32>
    %c4_245 = arith.constant 4 : index
    %c0_246 = arith.constant 0 : index
    %896 = vector.load %arg27[%c4_245, %c0_246] : memref<32x96xf32, #tpu.memory_space<vmem>>, vector<2x96xf32>
    %897 = tpu.concatenate %864, %892 in 1 : vector<2x32xf32>, vector<2x32xf32> -> vector<2x64xf32>
    %898 = arith.truncf %897 : vector<2x64xf32> to vector<2x64xbf16>
    %cst_247 = arith.constant dense<0.000000e+00> : vector<2x192xf32>
    %899 = tpu.matmul %898, %70, %cst_247 {dimension_numbers = #tpu.dot_dimension_numbers<[1], [0], [0], [1], [0, 0, 1, 1], [], []>} : vector<2x64xbf16>, vector<64x192xbf16>, vector<2x192xf32> -> vector<2x192xf32>
    %900 = vector.extract_strided_slice %895 {offsets = [0, 0], sizes = [2, 32], strides = [1, 1]} : vector<2x96xf32> to vector<2x32xf32>
    %901 = vector.extract_strided_slice %899 {offsets = [0, 0], sizes = [2, 32], strides = [1, 1]} : vector<2x192xf32> to vector<2x32xf32>
    %902 = arith.addf %900, %901 : vector<2x32xf32>
    %903 = arith.negf %902 : vector<2x32xf32>
    %904 = math.exp %903 : vector<2x32xf32>
    %cst_248 = arith.constant 1.000000e+00 : f32
    %905 = vector.broadcast %cst_248 : f32 to vector<2x32xf32>
    %906 = arith.addf %905, %904 : vector<2x32xf32>
    %907 = arith.divf %905, %906 : vector<2x32xf32>
    %908 = vector.extract_strided_slice %895 {offsets = [0, 32], sizes = [2, 32], strides = [1, 1]} : vector<2x96xf32> to vector<2x32xf32>
    %909 = vector.extract_strided_slice %899 {offsets = [0, 32], sizes = [2, 32], strides = [1, 1]} : vector<2x192xf32> to vector<2x32xf32>
    %910 = arith.addf %908, %909 : vector<2x32xf32>
    %911 = arith.negf %910 : vector<2x32xf32>
    %912 = math.exp %911 : vector<2x32xf32>
    %cst_249 = arith.constant 1.000000e+00 : f32
    %913 = vector.broadcast %cst_249 : f32 to vector<2x32xf32>
    %914 = arith.addf %913, %912 : vector<2x32xf32>
    %915 = arith.divf %913, %914 : vector<2x32xf32>
    %916 = vector.extract_strided_slice %895 {offsets = [0, 64], sizes = [2, 32], strides = [1, 1]} : vector<2x96xf32> to vector<2x32xf32>
    %917 = vector.extract_strided_slice %899 {offsets = [0, 64], sizes = [2, 32], strides = [1, 1]} : vector<2x192xf32> to vector<2x32xf32>
    %918 = vector.broadcast %72 : vector<1x32xf32> to vector<2x32xf32>
    %919 = arith.addf %917, %918 : vector<2x32xf32>
    %920 = arith.mulf %907, %919 : vector<2x32xf32>
    %921 = arith.addf %916, %920 : vector<2x32xf32>
    %922 = math.tanh %921 : vector<2x32xf32>
    %cst_250 = arith.constant 1.000000e+00 : f32
    %923 = vector.broadcast %cst_250 : f32 to vector<2x32xf32>
    %924 = arith.subf %923, %915 : vector<2x32xf32>
    %925 = arith.mulf %924, %922 : vector<2x32xf32>
    %926 = arith.mulf %915, %864 : vector<2x32xf32>
    %927 = arith.addf %925, %926 : vector<2x32xf32>
    %928 = vector.extract_strided_slice %896 {offsets = [0, 0], sizes = [2, 32], strides = [1, 1]} : vector<2x96xf32> to vector<2x32xf32>
    %929 = vector.extract_strided_slice %899 {offsets = [0, 96], sizes = [2, 32], strides = [1, 1]} : vector<2x192xf32> to vector<2x32xf32>
    %930 = arith.addf %928, %929 : vector<2x32xf32>
    %931 = arith.negf %930 : vector<2x32xf32>
    %932 = math.exp %931 : vector<2x32xf32>
    %cst_251 = arith.constant 1.000000e+00 : f32
    %933 = vector.broadcast %cst_251 : f32 to vector<2x32xf32>
    %934 = arith.addf %933, %932 : vector<2x32xf32>
    %935 = arith.divf %933, %934 : vector<2x32xf32>
    %936 = vector.extract_strided_slice %896 {offsets = [0, 32], sizes = [2, 32], strides = [1, 1]} : vector<2x96xf32> to vector<2x32xf32>
    %937 = vector.extract_strided_slice %899 {offsets = [0, 128], sizes = [2, 32], strides = [1, 1]} : vector<2x192xf32> to vector<2x32xf32>
    %938 = arith.addf %936, %937 : vector<2x32xf32>
    %939 = arith.negf %938 : vector<2x32xf32>
    %940 = math.exp %939 : vector<2x32xf32>
    %cst_252 = arith.constant 1.000000e+00 : f32
    %941 = vector.broadcast %cst_252 : f32 to vector<2x32xf32>
    %942 = arith.addf %941, %940 : vector<2x32xf32>
    %943 = arith.divf %941, %942 : vector<2x32xf32>
    %944 = vector.extract_strided_slice %896 {offsets = [0, 64], sizes = [2, 32], strides = [1, 1]} : vector<2x96xf32> to vector<2x32xf32>
    %945 = vector.extract_strided_slice %899 {offsets = [0, 160], sizes = [2, 32], strides = [1, 1]} : vector<2x192xf32> to vector<2x32xf32>
    %946 = vector.broadcast %73 : vector<1x32xf32> to vector<2x32xf32>
    %947 = arith.addf %945, %946 : vector<2x32xf32>
    %948 = arith.mulf %935, %947 : vector<2x32xf32>
    %949 = arith.addf %944, %948 : vector<2x32xf32>
    %950 = math.tanh %949 : vector<2x32xf32>
    %cst_253 = arith.constant 1.000000e+00 : f32
    %951 = vector.broadcast %cst_253 : f32 to vector<2x32xf32>
    %952 = arith.subf %951, %943 : vector<2x32xf32>
    %953 = arith.mulf %952, %950 : vector<2x32xf32>
    %954 = arith.mulf %943, %892 : vector<2x32xf32>
    %955 = arith.addf %953, %954 : vector<2x32xf32>
    %c26_254 = arith.constant 26 : index
    %c0_255 = arith.constant 0 : index
    %956 = vector.load %arg28[%c26_254, %c0_255] : memref<32x32xf32, #tpu.memory_space<vmem>>, vector<2x32xf32>
    tpu.vector_store %arg28[%c26_254, %c0_255], %927 {strides = array<i32>} : memref<32x32xf32, #tpu.memory_space<vmem>>, vector<2x32xf32>,
    %c4_256 = arith.constant 4 : index
    %c0_257 = arith.constant 0 : index
    %957 = vector.load %arg29[%c4_256, %c0_257] : memref<32x32xf32, #tpu.memory_space<vmem>>, vector<2x32xf32>
    tpu.vector_store %arg29[%c4_256, %c0_257], %955 {strides = array<i32>} : memref<32x32xf32, #tpu.memory_space<vmem>>, vector<2x32xf32>,
    %c28_258 = arith.constant 28 : index
    %c0_259 = arith.constant 0 : index
    %958 = vector.load %arg26[%c28_258, %c0_259] : memref<32x96xf32, #tpu.memory_space<vmem>>, vector<2x96xf32>
    %c2_260 = arith.constant 2 : index
    %c0_261 = arith.constant 0 : index
    %959 = vector.load %arg27[%c2_260, %c0_261] : memref<32x96xf32, #tpu.memory_space<vmem>>, vector<2x96xf32>
    %960 = tpu.concatenate %927, %955 in 1 : vector<2x32xf32>, vector<2x32xf32> -> vector<2x64xf32>
    %961 = arith.truncf %960 : vector<2x64xf32> to vector<2x64xbf16>
    %cst_262 = arith.constant dense<0.000000e+00> : vector<2x192xf32>
    %962 = tpu.matmul %961, %70, %cst_262 {dimension_numbers = #tpu.dot_dimension_numbers<[1], [0], [0], [1], [0, 0, 1, 1], [], []>} : vector<2x64xbf16>, vector<64x192xbf16>, vector<2x192xf32> -> vector<2x192xf32>
    %963 = vector.extract_strided_slice %958 {offsets = [0, 0], sizes = [2, 32], strides = [1, 1]} : vector<2x96xf32> to vector<2x32xf32>
    %964 = vector.extract_strided_slice %962 {offsets = [0, 0], sizes = [2, 32], strides = [1, 1]} : vector<2x192xf32> to vector<2x32xf32>
    %965 = arith.addf %963, %964 : vector<2x32xf32>
    %966 = arith.negf %965 : vector<2x32xf32>
    %967 = math.exp %966 : vector<2x32xf32>
    %cst_263 = arith.constant 1.000000e+00 : f32
    %968 = vector.broadcast %cst_263 : f32 to vector<2x32xf32>
    %969 = arith.addf %968, %967 : vector<2x32xf32>
    %970 = arith.divf %968, %969 : vector<2x32xf32>
    %971 = vector.extract_strided_slice %958 {offsets = [0, 32], sizes = [2, 32], strides = [1, 1]} : vector<2x96xf32> to vector<2x32xf32>
    %972 = vector.extract_strided_slice %962 {offsets = [0, 32], sizes = [2, 32], strides = [1, 1]} : vector<2x192xf32> to vector<2x32xf32>
    %973 = arith.addf %971, %972 : vector<2x32xf32>
    %974 = arith.negf %973 : vector<2x32xf32>
    %975 = math.exp %974 : vector<2x32xf32>
    %cst_264 = arith.constant 1.000000e+00 : f32
    %976 = vector.broadcast %cst_264 : f32 to vector<2x32xf32>
    %977 = arith.addf %976, %975 : vector<2x32xf32>
    %978 = arith.divf %976, %977 : vector<2x32xf32>
    %979 = vector.extract_strided_slice %958 {offsets = [0, 64], sizes = [2, 32], strides = [1, 1]} : vector<2x96xf32> to vector<2x32xf32>
    %980 = vector.extract_strided_slice %962 {offsets = [0, 64], sizes = [2, 32], strides = [1, 1]} : vector<2x192xf32> to vector<2x32xf32>
    %981 = vector.broadcast %72 : vector<1x32xf32> to vector<2x32xf32>
    %982 = arith.addf %980, %981 : vector<2x32xf32>
    %983 = arith.mulf %970, %982 : vector<2x32xf32>
    %984 = arith.addf %979, %983 : vector<2x32xf32>
    %985 = math.tanh %984 : vector<2x32xf32>
    %cst_265 = arith.constant 1.000000e+00 : f32
    %986 = vector.broadcast %cst_265 : f32 to vector<2x32xf32>
    %987 = arith.subf %986, %978 : vector<2x32xf32>
    %988 = arith.mulf %987, %985 : vector<2x32xf32>
    %989 = arith.mulf %978, %927 : vector<2x32xf32>
    %990 = arith.addf %988, %989 : vector<2x32xf32>
    %991 = vector.extract_strided_slice %959 {offsets = [0, 0], sizes = [2, 32], strides = [1, 1]} : vector<2x96xf32> to vector<2x32xf32>
    %992 = vector.extract_strided_slice %962 {offsets = [0, 96], sizes = [2, 32], strides = [1, 1]} : vector<2x192xf32> to vector<2x32xf32>
    %993 = arith.addf %991, %992 : vector<2x32xf32>
    %994 = arith.negf %993 : vector<2x32xf32>
    %995 = math.exp %994 : vector<2x32xf32>
    %cst_266 = arith.constant 1.000000e+00 : f32
    %996 = vector.broadcast %cst_266 : f32 to vector<2x32xf32>
    %997 = arith.addf %996, %995 : vector<2x32xf32>
    %998 = arith.divf %996, %997 : vector<2x32xf32>
    %999 = vector.extract_strided_slice %959 {offsets = [0, 32], sizes = [2, 32], strides = [1, 1]} : vector<2x96xf32> to vector<2x32xf32>
    %1000 = vector.extract_strided_slice %962 {offsets = [0, 128], sizes = [2, 32], strides = [1, 1]} : vector<2x192xf32> to vector<2x32xf32>
    %1001 = arith.addf %999, %1000 : vector<2x32xf32>
    %1002 = arith.negf %1001 : vector<2x32xf32>
    %1003 = math.exp %1002 : vector<2x32xf32>
    %cst_267 = arith.constant 1.000000e+00 : f32
    %1004 = vector.broadcast %cst_267 : f32 to vector<2x32xf32>
    %1005 = arith.addf %1004, %1003 : vector<2x32xf32>
    %1006 = arith.divf %1004, %1005 : vector<2x32xf32>
    %1007 = vector.extract_strided_slice %959 {offsets = [0, 64], sizes = [2, 32], strides = [1, 1]} : vector<2x96xf32> to vector<2x32xf32>
    %1008 = vector.extract_strided_slice %962 {offsets = [0, 160], sizes = [2, 32], strides = [1, 1]} : vector<2x192xf32> to vector<2x32xf32>
    %1009 = vector.broadcast %73 : vector<1x32xf32> to vector<2x32xf32>
    %1010 = arith.addf %1008, %1009 : vector<2x32xf32>
    %1011 = arith.mulf %998, %1010 : vector<2x32xf32>
    %1012 = arith.addf %1007, %1011 : vector<2x32xf32>
    %1013 = math.tanh %1012 : vector<2x32xf32>
    %cst_268 = arith.constant 1.000000e+00 : f32
    %1014 = vector.broadcast %cst_268 : f32 to vector<2x32xf32>
    %1015 = arith.subf %1014, %1006 : vector<2x32xf32>
    %1016 = arith.mulf %1015, %1013 : vector<2x32xf32>
    %1017 = arith.mulf %1006, %955 : vector<2x32xf32>
    %1018 = arith.addf %1016, %1017 : vector<2x32xf32>
    %c28_269 = arith.constant 28 : index
    %c0_270 = arith.constant 0 : index
    %1019 = vector.load %arg28[%c28_269, %c0_270] : memref<32x32xf32, #tpu.memory_space<vmem>>, vector<2x32xf32>
    tpu.vector_store %arg28[%c28_269, %c0_270], %990 {strides = array<i32>} : memref<32x32xf32, #tpu.memory_space<vmem>>, vector<2x32xf32>,
    %c2_271 = arith.constant 2 : index
    %c0_272 = arith.constant 0 : index
    %1020 = vector.load %arg29[%c2_271, %c0_272] : memref<32x32xf32, #tpu.memory_space<vmem>>, vector<2x32xf32>
    tpu.vector_store %arg29[%c2_271, %c0_272], %1018 {strides = array<i32>} : memref<32x32xf32, #tpu.memory_space<vmem>>, vector<2x32xf32>,
    %c30_273 = arith.constant 30 : index
    %c0_274 = arith.constant 0 : index
    %1021 = vector.load %arg26[%c30_273, %c0_274] : memref<32x96xf32, #tpu.memory_space<vmem>>, vector<2x96xf32>
    %c0_275 = arith.constant 0 : index
    %c0_276 = arith.constant 0 : index
    %1022 = vector.load %arg27[%c0_275, %c0_276] : memref<32x96xf32, #tpu.memory_space<vmem>>, vector<2x96xf32>
    %1023 = tpu.concatenate %990, %1018 in 1 : vector<2x32xf32>, vector<2x32xf32> -> vector<2x64xf32>
    %1024 = arith.truncf %1023 : vector<2x64xf32> to vector<2x64xbf16>
    %cst_277 = arith.constant dense<0.000000e+00> : vector<2x192xf32>
    %1025 = tpu.matmul %1024, %70, %cst_277 {dimension_numbers = #tpu.dot_dimension_numbers<[1], [0], [0], [1], [0, 0, 1, 1], [], []>} : vector<2x64xbf16>, vector<64x192xbf16>, vector<2x192xf32> -> vector<2x192xf32>
    %1026 = vector.extract_strided_slice %1021 {offsets = [0, 0], sizes = [2, 32], strides = [1, 1]} : vector<2x96xf32> to vector<2x32xf32>
    %1027 = vector.extract_strided_slice %1025 {offsets = [0, 0], sizes = [2, 32], strides = [1, 1]} : vector<2x192xf32> to vector<2x32xf32>
    %1028 = arith.addf %1026, %1027 : vector<2x32xf32>
    %1029 = arith.negf %1028 : vector<2x32xf32>
    %1030 = math.exp %1029 : vector<2x32xf32>
    %cst_278 = arith.constant 1.000000e+00 : f32
    %1031 = vector.broadcast %cst_278 : f32 to vector<2x32xf32>
    %1032 = arith.addf %1031, %1030 : vector<2x32xf32>
    %1033 = arith.divf %1031, %1032 : vector<2x32xf32>
    %1034 = vector.extract_strided_slice %1021 {offsets = [0, 32], sizes = [2, 32], strides = [1, 1]} : vector<2x96xf32> to vector<2x32xf32>
    %1035 = vector.extract_strided_slice %1025 {offsets = [0, 32], sizes = [2, 32], strides = [1, 1]} : vector<2x192xf32> to vector<2x32xf32>
    %1036 = arith.addf %1034, %1035 : vector<2x32xf32>
    %1037 = arith.negf %1036 : vector<2x32xf32>
    %1038 = math.exp %1037 : vector<2x32xf32>
    %cst_279 = arith.constant 1.000000e+00 : f32
    %1039 = vector.broadcast %cst_279 : f32 to vector<2x32xf32>
    %1040 = arith.addf %1039, %1038 : vector<2x32xf32>
    %1041 = arith.divf %1039, %1040 : vector<2x32xf32>
    %1042 = vector.extract_strided_slice %1021 {offsets = [0, 64], sizes = [2, 32], strides = [1, 1]} : vector<2x96xf32> to vector<2x32xf32>
    %1043 = vector.extract_strided_slice %1025 {offsets = [0, 64], sizes = [2, 32], strides = [1, 1]} : vector<2x192xf32> to vector<2x32xf32>
    %1044 = vector.broadcast %72 : vector<1x32xf32> to vector<2x32xf32>
    %1045 = arith.addf %1043, %1044 : vector<2x32xf32>
    %1046 = arith.mulf %1033, %1045 : vector<2x32xf32>
    %1047 = arith.addf %1042, %1046 : vector<2x32xf32>
    %1048 = math.tanh %1047 : vector<2x32xf32>
    %cst_280 = arith.constant 1.000000e+00 : f32
    %1049 = vector.broadcast %cst_280 : f32 to vector<2x32xf32>
    %1050 = arith.subf %1049, %1041 : vector<2x32xf32>
    %1051 = arith.mulf %1050, %1048 : vector<2x32xf32>
    %1052 = arith.mulf %1041, %990 : vector<2x32xf32>
    %1053 = arith.addf %1051, %1052 : vector<2x32xf32>
    %1054 = vector.extract_strided_slice %1022 {offsets = [0, 0], sizes = [2, 32], strides = [1, 1]} : vector<2x96xf32> to vector<2x32xf32>
    %1055 = vector.extract_strided_slice %1025 {offsets = [0, 96], sizes = [2, 32], strides = [1, 1]} : vector<2x192xf32> to vector<2x32xf32>
    %1056 = arith.addf %1054, %1055 : vector<2x32xf32>
    %1057 = arith.negf %1056 : vector<2x32xf32>
    %1058 = math.exp %1057 : vector<2x32xf32>
    %cst_281 = arith.constant 1.000000e+00 : f32
    %1059 = vector.broadcast %cst_281 : f32 to vector<2x32xf32>
    %1060 = arith.addf %1059, %1058 : vector<2x32xf32>
    %1061 = arith.divf %1059, %1060 : vector<2x32xf32>
    %1062 = vector.extract_strided_slice %1022 {offsets = [0, 32], sizes = [2, 32], strides = [1, 1]} : vector<2x96xf32> to vector<2x32xf32>
    %1063 = vector.extract_strided_slice %1025 {offsets = [0, 128], sizes = [2, 32], strides = [1, 1]} : vector<2x192xf32> to vector<2x32xf32>
    %1064 = arith.addf %1062, %1063 : vector<2x32xf32>
    %1065 = arith.negf %1064 : vector<2x32xf32>
    %1066 = math.exp %1065 : vector<2x32xf32>
    %cst_282 = arith.constant 1.000000e+00 : f32
    %1067 = vector.broadcast %cst_282 : f32 to vector<2x32xf32>
    %1068 = arith.addf %1067, %1066 : vector<2x32xf32>
    %1069 = arith.divf %1067, %1068 : vector<2x32xf32>
    %1070 = vector.extract_strided_slice %1022 {offsets = [0, 64], sizes = [2, 32], strides = [1, 1]} : vector<2x96xf32> to vector<2x32xf32>
    %1071 = vector.extract_strided_slice %1025 {offsets = [0, 160], sizes = [2, 32], strides = [1, 1]} : vector<2x192xf32> to vector<2x32xf32>
    %1072 = vector.broadcast %73 : vector<1x32xf32> to vector<2x32xf32>
    %1073 = arith.addf %1071, %1072 : vector<2x32xf32>
    %1074 = arith.mulf %1061, %1073 : vector<2x32xf32>
    %1075 = arith.addf %1070, %1074 : vector<2x32xf32>
    %1076 = math.tanh %1075 : vector<2x32xf32>
    %cst_283 = arith.constant 1.000000e+00 : f32
    %1077 = vector.broadcast %cst_283 : f32 to vector<2x32xf32>
    %1078 = arith.subf %1077, %1069 : vector<2x32xf32>
    %1079 = arith.mulf %1078, %1076 : vector<2x32xf32>
    %1080 = arith.mulf %1069, %1018 : vector<2x32xf32>
    %1081 = arith.addf %1079, %1080 : vector<2x32xf32>
    %c30_284 = arith.constant 30 : index
    %c0_285 = arith.constant 0 : index
    %1082 = vector.load %arg28[%c30_284, %c0_285] : memref<32x32xf32, #tpu.memory_space<vmem>>, vector<2x32xf32>
    tpu.vector_store %arg28[%c30_284, %c0_285], %1053 {strides = array<i32>} : memref<32x32xf32, #tpu.memory_space<vmem>>, vector<2x32xf32>,
    %c0_286 = arith.constant 0 : index
    %c0_287 = arith.constant 0 : index
    %1083 = vector.load %arg29[%c0_286, %c0_287] : memref<32x32xf32, #tpu.memory_space<vmem>>, vector<2x32xf32>
    tpu.vector_store %arg29[%c0_286, %c0_287], %1081 {strides = array<i32>} : memref<32x32xf32, #tpu.memory_space<vmem>>, vector<2x32xf32>,
    %c0_288 = arith.constant 0 : index
    %c0_289 = arith.constant 0 : index
    %1084 = vector.load %arg28[%c0_288, %c0_289] : memref<32x32xf32, #tpu.memory_space<vmem>>, vector<32x32xf32>
    %c0_290 = arith.constant 0 : index
    %c0_291 = arith.constant 0 : index
    %1085 = vector.load %arg29[%c0_290, %c0_291] : memref<32x32xf32, #tpu.memory_space<vmem>>, vector<32x32xf32>
    %1086 = tpu.concatenate %1084, %1085 in 1 : vector<32x32xf32>, vector<32x32xf32> -> vector<32x64xf32>
    %1087 = arith.truncf %1086 : vector<32x64xf32> to vector<32x64xbf16>
    %c0_292 = arith.constant 0 : index
    %c0_293 = arith.constant 0 : index
    %1088 = vector.load %arg11[%c0_292, %c0_293] : memref<64x192xbf16, #tpu.memory_space<vmem>>, vector<64x192xbf16>
    %cst_294 = arith.constant dense<0.000000e+00> : vector<32x192xf32>
    %1089 = tpu.matmul %1087, %1088, %cst_294 {dimension_numbers = #tpu.dot_dimension_numbers<[1], [0], [0], [1], [0, 0, 1, 1], [], []>} : vector<32x64xbf16>, vector<64x192xbf16>, vector<32x192xf32> -> vector<32x192xf32>
    %c0_295 = arith.constant 0 : index
    %c0_296 = arith.constant 0 : index
    %1090 = vector.load %arg12[%c0_295, %c0_296] : memref<1x192xf32, #tpu.memory_space<vmem>>, vector<1x192xf32>
    %1091 = vector.broadcast %1090 : vector<1x192xf32> to vector<32x192xf32>
    %1092 = arith.addf %1089, %1091 : vector<32x192xf32>
    %1093 = vector.extract_strided_slice %1092 {offsets = [0, 0], sizes = [32, 96], strides = [1, 1]} : vector<32x192xf32> to vector<32x96xf32>
    %c0_297 = arith.constant 0 : index
    %c0_298 = arith.constant 0 : index
    %1094 = vector.load %arg26[%c0_297, %c0_298] : memref<32x96xf32, #tpu.memory_space<vmem>>, vector<32x96xf32>
    tpu.vector_store %arg26[%c0_297, %c0_298], %1093 {strides = array<i32>} : memref<32x96xf32, #tpu.memory_space<vmem>>, vector<32x96xf32>,
    %1095 = vector.extract_strided_slice %1092 {offsets = [0, 96], sizes = [32, 96], strides = [1, 1]} : vector<32x192xf32> to vector<32x96xf32>
    %c0_299 = arith.constant 0 : index
    %c0_300 = arith.constant 0 : index
    %1096 = vector.load %arg27[%c0_299, %c0_300] : memref<32x96xf32, #tpu.memory_space<vmem>>, vector<32x96xf32>
    tpu.vector_store %arg27[%c0_299, %c0_300], %1095 {strides = array<i32>} : memref<32x96xf32, #tpu.memory_space<vmem>>, vector<32x96xf32>,
    %c0_301 = arith.constant 0 : index
    %c0_302 = arith.constant 0 : index
    %1097 = vector.load %arg13[%c0_301, %c0_302] : memref<64x192xbf16, #tpu.memory_space<vmem>>, vector<64x192xbf16>
    %c0_303 = arith.constant 0 : index
    %c0_304 = arith.constant 0 : index
    %1098 = vector.load %arg14[%c0_303, %c0_304] : memref<1x64xf32, #tpu.memory_space<vmem>>, vector<1x64xf32>
    %1099 = vector.extract_strided_slice %1098 {offsets = [0, 0], sizes = [1, 32], strides = [1, 1]} : vector<1x64xf32> to vector<1x32xf32>
    %1100 = vector.extract_strided_slice %1098 {offsets = [0, 32], sizes = [1, 32], strides = [1, 1]} : vector<1x64xf32> to vector<1x32xf32>
    %cst_305 = arith.constant 0.000000e+00 : f32
    %1101 = vector.broadcast %cst_305 : f32 to vector<2x32xf32>
    %cst_306 = arith.constant 0.000000e+00 : f32
    %1102 = vector.broadcast %cst_306 : f32 to vector<2x32xf32>
    %c0_307 = arith.constant 0 : index
    %c0_308 = arith.constant 0 : index
    %1103 = vector.load %arg26[%c0_307, %c0_308] : memref<32x96xf32, #tpu.memory_space<vmem>>, vector<2x96xf32>
    %c30_309 = arith.constant 30 : index
    %c0_310 = arith.constant 0 : index
    %1104 = vector.load %arg27[%c30_309, %c0_310] : memref<32x96xf32, #tpu.memory_space<vmem>>, vector<2x96xf32>
    %1105 = tpu.concatenate %1101, %1102 in 1 : vector<2x32xf32>, vector<2x32xf32> -> vector<2x64xf32>
    %1106 = arith.truncf %1105 : vector<2x64xf32> to vector<2x64xbf16>
    %cst_311 = arith.constant dense<0.000000e+00> : vector<2x192xf32>
    %1107 = tpu.matmul %1106, %1097, %cst_311 {dimension_numbers = #tpu.dot_dimension_numbers<[1], [0], [0], [1], [0, 0, 1, 1], [], []>} : vector<2x64xbf16>, vector<64x192xbf16>, vector<2x192xf32> -> vector<2x192xf32>
    %1108 = vector.extract_strided_slice %1103 {offsets = [0, 0], sizes = [2, 32], strides = [1, 1]} : vector<2x96xf32> to vector<2x32xf32>
    %1109 = vector.extract_strided_slice %1107 {offsets = [0, 0], sizes = [2, 32], strides = [1, 1]} : vector<2x192xf32> to vector<2x32xf32>
    %1110 = arith.addf %1108, %1109 : vector<2x32xf32>
    %1111 = arith.negf %1110 : vector<2x32xf32>
    %1112 = math.exp %1111 : vector<2x32xf32>
    %cst_312 = arith.constant 1.000000e+00 : f32
    %1113 = vector.broadcast %cst_312 : f32 to vector<2x32xf32>
    %1114 = arith.addf %1113, %1112 : vector<2x32xf32>
    %1115 = arith.divf %1113, %1114 : vector<2x32xf32>
    %1116 = vector.extract_strided_slice %1103 {offsets = [0, 32], sizes = [2, 32], strides = [1, 1]} : vector<2x96xf32> to vector<2x32xf32>
    %1117 = vector.extract_strided_slice %1107 {offsets = [0, 32], sizes = [2, 32], strides = [1, 1]} : vector<2x192xf32> to vector<2x32xf32>
    %1118 = arith.addf %1116, %1117 : vector<2x32xf32>
    %1119 = arith.negf %1118 : vector<2x32xf32>
    %1120 = math.exp %1119 : vector<2x32xf32>
    %cst_313 = arith.constant 1.000000e+00 : f32
    %1121 = vector.broadcast %cst_313 : f32 to vector<2x32xf32>
    %1122 = arith.addf %1121, %1120 : vector<2x32xf32>
    %1123 = arith.divf %1121, %1122 : vector<2x32xf32>
    %1124 = vector.extract_strided_slice %1103 {offsets = [0, 64], sizes = [2, 32], strides = [1, 1]} : vector<2x96xf32> to vector<2x32xf32>
    %1125 = vector.extract_strided_slice %1107 {offsets = [0, 64], sizes = [2, 32], strides = [1, 1]} : vector<2x192xf32> to vector<2x32xf32>
    %1126 = vector.broadcast %1099 : vector<1x32xf32> to vector<2x32xf32>
    %1127 = arith.addf %1125, %1126 : vector<2x32xf32>
    %1128 = arith.mulf %1115, %1127 : vector<2x32xf32>
    %1129 = arith.addf %1124, %1128 : vector<2x32xf32>
    %1130 = math.tanh %1129 : vector<2x32xf32>
    %cst_314 = arith.constant 1.000000e+00 : f32
    %1131 = vector.broadcast %cst_314 : f32 to vector<2x32xf32>
    %1132 = arith.subf %1131, %1123 : vector<2x32xf32>
    %1133 = arith.mulf %1132, %1130 : vector<2x32xf32>
    %1134 = arith.mulf %1123, %1101 : vector<2x32xf32>
    %1135 = arith.addf %1133, %1134 : vector<2x32xf32>
    %1136 = vector.extract_strided_slice %1104 {offsets = [0, 0], sizes = [2, 32], strides = [1, 1]} : vector<2x96xf32> to vector<2x32xf32>
    %1137 = vector.extract_strided_slice %1107 {offsets = [0, 96], sizes = [2, 32], strides = [1, 1]} : vector<2x192xf32> to vector<2x32xf32>
    %1138 = arith.addf %1136, %1137 : vector<2x32xf32>
    %1139 = arith.negf %1138 : vector<2x32xf32>
    %1140 = math.exp %1139 : vector<2x32xf32>
    %cst_315 = arith.constant 1.000000e+00 : f32
    %1141 = vector.broadcast %cst_315 : f32 to vector<2x32xf32>
    %1142 = arith.addf %1141, %1140 : vector<2x32xf32>
    %1143 = arith.divf %1141, %1142 : vector<2x32xf32>
    %1144 = vector.extract_strided_slice %1104 {offsets = [0, 32], sizes = [2, 32], strides = [1, 1]} : vector<2x96xf32> to vector<2x32xf32>
    %1145 = vector.extract_strided_slice %1107 {offsets = [0, 128], sizes = [2, 32], strides = [1, 1]} : vector<2x192xf32> to vector<2x32xf32>
    %1146 = arith.addf %1144, %1145 : vector<2x32xf32>
    %1147 = arith.negf %1146 : vector<2x32xf32>
    %1148 = math.exp %1147 : vector<2x32xf32>
    %cst_316 = arith.constant 1.000000e+00 : f32
    %1149 = vector.broadcast %cst_316 : f32 to vector<2x32xf32>
    %1150 = arith.addf %1149, %1148 : vector<2x32xf32>
    %1151 = arith.divf %1149, %1150 : vector<2x32xf32>
    %1152 = vector.extract_strided_slice %1104 {offsets = [0, 64], sizes = [2, 32], strides = [1, 1]} : vector<2x96xf32> to vector<2x32xf32>
    %1153 = vector.extract_strided_slice %1107 {offsets = [0, 160], sizes = [2, 32], strides = [1, 1]} : vector<2x192xf32> to vector<2x32xf32>
    %1154 = vector.broadcast %1100 : vector<1x32xf32> to vector<2x32xf32>
    %1155 = arith.addf %1153, %1154 : vector<2x32xf32>
    %1156 = arith.mulf %1143, %1155 : vector<2x32xf32>
    %1157 = arith.addf %1152, %1156 : vector<2x32xf32>
    %1158 = math.tanh %1157 : vector<2x32xf32>
    %cst_317 = arith.constant 1.000000e+00 : f32
    %1159 = vector.broadcast %cst_317 : f32 to vector<2x32xf32>
    %1160 = arith.subf %1159, %1151 : vector<2x32xf32>
    %1161 = arith.mulf %1160, %1158 : vector<2x32xf32>
    %1162 = arith.mulf %1151, %1102 : vector<2x32xf32>
    %1163 = arith.addf %1161, %1162 : vector<2x32xf32>
    %c0_318 = arith.constant 0 : index
    %c0_319 = arith.constant 0 : index
    %1164 = vector.load %arg28[%c0_318, %c0_319] : memref<32x32xf32, #tpu.memory_space<vmem>>, vector<2x32xf32>
    tpu.vector_store %arg28[%c0_318, %c0_319], %1135 {strides = array<i32>} : memref<32x32xf32, #tpu.memory_space<vmem>>, vector<2x32xf32>,
    %c30_320 = arith.constant 30 : index
    %c0_321 = arith.constant 0 : index
    %1165 = vector.load %arg29[%c30_320, %c0_321] : memref<32x32xf32, #tpu.memory_space<vmem>>, vector<2x32xf32>
    tpu.vector_store %arg29[%c30_320, %c0_321], %1163 {strides = array<i32>} : memref<32x32xf32, #tpu.memory_space<vmem>>, vector<2x32xf32>,
    %c2_322 = arith.constant 2 : index
    %c0_323 = arith.constant 0 : index
    %1166 = vector.load %arg26[%c2_322, %c0_323] : memref<32x96xf32, #tpu.memory_space<vmem>>, vector<2x96xf32>
    %c28_324 = arith.constant 28 : index
    %c0_325 = arith.constant 0 : index
    %1167 = vector.load %arg27[%c28_324, %c0_325] : memref<32x96xf32, #tpu.memory_space<vmem>>, vector<2x96xf32>
    %1168 = tpu.concatenate %1135, %1163 in 1 : vector<2x32xf32>, vector<2x32xf32> -> vector<2x64xf32>
    %1169 = arith.truncf %1168 : vector<2x64xf32> to vector<2x64xbf16>
    %cst_326 = arith.constant dense<0.000000e+00> : vector<2x192xf32>
    %1170 = tpu.matmul %1169, %1097, %cst_326 {dimension_numbers = #tpu.dot_dimension_numbers<[1], [0], [0], [1], [0, 0, 1, 1], [], []>} : vector<2x64xbf16>, vector<64x192xbf16>, vector<2x192xf32> -> vector<2x192xf32>
    %1171 = vector.extract_strided_slice %1166 {offsets = [0, 0], sizes = [2, 32], strides = [1, 1]} : vector<2x96xf32> to vector<2x32xf32>
    %1172 = vector.extract_strided_slice %1170 {offsets = [0, 0], sizes = [2, 32], strides = [1, 1]} : vector<2x192xf32> to vector<2x32xf32>
    %1173 = arith.addf %1171, %1172 : vector<2x32xf32>
    %1174 = arith.negf %1173 : vector<2x32xf32>
    %1175 = math.exp %1174 : vector<2x32xf32>
    %cst_327 = arith.constant 1.000000e+00 : f32
    %1176 = vector.broadcast %cst_327 : f32 to vector<2x32xf32>
    %1177 = arith.addf %1176, %1175 : vector<2x32xf32>
    %1178 = arith.divf %1176, %1177 : vector<2x32xf32>
    %1179 = vector.extract_strided_slice %1166 {offsets = [0, 32], sizes = [2, 32], strides = [1, 1]} : vector<2x96xf32> to vector<2x32xf32>
    %1180 = vector.extract_strided_slice %1170 {offsets = [0, 32], sizes = [2, 32], strides = [1, 1]} : vector<2x192xf32> to vector<2x32xf32>
    %1181 = arith.addf %1179, %1180 : vector<2x32xf32>
    %1182 = arith.negf %1181 : vector<2x32xf32>
    %1183 = math.exp %1182 : vector<2x32xf32>
    %cst_328 = arith.constant 1.000000e+00 : f32
    %1184 = vector.broadcast %cst_328 : f32 to vector<2x32xf32>
    %1185 = arith.addf %1184, %1183 : vector<2x32xf32>
    %1186 = arith.divf %1184, %1185 : vector<2x32xf32>
    %1187 = vector.extract_strided_slice %1166 {offsets = [0, 64], sizes = [2, 32], strides = [1, 1]} : vector<2x96xf32> to vector<2x32xf32>
    %1188 = vector.extract_strided_slice %1170 {offsets = [0, 64], sizes = [2, 32], strides = [1, 1]} : vector<2x192xf32> to vector<2x32xf32>
    %1189 = vector.broadcast %1099 : vector<1x32xf32> to vector<2x32xf32>
    %1190 = arith.addf %1188, %1189 : vector<2x32xf32>
    %1191 = arith.mulf %1178, %1190 : vector<2x32xf32>
    %1192 = arith.addf %1187, %1191 : vector<2x32xf32>
    %1193 = math.tanh %1192 : vector<2x32xf32>
    %cst_329 = arith.constant 1.000000e+00 : f32
    %1194 = vector.broadcast %cst_329 : f32 to vector<2x32xf32>
    %1195 = arith.subf %1194, %1186 : vector<2x32xf32>
    %1196 = arith.mulf %1195, %1193 : vector<2x32xf32>
    %1197 = arith.mulf %1186, %1135 : vector<2x32xf32>
    %1198 = arith.addf %1196, %1197 : vector<2x32xf32>
    %1199 = vector.extract_strided_slice %1167 {offsets = [0, 0], sizes = [2, 32], strides = [1, 1]} : vector<2x96xf32> to vector<2x32xf32>
    %1200 = vector.extract_strided_slice %1170 {offsets = [0, 96], sizes = [2, 32], strides = [1, 1]} : vector<2x192xf32> to vector<2x32xf32>
    %1201 = arith.addf %1199, %1200 : vector<2x32xf32>
    %1202 = arith.negf %1201 : vector<2x32xf32>
    %1203 = math.exp %1202 : vector<2x32xf32>
    %cst_330 = arith.constant 1.000000e+00 : f32
    %1204 = vector.broadcast %cst_330 : f32 to vector<2x32xf32>
    %1205 = arith.addf %1204, %1203 : vector<2x32xf32>
    %1206 = arith.divf %1204, %1205 : vector<2x32xf32>
    %1207 = vector.extract_strided_slice %1167 {offsets = [0, 32], sizes = [2, 32], strides = [1, 1]} : vector<2x96xf32> to vector<2x32xf32>
    %1208 = vector.extract_strided_slice %1170 {offsets = [0, 128], sizes = [2, 32], strides = [1, 1]} : vector<2x192xf32> to vector<2x32xf32>
    %1209 = arith.addf %1207, %1208 : vector<2x32xf32>
    %1210 = arith.negf %1209 : vector<2x32xf32>
    %1211 = math.exp %1210 : vector<2x32xf32>
    %cst_331 = arith.constant 1.000000e+00 : f32
    %1212 = vector.broadcast %cst_331 : f32 to vector<2x32xf32>
    %1213 = arith.addf %1212, %1211 : vector<2x32xf32>
    %1214 = arith.divf %1212, %1213 : vector<2x32xf32>
    %1215 = vector.extract_strided_slice %1167 {offsets = [0, 64], sizes = [2, 32], strides = [1, 1]} : vector<2x96xf32> to vector<2x32xf32>
    %1216 = vector.extract_strided_slice %1170 {offsets = [0, 160], sizes = [2, 32], strides = [1, 1]} : vector<2x192xf32> to vector<2x32xf32>
    %1217 = vector.broadcast %1100 : vector<1x32xf32> to vector<2x32xf32>
    %1218 = arith.addf %1216, %1217 : vector<2x32xf32>
    %1219 = arith.mulf %1206, %1218 : vector<2x32xf32>
    %1220 = arith.addf %1215, %1219 : vector<2x32xf32>
    %1221 = math.tanh %1220 : vector<2x32xf32>
    %cst_332 = arith.constant 1.000000e+00 : f32
    %1222 = vector.broadcast %cst_332 : f32 to vector<2x32xf32>
    %1223 = arith.subf %1222, %1214 : vector<2x32xf32>
    %1224 = arith.mulf %1223, %1221 : vector<2x32xf32>
    %1225 = arith.mulf %1214, %1163 : vector<2x32xf32>
    %1226 = arith.addf %1224, %1225 : vector<2x32xf32>
    %c2_333 = arith.constant 2 : index
    %c0_334 = arith.constant 0 : index
    %1227 = vector.load %arg28[%c2_333, %c0_334] : memref<32x32xf32, #tpu.memory_space<vmem>>, vector<2x32xf32>
    tpu.vector_store %arg28[%c2_333, %c0_334], %1198 {strides = array<i32>} : memref<32x32xf32, #tpu.memory_space<vmem>>, vector<2x32xf32>,
    %c28_335 = arith.constant 28 : index
    %c0_336 = arith.constant 0 : index
    %1228 = vector.load %arg29[%c28_335, %c0_336] : memref<32x32xf32, #tpu.memory_space<vmem>>, vector<2x32xf32>
    tpu.vector_store %arg29[%c28_335, %c0_336], %1226 {strides = array<i32>} : memref<32x32xf32, #tpu.memory_space<vmem>>, vector<2x32xf32>,
    %c4_337 = arith.constant 4 : index
    %c0_338 = arith.constant 0 : index
    %1229 = vector.load %arg26[%c4_337, %c0_338] : memref<32x96xf32, #tpu.memory_space<vmem>>, vector<2x96xf32>
    %c26_339 = arith.constant 26 : index
    %c0_340 = arith.constant 0 : index
    %1230 = vector.load %arg27[%c26_339, %c0_340] : memref<32x96xf32, #tpu.memory_space<vmem>>, vector<2x96xf32>
    %1231 = tpu.concatenate %1198, %1226 in 1 : vector<2x32xf32>, vector<2x32xf32> -> vector<2x64xf32>
    %1232 = arith.truncf %1231 : vector<2x64xf32> to vector<2x64xbf16>
    %cst_341 = arith.constant dense<0.000000e+00> : vector<2x192xf32>
    %1233 = tpu.matmul %1232, %1097, %cst_341 {dimension_numbers = #tpu.dot_dimension_numbers<[1], [0], [0], [1], [0, 0, 1, 1], [], []>} : vector<2x64xbf16>, vector<64x192xbf16>, vector<2x192xf32> -> vector<2x192xf32>
    %1234 = vector.extract_strided_slice %1229 {offsets = [0, 0], sizes = [2, 32], strides = [1, 1]} : vector<2x96xf32> to vector<2x32xf32>
    %1235 = vector.extract_strided_slice %1233 {offsets = [0, 0], sizes = [2, 32], strides = [1, 1]} : vector<2x192xf32> to vector<2x32xf32>
    %1236 = arith.addf %1234, %1235 : vector<2x32xf32>
    %1237 = arith.negf %1236 : vector<2x32xf32>
    %1238 = math.exp %1237 : vector<2x32xf32>
    %cst_342 = arith.constant 1.000000e+00 : f32
    %1239 = vector.broadcast %cst_342 : f32 to vector<2x32xf32>
    %1240 = arith.addf %1239, %1238 : vector<2x32xf32>
    %1241 = arith.divf %1239, %1240 : vector<2x32xf32>
    %1242 = vector.extract_strided_slice %1229 {offsets = [0, 32], sizes = [2, 32], strides = [1, 1]} : vector<2x96xf32> to vector<2x32xf32>
    %1243 = vector.extract_strided_slice %1233 {offsets = [0, 32], sizes = [2, 32], strides = [1, 1]} : vector<2x192xf32> to vector<2x32xf32>
    %1244 = arith.addf %1242, %1243 : vector<2x32xf32>
    %1245 = arith.negf %1244 : vector<2x32xf32>
    %1246 = math.exp %1245 : vector<2x32xf32>
    %cst_343 = arith.constant 1.000000e+00 : f32
    %1247 = vector.broadcast %cst_343 : f32 to vector<2x32xf32>
    %1248 = arith.addf %1247, %1246 : vector<2x32xf32>
    %1249 = arith.divf %1247, %1248 : vector<2x32xf32>
    %1250 = vector.extract_strided_slice %1229 {offsets = [0, 64], sizes = [2, 32], strides = [1, 1]} : vector<2x96xf32> to vector<2x32xf32>
    %1251 = vector.extract_strided_slice %1233 {offsets = [0, 64], sizes = [2, 32], strides = [1, 1]} : vector<2x192xf32> to vector<2x32xf32>
    %1252 = vector.broadcast %1099 : vector<1x32xf32> to vector<2x32xf32>
    %1253 = arith.addf %1251, %1252 : vector<2x32xf32>
    %1254 = arith.mulf %1241, %1253 : vector<2x32xf32>
    %1255 = arith.addf %1250, %1254 : vector<2x32xf32>
    %1256 = math.tanh %1255 : vector<2x32xf32>
    %cst_344 = arith.constant 1.000000e+00 : f32
    %1257 = vector.broadcast %cst_344 : f32 to vector<2x32xf32>
    %1258 = arith.subf %1257, %1249 : vector<2x32xf32>
    %1259 = arith.mulf %1258, %1256 : vector<2x32xf32>
    %1260 = arith.mulf %1249, %1198 : vector<2x32xf32>
    %1261 = arith.addf %1259, %1260 : vector<2x32xf32>
    %1262 = vector.extract_strided_slice %1230 {offsets = [0, 0], sizes = [2, 32], strides = [1, 1]} : vector<2x96xf32> to vector<2x32xf32>
    %1263 = vector.extract_strided_slice %1233 {offsets = [0, 96], sizes = [2, 32], strides = [1, 1]} : vector<2x192xf32> to vector<2x32xf32>
    %1264 = arith.addf %1262, %1263 : vector<2x32xf32>
    %1265 = arith.negf %1264 : vector<2x32xf32>
    %1266 = math.exp %1265 : vector<2x32xf32>
    %cst_345 = arith.constant 1.000000e+00 : f32
    %1267 = vector.broadcast %cst_345 : f32 to vector<2x32xf32>
    %1268 = arith.addf %1267, %1266 : vector<2x32xf32>
    %1269 = arith.divf %1267, %1268 : vector<2x32xf32>
    %1270 = vector.extract_strided_slice %1230 {offsets = [0, 32], sizes = [2, 32], strides = [1, 1]} : vector<2x96xf32> to vector<2x32xf32>
    %1271 = vector.extract_strided_slice %1233 {offsets = [0, 128], sizes = [2, 32], strides = [1, 1]} : vector<2x192xf32> to vector<2x32xf32>
    %1272 = arith.addf %1270, %1271 : vector<2x32xf32>
    %1273 = arith.negf %1272 : vector<2x32xf32>
    %1274 = math.exp %1273 : vector<2x32xf32>
    %cst_346 = arith.constant 1.000000e+00 : f32
    %1275 = vector.broadcast %cst_346 : f32 to vector<2x32xf32>
    %1276 = arith.addf %1275, %1274 : vector<2x32xf32>
    %1277 = arith.divf %1275, %1276 : vector<2x32xf32>
    %1278 = vector.extract_strided_slice %1230 {offsets = [0, 64], sizes = [2, 32], strides = [1, 1]} : vector<2x96xf32> to vector<2x32xf32>
    %1279 = vector.extract_strided_slice %1233 {offsets = [0, 160], sizes = [2, 32], strides = [1, 1]} : vector<2x192xf32> to vector<2x32xf32>
    %1280 = vector.broadcast %1100 : vector<1x32xf32> to vector<2x32xf32>
    %1281 = arith.addf %1279, %1280 : vector<2x32xf32>
    %1282 = arith.mulf %1269, %1281 : vector<2x32xf32>
    %1283 = arith.addf %1278, %1282 : vector<2x32xf32>
    %1284 = math.tanh %1283 : vector<2x32xf32>
    %cst_347 = arith.constant 1.000000e+00 : f32
    %1285 = vector.broadcast %cst_347 : f32 to vector<2x32xf32>
    %1286 = arith.subf %1285, %1277 : vector<2x32xf32>
    %1287 = arith.mulf %1286, %1284 : vector<2x32xf32>
    %1288 = arith.mulf %1277, %1226 : vector<2x32xf32>
    %1289 = arith.addf %1287, %1288 : vector<2x32xf32>
    %c4_348 = arith.constant 4 : index
    %c0_349 = arith.constant 0 : index
    %1290 = vector.load %arg28[%c4_348, %c0_349] : memref<32x32xf32, #tpu.memory_space<vmem>>, vector<2x32xf32>
    tpu.vector_store %arg28[%c4_348, %c0_349], %1261 {strides = array<i32>} : memref<32x32xf32, #tpu.memory_space<vmem>>, vector<2x32xf32>,
    %c26_350 = arith.constant 26 : index
    %c0_351 = arith.constant 0 : index
    %1291 = vector.load %arg29[%c26_350, %c0_351] : memref<32x32xf32, #tpu.memory_space<vmem>>, vector<2x32xf32>
    tpu.vector_store %arg29[%c26_350, %c0_351], %1289 {strides = array<i32>} : memref<32x32xf32, #tpu.memory_space<vmem>>, vector<2x32xf32>,
    %c6_352 = arith.constant 6 : index
    %c0_353 = arith.constant 0 : index
    %1292 = vector.load %arg26[%c6_352, %c0_353] : memref<32x96xf32, #tpu.memory_space<vmem>>, vector<2x96xf32>
    %c24_354 = arith.constant 24 : index
    %c0_355 = arith.constant 0 : index
    %1293 = vector.load %arg27[%c24_354, %c0_355] : memref<32x96xf32, #tpu.memory_space<vmem>>, vector<2x96xf32>
    %1294 = tpu.concatenate %1261, %1289 in 1 : vector<2x32xf32>, vector<2x32xf32> -> vector<2x64xf32>
    %1295 = arith.truncf %1294 : vector<2x64xf32> to vector<2x64xbf16>
    %cst_356 = arith.constant dense<0.000000e+00> : vector<2x192xf32>
    %1296 = tpu.matmul %1295, %1097, %cst_356 {dimension_numbers = #tpu.dot_dimension_numbers<[1], [0], [0], [1], [0, 0, 1, 1], [], []>} : vector<2x64xbf16>, vector<64x192xbf16>, vector<2x192xf32> -> vector<2x192xf32>
    %1297 = vector.extract_strided_slice %1292 {offsets = [0, 0], sizes = [2, 32], strides = [1, 1]} : vector<2x96xf32> to vector<2x32xf32>
    %1298 = vector.extract_strided_slice %1296 {offsets = [0, 0], sizes = [2, 32], strides = [1, 1]} : vector<2x192xf32> to vector<2x32xf32>
    %1299 = arith.addf %1297, %1298 : vector<2x32xf32>
    %1300 = arith.negf %1299 : vector<2x32xf32>
    %1301 = math.exp %1300 : vector<2x32xf32>
    %cst_357 = arith.constant 1.000000e+00 : f32
    %1302 = vector.broadcast %cst_357 : f32 to vector<2x32xf32>
    %1303 = arith.addf %1302, %1301 : vector<2x32xf32>
    %1304 = arith.divf %1302, %1303 : vector<2x32xf32>
    %1305 = vector.extract_strided_slice %1292 {offsets = [0, 32], sizes = [2, 32], strides = [1, 1]} : vector<2x96xf32> to vector<2x32xf32>
    %1306 = vector.extract_strided_slice %1296 {offsets = [0, 32], sizes = [2, 32], strides = [1, 1]} : vector<2x192xf32> to vector<2x32xf32>
    %1307 = arith.addf %1305, %1306 : vector<2x32xf32>
    %1308 = arith.negf %1307 : vector<2x32xf32>
    %1309 = math.exp %1308 : vector<2x32xf32>
    %cst_358 = arith.constant 1.000000e+00 : f32
    %1310 = vector.broadcast %cst_358 : f32 to vector<2x32xf32>
    %1311 = arith.addf %1310, %1309 : vector<2x32xf32>
    %1312 = arith.divf %1310, %1311 : vector<2x32xf32>
    %1313 = vector.extract_strided_slice %1292 {offsets = [0, 64], sizes = [2, 32], strides = [1, 1]} : vector<2x96xf32> to vector<2x32xf32>
    %1314 = vector.extract_strided_slice %1296 {offsets = [0, 64], sizes = [2, 32], strides = [1, 1]} : vector<2x192xf32> to vector<2x32xf32>
    %1315 = vector.broadcast %1099 : vector<1x32xf32> to vector<2x32xf32>
    %1316 = arith.addf %1314, %1315 : vector<2x32xf32>
    %1317 = arith.mulf %1304, %1316 : vector<2x32xf32>
    %1318 = arith.addf %1313, %1317 : vector<2x32xf32>
    %1319 = math.tanh %1318 : vector<2x32xf32>
    %cst_359 = arith.constant 1.000000e+00 : f32
    %1320 = vector.broadcast %cst_359 : f32 to vector<2x32xf32>
    %1321 = arith.subf %1320, %1312 : vector<2x32xf32>
    %1322 = arith.mulf %1321, %1319 : vector<2x32xf32>
    %1323 = arith.mulf %1312, %1261 : vector<2x32xf32>
    %1324 = arith.addf %1322, %1323 : vector<2x32xf32>
    %1325 = vector.extract_strided_slice %1293 {offsets = [0, 0], sizes = [2, 32], strides = [1, 1]} : vector<2x96xf32> to vector<2x32xf32>
    %1326 = vector.extract_strided_slice %1296 {offsets = [0, 96], sizes = [2, 32], strides = [1, 1]} : vector<2x192xf32> to vector<2x32xf32>
    %1327 = arith.addf %1325, %1326 : vector<2x32xf32>
    %1328 = arith.negf %1327 : vector<2x32xf32>
    %1329 = math.exp %1328 : vector<2x32xf32>
    %cst_360 = arith.constant 1.000000e+00 : f32
    %1330 = vector.broadcast %cst_360 : f32 to vector<2x32xf32>
    %1331 = arith.addf %1330, %1329 : vector<2x32xf32>
    %1332 = arith.divf %1330, %1331 : vector<2x32xf32>
    %1333 = vector.extract_strided_slice %1293 {offsets = [0, 32], sizes = [2, 32], strides = [1, 1]} : vector<2x96xf32> to vector<2x32xf32>
    %1334 = vector.extract_strided_slice %1296 {offsets = [0, 128], sizes = [2, 32], strides = [1, 1]} : vector<2x192xf32> to vector<2x32xf32>
    %1335 = arith.addf %1333, %1334 : vector<2x32xf32>
    %1336 = arith.negf %1335 : vector<2x32xf32>
    %1337 = math.exp %1336 : vector<2x32xf32>
    %cst_361 = arith.constant 1.000000e+00 : f32
    %1338 = vector.broadcast %cst_361 : f32 to vector<2x32xf32>
    %1339 = arith.addf %1338, %1337 : vector<2x32xf32>
    %1340 = arith.divf %1338, %1339 : vector<2x32xf32>
    %1341 = vector.extract_strided_slice %1293 {offsets = [0, 64], sizes = [2, 32], strides = [1, 1]} : vector<2x96xf32> to vector<2x32xf32>
    %1342 = vector.extract_strided_slice %1296 {offsets = [0, 160], sizes = [2, 32], strides = [1, 1]} : vector<2x192xf32> to vector<2x32xf32>
    %1343 = vector.broadcast %1100 : vector<1x32xf32> to vector<2x32xf32>
    %1344 = arith.addf %1342, %1343 : vector<2x32xf32>
    %1345 = arith.mulf %1332, %1344 : vector<2x32xf32>
    %1346 = arith.addf %1341, %1345 : vector<2x32xf32>
    %1347 = math.tanh %1346 : vector<2x32xf32>
    %cst_362 = arith.constant 1.000000e+00 : f32
    %1348 = vector.broadcast %cst_362 : f32 to vector<2x32xf32>
    %1349 = arith.subf %1348, %1340 : vector<2x32xf32>
    %1350 = arith.mulf %1349, %1347 : vector<2x32xf32>
    %1351 = arith.mulf %1340, %1289 : vector<2x32xf32>
    %1352 = arith.addf %1350, %1351 : vector<2x32xf32>
    %c6_363 = arith.constant 6 : index
    %c0_364 = arith.constant 0 : index
    %1353 = vector.load %arg28[%c6_363, %c0_364] : memref<32x32xf32, #tpu.memory_space<vmem>>, vector<2x32xf32>
    tpu.vector_store %arg28[%c6_363, %c0_364], %1324 {strides = array<i32>} : memref<32x32xf32, #tpu.memory_space<vmem>>, vector<2x32xf32>,
    %c24_365 = arith.constant 24 : index
    %c0_366 = arith.constant 0 : index
    %1354 = vector.load %arg29[%c24_365, %c0_366] : memref<32x32xf32, #tpu.memory_space<vmem>>, vector<2x32xf32>
    tpu.vector_store %arg29[%c24_365, %c0_366], %1352 {strides = array<i32>} : memref<32x32xf32, #tpu.memory_space<vmem>>, vector<2x32xf32>,
    %c8_367 = arith.constant 8 : index
    %c0_368 = arith.constant 0 : index
    %1355 = vector.load %arg26[%c8_367, %c0_368] : memref<32x96xf32, #tpu.memory_space<vmem>>, vector<2x96xf32>
    %c22_369 = arith.constant 22 : index
    %c0_370 = arith.constant 0 : index
    %1356 = vector.load %arg27[%c22_369, %c0_370] : memref<32x96xf32, #tpu.memory_space<vmem>>, vector<2x96xf32>
    %1357 = tpu.concatenate %1324, %1352 in 1 : vector<2x32xf32>, vector<2x32xf32> -> vector<2x64xf32>
    %1358 = arith.truncf %1357 : vector<2x64xf32> to vector<2x64xbf16>
    %cst_371 = arith.constant dense<0.000000e+00> : vector<2x192xf32>
    %1359 = tpu.matmul %1358, %1097, %cst_371 {dimension_numbers = #tpu.dot_dimension_numbers<[1], [0], [0], [1], [0, 0, 1, 1], [], []>} : vector<2x64xbf16>, vector<64x192xbf16>, vector<2x192xf32> -> vector<2x192xf32>
    %1360 = vector.extract_strided_slice %1355 {offsets = [0, 0], sizes = [2, 32], strides = [1, 1]} : vector<2x96xf32> to vector<2x32xf32>
    %1361 = vector.extract_strided_slice %1359 {offsets = [0, 0], sizes = [2, 32], strides = [1, 1]} : vector<2x192xf32> to vector<2x32xf32>
    %1362 = arith.addf %1360, %1361 : vector<2x32xf32>
    %1363 = arith.negf %1362 : vector<2x32xf32>
    %1364 = math.exp %1363 : vector<2x32xf32>
    %cst_372 = arith.constant 1.000000e+00 : f32
    %1365 = vector.broadcast %cst_372 : f32 to vector<2x32xf32>
    %1366 = arith.addf %1365, %1364 : vector<2x32xf32>
    %1367 = arith.divf %1365, %1366 : vector<2x32xf32>
    %1368 = vector.extract_strided_slice %1355 {offsets = [0, 32], sizes = [2, 32], strides = [1, 1]} : vector<2x96xf32> to vector<2x32xf32>
    %1369 = vector.extract_strided_slice %1359 {offsets = [0, 32], sizes = [2, 32], strides = [1, 1]} : vector<2x192xf32> to vector<2x32xf32>
    %1370 = arith.addf %1368, %1369 : vector<2x32xf32>
    %1371 = arith.negf %1370 : vector<2x32xf32>
    %1372 = math.exp %1371 : vector<2x32xf32>
    %cst_373 = arith.constant 1.000000e+00 : f32
    %1373 = vector.broadcast %cst_373 : f32 to vector<2x32xf32>
    %1374 = arith.addf %1373, %1372 : vector<2x32xf32>
    %1375 = arith.divf %1373, %1374 : vector<2x32xf32>
    %1376 = vector.extract_strided_slice %1355 {offsets = [0, 64], sizes = [2, 32], strides = [1, 1]} : vector<2x96xf32> to vector<2x32xf32>
    %1377 = vector.extract_strided_slice %1359 {offsets = [0, 64], sizes = [2, 32], strides = [1, 1]} : vector<2x192xf32> to vector<2x32xf32>
    %1378 = vector.broadcast %1099 : vector<1x32xf32> to vector<2x32xf32>
    %1379 = arith.addf %1377, %1378 : vector<2x32xf32>
    %1380 = arith.mulf %1367, %1379 : vector<2x32xf32>
    %1381 = arith.addf %1376, %1380 : vector<2x32xf32>
    %1382 = math.tanh %1381 : vector<2x32xf32>
    %cst_374 = arith.constant 1.000000e+00 : f32
    %1383 = vector.broadcast %cst_374 : f32 to vector<2x32xf32>
    %1384 = arith.subf %1383, %1375 : vector<2x32xf32>
    %1385 = arith.mulf %1384, %1382 : vector<2x32xf32>
    %1386 = arith.mulf %1375, %1324 : vector<2x32xf32>
    %1387 = arith.addf %1385, %1386 : vector<2x32xf32>
    %1388 = vector.extract_strided_slice %1356 {offsets = [0, 0], sizes = [2, 32], strides = [1, 1]} : vector<2x96xf32> to vector<2x32xf32>
    %1389 = vector.extract_strided_slice %1359 {offsets = [0, 96], sizes = [2, 32], strides = [1, 1]} : vector<2x192xf32> to vector<2x32xf32>
    %1390 = arith.addf %1388, %1389 : vector<2x32xf32>
    %1391 = arith.negf %1390 : vector<2x32xf32>
    %1392 = math.exp %1391 : vector<2x32xf32>
    %cst_375 = arith.constant 1.000000e+00 : f32
    %1393 = vector.broadcast %cst_375 : f32 to vector<2x32xf32>
    %1394 = arith.addf %1393, %1392 : vector<2x32xf32>
    %1395 = arith.divf %1393, %1394 : vector<2x32xf32>
    %1396 = vector.extract_strided_slice %1356 {offsets = [0, 32], sizes = [2, 32], strides = [1, 1]} : vector<2x96xf32> to vector<2x32xf32>
    %1397 = vector.extract_strided_slice %1359 {offsets = [0, 128], sizes = [2, 32], strides = [1, 1]} : vector<2x192xf32> to vector<2x32xf32>
    %1398 = arith.addf %1396, %1397 : vector<2x32xf32>
    %1399 = arith.negf %1398 : vector<2x32xf32>
    %1400 = math.exp %1399 : vector<2x32xf32>
    %cst_376 = arith.constant 1.000000e+00 : f32
    %1401 = vector.broadcast %cst_376 : f32 to vector<2x32xf32>
    %1402 = arith.addf %1401, %1400 : vector<2x32xf32>
    %1403 = arith.divf %1401, %1402 : vector<2x32xf32>
    %1404 = vector.extract_strided_slice %1356 {offsets = [0, 64], sizes = [2, 32], strides = [1, 1]} : vector<2x96xf32> to vector<2x32xf32>
    %1405 = vector.extract_strided_slice %1359 {offsets = [0, 160], sizes = [2, 32], strides = [1, 1]} : vector<2x192xf32> to vector<2x32xf32>
    %1406 = vector.broadcast %1100 : vector<1x32xf32> to vector<2x32xf32>
    %1407 = arith.addf %1405, %1406 : vector<2x32xf32>
    %1408 = arith.mulf %1395, %1407 : vector<2x32xf32>
    %1409 = arith.addf %1404, %1408 : vector<2x32xf32>
    %1410 = math.tanh %1409 : vector<2x32xf32>
    %cst_377 = arith.constant 1.000000e+00 : f32
    %1411 = vector.broadcast %cst_377 : f32 to vector<2x32xf32>
    %1412 = arith.subf %1411, %1403 : vector<2x32xf32>
    %1413 = arith.mulf %1412, %1410 : vector<2x32xf32>
    %1414 = arith.mulf %1403, %1352 : vector<2x32xf32>
    %1415 = arith.addf %1413, %1414 : vector<2x32xf32>
    %c8_378 = arith.constant 8 : index
    %c0_379 = arith.constant 0 : index
    %1416 = vector.load %arg28[%c8_378, %c0_379] : memref<32x32xf32, #tpu.memory_space<vmem>>, vector<2x32xf32>
    tpu.vector_store %arg28[%c8_378, %c0_379], %1387 {strides = array<i32>} : memref<32x32xf32, #tpu.memory_space<vmem>>, vector<2x32xf32>,
    %c22_380 = arith.constant 22 : index
    %c0_381 = arith.constant 0 : index
    %1417 = vector.load %arg29[%c22_380, %c0_381] : memref<32x32xf32, #tpu.memory_space<vmem>>, vector<2x32xf32>
    tpu.vector_store %arg29[%c22_380, %c0_381], %1415 {strides = array<i32>} : memref<32x32xf32, #tpu.memory_space<vmem>>, vector<2x32xf32>,
    %c10_382 = arith.constant 10 : index
    %c0_383 = arith.constant 0 : index
    %1418 = vector.load %arg26[%c10_382, %c0_383] : memref<32x96xf32, #tpu.memory_space<vmem>>, vector<2x96xf32>
    %c20_384 = arith.constant 20 : index
    %c0_385 = arith.constant 0 : index
    %1419 = vector.load %arg27[%c20_384, %c0_385] : memref<32x96xf32, #tpu.memory_space<vmem>>, vector<2x96xf32>
    %1420 = tpu.concatenate %1387, %1415 in 1 : vector<2x32xf32>, vector<2x32xf32> -> vector<2x64xf32>
    %1421 = arith.truncf %1420 : vector<2x64xf32> to vector<2x64xbf16>
    %cst_386 = arith.constant dense<0.000000e+00> : vector<2x192xf32>
    %1422 = tpu.matmul %1421, %1097, %cst_386 {dimension_numbers = #tpu.dot_dimension_numbers<[1], [0], [0], [1], [0, 0, 1, 1], [], []>} : vector<2x64xbf16>, vector<64x192xbf16>, vector<2x192xf32> -> vector<2x192xf32>
    %1423 = vector.extract_strided_slice %1418 {offsets = [0, 0], sizes = [2, 32], strides = [1, 1]} : vector<2x96xf32> to vector<2x32xf32>
    %1424 = vector.extract_strided_slice %1422 {offsets = [0, 0], sizes = [2, 32], strides = [1, 1]} : vector<2x192xf32> to vector<2x32xf32>
    %1425 = arith.addf %1423, %1424 : vector<2x32xf32>
    %1426 = arith.negf %1425 : vector<2x32xf32>
    %1427 = math.exp %1426 : vector<2x32xf32>
    %cst_387 = arith.constant 1.000000e+00 : f32
    %1428 = vector.broadcast %cst_387 : f32 to vector<2x32xf32>
    %1429 = arith.addf %1428, %1427 : vector<2x32xf32>
    %1430 = arith.divf %1428, %1429 : vector<2x32xf32>
    %1431 = vector.extract_strided_slice %1418 {offsets = [0, 32], sizes = [2, 32], strides = [1, 1]} : vector<2x96xf32> to vector<2x32xf32>
    %1432 = vector.extract_strided_slice %1422 {offsets = [0, 32], sizes = [2, 32], strides = [1, 1]} : vector<2x192xf32> to vector<2x32xf32>
    %1433 = arith.addf %1431, %1432 : vector<2x32xf32>
    %1434 = arith.negf %1433 : vector<2x32xf32>
    %1435 = math.exp %1434 : vector<2x32xf32>
    %cst_388 = arith.constant 1.000000e+00 : f32
    %1436 = vector.broadcast %cst_388 : f32 to vector<2x32xf32>
    %1437 = arith.addf %1436, %1435 : vector<2x32xf32>
    %1438 = arith.divf %1436, %1437 : vector<2x32xf32>
    %1439 = vector.extract_strided_slice %1418 {offsets = [0, 64], sizes = [2, 32], strides = [1, 1]} : vector<2x96xf32> to vector<2x32xf32>
    %1440 = vector.extract_strided_slice %1422 {offsets = [0, 64], sizes = [2, 32], strides = [1, 1]} : vector<2x192xf32> to vector<2x32xf32>
    %1441 = vector.broadcast %1099 : vector<1x32xf32> to vector<2x32xf32>
    %1442 = arith.addf %1440, %1441 : vector<2x32xf32>
    %1443 = arith.mulf %1430, %1442 : vector<2x32xf32>
    %1444 = arith.addf %1439, %1443 : vector<2x32xf32>
    %1445 = math.tanh %1444 : vector<2x32xf32>
    %cst_389 = arith.constant 1.000000e+00 : f32
    %1446 = vector.broadcast %cst_389 : f32 to vector<2x32xf32>
    %1447 = arith.subf %1446, %1438 : vector<2x32xf32>
    %1448 = arith.mulf %1447, %1445 : vector<2x32xf32>
    %1449 = arith.mulf %1438, %1387 : vector<2x32xf32>
    %1450 = arith.addf %1448, %1449 : vector<2x32xf32>
    %1451 = vector.extract_strided_slice %1419 {offsets = [0, 0], sizes = [2, 32], strides = [1, 1]} : vector<2x96xf32> to vector<2x32xf32>
    %1452 = vector.extract_strided_slice %1422 {offsets = [0, 96], sizes = [2, 32], strides = [1, 1]} : vector<2x192xf32> to vector<2x32xf32>
    %1453 = arith.addf %1451, %1452 : vector<2x32xf32>
    %1454 = arith.negf %1453 : vector<2x32xf32>
    %1455 = math.exp %1454 : vector<2x32xf32>
    %cst_390 = arith.constant 1.000000e+00 : f32
    %1456 = vector.broadcast %cst_390 : f32 to vector<2x32xf32>
    %1457 = arith.addf %1456, %1455 : vector<2x32xf32>
    %1458 = arith.divf %1456, %1457 : vector<2x32xf32>
    %1459 = vector.extract_strided_slice %1419 {offsets = [0, 32], sizes = [2, 32], strides = [1, 1]} : vector<2x96xf32> to vector<2x32xf32>
    %1460 = vector.extract_strided_slice %1422 {offsets = [0, 128], sizes = [2, 32], strides = [1, 1]} : vector<2x192xf32> to vector<2x32xf32>
    %1461 = arith.addf %1459, %1460 : vector<2x32xf32>
    %1462 = arith.negf %1461 : vector<2x32xf32>
    %1463 = math.exp %1462 : vector<2x32xf32>
    %cst_391 = arith.constant 1.000000e+00 : f32
    %1464 = vector.broadcast %cst_391 : f32 to vector<2x32xf32>
    %1465 = arith.addf %1464, %1463 : vector<2x32xf32>
    %1466 = arith.divf %1464, %1465 : vector<2x32xf32>
    %1467 = vector.extract_strided_slice %1419 {offsets = [0, 64], sizes = [2, 32], strides = [1, 1]} : vector<2x96xf32> to vector<2x32xf32>
    %1468 = vector.extract_strided_slice %1422 {offsets = [0, 160], sizes = [2, 32], strides = [1, 1]} : vector<2x192xf32> to vector<2x32xf32>
    %1469 = vector.broadcast %1100 : vector<1x32xf32> to vector<2x32xf32>
    %1470 = arith.addf %1468, %1469 : vector<2x32xf32>
    %1471 = arith.mulf %1458, %1470 : vector<2x32xf32>
    %1472 = arith.addf %1467, %1471 : vector<2x32xf32>
    %1473 = math.tanh %1472 : vector<2x32xf32>
    %cst_392 = arith.constant 1.000000e+00 : f32
    %1474 = vector.broadcast %cst_392 : f32 to vector<2x32xf32>
    %1475 = arith.subf %1474, %1466 : vector<2x32xf32>
    %1476 = arith.mulf %1475, %1473 : vector<2x32xf32>
    %1477 = arith.mulf %1466, %1415 : vector<2x32xf32>
    %1478 = arith.addf %1476, %1477 : vector<2x32xf32>
    %c10_393 = arith.constant 10 : index
    %c0_394 = arith.constant 0 : index
    %1479 = vector.load %arg28[%c10_393, %c0_394] : memref<32x32xf32, #tpu.memory_space<vmem>>, vector<2x32xf32>
    tpu.vector_store %arg28[%c10_393, %c0_394], %1450 {strides = array<i32>} : memref<32x32xf32, #tpu.memory_space<vmem>>, vector<2x32xf32>,
    %c20_395 = arith.constant 20 : index
    %c0_396 = arith.constant 0 : index
    %1480 = vector.load %arg29[%c20_395, %c0_396] : memref<32x32xf32, #tpu.memory_space<vmem>>, vector<2x32xf32>
    tpu.vector_store %arg29[%c20_395, %c0_396], %1478 {strides = array<i32>} : memref<32x32xf32, #tpu.memory_space<vmem>>, vector<2x32xf32>,
    %c12_397 = arith.constant 12 : index
    %c0_398 = arith.constant 0 : index
    %1481 = vector.load %arg26[%c12_397, %c0_398] : memref<32x96xf32, #tpu.memory_space<vmem>>, vector<2x96xf32>
    %c18_399 = arith.constant 18 : index
    %c0_400 = arith.constant 0 : index
    %1482 = vector.load %arg27[%c18_399, %c0_400] : memref<32x96xf32, #tpu.memory_space<vmem>>, vector<2x96xf32>
    %1483 = tpu.concatenate %1450, %1478 in 1 : vector<2x32xf32>, vector<2x32xf32> -> vector<2x64xf32>
    %1484 = arith.truncf %1483 : vector<2x64xf32> to vector<2x64xbf16>
    %cst_401 = arith.constant dense<0.000000e+00> : vector<2x192xf32>
    %1485 = tpu.matmul %1484, %1097, %cst_401 {dimension_numbers = #tpu.dot_dimension_numbers<[1], [0], [0], [1], [0, 0, 1, 1], [], []>} : vector<2x64xbf16>, vector<64x192xbf16>, vector<2x192xf32> -> vector<2x192xf32>
    %1486 = vector.extract_strided_slice %1481 {offsets = [0, 0], sizes = [2, 32], strides = [1, 1]} : vector<2x96xf32> to vector<2x32xf32>
    %1487 = vector.extract_strided_slice %1485 {offsets = [0, 0], sizes = [2, 32], strides = [1, 1]} : vector<2x192xf32> to vector<2x32xf32>
    %1488 = arith.addf %1486, %1487 : vector<2x32xf32>
    %1489 = arith.negf %1488 : vector<2x32xf32>
    %1490 = math.exp %1489 : vector<2x32xf32>
    %cst_402 = arith.constant 1.000000e+00 : f32
    %1491 = vector.broadcast %cst_402 : f32 to vector<2x32xf32>
    %1492 = arith.addf %1491, %1490 : vector<2x32xf32>
    %1493 = arith.divf %1491, %1492 : vector<2x32xf32>
    %1494 = vector.extract_strided_slice %1481 {offsets = [0, 32], sizes = [2, 32], strides = [1, 1]} : vector<2x96xf32> to vector<2x32xf32>
    %1495 = vector.extract_strided_slice %1485 {offsets = [0, 32], sizes = [2, 32], strides = [1, 1]} : vector<2x192xf32> to vector<2x32xf32>
    %1496 = arith.addf %1494, %1495 : vector<2x32xf32>
    %1497 = arith.negf %1496 : vector<2x32xf32>
    %1498 = math.exp %1497 : vector<2x32xf32>
    %cst_403 = arith.constant 1.000000e+00 : f32
    %1499 = vector.broadcast %cst_403 : f32 to vector<2x32xf32>
    %1500 = arith.addf %1499, %1498 : vector<2x32xf32>
    %1501 = arith.divf %1499, %1500 : vector<2x32xf32>
    %1502 = vector.extract_strided_slice %1481 {offsets = [0, 64], sizes = [2, 32], strides = [1, 1]} : vector<2x96xf32> to vector<2x32xf32>
    %1503 = vector.extract_strided_slice %1485 {offsets = [0, 64], sizes = [2, 32], strides = [1, 1]} : vector<2x192xf32> to vector<2x32xf32>
    %1504 = vector.broadcast %1099 : vector<1x32xf32> to vector<2x32xf32>
    %1505 = arith.addf %1503, %1504 : vector<2x32xf32>
    %1506 = arith.mulf %1493, %1505 : vector<2x32xf32>
    %1507 = arith.addf %1502, %1506 : vector<2x32xf32>
    %1508 = math.tanh %1507 : vector<2x32xf32>
    %cst_404 = arith.constant 1.000000e+00 : f32
    %1509 = vector.broadcast %cst_404 : f32 to vector<2x32xf32>
    %1510 = arith.subf %1509, %1501 : vector<2x32xf32>
    %1511 = arith.mulf %1510, %1508 : vector<2x32xf32>
    %1512 = arith.mulf %1501, %1450 : vector<2x32xf32>
    %1513 = arith.addf %1511, %1512 : vector<2x32xf32>
    %1514 = vector.extract_strided_slice %1482 {offsets = [0, 0], sizes = [2, 32], strides = [1, 1]} : vector<2x96xf32> to vector<2x32xf32>
    %1515 = vector.extract_strided_slice %1485 {offsets = [0, 96], sizes = [2, 32], strides = [1, 1]} : vector<2x192xf32> to vector<2x32xf32>
    %1516 = arith.addf %1514, %1515 : vector<2x32xf32>
    %1517 = arith.negf %1516 : vector<2x32xf32>
    %1518 = math.exp %1517 : vector<2x32xf32>
    %cst_405 = arith.constant 1.000000e+00 : f32
    %1519 = vector.broadcast %cst_405 : f32 to vector<2x32xf32>
    %1520 = arith.addf %1519, %1518 : vector<2x32xf32>
    %1521 = arith.divf %1519, %1520 : vector<2x32xf32>
    %1522 = vector.extract_strided_slice %1482 {offsets = [0, 32], sizes = [2, 32], strides = [1, 1]} : vector<2x96xf32> to vector<2x32xf32>
    %1523 = vector.extract_strided_slice %1485 {offsets = [0, 128], sizes = [2, 32], strides = [1, 1]} : vector<2x192xf32> to vector<2x32xf32>
    %1524 = arith.addf %1522, %1523 : vector<2x32xf32>
    %1525 = arith.negf %1524 : vector<2x32xf32>
    %1526 = math.exp %1525 : vector<2x32xf32>
    %cst_406 = arith.constant 1.000000e+00 : f32
    %1527 = vector.broadcast %cst_406 : f32 to vector<2x32xf32>
    %1528 = arith.addf %1527, %1526 : vector<2x32xf32>
    %1529 = arith.divf %1527, %1528 : vector<2x32xf32>
    %1530 = vector.extract_strided_slice %1482 {offsets = [0, 64], sizes = [2, 32], strides = [1, 1]} : vector<2x96xf32> to vector<2x32xf32>
    %1531 = vector.extract_strided_slice %1485 {offsets = [0, 160], sizes = [2, 32], strides = [1, 1]} : vector<2x192xf32> to vector<2x32xf32>
    %1532 = vector.broadcast %1100 : vector<1x32xf32> to vector<2x32xf32>
    %1533 = arith.addf %1531, %1532 : vector<2x32xf32>
    %1534 = arith.mulf %1521, %1533 : vector<2x32xf32>
    %1535 = arith.addf %1530, %1534 : vector<2x32xf32>
    %1536 = math.tanh %1535 : vector<2x32xf32>
    %cst_407 = arith.constant 1.000000e+00 : f32
    %1537 = vector.broadcast %cst_407 : f32 to vector<2x32xf32>
    %1538 = arith.subf %1537, %1529 : vector<2x32xf32>
    %1539 = arith.mulf %1538, %1536 : vector<2x32xf32>
    %1540 = arith.mulf %1529, %1478 : vector<2x32xf32>
    %1541 = arith.addf %1539, %1540 : vector<2x32xf32>
    %c12_408 = arith.constant 12 : index
    %c0_409 = arith.constant 0 : index
    %1542 = vector.load %arg28[%c12_408, %c0_409] : memref<32x32xf32, #tpu.memory_space<vmem>>, vector<2x32xf32>
    tpu.vector_store %arg28[%c12_408, %c0_409], %1513 {strides = array<i32>} : memref<32x32xf32, #tpu.memory_space<vmem>>, vector<2x32xf32>,
    %c18_410 = arith.constant 18 : index
    %c0_411 = arith.constant 0 : index
    %1543 = vector.load %arg29[%c18_410, %c0_411] : memref<32x32xf32, #tpu.memory_space<vmem>>, vector<2x32xf32>
    tpu.vector_store %arg29[%c18_410, %c0_411], %1541 {strides = array<i32>} : memref<32x32xf32, #tpu.memory_space<vmem>>, vector<2x32xf32>,
    %c14_412 = arith.constant 14 : index
    %c0_413 = arith.constant 0 : index
    %1544 = vector.load %arg26[%c14_412, %c0_413] : memref<32x96xf32, #tpu.memory_space<vmem>>, vector<2x96xf32>
    %c16_414 = arith.constant 16 : index
    %c0_415 = arith.constant 0 : index
    %1545 = vector.load %arg27[%c16_414, %c0_415] : memref<32x96xf32, #tpu.memory_space<vmem>>, vector<2x96xf32>
    %1546 = tpu.concatenate %1513, %1541 in 1 : vector<2x32xf32>, vector<2x32xf32> -> vector<2x64xf32>
    %1547 = arith.truncf %1546 : vector<2x64xf32> to vector<2x64xbf16>
    %cst_416 = arith.constant dense<0.000000e+00> : vector<2x192xf32>
    %1548 = tpu.matmul %1547, %1097, %cst_416 {dimension_numbers = #tpu.dot_dimension_numbers<[1], [0], [0], [1], [0, 0, 1, 1], [], []>} : vector<2x64xbf16>, vector<64x192xbf16>, vector<2x192xf32> -> vector<2x192xf32>
    %1549 = vector.extract_strided_slice %1544 {offsets = [0, 0], sizes = [2, 32], strides = [1, 1]} : vector<2x96xf32> to vector<2x32xf32>
    %1550 = vector.extract_strided_slice %1548 {offsets = [0, 0], sizes = [2, 32], strides = [1, 1]} : vector<2x192xf32> to vector<2x32xf32>
    %1551 = arith.addf %1549, %1550 : vector<2x32xf32>
    %1552 = arith.negf %1551 : vector<2x32xf32>
    %1553 = math.exp %1552 : vector<2x32xf32>
    %cst_417 = arith.constant 1.000000e+00 : f32
    %1554 = vector.broadcast %cst_417 : f32 to vector<2x32xf32>
    %1555 = arith.addf %1554, %1553 : vector<2x32xf32>
    %1556 = arith.divf %1554, %1555 : vector<2x32xf32>
    %1557 = vector.extract_strided_slice %1544 {offsets = [0, 32], sizes = [2, 32], strides = [1, 1]} : vector<2x96xf32> to vector<2x32xf32>
    %1558 = vector.extract_strided_slice %1548 {offsets = [0, 32], sizes = [2, 32], strides = [1, 1]} : vector<2x192xf32> to vector<2x32xf32>
    %1559 = arith.addf %1557, %1558 : vector<2x32xf32>
    %1560 = arith.negf %1559 : vector<2x32xf32>
    %1561 = math.exp %1560 : vector<2x32xf32>
    %cst_418 = arith.constant 1.000000e+00 : f32
    %1562 = vector.broadcast %cst_418 : f32 to vector<2x32xf32>
    %1563 = arith.addf %1562, %1561 : vector<2x32xf32>
    %1564 = arith.divf %1562, %1563 : vector<2x32xf32>
    %1565 = vector.extract_strided_slice %1544 {offsets = [0, 64], sizes = [2, 32], strides = [1, 1]} : vector<2x96xf32> to vector<2x32xf32>
    %1566 = vector.extract_strided_slice %1548 {offsets = [0, 64], sizes = [2, 32], strides = [1, 1]} : vector<2x192xf32> to vector<2x32xf32>
    %1567 = vector.broadcast %1099 : vector<1x32xf32> to vector<2x32xf32>
    %1568 = arith.addf %1566, %1567 : vector<2x32xf32>
    %1569 = arith.mulf %1556, %1568 : vector<2x32xf32>
    %1570 = arith.addf %1565, %1569 : vector<2x32xf32>
    %1571 = math.tanh %1570 : vector<2x32xf32>
    %cst_419 = arith.constant 1.000000e+00 : f32
    %1572 = vector.broadcast %cst_419 : f32 to vector<2x32xf32>
    %1573 = arith.subf %1572, %1564 : vector<2x32xf32>
    %1574 = arith.mulf %1573, %1571 : vector<2x32xf32>
    %1575 = arith.mulf %1564, %1513 : vector<2x32xf32>
    %1576 = arith.addf %1574, %1575 : vector<2x32xf32>
    %1577 = vector.extract_strided_slice %1545 {offsets = [0, 0], sizes = [2, 32], strides = [1, 1]} : vector<2x96xf32> to vector<2x32xf32>
    %1578 = vector.extract_strided_slice %1548 {offsets = [0, 96], sizes = [2, 32], strides = [1, 1]} : vector<2x192xf32> to vector<2x32xf32>
    %1579 = arith.addf %1577, %1578 : vector<2x32xf32>
    %1580 = arith.negf %1579 : vector<2x32xf32>
    %1581 = math.exp %1580 : vector<2x32xf32>
    %cst_420 = arith.constant 1.000000e+00 : f32
    %1582 = vector.broadcast %cst_420 : f32 to vector<2x32xf32>
    %1583 = arith.addf %1582, %1581 : vector<2x32xf32>
    %1584 = arith.divf %1582, %1583 : vector<2x32xf32>
    %1585 = vector.extract_strided_slice %1545 {offsets = [0, 32], sizes = [2, 32], strides = [1, 1]} : vector<2x96xf32> to vector<2x32xf32>
    %1586 = vector.extract_strided_slice %1548 {offsets = [0, 128], sizes = [2, 32], strides = [1, 1]} : vector<2x192xf32> to vector<2x32xf32>
    %1587 = arith.addf %1585, %1586 : vector<2x32xf32>
    %1588 = arith.negf %1587 : vector<2x32xf32>
    %1589 = math.exp %1588 : vector<2x32xf32>
    %cst_421 = arith.constant 1.000000e+00 : f32
    %1590 = vector.broadcast %cst_421 : f32 to vector<2x32xf32>
    %1591 = arith.addf %1590, %1589 : vector<2x32xf32>
    %1592 = arith.divf %1590, %1591 : vector<2x32xf32>
    %1593 = vector.extract_strided_slice %1545 {offsets = [0, 64], sizes = [2, 32], strides = [1, 1]} : vector<2x96xf32> to vector<2x32xf32>
    %1594 = vector.extract_strided_slice %1548 {offsets = [0, 160], sizes = [2, 32], strides = [1, 1]} : vector<2x192xf32> to vector<2x32xf32>
    %1595 = vector.broadcast %1100 : vector<1x32xf32> to vector<2x32xf32>
    %1596 = arith.addf %1594, %1595 : vector<2x32xf32>
    %1597 = arith.mulf %1584, %1596 : vector<2x32xf32>
    %1598 = arith.addf %1593, %1597 : vector<2x32xf32>
    %1599 = math.tanh %1598 : vector<2x32xf32>
    %cst_422 = arith.constant 1.000000e+00 : f32
    %1600 = vector.broadcast %cst_422 : f32 to vector<2x32xf32>
    %1601 = arith.subf %1600, %1592 : vector<2x32xf32>
    %1602 = arith.mulf %1601, %1599 : vector<2x32xf32>
    %1603 = arith.mulf %1592, %1541 : vector<2x32xf32>
    %1604 = arith.addf %1602, %1603 : vector<2x32xf32>
    %c14_423 = arith.constant 14 : index
    %c0_424 = arith.constant 0 : index
    %1605 = vector.load %arg28[%c14_423, %c0_424] : memref<32x32xf32, #tpu.memory_space<vmem>>, vector<2x32xf32>
    tpu.vector_store %arg28[%c14_423, %c0_424], %1576 {strides = array<i32>} : memref<32x32xf32, #tpu.memory_space<vmem>>, vector<2x32xf32>,
    %c16_425 = arith.constant 16 : index
    %c0_426 = arith.constant 0 : index
    %1606 = vector.load %arg29[%c16_425, %c0_426] : memref<32x32xf32, #tpu.memory_space<vmem>>, vector<2x32xf32>
    tpu.vector_store %arg29[%c16_425, %c0_426], %1604 {strides = array<i32>} : memref<32x32xf32, #tpu.memory_space<vmem>>, vector<2x32xf32>,
    %c16_427 = arith.constant 16 : index
    %c0_428 = arith.constant 0 : index
    %1607 = vector.load %arg26[%c16_427, %c0_428] : memref<32x96xf32, #tpu.memory_space<vmem>>, vector<2x96xf32>
    %c14_429 = arith.constant 14 : index
    %c0_430 = arith.constant 0 : index
    %1608 = vector.load %arg27[%c14_429, %c0_430] : memref<32x96xf32, #tpu.memory_space<vmem>>, vector<2x96xf32>
    %1609 = tpu.concatenate %1576, %1604 in 1 : vector<2x32xf32>, vector<2x32xf32> -> vector<2x64xf32>
    %1610 = arith.truncf %1609 : vector<2x64xf32> to vector<2x64xbf16>
    %cst_431 = arith.constant dense<0.000000e+00> : vector<2x192xf32>
    %1611 = tpu.matmul %1610, %1097, %cst_431 {dimension_numbers = #tpu.dot_dimension_numbers<[1], [0], [0], [1], [0, 0, 1, 1], [], []>} : vector<2x64xbf16>, vector<64x192xbf16>, vector<2x192xf32> -> vector<2x192xf32>
    %1612 = vector.extract_strided_slice %1607 {offsets = [0, 0], sizes = [2, 32], strides = [1, 1]} : vector<2x96xf32> to vector<2x32xf32>
    %1613 = vector.extract_strided_slice %1611 {offsets = [0, 0], sizes = [2, 32], strides = [1, 1]} : vector<2x192xf32> to vector<2x32xf32>
    %1614 = arith.addf %1612, %1613 : vector<2x32xf32>
    %1615 = arith.negf %1614 : vector<2x32xf32>
    %1616 = math.exp %1615 : vector<2x32xf32>
    %cst_432 = arith.constant 1.000000e+00 : f32
    %1617 = vector.broadcast %cst_432 : f32 to vector<2x32xf32>
    %1618 = arith.addf %1617, %1616 : vector<2x32xf32>
    %1619 = arith.divf %1617, %1618 : vector<2x32xf32>
    %1620 = vector.extract_strided_slice %1607 {offsets = [0, 32], sizes = [2, 32], strides = [1, 1]} : vector<2x96xf32> to vector<2x32xf32>
    %1621 = vector.extract_strided_slice %1611 {offsets = [0, 32], sizes = [2, 32], strides = [1, 1]} : vector<2x192xf32> to vector<2x32xf32>
    %1622 = arith.addf %1620, %1621 : vector<2x32xf32>
    %1623 = arith.negf %1622 : vector<2x32xf32>
    %1624 = math.exp %1623 : vector<2x32xf32>
    %cst_433 = arith.constant 1.000000e+00 : f32
    %1625 = vector.broadcast %cst_433 : f32 to vector<2x32xf32>
    %1626 = arith.addf %1625, %1624 : vector<2x32xf32>
    %1627 = arith.divf %1625, %1626 : vector<2x32xf32>
    %1628 = vector.extract_strided_slice %1607 {offsets = [0, 64], sizes = [2, 32], strides = [1, 1]} : vector<2x96xf32> to vector<2x32xf32>
    %1629 = vector.extract_strided_slice %1611 {offsets = [0, 64], sizes = [2, 32], strides = [1, 1]} : vector<2x192xf32> to vector<2x32xf32>
    %1630 = vector.broadcast %1099 : vector<1x32xf32> to vector<2x32xf32>
    %1631 = arith.addf %1629, %1630 : vector<2x32xf32>
    %1632 = arith.mulf %1619, %1631 : vector<2x32xf32>
    %1633 = arith.addf %1628, %1632 : vector<2x32xf32>
    %1634 = math.tanh %1633 : vector<2x32xf32>
    %cst_434 = arith.constant 1.000000e+00 : f32
    %1635 = vector.broadcast %cst_434 : f32 to vector<2x32xf32>
    %1636 = arith.subf %1635, %1627 : vector<2x32xf32>
    %1637 = arith.mulf %1636, %1634 : vector<2x32xf32>
    %1638 = arith.mulf %1627, %1576 : vector<2x32xf32>
    %1639 = arith.addf %1637, %1638 : vector<2x32xf32>
    %1640 = vector.extract_strided_slice %1608 {offsets = [0, 0], sizes = [2, 32], strides = [1, 1]} : vector<2x96xf32> to vector<2x32xf32>
    %1641 = vector.extract_strided_slice %1611 {offsets = [0, 96], sizes = [2, 32], strides = [1, 1]} : vector<2x192xf32> to vector<2x32xf32>
    %1642 = arith.addf %1640, %1641 : vector<2x32xf32>
    %1643 = arith.negf %1642 : vector<2x32xf32>
    %1644 = math.exp %1643 : vector<2x32xf32>
    %cst_435 = arith.constant 1.000000e+00 : f32
    %1645 = vector.broadcast %cst_435 : f32 to vector<2x32xf32>
    %1646 = arith.addf %1645, %1644 : vector<2x32xf32>
    %1647 = arith.divf %1645, %1646 : vector<2x32xf32>
    %1648 = vector.extract_strided_slice %1608 {offsets = [0, 32], sizes = [2, 32], strides = [1, 1]} : vector<2x96xf32> to vector<2x32xf32>
    %1649 = vector.extract_strided_slice %1611 {offsets = [0, 128], sizes = [2, 32], strides = [1, 1]} : vector<2x192xf32> to vector<2x32xf32>
    %1650 = arith.addf %1648, %1649 : vector<2x32xf32>
    %1651 = arith.negf %1650 : vector<2x32xf32>
    %1652 = math.exp %1651 : vector<2x32xf32>
    %cst_436 = arith.constant 1.000000e+00 : f32
    %1653 = vector.broadcast %cst_436 : f32 to vector<2x32xf32>
    %1654 = arith.addf %1653, %1652 : vector<2x32xf32>
    %1655 = arith.divf %1653, %1654 : vector<2x32xf32>
    %1656 = vector.extract_strided_slice %1608 {offsets = [0, 64], sizes = [2, 32], strides = [1, 1]} : vector<2x96xf32> to vector<2x32xf32>
    %1657 = vector.extract_strided_slice %1611 {offsets = [0, 160], sizes = [2, 32], strides = [1, 1]} : vector<2x192xf32> to vector<2x32xf32>
    %1658 = vector.broadcast %1100 : vector<1x32xf32> to vector<2x32xf32>
    %1659 = arith.addf %1657, %1658 : vector<2x32xf32>
    %1660 = arith.mulf %1647, %1659 : vector<2x32xf32>
    %1661 = arith.addf %1656, %1660 : vector<2x32xf32>
    %1662 = math.tanh %1661 : vector<2x32xf32>
    %cst_437 = arith.constant 1.000000e+00 : f32
    %1663 = vector.broadcast %cst_437 : f32 to vector<2x32xf32>
    %1664 = arith.subf %1663, %1655 : vector<2x32xf32>
    %1665 = arith.mulf %1664, %1662 : vector<2x32xf32>
    %1666 = arith.mulf %1655, %1604 : vector<2x32xf32>
    %1667 = arith.addf %1665, %1666 : vector<2x32xf32>
    %c16_438 = arith.constant 16 : index
    %c0_439 = arith.constant 0 : index
    %1668 = vector.load %arg28[%c16_438, %c0_439] : memref<32x32xf32, #tpu.memory_space<vmem>>, vector<2x32xf32>
    tpu.vector_store %arg28[%c16_438, %c0_439], %1639 {strides = array<i32>} : memref<32x32xf32, #tpu.memory_space<vmem>>, vector<2x32xf32>,
    %c14_440 = arith.constant 14 : index
    %c0_441 = arith.constant 0 : index
    %1669 = vector.load %arg29[%c14_440, %c0_441] : memref<32x32xf32, #tpu.memory_space<vmem>>, vector<2x32xf32>
    tpu.vector_store %arg29[%c14_440, %c0_441], %1667 {strides = array<i32>} : memref<32x32xf32, #tpu.memory_space<vmem>>, vector<2x32xf32>,
    %c18_442 = arith.constant 18 : index
    %c0_443 = arith.constant 0 : index
    %1670 = vector.load %arg26[%c18_442, %c0_443] : memref<32x96xf32, #tpu.memory_space<vmem>>, vector<2x96xf32>
    %c12_444 = arith.constant 12 : index
    %c0_445 = arith.constant 0 : index
    %1671 = vector.load %arg27[%c12_444, %c0_445] : memref<32x96xf32, #tpu.memory_space<vmem>>, vector<2x96xf32>
    %1672 = tpu.concatenate %1639, %1667 in 1 : vector<2x32xf32>, vector<2x32xf32> -> vector<2x64xf32>
    %1673 = arith.truncf %1672 : vector<2x64xf32> to vector<2x64xbf16>
    %cst_446 = arith.constant dense<0.000000e+00> : vector<2x192xf32>
    %1674 = tpu.matmul %1673, %1097, %cst_446 {dimension_numbers = #tpu.dot_dimension_numbers<[1], [0], [0], [1], [0, 0, 1, 1], [], []>} : vector<2x64xbf16>, vector<64x192xbf16>, vector<2x192xf32> -> vector<2x192xf32>
    %1675 = vector.extract_strided_slice %1670 {offsets = [0, 0], sizes = [2, 32], strides = [1, 1]} : vector<2x96xf32> to vector<2x32xf32>
    %1676 = vector.extract_strided_slice %1674 {offsets = [0, 0], sizes = [2, 32], strides = [1, 1]} : vector<2x192xf32> to vector<2x32xf32>
    %1677 = arith.addf %1675, %1676 : vector<2x32xf32>
    %1678 = arith.negf %1677 : vector<2x32xf32>
    %1679 = math.exp %1678 : vector<2x32xf32>
    %cst_447 = arith.constant 1.000000e+00 : f32
    %1680 = vector.broadcast %cst_447 : f32 to vector<2x32xf32>
    %1681 = arith.addf %1680, %1679 : vector<2x32xf32>
    %1682 = arith.divf %1680, %1681 : vector<2x32xf32>
    %1683 = vector.extract_strided_slice %1670 {offsets = [0, 32], sizes = [2, 32], strides = [1, 1]} : vector<2x96xf32> to vector<2x32xf32>
    %1684 = vector.extract_strided_slice %1674 {offsets = [0, 32], sizes = [2, 32], strides = [1, 1]} : vector<2x192xf32> to vector<2x32xf32>
    %1685 = arith.addf %1683, %1684 : vector<2x32xf32>
    %1686 = arith.negf %1685 : vector<2x32xf32>
    %1687 = math.exp %1686 : vector<2x32xf32>
    %cst_448 = arith.constant 1.000000e+00 : f32
    %1688 = vector.broadcast %cst_448 : f32 to vector<2x32xf32>
    %1689 = arith.addf %1688, %1687 : vector<2x32xf32>
    %1690 = arith.divf %1688, %1689 : vector<2x32xf32>
    %1691 = vector.extract_strided_slice %1670 {offsets = [0, 64], sizes = [2, 32], strides = [1, 1]} : vector<2x96xf32> to vector<2x32xf32>
    %1692 = vector.extract_strided_slice %1674 {offsets = [0, 64], sizes = [2, 32], strides = [1, 1]} : vector<2x192xf32> to vector<2x32xf32>
    %1693 = vector.broadcast %1099 : vector<1x32xf32> to vector<2x32xf32>
    %1694 = arith.addf %1692, %1693 : vector<2x32xf32>
    %1695 = arith.mulf %1682, %1694 : vector<2x32xf32>
    %1696 = arith.addf %1691, %1695 : vector<2x32xf32>
    %1697 = math.tanh %1696 : vector<2x32xf32>
    %cst_449 = arith.constant 1.000000e+00 : f32
    %1698 = vector.broadcast %cst_449 : f32 to vector<2x32xf32>
    %1699 = arith.subf %1698, %1690 : vector<2x32xf32>
    %1700 = arith.mulf %1699, %1697 : vector<2x32xf32>
    %1701 = arith.mulf %1690, %1639 : vector<2x32xf32>
    %1702 = arith.addf %1700, %1701 : vector<2x32xf32>
    %1703 = vector.extract_strided_slice %1671 {offsets = [0, 0], sizes = [2, 32], strides = [1, 1]} : vector<2x96xf32> to vector<2x32xf32>
    %1704 = vector.extract_strided_slice %1674 {offsets = [0, 96], sizes = [2, 32], strides = [1, 1]} : vector<2x192xf32> to vector<2x32xf32>
    %1705 = arith.addf %1703, %1704 : vector<2x32xf32>
    %1706 = arith.negf %1705 : vector<2x32xf32>
    %1707 = math.exp %1706 : vector<2x32xf32>
    %cst_450 = arith.constant 1.000000e+00 : f32
    %1708 = vector.broadcast %cst_450 : f32 to vector<2x32xf32>
    %1709 = arith.addf %1708, %1707 : vector<2x32xf32>
    %1710 = arith.divf %1708, %1709 : vector<2x32xf32>
    %1711 = vector.extract_strided_slice %1671 {offsets = [0, 32], sizes = [2, 32], strides = [1, 1]} : vector<2x96xf32> to vector<2x32xf32>
    %1712 = vector.extract_strided_slice %1674 {offsets = [0, 128], sizes = [2, 32], strides = [1, 1]} : vector<2x192xf32> to vector<2x32xf32>
    %1713 = arith.addf %1711, %1712 : vector<2x32xf32>
    %1714 = arith.negf %1713 : vector<2x32xf32>
    %1715 = math.exp %1714 : vector<2x32xf32>
    %cst_451 = arith.constant 1.000000e+00 : f32
    %1716 = vector.broadcast %cst_451 : f32 to vector<2x32xf32>
    %1717 = arith.addf %1716, %1715 : vector<2x32xf32>
    %1718 = arith.divf %1716, %1717 : vector<2x32xf32>
    %1719 = vector.extract_strided_slice %1671 {offsets = [0, 64], sizes = [2, 32], strides = [1, 1]} : vector<2x96xf32> to vector<2x32xf32>
    %1720 = vector.extract_strided_slice %1674 {offsets = [0, 160], sizes = [2, 32], strides = [1, 1]} : vector<2x192xf32> to vector<2x32xf32>
    %1721 = vector.broadcast %1100 : vector<1x32xf32> to vector<2x32xf32>
    %1722 = arith.addf %1720, %1721 : vector<2x32xf32>
    %1723 = arith.mulf %1710, %1722 : vector<2x32xf32>
    %1724 = arith.addf %1719, %1723 : vector<2x32xf32>
    %1725 = math.tanh %1724 : vector<2x32xf32>
    %cst_452 = arith.constant 1.000000e+00 : f32
    %1726 = vector.broadcast %cst_452 : f32 to vector<2x32xf32>
    %1727 = arith.subf %1726, %1718 : vector<2x32xf32>
    %1728 = arith.mulf %1727, %1725 : vector<2x32xf32>
    %1729 = arith.mulf %1718, %1667 : vector<2x32xf32>
    %1730 = arith.addf %1728, %1729 : vector<2x32xf32>
    %c18_453 = arith.constant 18 : index
    %c0_454 = arith.constant 0 : index
    %1731 = vector.load %arg28[%c18_453, %c0_454] : memref<32x32xf32, #tpu.memory_space<vmem>>, vector<2x32xf32>
    tpu.vector_store %arg28[%c18_453, %c0_454], %1702 {strides = array<i32>} : memref<32x32xf32, #tpu.memory_space<vmem>>, vector<2x32xf32>,
    %c12_455 = arith.constant 12 : index
    %c0_456 = arith.constant 0 : index
    %1732 = vector.load %arg29[%c12_455, %c0_456] : memref<32x32xf32, #tpu.memory_space<vmem>>, vector<2x32xf32>
    tpu.vector_store %arg29[%c12_455, %c0_456], %1730 {strides = array<i32>} : memref<32x32xf32, #tpu.memory_space<vmem>>, vector<2x32xf32>,
    %c20_457 = arith.constant 20 : index
    %c0_458 = arith.constant 0 : index
    %1733 = vector.load %arg26[%c20_457, %c0_458] : memref<32x96xf32, #tpu.memory_space<vmem>>, vector<2x96xf32>
    %c10_459 = arith.constant 10 : index
    %c0_460 = arith.constant 0 : index
    %1734 = vector.load %arg27[%c10_459, %c0_460] : memref<32x96xf32, #tpu.memory_space<vmem>>, vector<2x96xf32>
    %1735 = tpu.concatenate %1702, %1730 in 1 : vector<2x32xf32>, vector<2x32xf32> -> vector<2x64xf32>
    %1736 = arith.truncf %1735 : vector<2x64xf32> to vector<2x64xbf16>
    %cst_461 = arith.constant dense<0.000000e+00> : vector<2x192xf32>
    %1737 = tpu.matmul %1736, %1097, %cst_461 {dimension_numbers = #tpu.dot_dimension_numbers<[1], [0], [0], [1], [0, 0, 1, 1], [], []>} : vector<2x64xbf16>, vector<64x192xbf16>, vector<2x192xf32> -> vector<2x192xf32>
    %1738 = vector.extract_strided_slice %1733 {offsets = [0, 0], sizes = [2, 32], strides = [1, 1]} : vector<2x96xf32> to vector<2x32xf32>
    %1739 = vector.extract_strided_slice %1737 {offsets = [0, 0], sizes = [2, 32], strides = [1, 1]} : vector<2x192xf32> to vector<2x32xf32>
    %1740 = arith.addf %1738, %1739 : vector<2x32xf32>
    %1741 = arith.negf %1740 : vector<2x32xf32>
    %1742 = math.exp %1741 : vector<2x32xf32>
    %cst_462 = arith.constant 1.000000e+00 : f32
    %1743 = vector.broadcast %cst_462 : f32 to vector<2x32xf32>
    %1744 = arith.addf %1743, %1742 : vector<2x32xf32>
    %1745 = arith.divf %1743, %1744 : vector<2x32xf32>
    %1746 = vector.extract_strided_slice %1733 {offsets = [0, 32], sizes = [2, 32], strides = [1, 1]} : vector<2x96xf32> to vector<2x32xf32>
    %1747 = vector.extract_strided_slice %1737 {offsets = [0, 32], sizes = [2, 32], strides = [1, 1]} : vector<2x192xf32> to vector<2x32xf32>
    %1748 = arith.addf %1746, %1747 : vector<2x32xf32>
    %1749 = arith.negf %1748 : vector<2x32xf32>
    %1750 = math.exp %1749 : vector<2x32xf32>
    %cst_463 = arith.constant 1.000000e+00 : f32
    %1751 = vector.broadcast %cst_463 : f32 to vector<2x32xf32>
    %1752 = arith.addf %1751, %1750 : vector<2x32xf32>
    %1753 = arith.divf %1751, %1752 : vector<2x32xf32>
    %1754 = vector.extract_strided_slice %1733 {offsets = [0, 64], sizes = [2, 32], strides = [1, 1]} : vector<2x96xf32> to vector<2x32xf32>
    %1755 = vector.extract_strided_slice %1737 {offsets = [0, 64], sizes = [2, 32], strides = [1, 1]} : vector<2x192xf32> to vector<2x32xf32>
    %1756 = vector.broadcast %1099 : vector<1x32xf32> to vector<2x32xf32>
    %1757 = arith.addf %1755, %1756 : vector<2x32xf32>
    %1758 = arith.mulf %1745, %1757 : vector<2x32xf32>
    %1759 = arith.addf %1754, %1758 : vector<2x32xf32>
    %1760 = math.tanh %1759 : vector<2x32xf32>
    %cst_464 = arith.constant 1.000000e+00 : f32
    %1761 = vector.broadcast %cst_464 : f32 to vector<2x32xf32>
    %1762 = arith.subf %1761, %1753 : vector<2x32xf32>
    %1763 = arith.mulf %1762, %1760 : vector<2x32xf32>
    %1764 = arith.mulf %1753, %1702 : vector<2x32xf32>
    %1765 = arith.addf %1763, %1764 : vector<2x32xf32>
    %1766 = vector.extract_strided_slice %1734 {offsets = [0, 0], sizes = [2, 32], strides = [1, 1]} : vector<2x96xf32> to vector<2x32xf32>
    %1767 = vector.extract_strided_slice %1737 {offsets = [0, 96], sizes = [2, 32], strides = [1, 1]} : vector<2x192xf32> to vector<2x32xf32>
    %1768 = arith.addf %1766, %1767 : vector<2x32xf32>
    %1769 = arith.negf %1768 : vector<2x32xf32>
    %1770 = math.exp %1769 : vector<2x32xf32>
    %cst_465 = arith.constant 1.000000e+00 : f32
    %1771 = vector.broadcast %cst_465 : f32 to vector<2x32xf32>
    %1772 = arith.addf %1771, %1770 : vector<2x32xf32>
    %1773 = arith.divf %1771, %1772 : vector<2x32xf32>
    %1774 = vector.extract_strided_slice %1734 {offsets = [0, 32], sizes = [2, 32], strides = [1, 1]} : vector<2x96xf32> to vector<2x32xf32>
    %1775 = vector.extract_strided_slice %1737 {offsets = [0, 128], sizes = [2, 32], strides = [1, 1]} : vector<2x192xf32> to vector<2x32xf32>
    %1776 = arith.addf %1774, %1775 : vector<2x32xf32>
    %1777 = arith.negf %1776 : vector<2x32xf32>
    %1778 = math.exp %1777 : vector<2x32xf32>
    %cst_466 = arith.constant 1.000000e+00 : f32
    %1779 = vector.broadcast %cst_466 : f32 to vector<2x32xf32>
    %1780 = arith.addf %1779, %1778 : vector<2x32xf32>
    %1781 = arith.divf %1779, %1780 : vector<2x32xf32>
    %1782 = vector.extract_strided_slice %1734 {offsets = [0, 64], sizes = [2, 32], strides = [1, 1]} : vector<2x96xf32> to vector<2x32xf32>
    %1783 = vector.extract_strided_slice %1737 {offsets = [0, 160], sizes = [2, 32], strides = [1, 1]} : vector<2x192xf32> to vector<2x32xf32>
    %1784 = vector.broadcast %1100 : vector<1x32xf32> to vector<2x32xf32>
    %1785 = arith.addf %1783, %1784 : vector<2x32xf32>
    %1786 = arith.mulf %1773, %1785 : vector<2x32xf32>
    %1787 = arith.addf %1782, %1786 : vector<2x32xf32>
    %1788 = math.tanh %1787 : vector<2x32xf32>
    %cst_467 = arith.constant 1.000000e+00 : f32
    %1789 = vector.broadcast %cst_467 : f32 to vector<2x32xf32>
    %1790 = arith.subf %1789, %1781 : vector<2x32xf32>
    %1791 = arith.mulf %1790, %1788 : vector<2x32xf32>
    %1792 = arith.mulf %1781, %1730 : vector<2x32xf32>
    %1793 = arith.addf %1791, %1792 : vector<2x32xf32>
    %c20_468 = arith.constant 20 : index
    %c0_469 = arith.constant 0 : index
    %1794 = vector.load %arg28[%c20_468, %c0_469] : memref<32x32xf32, #tpu.memory_space<vmem>>, vector<2x32xf32>
    tpu.vector_store %arg28[%c20_468, %c0_469], %1765 {strides = array<i32>} : memref<32x32xf32, #tpu.memory_space<vmem>>, vector<2x32xf32>,
    %c10_470 = arith.constant 10 : index
    %c0_471 = arith.constant 0 : index
    %1795 = vector.load %arg29[%c10_470, %c0_471] : memref<32x32xf32, #tpu.memory_space<vmem>>, vector<2x32xf32>
    tpu.vector_store %arg29[%c10_470, %c0_471], %1793 {strides = array<i32>} : memref<32x32xf32, #tpu.memory_space<vmem>>, vector<2x32xf32>,
    %c22_472 = arith.constant 22 : index
    %c0_473 = arith.constant 0 : index
    %1796 = vector.load %arg26[%c22_472, %c0_473] : memref<32x96xf32, #tpu.memory_space<vmem>>, vector<2x96xf32>
    %c8_474 = arith.constant 8 : index
    %c0_475 = arith.constant 0 : index
    %1797 = vector.load %arg27[%c8_474, %c0_475] : memref<32x96xf32, #tpu.memory_space<vmem>>, vector<2x96xf32>
    %1798 = tpu.concatenate %1765, %1793 in 1 : vector<2x32xf32>, vector<2x32xf32> -> vector<2x64xf32>
    %1799 = arith.truncf %1798 : vector<2x64xf32> to vector<2x64xbf16>
    %cst_476 = arith.constant dense<0.000000e+00> : vector<2x192xf32>
    %1800 = tpu.matmul %1799, %1097, %cst_476 {dimension_numbers = #tpu.dot_dimension_numbers<[1], [0], [0], [1], [0, 0, 1, 1], [], []>} : vector<2x64xbf16>, vector<64x192xbf16>, vector<2x192xf32> -> vector<2x192xf32>
    %1801 = vector.extract_strided_slice %1796 {offsets = [0, 0], sizes = [2, 32], strides = [1, 1]} : vector<2x96xf32> to vector<2x32xf32>
    %1802 = vector.extract_strided_slice %1800 {offsets = [0, 0], sizes = [2, 32], strides = [1, 1]} : vector<2x192xf32> to vector<2x32xf32>
    %1803 = arith.addf %1801, %1802 : vector<2x32xf32>
    %1804 = arith.negf %1803 : vector<2x32xf32>
    %1805 = math.exp %1804 : vector<2x32xf32>
    %cst_477 = arith.constant 1.000000e+00 : f32
    %1806 = vector.broadcast %cst_477 : f32 to vector<2x32xf32>
    %1807 = arith.addf %1806, %1805 : vector<2x32xf32>
    %1808 = arith.divf %1806, %1807 : vector<2x32xf32>
    %1809 = vector.extract_strided_slice %1796 {offsets = [0, 32], sizes = [2, 32], strides = [1, 1]} : vector<2x96xf32> to vector<2x32xf32>
    %1810 = vector.extract_strided_slice %1800 {offsets = [0, 32], sizes = [2, 32], strides = [1, 1]} : vector<2x192xf32> to vector<2x32xf32>
    %1811 = arith.addf %1809, %1810 : vector<2x32xf32>
    %1812 = arith.negf %1811 : vector<2x32xf32>
    %1813 = math.exp %1812 : vector<2x32xf32>
    %cst_478 = arith.constant 1.000000e+00 : f32
    %1814 = vector.broadcast %cst_478 : f32 to vector<2x32xf32>
    %1815 = arith.addf %1814, %1813 : vector<2x32xf32>
    %1816 = arith.divf %1814, %1815 : vector<2x32xf32>
    %1817 = vector.extract_strided_slice %1796 {offsets = [0, 64], sizes = [2, 32], strides = [1, 1]} : vector<2x96xf32> to vector<2x32xf32>
    %1818 = vector.extract_strided_slice %1800 {offsets = [0, 64], sizes = [2, 32], strides = [1, 1]} : vector<2x192xf32> to vector<2x32xf32>
    %1819 = vector.broadcast %1099 : vector<1x32xf32> to vector<2x32xf32>
    %1820 = arith.addf %1818, %1819 : vector<2x32xf32>
    %1821 = arith.mulf %1808, %1820 : vector<2x32xf32>
    %1822 = arith.addf %1817, %1821 : vector<2x32xf32>
    %1823 = math.tanh %1822 : vector<2x32xf32>
    %cst_479 = arith.constant 1.000000e+00 : f32
    %1824 = vector.broadcast %cst_479 : f32 to vector<2x32xf32>
    %1825 = arith.subf %1824, %1816 : vector<2x32xf32>
    %1826 = arith.mulf %1825, %1823 : vector<2x32xf32>
    %1827 = arith.mulf %1816, %1765 : vector<2x32xf32>
    %1828 = arith.addf %1826, %1827 : vector<2x32xf32>
    %1829 = vector.extract_strided_slice %1797 {offsets = [0, 0], sizes = [2, 32], strides = [1, 1]} : vector<2x96xf32> to vector<2x32xf32>
    %1830 = vector.extract_strided_slice %1800 {offsets = [0, 96], sizes = [2, 32], strides = [1, 1]} : vector<2x192xf32> to vector<2x32xf32>
    %1831 = arith.addf %1829, %1830 : vector<2x32xf32>
    %1832 = arith.negf %1831 : vector<2x32xf32>
    %1833 = math.exp %1832 : vector<2x32xf32>
    %cst_480 = arith.constant 1.000000e+00 : f32
    %1834 = vector.broadcast %cst_480 : f32 to vector<2x32xf32>
    %1835 = arith.addf %1834, %1833 : vector<2x32xf32>
    %1836 = arith.divf %1834, %1835 : vector<2x32xf32>
    %1837 = vector.extract_strided_slice %1797 {offsets = [0, 32], sizes = [2, 32], strides = [1, 1]} : vector<2x96xf32> to vector<2x32xf32>
    %1838 = vector.extract_strided_slice %1800 {offsets = [0, 128], sizes = [2, 32], strides = [1, 1]} : vector<2x192xf32> to vector<2x32xf32>
    %1839 = arith.addf %1837, %1838 : vector<2x32xf32>
    %1840 = arith.negf %1839 : vector<2x32xf32>
    %1841 = math.exp %1840 : vector<2x32xf32>
    %cst_481 = arith.constant 1.000000e+00 : f32
    %1842 = vector.broadcast %cst_481 : f32 to vector<2x32xf32>
    %1843 = arith.addf %1842, %1841 : vector<2x32xf32>
    %1844 = arith.divf %1842, %1843 : vector<2x32xf32>
    %1845 = vector.extract_strided_slice %1797 {offsets = [0, 64], sizes = [2, 32], strides = [1, 1]} : vector<2x96xf32> to vector<2x32xf32>
    %1846 = vector.extract_strided_slice %1800 {offsets = [0, 160], sizes = [2, 32], strides = [1, 1]} : vector<2x192xf32> to vector<2x32xf32>
    %1847 = vector.broadcast %1100 : vector<1x32xf32> to vector<2x32xf32>
    %1848 = arith.addf %1846, %1847 : vector<2x32xf32>
    %1849 = arith.mulf %1836, %1848 : vector<2x32xf32>
    %1850 = arith.addf %1845, %1849 : vector<2x32xf32>
    %1851 = math.tanh %1850 : vector<2x32xf32>
    %cst_482 = arith.constant 1.000000e+00 : f32
    %1852 = vector.broadcast %cst_482 : f32 to vector<2x32xf32>
    %1853 = arith.subf %1852, %1844 : vector<2x32xf32>
    %1854 = arith.mulf %1853, %1851 : vector<2x32xf32>
    %1855 = arith.mulf %1844, %1793 : vector<2x32xf32>
    %1856 = arith.addf %1854, %1855 : vector<2x32xf32>
    %c22_483 = arith.constant 22 : index
    %c0_484 = arith.constant 0 : index
    %1857 = vector.load %arg28[%c22_483, %c0_484] : memref<32x32xf32, #tpu.memory_space<vmem>>, vector<2x32xf32>
    tpu.vector_store %arg28[%c22_483, %c0_484], %1828 {strides = array<i32>} : memref<32x32xf32, #tpu.memory_space<vmem>>, vector<2x32xf32>,
    %c8_485 = arith.constant 8 : index
    %c0_486 = arith.constant 0 : index
    %1858 = vector.load %arg29[%c8_485, %c0_486] : memref<32x32xf32, #tpu.memory_space<vmem>>, vector<2x32xf32>
    tpu.vector_store %arg29[%c8_485, %c0_486], %1856 {strides = array<i32>} : memref<32x32xf32, #tpu.memory_space<vmem>>, vector<2x32xf32>,
    %c24_487 = arith.constant 24 : index
    %c0_488 = arith.constant 0 : index
    %1859 = vector.load %arg26[%c24_487, %c0_488] : memref<32x96xf32, #tpu.memory_space<vmem>>, vector<2x96xf32>
    %c6_489 = arith.constant 6 : index
    %c0_490 = arith.constant 0 : index
    %1860 = vector.load %arg27[%c6_489, %c0_490] : memref<32x96xf32, #tpu.memory_space<vmem>>, vector<2x96xf32>
    %1861 = tpu.concatenate %1828, %1856 in 1 : vector<2x32xf32>, vector<2x32xf32> -> vector<2x64xf32>
    %1862 = arith.truncf %1861 : vector<2x64xf32> to vector<2x64xbf16>
    %cst_491 = arith.constant dense<0.000000e+00> : vector<2x192xf32>
    %1863 = tpu.matmul %1862, %1097, %cst_491 {dimension_numbers = #tpu.dot_dimension_numbers<[1], [0], [0], [1], [0, 0, 1, 1], [], []>} : vector<2x64xbf16>, vector<64x192xbf16>, vector<2x192xf32> -> vector<2x192xf32>
    %1864 = vector.extract_strided_slice %1859 {offsets = [0, 0], sizes = [2, 32], strides = [1, 1]} : vector<2x96xf32> to vector<2x32xf32>
    %1865 = vector.extract_strided_slice %1863 {offsets = [0, 0], sizes = [2, 32], strides = [1, 1]} : vector<2x192xf32> to vector<2x32xf32>
    %1866 = arith.addf %1864, %1865 : vector<2x32xf32>
    %1867 = arith.negf %1866 : vector<2x32xf32>
    %1868 = math.exp %1867 : vector<2x32xf32>
    %cst_492 = arith.constant 1.000000e+00 : f32
    %1869 = vector.broadcast %cst_492 : f32 to vector<2x32xf32>
    %1870 = arith.addf %1869, %1868 : vector<2x32xf32>
    %1871 = arith.divf %1869, %1870 : vector<2x32xf32>
    %1872 = vector.extract_strided_slice %1859 {offsets = [0, 32], sizes = [2, 32], strides = [1, 1]} : vector<2x96xf32> to vector<2x32xf32>
    %1873 = vector.extract_strided_slice %1863 {offsets = [0, 32], sizes = [2, 32], strides = [1, 1]} : vector<2x192xf32> to vector<2x32xf32>
    %1874 = arith.addf %1872, %1873 : vector<2x32xf32>
    %1875 = arith.negf %1874 : vector<2x32xf32>
    %1876 = math.exp %1875 : vector<2x32xf32>
    %cst_493 = arith.constant 1.000000e+00 : f32
    %1877 = vector.broadcast %cst_493 : f32 to vector<2x32xf32>
    %1878 = arith.addf %1877, %1876 : vector<2x32xf32>
    %1879 = arith.divf %1877, %1878 : vector<2x32xf32>
    %1880 = vector.extract_strided_slice %1859 {offsets = [0, 64], sizes = [2, 32], strides = [1, 1]} : vector<2x96xf32> to vector<2x32xf32>
    %1881 = vector.extract_strided_slice %1863 {offsets = [0, 64], sizes = [2, 32], strides = [1, 1]} : vector<2x192xf32> to vector<2x32xf32>
    %1882 = vector.broadcast %1099 : vector<1x32xf32> to vector<2x32xf32>
    %1883 = arith.addf %1881, %1882 : vector<2x32xf32>
    %1884 = arith.mulf %1871, %1883 : vector<2x32xf32>
    %1885 = arith.addf %1880, %1884 : vector<2x32xf32>
    %1886 = math.tanh %1885 : vector<2x32xf32>
    %cst_494 = arith.constant 1.000000e+00 : f32
    %1887 = vector.broadcast %cst_494 : f32 to vector<2x32xf32>
    %1888 = arith.subf %1887, %1879 : vector<2x32xf32>
    %1889 = arith.mulf %1888, %1886 : vector<2x32xf32>
    %1890 = arith.mulf %1879, %1828 : vector<2x32xf32>
    %1891 = arith.addf %1889, %1890 : vector<2x32xf32>
    %1892 = vector.extract_strided_slice %1860 {offsets = [0, 0], sizes = [2, 32], strides = [1, 1]} : vector<2x96xf32> to vector<2x32xf32>
    %1893 = vector.extract_strided_slice %1863 {offsets = [0, 96], sizes = [2, 32], strides = [1, 1]} : vector<2x192xf32> to vector<2x32xf32>
    %1894 = arith.addf %1892, %1893 : vector<2x32xf32>
    %1895 = arith.negf %1894 : vector<2x32xf32>
    %1896 = math.exp %1895 : vector<2x32xf32>
    %cst_495 = arith.constant 1.000000e+00 : f32
    %1897 = vector.broadcast %cst_495 : f32 to vector<2x32xf32>
    %1898 = arith.addf %1897, %1896 : vector<2x32xf32>
    %1899 = arith.divf %1897, %1898 : vector<2x32xf32>
    %1900 = vector.extract_strided_slice %1860 {offsets = [0, 32], sizes = [2, 32], strides = [1, 1]} : vector<2x96xf32> to vector<2x32xf32>
    %1901 = vector.extract_strided_slice %1863 {offsets = [0, 128], sizes = [2, 32], strides = [1, 1]} : vector<2x192xf32> to vector<2x32xf32>
    %1902 = arith.addf %1900, %1901 : vector<2x32xf32>
    %1903 = arith.negf %1902 : vector<2x32xf32>
    %1904 = math.exp %1903 : vector<2x32xf32>
    %cst_496 = arith.constant 1.000000e+00 : f32
    %1905 = vector.broadcast %cst_496 : f32 to vector<2x32xf32>
    %1906 = arith.addf %1905, %1904 : vector<2x32xf32>
    %1907 = arith.divf %1905, %1906 : vector<2x32xf32>
    %1908 = vector.extract_strided_slice %1860 {offsets = [0, 64], sizes = [2, 32], strides = [1, 1]} : vector<2x96xf32> to vector<2x32xf32>
    %1909 = vector.extract_strided_slice %1863 {offsets = [0, 160], sizes = [2, 32], strides = [1, 1]} : vector<2x192xf32> to vector<2x32xf32>
    %1910 = vector.broadcast %1100 : vector<1x32xf32> to vector<2x32xf32>
    %1911 = arith.addf %1909, %1910 : vector<2x32xf32>
    %1912 = arith.mulf %1899, %1911 : vector<2x32xf32>
    %1913 = arith.addf %1908, %1912 : vector<2x32xf32>
    %1914 = math.tanh %1913 : vector<2x32xf32>
    %cst_497 = arith.constant 1.000000e+00 : f32
    %1915 = vector.broadcast %cst_497 : f32 to vector<2x32xf32>
    %1916 = arith.subf %1915, %1907 : vector<2x32xf32>
    %1917 = arith.mulf %1916, %1914 : vector<2x32xf32>
    %1918 = arith.mulf %1907, %1856 : vector<2x32xf32>
    %1919 = arith.addf %1917, %1918 : vector<2x32xf32>
    %c24_498 = arith.constant 24 : index
    %c0_499 = arith.constant 0 : index
    %1920 = vector.load %arg28[%c24_498, %c0_499] : memref<32x32xf32, #tpu.memory_space<vmem>>, vector<2x32xf32>
    tpu.vector_store %arg28[%c24_498, %c0_499], %1891 {strides = array<i32>} : memref<32x32xf32, #tpu.memory_space<vmem>>, vector<2x32xf32>,
    %c6_500 = arith.constant 6 : index
    %c0_501 = arith.constant 0 : index
    %1921 = vector.load %arg29[%c6_500, %c0_501] : memref<32x32xf32, #tpu.memory_space<vmem>>, vector<2x32xf32>
    tpu.vector_store %arg29[%c6_500, %c0_501], %1919 {strides = array<i32>} : memref<32x32xf32, #tpu.memory_space<vmem>>, vector<2x32xf32>,
    %c26_502 = arith.constant 26 : index
    %c0_503 = arith.constant 0 : index
    %1922 = vector.load %arg26[%c26_502, %c0_503] : memref<32x96xf32, #tpu.memory_space<vmem>>, vector<2x96xf32>
    %c4_504 = arith.constant 4 : index
    %c0_505 = arith.constant 0 : index
    %1923 = vector.load %arg27[%c4_504, %c0_505] : memref<32x96xf32, #tpu.memory_space<vmem>>, vector<2x96xf32>
    %1924 = tpu.concatenate %1891, %1919 in 1 : vector<2x32xf32>, vector<2x32xf32> -> vector<2x64xf32>
    %1925 = arith.truncf %1924 : vector<2x64xf32> to vector<2x64xbf16>
    %cst_506 = arith.constant dense<0.000000e+00> : vector<2x192xf32>
    %1926 = tpu.matmul %1925, %1097, %cst_506 {dimension_numbers = #tpu.dot_dimension_numbers<[1], [0], [0], [1], [0, 0, 1, 1], [], []>} : vector<2x64xbf16>, vector<64x192xbf16>, vector<2x192xf32> -> vector<2x192xf32>
    %1927 = vector.extract_strided_slice %1922 {offsets = [0, 0], sizes = [2, 32], strides = [1, 1]} : vector<2x96xf32> to vector<2x32xf32>
    %1928 = vector.extract_strided_slice %1926 {offsets = [0, 0], sizes = [2, 32], strides = [1, 1]} : vector<2x192xf32> to vector<2x32xf32>
    %1929 = arith.addf %1927, %1928 : vector<2x32xf32>
    %1930 = arith.negf %1929 : vector<2x32xf32>
    %1931 = math.exp %1930 : vector<2x32xf32>
    %cst_507 = arith.constant 1.000000e+00 : f32
    %1932 = vector.broadcast %cst_507 : f32 to vector<2x32xf32>
    %1933 = arith.addf %1932, %1931 : vector<2x32xf32>
    %1934 = arith.divf %1932, %1933 : vector<2x32xf32>
    %1935 = vector.extract_strided_slice %1922 {offsets = [0, 32], sizes = [2, 32], strides = [1, 1]} : vector<2x96xf32> to vector<2x32xf32>
    %1936 = vector.extract_strided_slice %1926 {offsets = [0, 32], sizes = [2, 32], strides = [1, 1]} : vector<2x192xf32> to vector<2x32xf32>
    %1937 = arith.addf %1935, %1936 : vector<2x32xf32>
    %1938 = arith.negf %1937 : vector<2x32xf32>
    %1939 = math.exp %1938 : vector<2x32xf32>
    %cst_508 = arith.constant 1.000000e+00 : f32
    %1940 = vector.broadcast %cst_508 : f32 to vector<2x32xf32>
    %1941 = arith.addf %1940, %1939 : vector<2x32xf32>
    %1942 = arith.divf %1940, %1941 : vector<2x32xf32>
    %1943 = vector.extract_strided_slice %1922 {offsets = [0, 64], sizes = [2, 32], strides = [1, 1]} : vector<2x96xf32> to vector<2x32xf32>
    %1944 = vector.extract_strided_slice %1926 {offsets = [0, 64], sizes = [2, 32], strides = [1, 1]} : vector<2x192xf32> to vector<2x32xf32>
    %1945 = vector.broadcast %1099 : vector<1x32xf32> to vector<2x32xf32>
    %1946 = arith.addf %1944, %1945 : vector<2x32xf32>
    %1947 = arith.mulf %1934, %1946 : vector<2x32xf32>
    %1948 = arith.addf %1943, %1947 : vector<2x32xf32>
    %1949 = math.tanh %1948 : vector<2x32xf32>
    %cst_509 = arith.constant 1.000000e+00 : f32
    %1950 = vector.broadcast %cst_509 : f32 to vector<2x32xf32>
    %1951 = arith.subf %1950, %1942 : vector<2x32xf32>
    %1952 = arith.mulf %1951, %1949 : vector<2x32xf32>
    %1953 = arith.mulf %1942, %1891 : vector<2x32xf32>
    %1954 = arith.addf %1952, %1953 : vector<2x32xf32>
    %1955 = vector.extract_strided_slice %1923 {offsets = [0, 0], sizes = [2, 32], strides = [1, 1]} : vector<2x96xf32> to vector<2x32xf32>
    %1956 = vector.extract_strided_slice %1926 {offsets = [0, 96], sizes = [2, 32], strides = [1, 1]} : vector<2x192xf32> to vector<2x32xf32>
    %1957 = arith.addf %1955, %1956 : vector<2x32xf32>
    %1958 = arith.negf %1957 : vector<2x32xf32>
    %1959 = math.exp %1958 : vector<2x32xf32>
    %cst_510 = arith.constant 1.000000e+00 : f32
    %1960 = vector.broadcast %cst_510 : f32 to vector<2x32xf32>
    %1961 = arith.addf %1960, %1959 : vector<2x32xf32>
    %1962 = arith.divf %1960, %1961 : vector<2x32xf32>
    %1963 = vector.extract_strided_slice %1923 {offsets = [0, 32], sizes = [2, 32], strides = [1, 1]} : vector<2x96xf32> to vector<2x32xf32>
    %1964 = vector.extract_strided_slice %1926 {offsets = [0, 128], sizes = [2, 32], strides = [1, 1]} : vector<2x192xf32> to vector<2x32xf32>
    %1965 = arith.addf %1963, %1964 : vector<2x32xf32>
    %1966 = arith.negf %1965 : vector<2x32xf32>
    %1967 = math.exp %1966 : vector<2x32xf32>
    %cst_511 = arith.constant 1.000000e+00 : f32
    %1968 = vector.broadcast %cst_511 : f32 to vector<2x32xf32>
    %1969 = arith.addf %1968, %1967 : vector<2x32xf32>
    %1970 = arith.divf %1968, %1969 : vector<2x32xf32>
    %1971 = vector.extract_strided_slice %1923 {offsets = [0, 64], sizes = [2, 32], strides = [1, 1]} : vector<2x96xf32> to vector<2x32xf32>
    %1972 = vector.extract_strided_slice %1926 {offsets = [0, 160], sizes = [2, 32], strides = [1, 1]} : vector<2x192xf32> to vector<2x32xf32>
    %1973 = vector.broadcast %1100 : vector<1x32xf32> to vector<2x32xf32>
    %1974 = arith.addf %1972, %1973 : vector<2x32xf32>
    %1975 = arith.mulf %1962, %1974 : vector<2x32xf32>
    %1976 = arith.addf %1971, %1975 : vector<2x32xf32>
    %1977 = math.tanh %1976 : vector<2x32xf32>
    %cst_512 = arith.constant 1.000000e+00 : f32
    %1978 = vector.broadcast %cst_512 : f32 to vector<2x32xf32>
    %1979 = arith.subf %1978, %1970 : vector<2x32xf32>
    %1980 = arith.mulf %1979, %1977 : vector<2x32xf32>
    %1981 = arith.mulf %1970, %1919 : vector<2x32xf32>
    %1982 = arith.addf %1980, %1981 : vector<2x32xf32>
    %c26_513 = arith.constant 26 : index
    %c0_514 = arith.constant 0 : index
    %1983 = vector.load %arg28[%c26_513, %c0_514] : memref<32x32xf32, #tpu.memory_space<vmem>>, vector<2x32xf32>
    tpu.vector_store %arg28[%c26_513, %c0_514], %1954 {strides = array<i32>} : memref<32x32xf32, #tpu.memory_space<vmem>>, vector<2x32xf32>,
    %c4_515 = arith.constant 4 : index
    %c0_516 = arith.constant 0 : index
    %1984 = vector.load %arg29[%c4_515, %c0_516] : memref<32x32xf32, #tpu.memory_space<vmem>>, vector<2x32xf32>
    tpu.vector_store %arg29[%c4_515, %c0_516], %1982 {strides = array<i32>} : memref<32x32xf32, #tpu.memory_space<vmem>>, vector<2x32xf32>,
    %c28_517 = arith.constant 28 : index
    %c0_518 = arith.constant 0 : index
    %1985 = vector.load %arg26[%c28_517, %c0_518] : memref<32x96xf32, #tpu.memory_space<vmem>>, vector<2x96xf32>
    %c2_519 = arith.constant 2 : index
    %c0_520 = arith.constant 0 : index
    %1986 = vector.load %arg27[%c2_519, %c0_520] : memref<32x96xf32, #tpu.memory_space<vmem>>, vector<2x96xf32>
    %1987 = tpu.concatenate %1954, %1982 in 1 : vector<2x32xf32>, vector<2x32xf32> -> vector<2x64xf32>
    %1988 = arith.truncf %1987 : vector<2x64xf32> to vector<2x64xbf16>
    %cst_521 = arith.constant dense<0.000000e+00> : vector<2x192xf32>
    %1989 = tpu.matmul %1988, %1097, %cst_521 {dimension_numbers = #tpu.dot_dimension_numbers<[1], [0], [0], [1], [0, 0, 1, 1], [], []>} : vector<2x64xbf16>, vector<64x192xbf16>, vector<2x192xf32> -> vector<2x192xf32>
    %1990 = vector.extract_strided_slice %1985 {offsets = [0, 0], sizes = [2, 32], strides = [1, 1]} : vector<2x96xf32> to vector<2x32xf32>
    %1991 = vector.extract_strided_slice %1989 {offsets = [0, 0], sizes = [2, 32], strides = [1, 1]} : vector<2x192xf32> to vector<2x32xf32>
    %1992 = arith.addf %1990, %1991 : vector<2x32xf32>
    %1993 = arith.negf %1992 : vector<2x32xf32>
    %1994 = math.exp %1993 : vector<2x32xf32>
    %cst_522 = arith.constant 1.000000e+00 : f32
    %1995 = vector.broadcast %cst_522 : f32 to vector<2x32xf32>
    %1996 = arith.addf %1995, %1994 : vector<2x32xf32>
    %1997 = arith.divf %1995, %1996 : vector<2x32xf32>
    %1998 = vector.extract_strided_slice %1985 {offsets = [0, 32], sizes = [2, 32], strides = [1, 1]} : vector<2x96xf32> to vector<2x32xf32>
    %1999 = vector.extract_strided_slice %1989 {offsets = [0, 32], sizes = [2, 32], strides = [1, 1]} : vector<2x192xf32> to vector<2x32xf32>
    %2000 = arith.addf %1998, %1999 : vector<2x32xf32>
    %2001 = arith.negf %2000 : vector<2x32xf32>
    %2002 = math.exp %2001 : vector<2x32xf32>
    %cst_523 = arith.constant 1.000000e+00 : f32
    %2003 = vector.broadcast %cst_523 : f32 to vector<2x32xf32>
    %2004 = arith.addf %2003, %2002 : vector<2x32xf32>
    %2005 = arith.divf %2003, %2004 : vector<2x32xf32>
    %2006 = vector.extract_strided_slice %1985 {offsets = [0, 64], sizes = [2, 32], strides = [1, 1]} : vector<2x96xf32> to vector<2x32xf32>
    %2007 = vector.extract_strided_slice %1989 {offsets = [0, 64], sizes = [2, 32], strides = [1, 1]} : vector<2x192xf32> to vector<2x32xf32>
    %2008 = vector.broadcast %1099 : vector<1x32xf32> to vector<2x32xf32>
    %2009 = arith.addf %2007, %2008 : vector<2x32xf32>
    %2010 = arith.mulf %1997, %2009 : vector<2x32xf32>
    %2011 = arith.addf %2006, %2010 : vector<2x32xf32>
    %2012 = math.tanh %2011 : vector<2x32xf32>
    %cst_524 = arith.constant 1.000000e+00 : f32
    %2013 = vector.broadcast %cst_524 : f32 to vector<2x32xf32>
    %2014 = arith.subf %2013, %2005 : vector<2x32xf32>
    %2015 = arith.mulf %2014, %2012 : vector<2x32xf32>
    %2016 = arith.mulf %2005, %1954 : vector<2x32xf32>
    %2017 = arith.addf %2015, %2016 : vector<2x32xf32>
    %2018 = vector.extract_strided_slice %1986 {offsets = [0, 0], sizes = [2, 32], strides = [1, 1]} : vector<2x96xf32> to vector<2x32xf32>
    %2019 = vector.extract_strided_slice %1989 {offsets = [0, 96], sizes = [2, 32], strides = [1, 1]} : vector<2x192xf32> to vector<2x32xf32>
    %2020 = arith.addf %2018, %2019 : vector<2x32xf32>
    %2021 = arith.negf %2020 : vector<2x32xf32>
    %2022 = math.exp %2021 : vector<2x32xf32>
    %cst_525 = arith.constant 1.000000e+00 : f32
    %2023 = vector.broadcast %cst_525 : f32 to vector<2x32xf32>
    %2024 = arith.addf %2023, %2022 : vector<2x32xf32>
    %2025 = arith.divf %2023, %2024 : vector<2x32xf32>
    %2026 = vector.extract_strided_slice %1986 {offsets = [0, 32], sizes = [2, 32], strides = [1, 1]} : vector<2x96xf32> to vector<2x32xf32>
    %2027 = vector.extract_strided_slice %1989 {offsets = [0, 128], sizes = [2, 32], strides = [1, 1]} : vector<2x192xf32> to vector<2x32xf32>
    %2028 = arith.addf %2026, %2027 : vector<2x32xf32>
    %2029 = arith.negf %2028 : vector<2x32xf32>
    %2030 = math.exp %2029 : vector<2x32xf32>
    %cst_526 = arith.constant 1.000000e+00 : f32
    %2031 = vector.broadcast %cst_526 : f32 to vector<2x32xf32>
    %2032 = arith.addf %2031, %2030 : vector<2x32xf32>
    %2033 = arith.divf %2031, %2032 : vector<2x32xf32>
    %2034 = vector.extract_strided_slice %1986 {offsets = [0, 64], sizes = [2, 32], strides = [1, 1]} : vector<2x96xf32> to vector<2x32xf32>
    %2035 = vector.extract_strided_slice %1989 {offsets = [0, 160], sizes = [2, 32], strides = [1, 1]} : vector<2x192xf32> to vector<2x32xf32>
    %2036 = vector.broadcast %1100 : vector<1x32xf32> to vector<2x32xf32>
    %2037 = arith.addf %2035, %2036 : vector<2x32xf32>
    %2038 = arith.mulf %2025, %2037 : vector<2x32xf32>
    %2039 = arith.addf %2034, %2038 : vector<2x32xf32>
    %2040 = math.tanh %2039 : vector<2x32xf32>
    %cst_527 = arith.constant 1.000000e+00 : f32
    %2041 = vector.broadcast %cst_527 : f32 to vector<2x32xf32>
    %2042 = arith.subf %2041, %2033 : vector<2x32xf32>
    %2043 = arith.mulf %2042, %2040 : vector<2x32xf32>
    %2044 = arith.mulf %2033, %1982 : vector<2x32xf32>
    %2045 = arith.addf %2043, %2044 : vector<2x32xf32>
    %c28_528 = arith.constant 28 : index
    %c0_529 = arith.constant 0 : index
    %2046 = vector.load %arg28[%c28_528, %c0_529] : memref<32x32xf32, #tpu.memory_space<vmem>>, vector<2x32xf32>
    tpu.vector_store %arg28[%c28_528, %c0_529], %2017 {strides = array<i32>} : memref<32x32xf32, #tpu.memory_space<vmem>>, vector<2x32xf32>,
    %c2_530 = arith.constant 2 : index
    %c0_531 = arith.constant 0 : index
    %2047 = vector.load %arg29[%c2_530, %c0_531] : memref<32x32xf32, #tpu.memory_space<vmem>>, vector<2x32xf32>
    tpu.vector_store %arg29[%c2_530, %c0_531], %2045 {strides = array<i32>} : memref<32x32xf32, #tpu.memory_space<vmem>>, vector<2x32xf32>,
    %c30_532 = arith.constant 30 : index
    %c0_533 = arith.constant 0 : index
    %2048 = vector.load %arg26[%c30_532, %c0_533] : memref<32x96xf32, #tpu.memory_space<vmem>>, vector<2x96xf32>
    %c0_534 = arith.constant 0 : index
    %c0_535 = arith.constant 0 : index
    %2049 = vector.load %arg27[%c0_534, %c0_535] : memref<32x96xf32, #tpu.memory_space<vmem>>, vector<2x96xf32>
    %2050 = tpu.concatenate %2017, %2045 in 1 : vector<2x32xf32>, vector<2x32xf32> -> vector<2x64xf32>
    %2051 = arith.truncf %2050 : vector<2x64xf32> to vector<2x64xbf16>
    %cst_536 = arith.constant dense<0.000000e+00> : vector<2x192xf32>
    %2052 = tpu.matmul %2051, %1097, %cst_536 {dimension_numbers = #tpu.dot_dimension_numbers<[1], [0], [0], [1], [0, 0, 1, 1], [], []>} : vector<2x64xbf16>, vector<64x192xbf16>, vector<2x192xf32> -> vector<2x192xf32>
    %2053 = vector.extract_strided_slice %2048 {offsets = [0, 0], sizes = [2, 32], strides = [1, 1]} : vector<2x96xf32> to vector<2x32xf32>
    %2054 = vector.extract_strided_slice %2052 {offsets = [0, 0], sizes = [2, 32], strides = [1, 1]} : vector<2x192xf32> to vector<2x32xf32>
    %2055 = arith.addf %2053, %2054 : vector<2x32xf32>
    %2056 = arith.negf %2055 : vector<2x32xf32>
    %2057 = math.exp %2056 : vector<2x32xf32>
    %cst_537 = arith.constant 1.000000e+00 : f32
    %2058 = vector.broadcast %cst_537 : f32 to vector<2x32xf32>
    %2059 = arith.addf %2058, %2057 : vector<2x32xf32>
    %2060 = arith.divf %2058, %2059 : vector<2x32xf32>
    %2061 = vector.extract_strided_slice %2048 {offsets = [0, 32], sizes = [2, 32], strides = [1, 1]} : vector<2x96xf32> to vector<2x32xf32>
    %2062 = vector.extract_strided_slice %2052 {offsets = [0, 32], sizes = [2, 32], strides = [1, 1]} : vector<2x192xf32> to vector<2x32xf32>
    %2063 = arith.addf %2061, %2062 : vector<2x32xf32>
    %2064 = arith.negf %2063 : vector<2x32xf32>
    %2065 = math.exp %2064 : vector<2x32xf32>
    %cst_538 = arith.constant 1.000000e+00 : f32
    %2066 = vector.broadcast %cst_538 : f32 to vector<2x32xf32>
    %2067 = arith.addf %2066, %2065 : vector<2x32xf32>
    %2068 = arith.divf %2066, %2067 : vector<2x32xf32>
    %2069 = vector.extract_strided_slice %2048 {offsets = [0, 64], sizes = [2, 32], strides = [1, 1]} : vector<2x96xf32> to vector<2x32xf32>
    %2070 = vector.extract_strided_slice %2052 {offsets = [0, 64], sizes = [2, 32], strides = [1, 1]} : vector<2x192xf32> to vector<2x32xf32>
    %2071 = vector.broadcast %1099 : vector<1x32xf32> to vector<2x32xf32>
    %2072 = arith.addf %2070, %2071 : vector<2x32xf32>
    %2073 = arith.mulf %2060, %2072 : vector<2x32xf32>
    %2074 = arith.addf %2069, %2073 : vector<2x32xf32>
    %2075 = math.tanh %2074 : vector<2x32xf32>
    %cst_539 = arith.constant 1.000000e+00 : f32
    %2076 = vector.broadcast %cst_539 : f32 to vector<2x32xf32>
    %2077 = arith.subf %2076, %2068 : vector<2x32xf32>
    %2078 = arith.mulf %2077, %2075 : vector<2x32xf32>
    %2079 = arith.mulf %2068, %2017 : vector<2x32xf32>
    %2080 = arith.addf %2078, %2079 : vector<2x32xf32>
    %2081 = vector.extract_strided_slice %2049 {offsets = [0, 0], sizes = [2, 32], strides = [1, 1]} : vector<2x96xf32> to vector<2x32xf32>
    %2082 = vector.extract_strided_slice %2052 {offsets = [0, 96], sizes = [2, 32], strides = [1, 1]} : vector<2x192xf32> to vector<2x32xf32>
    %2083 = arith.addf %2081, %2082 : vector<2x32xf32>
    %2084 = arith.negf %2083 : vector<2x32xf32>
    %2085 = math.exp %2084 : vector<2x32xf32>
    %cst_540 = arith.constant 1.000000e+00 : f32
    %2086 = vector.broadcast %cst_540 : f32 to vector<2x32xf32>
    %2087 = arith.addf %2086, %2085 : vector<2x32xf32>
    %2088 = arith.divf %2086, %2087 : vector<2x32xf32>
    %2089 = vector.extract_strided_slice %2049 {offsets = [0, 32], sizes = [2, 32], strides = [1, 1]} : vector<2x96xf32> to vector<2x32xf32>
    %2090 = vector.extract_strided_slice %2052 {offsets = [0, 128], sizes = [2, 32], strides = [1, 1]} : vector<2x192xf32> to vector<2x32xf32>
    %2091 = arith.addf %2089, %2090 : vector<2x32xf32>
    %2092 = arith.negf %2091 : vector<2x32xf32>
    %2093 = math.exp %2092 : vector<2x32xf32>
    %cst_541 = arith.constant 1.000000e+00 : f32
    %2094 = vector.broadcast %cst_541 : f32 to vector<2x32xf32>
    %2095 = arith.addf %2094, %2093 : vector<2x32xf32>
    %2096 = arith.divf %2094, %2095 : vector<2x32xf32>
    %2097 = vector.extract_strided_slice %2049 {offsets = [0, 64], sizes = [2, 32], strides = [1, 1]} : vector<2x96xf32> to vector<2x32xf32>
    %2098 = vector.extract_strided_slice %2052 {offsets = [0, 160], sizes = [2, 32], strides = [1, 1]} : vector<2x192xf32> to vector<2x32xf32>
    %2099 = vector.broadcast %1100 : vector<1x32xf32> to vector<2x32xf32>
    %2100 = arith.addf %2098, %2099 : vector<2x32xf32>
    %2101 = arith.mulf %2088, %2100 : vector<2x32xf32>
    %2102 = arith.addf %2097, %2101 : vector<2x32xf32>
    %2103 = math.tanh %2102 : vector<2x32xf32>
    %cst_542 = arith.constant 1.000000e+00 : f32
    %2104 = vector.broadcast %cst_542 : f32 to vector<2x32xf32>
    %2105 = arith.subf %2104, %2096 : vector<2x32xf32>
    %2106 = arith.mulf %2105, %2103 : vector<2x32xf32>
    %2107 = arith.mulf %2096, %2045 : vector<2x32xf32>
    %2108 = arith.addf %2106, %2107 : vector<2x32xf32>
    %c30_543 = arith.constant 30 : index
    %c0_544 = arith.constant 0 : index
    %2109 = vector.load %arg28[%c30_543, %c0_544] : memref<32x32xf32, #tpu.memory_space<vmem>>, vector<2x32xf32>
    tpu.vector_store %arg28[%c30_543, %c0_544], %2080 {strides = array<i32>} : memref<32x32xf32, #tpu.memory_space<vmem>>, vector<2x32xf32>,
    %c0_545 = arith.constant 0 : index
    %c0_546 = arith.constant 0 : index
    %2110 = vector.load %arg29[%c0_545, %c0_546] : memref<32x32xf32, #tpu.memory_space<vmem>>, vector<2x32xf32>
    tpu.vector_store %arg29[%c0_545, %c0_546], %2108 {strides = array<i32>} : memref<32x32xf32, #tpu.memory_space<vmem>>, vector<2x32xf32>,
    %c0_547 = arith.constant 0 : index
    %c0_548 = arith.constant 0 : index
    %2111 = vector.load %arg29[%c0_547, %c0_548] : memref<32x32xf32, #tpu.memory_space<vmem>>, vector<32x32xf32>
    %2112 = math.tanh %2111 : vector<32x32xf32>
    %c0_549 = arith.constant 0 : index
    %c0_550 = arith.constant 0 : index
    %2113 = vector.load %arg28[%c0_549, %c0_550] : memref<32x32xf32, #tpu.memory_space<vmem>>, vector<32x32xf32>
    %2114 = math.tanh %2113 : vector<32x32xf32>
    %2115 = arith.mulf %2112, %2114 : vector<32x32xf32>
    %2116 = arith.truncf %2115 : vector<32x32xf32> to vector<32x32xbf16>
    %c0_551 = arith.constant 0 : index
    %c0_552 = arith.constant 0 : index
    %2117 = vector.load %arg15[%c0_551, %c0_552] : memref<32x96xbf16, #tpu.memory_space<vmem>>, vector<32x96xbf16>
    %cst_553 = arith.constant dense<0.000000e+00> : vector<32x96xf32>
    %2118 = tpu.matmul %2116, %2117, %cst_553 {dimension_numbers = #tpu.dot_dimension_numbers<[1], [0], [0], [1], [0, 0, 1, 1], [], []>} : vector<32x32xbf16>, vector<32x96xbf16>, vector<32x96xf32> -> vector<32x96xf32>
    %c0_554 = arith.constant 0 : index
    %c0_555 = arith.constant 0 : index
    %2119 = vector.load %arg16[%c0_554, %c0_555] : memref<1x96xf32, #tpu.memory_space<vmem>>, vector<1x96xf32>
    %2120 = vector.broadcast %2119 : vector<1x96xf32> to vector<32x96xf32>
    %2121 = arith.addf %2118, %2120 : vector<32x96xf32>
    %2122 = vector.extract_strided_slice %2121 {offsets = [0, 0], sizes = [32, 32], strides = [1, 1]} : vector<32x96xf32> to vector<32x32xf32>
    %2123 = arith.truncf %2122 : vector<32x32xf32> to vector<32x32xbf16>
    %2124 = vector.extract_strided_slice %2121 {offsets = [0, 32], sizes = [32, 32], strides = [1, 1]} : vector<32x96xf32> to vector<32x32xf32>
    %2125 = arith.truncf %2124 : vector<32x32xf32> to vector<32x32xbf16>
    %2126 = vector.extract_strided_slice %2121 {offsets = [0, 64], sizes = [32, 32], strides = [1, 1]} : vector<32x96xf32> to vector<32x32xf32>
    %2127 = arith.truncf %2126 : vector<32x32xf32> to vector<32x32xbf16>
    %c0_556 = arith.constant 0 : index
    %c0_557 = arith.constant 0 : index
    %2128 = vector.load %arg17[%c0_556, %c0_557] : memref<32x32xf32, #tpu.memory_space<vmem>>, vector<32x32xf32>
    %2129 = vector.extract_strided_slice %2123 {offsets = [0, 0], sizes = [32, 8], strides = [1, 1]} : vector<32x32xbf16> to vector<32x8xbf16>
    %2130 = vector.extract_strided_slice %2125 {offsets = [0, 0], sizes = [32, 8], strides = [1, 1]} : vector<32x32xbf16> to vector<32x8xbf16>
    %cst_558 = arith.constant dense<0.000000e+00> : vector<32x32xf32>
    %2131 = tpu.matmul %2129, %2130, %cst_558 {dimension_numbers = #tpu.dot_dimension_numbers<[1], [1], [0], [0], [0, 0, 1, 0], [], []>} : vector<32x8xbf16>, vector<32x8xbf16>, vector<32x32xf32> -> vector<32x32xf32>
    %2132 = arith.addf %2131, %2128 : vector<32x32xf32>
    %cst_559 = arith.constant dense<0xFF800000> : vector<32xf32>
    %2133 = vector.multi_reduction <maximumf>, %2132, %cst_559 [1] : vector<32x32xf32> to vector<32xf32>
    %2134 = vector.shape_cast %2133 : vector<32xf32> to vector<32x1xf32>
    %2135 = vector.broadcast %2134 : vector<32x1xf32> to vector<32x32xf32>
    %2136 = arith.subf %2132, %2135 : vector<32x32xf32>
    %2137 = math.exp %2136 : vector<32x32xf32>
    %cst_560 = arith.constant dense<0.000000e+00> : vector<32xf32>
    %2138 = vector.multi_reduction <add>, %2137, %cst_560 [1] : vector<32x32xf32> to vector<32xf32>
    %2139 = vector.shape_cast %2138 : vector<32xf32> to vector<32x1xf32>
    %2140 = tpu.reciprocal %2139 {approx = true} : vector<32x1xf32> -> vector<32x1xf32>
    %2141 = vector.broadcast %2140 : vector<32x1xf32> to vector<32x32xf32>
    %2142 = arith.mulf %2137, %2141 : vector<32x32xf32>
    %2143 = arith.truncf %2142 : vector<32x32xf32> to vector<32x32xbf16>
    %2144 = vector.extract_strided_slice %2127 {offsets = [0, 0], sizes = [32, 8], strides = [1, 1]} : vector<32x32xbf16> to vector<32x8xbf16>
    %cst_561 = arith.constant dense<0.000000e+00> : vector<32x8xf32>
    %2145 = tpu.matmul %2143, %2144, %cst_561 {dimension_numbers = #tpu.dot_dimension_numbers<[1], [0], [0], [1], [0, 0, 1, 1], [], []>} : vector<32x32xbf16>, vector<32x8xbf16>, vector<32x8xf32> -> vector<32x8xf32>
    %2146 = vector.extract_strided_slice %2123 {offsets = [0, 8], sizes = [32, 8], strides = [1, 1]} : vector<32x32xbf16> to vector<32x8xbf16>
    %2147 = vector.extract_strided_slice %2125 {offsets = [0, 8], sizes = [32, 8], strides = [1, 1]} : vector<32x32xbf16> to vector<32x8xbf16>
    %cst_562 = arith.constant dense<0.000000e+00> : vector<32x32xf32>
    %2148 = tpu.matmul %2146, %2147, %cst_562 {dimension_numbers = #tpu.dot_dimension_numbers<[1], [1], [0], [0], [0, 0, 1, 0], [], []>} : vector<32x8xbf16>, vector<32x8xbf16>, vector<32x32xf32> -> vector<32x32xf32>
    %2149 = arith.addf %2148, %2128 : vector<32x32xf32>
    %cst_563 = arith.constant dense<0xFF800000> : vector<32xf32>
    %2150 = vector.multi_reduction <maximumf>, %2149, %cst_563 [1] : vector<32x32xf32> to vector<32xf32>
    %2151 = vector.shape_cast %2150 : vector<32xf32> to vector<32x1xf32>
    %2152 = vector.broadcast %2151 : vector<32x1xf32> to vector<32x32xf32>
    %2153 = arith.subf %2149, %2152 : vector<32x32xf32>
    %2154 = math.exp %2153 : vector<32x32xf32>
    %cst_564 = arith.constant dense<0.000000e+00> : vector<32xf32>
    %2155 = vector.multi_reduction <add>, %2154, %cst_564 [1] : vector<32x32xf32> to vector<32xf32>
    %2156 = vector.shape_cast %2155 : vector<32xf32> to vector<32x1xf32>
    %2157 = tpu.reciprocal %2156 {approx = true} : vector<32x1xf32> -> vector<32x1xf32>
    %2158 = vector.broadcast %2157 : vector<32x1xf32> to vector<32x32xf32>
    %2159 = arith.mulf %2154, %2158 : vector<32x32xf32>
    %2160 = arith.truncf %2159 : vector<32x32xf32> to vector<32x32xbf16>
    %2161 = vector.extract_strided_slice %2127 {offsets = [0, 8], sizes = [32, 8], strides = [1, 1]} : vector<32x32xbf16> to vector<32x8xbf16>
    %cst_565 = arith.constant dense<0.000000e+00> : vector<32x8xf32>
    %2162 = tpu.matmul %2160, %2161, %cst_565 {dimension_numbers = #tpu.dot_dimension_numbers<[1], [0], [0], [1], [0, 0, 1, 1], [], []>} : vector<32x32xbf16>, vector<32x8xbf16>, vector<32x8xf32> -> vector<32x8xf32>
    %2163 = vector.extract_strided_slice %2123 {offsets = [0, 16], sizes = [32, 8], strides = [1, 1]} : vector<32x32xbf16> to vector<32x8xbf16>
    %2164 = vector.extract_strided_slice %2125 {offsets = [0, 16], sizes = [32, 8], strides = [1, 1]} : vector<32x32xbf16> to vector<32x8xbf16>
    %cst_566 = arith.constant dense<0.000000e+00> : vector<32x32xf32>
    %2165 = tpu.matmul %2163, %2164, %cst_566 {dimension_numbers = #tpu.dot_dimension_numbers<[1], [1], [0], [0], [0, 0, 1, 0], [], []>} : vector<32x8xbf16>, vector<32x8xbf16>, vector<32x32xf32> -> vector<32x32xf32>
    %2166 = arith.addf %2165, %2128 : vector<32x32xf32>
    %cst_567 = arith.constant dense<0xFF800000> : vector<32xf32>
    %2167 = vector.multi_reduction <maximumf>, %2166, %cst_567 [1] : vector<32x32xf32> to vector<32xf32>
    %2168 = vector.shape_cast %2167 : vector<32xf32> to vector<32x1xf32>
    %2169 = vector.broadcast %2168 : vector<32x1xf32> to vector<32x32xf32>
    %2170 = arith.subf %2166, %2169 : vector<32x32xf32>
    %2171 = math.exp %2170 : vector<32x32xf32>
    %cst_568 = arith.constant dense<0.000000e+00> : vector<32xf32>
    %2172 = vector.multi_reduction <add>, %2171, %cst_568 [1] : vector<32x32xf32> to vector<32xf32>
    %2173 = vector.shape_cast %2172 : vector<32xf32> to vector<32x1xf32>
    %2174 = tpu.reciprocal %2173 {approx = true} : vector<32x1xf32> -> vector<32x1xf32>
    %2175 = vector.broadcast %2174 : vector<32x1xf32> to vector<32x32xf32>
    %2176 = arith.mulf %2171, %2175 : vector<32x32xf32>
    %2177 = arith.truncf %2176 : vector<32x32xf32> to vector<32x32xbf16>
    %2178 = vector.extract_strided_slice %2127 {offsets = [0, 16], sizes = [32, 8], strides = [1, 1]} : vector<32x32xbf16> to vector<32x8xbf16>
    %cst_569 = arith.constant dense<0.000000e+00> : vector<32x8xf32>
    %2179 = tpu.matmul %2177, %2178, %cst_569 {dimension_numbers = #tpu.dot_dimension_numbers<[1], [0], [0], [1], [0, 0, 1, 1], [], []>} : vector<32x32xbf16>, vector<32x8xbf16>, vector<32x8xf32> -> vector<32x8xf32>
    %2180 = vector.extract_strided_slice %2123 {offsets = [0, 24], sizes = [32, 8], strides = [1, 1]} : vector<32x32xbf16> to vector<32x8xbf16>
    %2181 = vector.extract_strided_slice %2125 {offsets = [0, 24], sizes = [32, 8], strides = [1, 1]} : vector<32x32xbf16> to vector<32x8xbf16>
    %cst_570 = arith.constant dense<0.000000e+00> : vector<32x32xf32>
    %2182 = tpu.matmul %2180, %2181, %cst_570 {dimension_numbers = #tpu.dot_dimension_numbers<[1], [1], [0], [0], [0, 0, 1, 0], [], []>} : vector<32x8xbf16>, vector<32x8xbf16>, vector<32x32xf32> -> vector<32x32xf32>
    %2183 = arith.addf %2182, %2128 : vector<32x32xf32>
    %cst_571 = arith.constant dense<0xFF800000> : vector<32xf32>
    %2184 = vector.multi_reduction <maximumf>, %2183, %cst_571 [1] : vector<32x32xf32> to vector<32xf32>
    %2185 = vector.shape_cast %2184 : vector<32xf32> to vector<32x1xf32>
    %2186 = vector.broadcast %2185 : vector<32x1xf32> to vector<32x32xf32>
    %2187 = arith.subf %2183, %2186 : vector<32x32xf32>
    %2188 = math.exp %2187 : vector<32x32xf32>
    %cst_572 = arith.constant dense<0.000000e+00> : vector<32xf32>
    %2189 = vector.multi_reduction <add>, %2188, %cst_572 [1] : vector<32x32xf32> to vector<32xf32>
    %2190 = vector.shape_cast %2189 : vector<32xf32> to vector<32x1xf32>
    %2191 = tpu.reciprocal %2190 {approx = true} : vector<32x1xf32> -> vector<32x1xf32>
    %2192 = vector.broadcast %2191 : vector<32x1xf32> to vector<32x32xf32>
    %2193 = arith.mulf %2188, %2192 : vector<32x32xf32>
    %2194 = arith.truncf %2193 : vector<32x32xf32> to vector<32x32xbf16>
    %2195 = vector.extract_strided_slice %2127 {offsets = [0, 24], sizes = [32, 8], strides = [1, 1]} : vector<32x32xbf16> to vector<32x8xbf16>
    %cst_573 = arith.constant dense<0.000000e+00> : vector<32x8xf32>
    %2196 = tpu.matmul %2194, %2195, %cst_573 {dimension_numbers = #tpu.dot_dimension_numbers<[1], [0], [0], [1], [0, 0, 1, 1], [], []>} : vector<32x32xbf16>, vector<32x8xbf16>, vector<32x8xf32> -> vector<32x8xf32>
    %2197 = tpu.concatenate %2145, %2162, %2179, %2196 in 1 : vector<32x8xf32>, vector<32x8xf32>, vector<32x8xf32>, vector<32x8xf32> -> vector<32x32xf32>
    %2198 = arith.truncf %2197 : vector<32x32xf32> to vector<32x32xbf16>
    %c0_574 = arith.constant 0 : index
    %c0_575 = arith.constant 0 : index
    %2199 = vector.load %arg18[%c0_574, %c0_575] : memref<32x32xbf16, #tpu.memory_space<vmem>>, vector<32x32xbf16>
    %cst_576 = arith.constant dense<0.000000e+00> : vector<32x32xf32>
    %2200 = tpu.matmul %2198, %2199, %cst_576 {dimension_numbers = #tpu.dot_dimension_numbers<[1], [0], [0], [1], [0, 0, 1, 1], [], []>} : vector<32x32xbf16>, vector<32x32xbf16>, vector<32x32xf32> -> vector<32x32xf32>
    %c0_577 = arith.constant 0 : index
    %c0_578 = arith.constant 0 : index
    %2201 = vector.load %arg19[%c0_577, %c0_578] : memref<1x32xf32, #tpu.memory_space<vmem>>, vector<1x32xf32>
    %2202 = vector.broadcast %2201 : vector<1x32xf32> to vector<32x32xf32>
    %2203 = arith.addf %2200, %2202 : vector<32x32xf32>
    %2204 = math.tanh %2203 : vector<32x32xf32>
    %2205 = arith.truncf %2204 : vector<32x32xf32> to vector<32x32xbf16>
    %c0_579 = arith.constant 0 : index
    %c0_580 = arith.constant 0 : index
    %2206 = vector.load %arg20[%c0_579, %c0_580] : memref<32x32xbf16, #tpu.memory_space<vmem>>, vector<32x32xbf16>
    %cst_581 = arith.constant dense<0.000000e+00> : vector<32x32xf32>
    %2207 = tpu.matmul %2205, %2206, %cst_581 {dimension_numbers = #tpu.dot_dimension_numbers<[1], [0], [0], [1], [0, 0, 1, 1], [], []>} : vector<32x32xbf16>, vector<32x32xbf16>, vector<32x32xf32> -> vector<32x32xf32>
    %c0_582 = arith.constant 0 : index
    %c0_583 = arith.constant 0 : index
    %2208 = vector.load %arg21[%c0_582, %c0_583] : memref<1x32xf32, #tpu.memory_space<vmem>>, vector<1x32xf32>
    %2209 = vector.broadcast %2208 : vector<1x32xf32> to vector<32x32xf32>
    %2210 = arith.addf %2207, %2209 : vector<32x32xf32>
    %2211 = arith.truncf %2210 : vector<32x32xf32> to vector<32x32xbf16>
    %c0_584 = arith.constant 0 : index
    %c0_585 = arith.constant 0 : index
    %2212 = vector.load %arg22[%c0_584, %c0_585] : memref<32x12xbf16, #tpu.memory_space<vmem>>, vector<32x12xbf16>
    %cst_586 = arith.constant dense<0.000000e+00> : vector<32x12xf32>
    %2213 = tpu.matmul %2211, %2212, %cst_586 {dimension_numbers = #tpu.dot_dimension_numbers<[1], [0], [0], [1], [0, 0, 1, 1], [], []>} : vector<32x32xbf16>, vector<32x12xbf16>, vector<32x12xf32> -> vector<32x12xf32>
    %c0_587 = arith.constant 0 : index
    %c0_588 = arith.constant 0 : index
    %2214 = vector.load %arg23[%c0_587, %c0_588] : memref<1x12xf32, #tpu.memory_space<vmem>>, vector<1x12xf32>
    %2215 = vector.broadcast %2214 : vector<1x12xf32> to vector<32x12xf32>
    %2216 = arith.addf %2213, %2215 : vector<32x12xf32>
    %2217 = math.tanh %2216 : vector<32x12xf32>
    %c0_589 = arith.constant 0 : index
    %c0_590 = arith.constant 0 : index
    %2218 = vector.load %arg24[%c0_589, %c0_590] : memref<32x12xf32, #tpu.memory_space<vmem>>, vector<32x12xf32>
    tpu.vector_store %arg24[%c0_589, %c0_590], %2217 {strides = array<i32>} : memref<32x12xf32, #tpu.memory_space<vmem>>, vector<32x12xf32>,
    return
  }
}

</mosaic_0001>

<bundles_post_ra>
// kernel: _lambda_.1
= control target key start
LH: loop header
LB: loop body
LE: loop exit
PB: predicated region body
PF: predicated region fallthrough
CT: control target
= control target key end

     0   :  { %vm131_vm0 = vcmask 523264   ;;  %vm410_vm1 = vcmask 517120   ;;  %v7687_v47 = vmov 0.0   ;;  %vm782_vm2 = vcmask 261120   ;;  %s7696_s30 = smov 80   ;;  %s9696_s1 = inlined_call_operand.vmem [shape: bf16[3,64,128], index: 1, kind: input, shape index: {}]   ;;  %s9697_s0 = inlined_call_operand.vmem [shape: f32[36,64], index: 0, kind: input, shape index: {}]   ;;  %s9698_s4 = inlined_call_operand.vmem [shape: bf16[3,64,64], index: 4, kind: input, shape index: {}]   ;;  %s9699_s2 = inlined_call_operand.vmem [shape: f32[1,128], index: 2, kind: input, shape index: {}]   ;;  %s9700_s3 = inlined_call_operand.vmem [shape: f32[1,128], index: 3, kind: input, shape index: {}]   ;;  %s9701_s9 = inlined_call_operand.vmem [shape: bf16[64,192], index: 9, kind: input, shape index: {}]   ;;  %s9702_s7 = inlined_call_operand.vmem [shape: bf16[32,192], index: 7, kind: input, shape index: {}]   ;;  %s9703_s5 = inlined_call_operand.vmem [shape: f32[1,64], index: 5, kind: input, shape index: {}]   ;;  %s9704_s6 = inlined_call_operand.vmem [shape: f32[1,64], index: 6, kind: input, shape index: {}]   ;;  %s9705_s10 = inlined_call_operand.vmem [shape: f32[1,64], index: 10, kind: input, shape index: {}]   ;;  %s9706_s8 = inlined_call_operand.vmem [shape: f32[1,192], index: 8, kind: input, shape index: {}]   ;;  %s9707_s13 = inlined_call_operand.vmem [shape: bf16[64,192], index: 13, kind: input, shape index: {}]   ;;  %s9708_s11 = inlined_call_operand.vmem [shape: bf16[64,192], index: 11, kind: input, shape index: {}]   ;;  %s9709_s14 = inlined_call_operand.vmem [shape: f32[1,64], index: 14, kind: input, shape index: {}]   ;;  %s9710_s12 = inlined_call_operand.vmem [shape: f32[1,192], index: 12, kind: input, shape index: {}]   ;;  %s9711_s15 = inlined_call_operand.vmem [shape: bf16[32,96], index: 15, kind: input, shape index: {}]   ;;  %s9712_s16 = inlined_call_operand.vmem [shape: f32[1,96], index: 16, kind: input, shape index: {}]   ;;  %s9713_s17 = inlined_call_operand.vmem [shape: f32[32,32], index: 17, kind: input, shape index: {}]   ;;  %s9714_s18 = inlined_call_operand.vmem [shape: bf16[32,32], index: 18, kind: input, shape index: {}]   ;;  %s9715_s20 = inlined_call_operand.vmem [shape: bf16[32,32], index: 20, kind: input, shape index: {}]   ;;  %s9716_s19 = inlined_call_operand.vmem [shape: f32[1,32], index: 19, kind: input, shape index: {}]   ;;  %s9717_s22 = inlined_call_operand.vmem [shape: bf16[32,12], index: 22, kind: input, shape index: {}]   ;;  %s9718_s21 = inlined_call_operand.vmem [shape: f32[1,32], index: 21, kind: input, shape index: {}]   ;;  %s9719_s23 = inlined_call_operand.vmem [shape: f32[1,12], index: 23, kind: input, shape index: {}]   ;;  %s9720_s24 = inlined_call_operand.vmem [shape: f32[32,12], index: 24, kind: output, shape index: {}]  }
   0x1   :  { %9726 = sst [smem:[#allocation7_spill]] %s9696_s1  ;;  %411 = vst.msk [vmem:[#allocation2] sm:$0x3] %vm410_vm1, %v7687_v47  ;;  %412 = vst.msk [vmem:[#allocation2 + $0x22] sm:$0x3] %vm410_vm1, %v7687_v47  ;;  %vm842_vm3 = vcmask 785408  }
   0x2   :  { %9727 = sst [smem:[#allocation8_spill]] %s9697_s0  ;;  %vm1061_vm4 = vcmask 254976   ;;  %vm5359_vm5 = vcmask 64512   ;;  %vm6108_vm6 = vcmask 130048   ;;  %vm6113_vm7 = vcmask 195584  }
   0x3   :  { %9728 = sst [smem:[#allocation9_spill]] %s9698_s4  ;;  %vm6366_vm8 = vcmask 97280  }
   0x4   :  { %9729 = sst [smem:[#allocation10_spill]] %s9699_s2 }
   0x5   :  { %9730 = sst [smem:[#allocation11_spill]] %s9700_s3 }
   0x6   :  { %9731 = sst [smem:[#allocation12_spill]] %s9701_s9 }
   0x7   :  { %9732 = sst [smem:[#allocation13_spill]] %s9702_s7  ;;  %s7688_s7 = smov 64  }
   0x8   :  { %9733 = sst [smem:[#allocation14_spill]] %s9703_s5  ;;  %s7694_s5 = smov 120  }
   0x9   :  { %9734 = sst [smem:[#allocation15_spill]] %s9704_s6 }
   0xa   :  { %s9735_s27 = sld [smem:[#allocation7_spill]] }
   0xb   :  { %s9736_s28 = sld [smem:[#allocation8_spill]] }
   0xc   :  { %s9737_s6 = sld [smem:[#allocation9_spill]] }
   0xd   :  { %s9738_s29 = sld [smem:[#allocation10_spill]] }
   0xe   :  { %s9739_s25 = sld [smem:[#allocation11_spill]] }
   0xf   :  { %s9740_s0 = sld [smem:[#allocation12_spill]] }
  0x10   :  { %v6971_v0 = vld [vmem:[%s9735_s27 + $0x18] sm:$0xff]   ;;  %v6973_v2 = vld [vmem:[%s9735_s27 + $0x10] sm:$0xff]   ;;  %v6975_v4 = vld [vmem:[%s9735_s27 + $0x8] sm:$0xff]   ;;  %s9741_s3 = sld [smem:[#allocation13_spill]] }
  0x11   :  { %v6972_v1 = vld [vmem:[%s9735_s27 + $0x38] sm:$0xff]   ;;  %6727 = vmatprep.subr.bf16.mxu0 %v6971_v0  ;;  %v6974_v3 = vld [vmem:[%s9735_s27 + $0x30] sm:$0xff]   ;;  %v6976_v5 = vld [vmem:[%s9735_s27 + $0x28] sm:$0xff]   ;;  %s9742_s2 = sld [smem:[#allocation14_spill]] }
  0x12   :  { %6739 = vmatprep.subr.bf16.mxu1 %v6972_v1  ;;  %6728 = vmatpush3.bf16.msra.mxu0 %v6971_v0  ;;  %v6977_v6 = vld [vmem:[%s9735_s27] sm:$0xff]   ;;  %v94_v8 = vld [vmem:[%s9736_s28 + $0x8] sm:$0xff]  ;;  %v95_v13 = vld [vmem:[%s9736_s28 + $0x10] sm:$0xff] }
  0x13   :  { %6740 = vmatpush3.bf16.msra.mxu1 %v6972_v1  ;;  %6729 = vmatprep.subr.bf16.mxu0 %v6973_v2  ;;  %v93_v7 = vld [vmem:[%s9736_s28] sm:$0xff]  ;;  %v79_v12 = vld [vmem:[%s9736_s28 + $0xa] sm:$0xff]  ;;  %v96_v15 = vld [vmem:[%s9736_s28 + $0x18] sm:$0xff] }
  0x14   :  { %6741 = vmatprep.subr.bf16.mxu1 %v6974_v3  ;;  %v78_v9 = vld [vmem:[%s9736_s28 + $0x2] sm:$0xff]  ;;  %v97_v11 = vpack.c.bf16 %v94_v8, %v93_v7  ;;  %v80_v16 = vld [vmem:[%s9736_s28 + $0x12] sm:$0xff]  ;;  %v81_v17 = vld [vmem:[%s9736_s28 + $0x1a] sm:$0xff]  ;;  %v98_v19 = vpack.c.bf16 %v96_v15, %v95_v13 }
  0x15   :  { %v6978_v10 = vld [vmem:[%s9735_s27 + $0x20] sm:$0xff]   ;;  %v82_v14 = vpack.c.bf16 %v79_v12, %v78_v9  ;;  %v6979_v18 = vld [vmem:[%s9735_s27 + $0x58] sm:$0xff]   ;;  %v83_v21 = vpack.c.bf16 %v81_v17, %v80_v16  ;;  %v267_v22 = vld [vmem:[%s9736_s28 + $0xc] sm:$0xff] }
  0x16   :  { %6730 = vmatpush3.bf16.msra.mxu0 %v6973_v2  ;;  %6735 = vmatprep.mubr.msk.bf16.mxu0 %vm131_vm0, %v97_v11  ;;  %v266_v20 = vld [vmem:[%s9736_s28 + $0x4] sm:$0xff]  ;;  %v6980_v23 = vld [vmem:[%s9735_s27 + $0x50] sm:$0xff]   ;;  %v269_v28 = vld [vmem:[%s9736_s28 + $0x1c] sm:$0xff] }
  0x17   :  { %6742 = vmatpush3.bf16.msra.mxu1 %v6974_v3  ;;  %6731 = vmatprep.subr.bf16.mxu0 %v6975_v4  ;;  %v270_v24 = vpack.c.bf16 %v267_v22, %v266_v20  ;;  %v6981_v25 = vld [vmem:[%s9735_s27 + $0x48] sm:$0xff]   ;;  %v6982_v26 = vld [vmem:[%s9735_s27 + $0x40] sm:$0xff]   ;;  %v268_v27 = vld [vmem:[%s9736_s28 + $0x14] sm:$0xff]  ;;  %s9743_s28 = sld [smem:[#allocation15_spill]]  ;;  %s7700_s27 = smov 104  }
  0x18   :  { %6743 = vmatprep.subr.bf16.mxu1 %v6976_v5  ;;  %6747 = vmatprep.mubr.msk.bf16.mxu1 %vm131_vm0, %v82_v14  ;;  %v271_v29 = vpack.c.bf16 %v269_v28, %v268_v27  ;;  %v6983_v30 = vld [vmem:[%s9737_s6 + $0x38] sm:$0xff]   ;;  %v6984_v31 = vld [vmem:[%s9737_s6 + $0x30] sm:$0xff]   ;;  %v6986_v40 = vld [vmem:[%s9737_s6 + $0x28] sm:$0xff]  }
  0x19   :  { %v6985_v37 = vld [vmem:[%s9737_s6 + $0x18] sm:$0xff]   ;;  %v6409_v43 = vld [vmem:[%s9738_s29] ss:$0 sm:$0xff]  ;;  %v6987_v46 = vld [vmem:[%s9737_s6 + $0x10] sm:$0xff]   ;;  %s7691_s29 = smov 96  }
  0x1a   :  { %6732 = vmatpush3.bf16.msra.mxu0 %v6975_v4  ;;  %v6410_v50 = vld [vmem:[%s9739_s25] ss:$0 sm:$0xff]  ;;  %v6989_v56 = vld [vmem:[%s9737_s6 + $0x8] sm:$0xff]   ;;  %v6991_v9 = vld [vmem:[%s9737_s6 + $0x58] sm:$0xff]   ;;  %s7699_s25 = smov 72  }
  0x1b   :  { %6744 = vmatpush3.bf16.msra.mxu1 %v6976_v5  ;;  %6733 = vmatprep.subr.bf16.mxu0 %v6977_v6  ;;  %v6988_v51 = vld [vmem:[%s9737_s6 + $0x20] sm:$0xff]   ;;  %v6992_v28 = vld [vmem:[%s9737_s6 + $0x50] sm:$0xff]  }
  0x1c   :  { %6745 = vmatprep.subr.bf16.mxu1 %v6978_v10  ;;  %v6990_v2 = vld [vmem:[%s9737_s6] sm:$0xff]  }
  0x1e   :  { %6734 = vmatpush3.bf16.msra.mxu0 %v6977_v6 }
  0x1f   :  { %6746 = vmatpush3.bf16.msra.mxu1 %v6978_v10  ;;  %6751 = vmatprep.subr.bf16.mxu0 %v6979_v18 }
  0x20   :  { %6763 = vmatprep.subr.bf16.mxu1 %v6985_v37 }
  0x21   :  { %6736 = vmatmul.mubr.msk.bf16.vlgmr.msra.gmra.mxu0 %vm131_vm0, %v98_v19 }
  0x22   :  { %6748 = vmatmul.mubr.msk.bf16.vlgmr.msra.gmra.mxu1 %vm131_vm0, %v83_v21  ;;  %6752 = vmatpush3.bf16.msra.mxu0 %v6979_v18 }
  0x23   :  { %6753 = vmatprep.subr.bf16.mxu0 %v6980_v23  ;;  %6759 = vmatprep.mubr.msk.bf16.mxu0 %vm131_vm0, %v270_v24 }
  0x24   :  { %6764 = vmatpush3.bf16.msra.mxu1 %v6985_v37  ;;  %v7974_v37 = vld [vmem:[%s9740_s0 + $0x30] ss:$8 sps:$4 sm:$0xff]  }
  0x25   :  { %6765 = vmatprep.subr.bf16.mxu1 %v6987_v46 }
  0x26   :  { %6754 = vmatpush3.bf16.msra.mxu0 %v6980_v23 }
  0x27   :  { %6755 = vmatprep.subr.bf16.mxu0 %v6981_v25 }
  0x28   :  { %6766 = vmatpush3.bf16.msra.mxu1 %v6987_v46  ;;  %v7690_v46 = vmov 0.0|0.0  }
  0x29   :  { %6767 = vmatprep.subr.bf16.mxu1 %v6989_v56 }
  0x2a   :  { %6756 = vmatpush3.bf16.msra.mxu0 %v6981_v25 }
  0x2b   :  { %6757 = vmatprep.subr.bf16.mxu0 %v6982_v26 }
  0x2c   :  { %6768 = vmatpush3.bf16.msra.mxu1 %v6989_v56  ;;  %v6445_v56 = vld [vmem:[%s9742_s2] ss:$0 sm:$0xff]  ;;  %s7698_s2 = smov 48  }
  0x2d   :  { %6769 = vmatprep.subr.bf16.mxu1 %v6990_v2 }
  0x2e   :  { %6758 = vmatpush3.bf16.msra.mxu0 %v6982_v26 }
  0x2f   :  { %6775 = vmatprep.subr.bf16.mxu0 %v6983_v30 }
  0x30   :  { %6770 = vmatpush3.bf16.msra.mxu1 %v6990_v2  ;;  %v7012_v2 = vld [vmem:[%s9741_s3 + $0x4] ss:$8 sps:$4 sm:$0xff]  }
  0x31   :  { %6760 = vmatmul.mubr.msk.bf16.vlgmr.msra.gmra.mxu0 %vm131_vm0, %v271_v29  ;;  %6787 = vmatprep.subr.bf16.mxu1 %v6991_v9 }
  0x32   :  { %6776 = vmatpush3.bf16.msra.mxu0 %v6983_v30  ;;  %v6993_v30 = vld [vmem:[%s9737_s6 + $0x48] sm:$0xff]  }
  0x33   :  { %6777 = vmatprep.subr.bf16.mxu0 %v6984_v31 }
  0x36   :  { %6778 = vmatpush3.bf16.msra.mxu0 %v6984_v31  ;;  %v6994_v31 = vld [vmem:[%s9737_s6 + $0x40] sm:$0xff]   ;;  %s7704_s6 = smov 24  }
  0x37   :  { %6779 = vmatprep.subr.bf16.mxu0 %v6986_v40 }
  0x3a   :  { %6780 = vmatpush3.bf16.msra.mxu0 %v6986_v40  ;;  %v7992_v40 = vld [vmem:[%s9740_s0 + $0x14] ss:$8 sps:$4 sm:$0xff]  }
  0x3b   :  { %6781 = vmatprep.subr.bf16.mxu0 %v6988_v51 }
  0x3e   :  { %6782 = vmatpush3.bf16.msra.mxu0 %v6988_v51 }
  0xe1   :  { %v6737_v32 = vpop.f32.mrf.mxu0 }
  0xe2   :  { %v6749_v33 = vpop.f32.mrf.mxu1 }
  0xe3   :  { %v172_v34 = vpop.f32.mrf.mxu0  ;;  %v260_v41 = vadd.f32 %v6749_v33, %v6737_v32 }
  0xe4   :  { %v251_v35 = vpop.f32.mrf.mxu1 }
  0xe5   :  { %v6738_v36 = vpop.f32.mrf.mxu0  ;;  %v252_v44 = vadd.f32 %v251_v35, %v172_v34  ;;  %v7967_v35 = vld [vmem:[%s9740_s0 + $0x34] ss:$8 sps:$4 sm:$0xff]  }
  0xe6   :  { %v6750_v38 = vpop.f32.mrf.mxu1 }
  0xe7   :  { %v175_v39 = vpop.f32.mrf.mxu0  ;;  %v263_v52 = vadd.f32 %v6750_v38, %v6738_v36  ;;  %v7689_v36 = vmov 0   ;;  %v7980_v38 = vld [vmem:[%s9740_s0 + $0x24] ss:$8 sps:$4 sm:$0xff]  }
  0xe8   :  { %v254_v48 = vpop.f32.mrf.mxu1 }
  0xe9   :  { %v255_v57 = vadd.f32 %v254_v48, %v175_v39  ;;  %v7986_v39 = vld [vmem:[%s9740_s0 + $0x20] ss:$8 sps:$4 sm:$0xff]  }
  0xf1   :  { %v6761_v42 = vpop.f32.mrf.mxu0 }
  0xf2   :  { %v362_v45 = vadd.f32 %v6761_v42, %v260_v41  ;;  %v7007_v41 = vld [vmem:[%s9741_s3 + $0x10] ss:$8 sps:$4 sm:$0xff]   ;;  %v7009_v42 = vld [vmem:[%s9741_s3 + $0x14] ss:$8 sps:$4 sm:$0xff]  }
  0xf3   :  { %v345_v49 = vpop.f32.mrf.mxu0  ;;  %801 = vmatprep.subr.bf16.mxu0 %v7009_v42 }
  0xf4   :  { %v373_v53 = vmul.f32 %v6409_v43, %v362_v45  ;;  %v360_v54 = vadd.f32 %v345_v49, %v252_v44  ;;  %v8010_v44 = vld [vmem:[%s9740_s0 + $0x4] ss:$8 sps:$4 sm:$0xff]   ;;  %v8016_v45 = vld [vmem:[%s9740_s0] ss:$8 sps:$4 sm:$0xff]  }
  0xf5   :  { %v6762_v55 = vpop.f32.mrf.mxu0 }
  0xf6   :  { %v371_v58 = vmul.f32 %v6409_v43, %v360_v54  ;;  %v363_v59 = vadd.f32 %v6762_v55, %v263_v52  ;;  %v384_v60 = vadd.f32 %v6410_v50, %v373_v53 }
  0xf7   :  { %v348_v61 = vpop.f32.mrf.mxu0 }
  0xf8   :  { %v374_v62 = vmul.f32 %v6409_v43, %v363_v59  ;;  %v361_v63 = vadd.f32 %v348_v61, %v255_v57  ;;  %v388_v0 = vmax.f32 %v384_v60, 0.0  ;;  %v382_v1 = vadd.f32 %v6410_v50, %v371_v58 }
  0xfa   :  { %v372_v3 = vmul.f32 %v6409_v43, %v361_v63  ;;  %398 = vrot.lane.b32.xlu1 %v388_v0, %s7688_s7  ;;  %v386_v4 = vmax.f32 %v382_v1, 0.0  ;;  %v385_v5 = vadd.f32 %v6410_v50, %v374_v62  ;;  %v8004_v43 = vld [vmem:[%s9740_s0 + $0x10] ss:$8 sps:$4 sm:$0xff]  }
  0xfc   :  { %394 = vrot.lane.b32.xlu0 %v386_v4, %s7688_s7  ;;  %v389_v6 = vmax.f32 %v385_v5, 0.0  ;;  %v383_v7 = vadd.f32 %v6410_v50, %v372_v3 }
  0xfe   :  { %400 = vrot.lane.b32.xlu1 %v389_v6, %s7688_s7  ;;  %v387_v8 = vmax.f32 %v383_v7, 0.0 }
 0x100   :  { %396 = vrot.lane.b32.xlu0 %v387_v8, %s7688_s7 }
 0x16c   :  { %v399_v10 = vpop.permute.xlu1 %398 }
 0x16d   :  { %v408_v11 = vmax.f32 %v388_v0, %v399_v10  ;;  %v6446_v0 = vld [vmem:[%s9743_s28] ss:$0 sm:$0xff]  ;;  %s7702_s28 = smov 8  }
 0x16e   :  { %v395_v12 = vpop.permute.xlu0 %394 }
 0x16f   :  { %415 = vst.msk [vmem:[#allocation2 + $0x12] sm:$0xff] %vm131_vm0, %v408_v11  ;;  %v406_v13 = vmax.f32 %v386_v4, %v395_v12 }
 0x170   :  { %v401_v14 = vpop.permute.xlu1 %400 }
 0x171   :  { %413 = vst.msk [vmem:[#allocation2 + $0x2] sm:$0xff] %vm131_vm0, %v406_v13  ;;  %v409_v15 = vmax.f32 %v389_v6, %v401_v14  ;;  %v7010_v6 = vld [vmem:[%s9741_s3] ss:$8 sps:$4 sm:$0xff]  }
 0x172   :  { %v397_v16 = vpop.permute.xlu0 %396 }
 0x173   :  { %416 = vst.msk [vmem:[#allocation2 + $0x1a] sm:$0xff] %vm131_vm0, %v409_v15  ;;  %v407_v17 = vmax.f32 %v387_v8, %v397_v16  ;;  %v418_v19 = vpack.c.bf16 %v409_v15, %v408_v11 }
 0x175   :  { %414 = vst.msk [vmem:[#allocation2 + $0xa] sm:$0xff] %vm131_vm0, %v407_v17  ;;  %v417_v18 = vpack.c.bf16 %v407_v17, %v406_v13 }
 0x177   :  { %6783 = vmatprep.mubr.msk.bf16.mxu0 %vm131_vm0, %v417_v18 }
 0x178   :  { %6784 = vmatmul.mubr.msk.bf16.vlgmr.msra.gmra.mxu0 %vm131_vm0, %v418_v19  ;;  %v428_v20 = vld [vmem:[#allocation2] sm:$0xff] }
 0x179   :  { %821 = vmatprep.mubr.bf16.mxu0 %v7689_v36  ;;  %802 = vmatpush1.bf16.msra.mxu0 %v7007_v41 }
 0x17a   :  { %v431_v21 = vld [vmem:[#allocation2 + $0x18] sm:$0xff]  ;;  %803 = vmatprep.subr.bf16.mxu0 %v7012_v2 }
 0x17b   :  { %v602_v32 = vld [vmem:[#allocation2 + $0x14] sm:$0xff]  ;;  %v603_v33 = vld [vmem:[#allocation2 + $0x1c] sm:$0xff] }
 0x17c   :  { %v429_v22 = vld [vmem:[#allocation2 + $0x8] sm:$0xff]  ;;  %v430_v23 = vld [vmem:[#allocation2 + $0x10] sm:$0xff]  ;;  %v605_v34 = vpack.c.bf16 %v603_v33, %v602_v32 }
 0x17d   :  { %v600_v24 = vld [vmem:[#allocation2 + $0x4] sm:$0xff]  ;;  %v432_v25 = vpack.c.bf16 %v429_v22, %v428_v20  ;;  %v433_v26 = vpack.c.bf16 %v431_v21, %v430_v23  ;;  %v601_v27 = vld [vmem:[#allocation2 + $0xc] sm:$0xff]  ;;  %804 = vmatpush1.bf16.msra.mxu0 %v7010_v6  ;;  %v8049_v21 = vld [vmem:[%s9705_s10] ss:$0 sm:$0xff] }
 0x17e   :  { %v604_v29 = vpack.c.bf16 %v601_v27, %v600_v24  ;;  %1083 = vmatprep.subr.bf16.mxu0 %v7967_v35 }
 0x17f   :  { %6771 = vmatprep.mubr.msk.bf16.mxu1 %vm131_vm0, %v432_v25 }
 0x180   :  { %6772 = vmatmul.mubr.msk.bf16.vlgmr.msra.gmra.mxu1 %vm131_vm0, %v433_v26 }
 0x181   :  { %6788 = vmatpush3.bf16.msra.mxu1 %v6991_v9  ;;  %6795 = vmatprep.mubr.msk.bf16.mxu1 %vm131_vm0, %v604_v29 }
 0x182   :  { %6789 = vmatprep.subr.bf16.mxu1 %v6992_v28 }
 0x185   :  { %6790 = vmatpush3.bf16.msra.mxu1 %v6992_v28 }
 0x186   :  { %6791 = vmatprep.subr.bf16.mxu1 %v6993_v30 }
 0x189   :  { %6792 = vmatpush3.bf16.msra.mxu1 %v6993_v30 }
 0x18a   :  { %6793 = vmatprep.subr.bf16.mxu1 %v6994_v31 }
 0x18d   :  { %6794 = vmatpush3.bf16.msra.mxu1 %v6994_v31 }
 0x18e   :  { %946 = vmatprep.subr.bf16.mxu1 %v7967_v35 }
 0x190   :  { %6796 = vmatmul.mubr.msk.bf16.vlgmr.msra.gmra.mxu1 %vm131_vm0, %v605_v34 }
 0x191   :  { %970 = vmatprep.mubr.bf16.mxu1 %v7689_v36  ;;  %947 = vmatpush1.bf16.msra.mxu1 %v7974_v37 }
 0x192   :  { %948 = vmatprep.subr.bf16.mxu1 %v7980_v38 }
 0x195   :  { %949 = vmatpush1.bf16.msra.mxu1 %v7986_v39 }
 0x196   :  { %950 = vmatprep.subr.bf16.mxu1 %v7992_v40 }
 0x199   :  { %951 = vmatpush1.bf16.msra.mxu1 %v8004_v43 }
 0x19a   :  { %952 = vmatprep.subr.bf16.mxu1 %v8010_v44 }
 0x19d   :  { %953 = vmatpush1.bf16.msra.mxu1 %v8016_v45 }
 0x19e   :  { %1210 = vmatprep.subr.bf16.mxu1 %v7967_v35 }
 0x1a0   :  { %971 = vmatmul.mubr.bf16.vlgmr.msra.gmra.mxu1 %v7690_v46 }
 0x1a1   :  { %1211 = vmatpush1.bf16.msra.mxu1 %v7974_v37  ;;  %1234 = vmatprep.mubr.bf16.mxu1 %v7689_v36 }
 0x1a2   :  { %1212 = vmatprep.subr.bf16.mxu1 %v7980_v38 }
 0x1a5   :  { %1213 = vmatpush1.bf16.msra.mxu1 %v7986_v39 }
 0x1a6   :  { %1214 = vmatprep.subr.bf16.mxu1 %v7992_v40 }
 0x1a9   :  { %1215 = vmatpush1.bf16.msra.mxu1 %v8004_v43 }
 0x1aa   :  { %1216 = vmatprep.subr.bf16.mxu1 %v8010_v44 }
 0x1ad   :  { %1217 = vmatpush1.bf16.msra.mxu1 %v8016_v45 }
 0x1ae   :  { %1464 = vmatprep.subr.bf16.mxu1 %v7967_v35 }
 0x238   :  { %v6785_v49 = vpop.f32.mrf.mxu0 }
 0x23a   :  { %v585_v51 = vpop.f32.mrf.mxu0 }
 0x23c   :  { %v6786_v54 = vpop.f32.mrf.mxu0 }
 0x23e   :  { %v588_v63 = vpop.f32.mrf.mxu0 }
 0x240   :  { %v6773_v47 = vpop.f32.mrf.mxu1 }
 0x241   :  { %v594_v53 = vadd.f32 %v6785_v49, %v6773_v47 }
 0x242   :  { %v506_v48 = vpop.f32.mrf.mxu1 }
 0x243   :  { %v586_v57 = vadd.f32 %v585_v51, %v506_v48 }
 0x244   :  { %v6774_v50 = vpop.f32.mrf.mxu1 }
 0x245   :  { %v597_v60 = vadd.f32 %v6786_v54, %v6774_v50  ;;  %v752_v50 = vlaneseq }
 0x246   :  { %v509_v52 = vpop.f32.mrf.mxu1 }
 0x247   :  { %v589_v3 = vadd.f32 %v588_v63, %v509_v52  ;;  %v8074_v51 = vshrl.u32 %v752_v50, 7 }
 0x249   :  { %v754_v52 = vsub.s32 0, %v8074_v51  ;;  %v758_v54 = vsub.s32 1, %v8074_v51 }
 0x250   :  { %v6797_v55 = vpop.f32.mrf.mxu1 }
 0x251   :  { %v696_v58 = vadd.f32 %v6797_v55, %v594_v53  ;;  %v750_v53 = vld [vmem:[%s9706_s8] sm:$0x3]  ;;  %s7692_s8 = smov 32  }
 0x252   :  { %v679_v59 = vpop.f32.mrf.mxu1  ;;  %v755_v55 = vrot.slane %v750_v53, %v754_v52 }
 0x253   :  { %v707_v61 = vmul.f32 %v6445_v56, %v696_v58  ;;  %v694_v62 = vadd.f32 %v679_v59, %v586_v57 }
 0x254   :  { %v6798_v1 = vpop.f32.mrf.mxu1 }
 0x255   :  { %v705_v4 = vmul.f32 %v6445_v56, %v694_v62  ;;  %v697_v5 = vadd.f32 %v6798_v1, %v597_v60  ;;  %v718_v8 = vadd.f32 %v6446_v0, %v707_v61 }
 0x256   :  { %v682_v7 = vpop.f32.mrf.mxu1 }
 0x257   :  { %v708_v9 = vmul.f32 %v6445_v56, %v697_v5  ;;  %v695_v10 = vadd.f32 %v682_v7, %v589_v3  ;;  %v716_v11 = vadd.f32 %v6446_v0, %v705_v4  ;;  %v722_v14 = vmax.f32 %v718_v8, 0.0 }
 0x259   :  { %v719_v12 = vadd.f32 %v6446_v0, %v708_v9  ;;  %v706_v13 = vmul.f32 %v6445_v56, %v695_v10  ;;  %v720_v17 = vmax.f32 %v716_v11, 0.0  ;;  %v759_v56 = vrot.slane %v750_v53, %v758_v54 }
 0x25b   :  { %v723_v15 = vmax.f32 %v719_v12, 0.0  ;;  %v717_v16 = vadd.f32 %v6446_v0, %v706_v13 }
 0x25d   :  { %v721_v18 = vmax.f32 %v717_v16, 0.0  ;;  %v6926_v19 = vpack.i.bf16 %v723_v15, %v722_v14 }
 0x25f   :  { %6927 = vrot.lane.b32.xlu1 %v6926_v19, %s7691_s29  ;;  %v6921_v20 = vpack.i.bf16 %v721_v18, %v720_v17 }
 0x260   :  { %v8053_v22 = vpop.f32.mrf.mxu1 }
 0x261   :  { %6922 = vrot.lane.b32.xlu0 %v6921_v20, %s7691_s29 }
 0x262   :  { %v8055_v23 = vpop.f32.mrf.mxu1 }
 0x263   :  { %v1037_v12 = vadd.f32 %v8049_v21, %v8055_v23 }
 0x264   :  { %v976_v24 = vpop.f32.mrf.mxu1 }
 0x265   :  { %991 = vrot.lane.b32.xlu0 %v8049_v21, %s7688_s7 }
 0x266   :  { %v977_v25 = vpop.f32.mrf.mxu1 }
 0x2d1   :  { %v6928_v29 = vpop.permute.xlu1 %6927 }
 0x2d2   :  { %v6930_v33 = vunpack.i.h.bf16 %v6928_v29  ;;  %v6929_v34 = vunpack.i.l.bf16 %v6928_v29 }
 0x2d3   :  { %v6923_v26 = vpop.permute.xlu0 %6922 }
 0x2d4   :  { %v6925_v27 = vunpack.i.h.bf16 %v6923_v26  ;;  %v6924_v28 = vunpack.i.l.bf16 %v6923_v26  ;;  %v743_v47 = vmax.f32 %v723_v15, %v6930_v33  ;;  %v742_v48 = vmax.f32 %v722_v14, %v6929_v34 }
 0x2d6   :  { %v741_v30 = vmax.f32 %v721_v18, %v6925_v27  ;;  %v740_v31 = vmax.f32 %v720_v17, %v6924_v28  ;;  %v745_v49 = vpack.c.bf16 %v743_v47, %v742_v48 }
 0x2d7   :  { %v8057_v32 = vpop.permute.xlu0 %991 }
 0x2d8   :  { %v744_v41 = vpack.c.bf16 %v741_v30, %v740_v31  ;;  %v994_v42 = vadd.f32 %v8057_v32, %v8053_v22 }
 0x2da   :  { %6451 = vmatmul.mubr.msk.bf16.vlgmr.msra.gmra.mxu0 %vm782_vm2, %v744_v41  ;;  %996 = vrot.lane.b32.xlu1 %v994_v42, %s7688_s7 }
 0x2db   :  { %831 = vmatprep.mubr.bf16.mxu0 %v7689_v36  ;;  %1084 = vmatpush1.bf16.msra.mxu0 %v7974_v37 }
 0x2dc   :  { %1085 = vmatprep.subr.bf16.mxu0 %v7980_v38 }
 0x2df   :  { %1086 = vmatpush1.bf16.msra.mxu0 %v7986_v39 }
 0x2e0   :  { %1087 = vmatprep.subr.bf16.mxu0 %v7992_v40 }
 0x2e2   :  { %6452 = vmatmul.mubr.msk.bf16.gmra.mxu0 %vm782_vm2, %v745_v49 }
 0x2e3   :  { %1088 = vmatpush1.bf16.msra.mxu0 %v8004_v43  ;;  %1107 = vmatprep.mubr.bf16.mxu0 %v7689_v36 }
 0x2e4   :  { %1089 = vmatprep.subr.bf16.mxu0 %v8010_v44 }
 0x2e7   :  { %1090 = vmatpush1.bf16.msra.mxu0 %v8016_v45 }
 0x2e8   :  { %1337 = vmatprep.subr.bf16.mxu0 %v7967_v35 }
 0x34c   :  { %v997_v15 = vpop.permute.xlu1 %996 }
 0x39a   :  { %v823_v57 = vpop.f32.mrf.mxu0 }
 0x39b   :  { %v8085_v58 = vadd.f32 %v823_v57, %v755_v55 }
 0x39c   :  { %v825_v59 = vpop.f32.mrf.mxu0 }
 0x39d   :  { %843 = vst.msk [vmem:[#allocation3] sm:$0xff] %vm842_vm3, %v8085_v58  ;;  %v8089_v60 = vadd.f32 %v825_v59, %v759_v56 }
 0x39e   :  { %v827_v61 = vpop.f32.mrf.mxu0 }
 0x39f   :  { %v8091_v62 = vadd.f32 %v827_v61, %v755_v55 }
 0x3a0   :  { %v829_v63 = vpop.f32.mrf.mxu0 }
 0x3a1   :  { %844 = vst.msk [vmem:[#allocation3 + $0x8] sm:$0xff] %vm842_vm3, %v8091_v62  ;;  %v8095_v0 = vadd.f32 %v829_v63, %v759_v56 }
 0x3a2   :  { %v833_v1 = vpop.f32.mrf.mxu0 }
 0x3a3   :  { %v8097_v2 = vadd.f32 %v833_v1, %v755_v55 }
 0x3a4   :  { %v892_v3 = vld [vmem:[#allocation3] sm:$0x3]  ;;  %v835_v4 = vpop.f32.mrf.mxu0 }
 0x3a5   :  { %v979_v5 = vadd.f32 %v8053_v22, %v892_v3  ;;  %845 = vst.msk [vmem:[#allocation3 + $0x10] sm:$0xff] %vm842_vm3, %v8097_v2  ;;  %v8102_v6 = vadd.f32 %v835_v4, %v759_v56 }
 0x3a6   :  { %v837_v7 = vpop.f32.mrf.mxu0 }
 0x3a7   :  { %v6461_v8 = vmul.f32 -1.442695, %v979_v5  ;;  %v838_v9 = vadd.f32 %v837_v7, %v755_v55 }
 0x3a8   :  { %v839_v10 = vpop.f32.mrf.mxu0 }
 0x3a9   :  { %846 = vst.msk [vmem:[#allocation3 + $0x18] sm:$0xff] %vm842_vm3, %v838_v9  ;;  %v840_v11 = vadd.f32 %v839_v10, %v759_v56  ;;  %867 = vrot.lane.b32.xlu0 %v838_v9, %s7692_s8  ;;  %7045 = vpow2.f32 %v6461_v8 }
 0x3ab   :  { %869 = vrot.lane.b32.xlu1 %v840_v11, %s7692_s8 }
 0x3ad   :  { %1015 = vrot.lane.b32.xlu0 %v8053_v22, %s7692_s8 }
 0x3af   :  { %1039 = vrot.lane.b32.xlu1 %v1037_v12, %s7691_s29 }
 0x3b6   :  { %v7046_v13 = vpop.eup %7045 }
 0x3b7   :  { %v983_v14 = vadd.f32 1.0, %v7046_v13 }
 0x3b9   :  { %7047 = vrcp.f32 %v983_v14 }
 0x3c6   :  { %v7048_v16 = vpop.eup %7047 }
 0x3c7   :  { %v999_v17 = vmul.f32 %v7048_v16, %v997_v15  ;;  %v1006_v47 = vsub.f32 1.0, %v7048_v16  ;;  %v1012_v50 = vmul.f32 0.0, %v7048_v16 }
 0x3c9   :  { %1001 = vrot.lane.b32.xlu0 %v999_v17, %s7688_s7 }
 0x41b   :  { %v868_v18 = vpop.permute.xlu0 %867 }
 0x41d   :  { %v870_v19 = vpop.permute.xlu1 %869 }
 0x41e   :  { %v874_v20 = vsel %vm782_vm2, %v868_v18, %v870_v19  ;;  %v1068_v18 = vld [vmem:[#allocation3 + $0x2] sm:$0x3] }
 0x41f   :  { %882 = vst.msk [vmem:[#allocation4 + $0x18] sm:$0xff] %vm842_vm3, %v874_v20  ;;  %v1016_v25 = vpop.permute.xlu0 %1015 }
 0x421   :  { %v1040_v33 = vpop.permute.xlu1 %1039 }
 0x426   :  { %v893_v24 = vld [vmem:[#allocation4 + $0x1e] sm:$0x3] }
 0x427   :  { %v1018_v26 = vadd.f32 %v1016_v25, %v893_v24 }
 0x429   :  { %v6463_v22 = vmul.f32 -1.442695, %v1018_v26  ;;  %v1069_v26 = vld [vmem:[#allocation4 + $0x1c] sm:$0x3] }
 0x42b   :  { %7049 = vpow2.f32 %v6463_v22 }
 0x438   :  { %v7050_v27 = vpop.eup %7049 }
 0x439   :  { %v1022_v28 = vadd.f32 1.0, %v7050_v27 }
 0x43b   :  { %7051 = vrcp.f32 %v1022_v28  ;;  %v1002_v29 = vpop.permute.xlu0 %1001 }
 0x43c   :  { %v1004_v30 = vadd.f32 %v1002_v29, %v892_v3 }
 0x43e   :  { %7053 = vtanh.f32 %v1004_v30 }
 0x448   :  { %v7052_v31 = vpop.eup %7051 }
 0x449   :  { %v1042_v34 = vmul.f32 %v7052_v31, %v1040_v33 }
 0x44b   :  { %v7054_v41 = vpop.eup %7053  ;;  %1044 = vrot.lane.b32.xlu1 %v1042_v34, %s7688_s7 }
 0x44c   :  { %1008 = vrot.lane.b32.xlu0 %v7054_v41, %s7691_s29 }
 0x44f   :  { %1026 = vrot.lane.b32.xlu1 %v8055_v23, %s7692_s8 }
 0x4bd   :  { %v1045_v42 = vpop.permute.xlu1 %1044 }
 0x4be   :  { %v1047_v48 = vadd.f32 %v1045_v42, %v893_v24  ;;  %v1009_v49 = vpop.permute.xlu0 %1008 }
 0x4bf   :  { %v1011_v53 = vmul.f32 %v1009_v49, %v1006_v47 }
 0x4c0   :  { %7055 = vtanh.f32 %v1047_v48 }
 0x4c1   :  { %v8119_v55 = vadd.f32 %v1012_v50, %v1011_v53  ;;  %v1027_v57 = vpop.permute.xlu1 %1026 }
 0x4c2   :  { %v1029_v59 = vadd.f32 %v1027_v57, %v893_v24 }
 0x4c3   :  { %1058 = vrot.lane.b32.xlu1 %v8119_v55, %s7691_s29 }
 0x4c4   :  { %v6464_v61 = vmul.f32 -1.442695, %v1029_v59 }
 0x4c6   :  { %7057 = vpow2.f32 %v6464_v61 }
 0x4cd   :  { %v7056_v56 = vpop.eup %7055 }
 0x4ce   :  { %1051 = vrot.lane.b32.xlu0 %v7056_v56, %s7691_s29 }
 0x4d3   :  { %v7058_v23 = vpop.eup %7057 }
 0x4d4   :  { %v1033_v63 = vadd.f32 1.0, %v7058_v23 }
 0x4d6   :  { %7059 = vrcp.f32 %v1033_v63 }
 0x4e3   :  { %v7060_v3 = vpop.eup %7059 }
 0x4e4   :  { %v1049_v4 = vsub.f32 1.0, %v7060_v3  ;;  %v1055_v7 = vmul.f32 0.0, %v7060_v3 }
 0x535   :  { %v1059_v1 = vpop.permute.xlu1 %1058 }
 0x536   :  { %1062 = vst.msk [vmem:[#allocation5] sm:$0x3] %vm1061_vm4, %v1059_v1 }
 0x540   :  { %v1052_v5 = vpop.permute.xlu0 %1051 }
 0x541   :  { %v1054_v8 = vmul.f32 %v1052_v5, %v1049_v4 }
 0x543   :  { %v8125_v9 = vadd.f32 %v1055_v7, %v1054_v8 }
 0x545   :  { %v1070_v10 = vsel %vm782_vm2, %v1059_v1, %v8125_v9 }
 0x546   :  { %v1071_v11 = vpack.c.bf16 %v1070_v10, %v1070_v10 }
 0x548   :  { %6465 = vmatmul.mubr.msk.bf16.vlgmr.msra.gmra.mxu0 %vm131_vm0, %v1071_v11 }
 0x549   :  { %1338 = vmatpush1.bf16.msra.mxu0 %v7974_v37  ;;  %1361 = vmatprep.mubr.bf16.mxu0 %v7689_v36 }
 0x54a   :  { %1339 = vmatprep.subr.bf16.mxu0 %v7980_v38 }
 0x54d   :  { %1340 = vmatpush1.bf16.msra.mxu0 %v7986_v39 }
 0x54e   :  { %1341 = vmatprep.subr.bf16.mxu0 %v7992_v40 }
 0x551   :  { %1342 = vmatpush1.bf16.msra.mxu0 %v8004_v43 }
 0x552   :  { %1343 = vmatprep.subr.bf16.mxu0 %v8010_v44 }
 0x555   :  { %1344 = vmatpush1.bf16.msra.mxu0 %v8016_v45 }
 0x556   :  { %1591 = vmatprep.subr.bf16.mxu0 %v7967_v35 }
 0x608   :  { %v1109_v12 = vpop.f32.mrf.mxu0 }
 0x609   :  { %v1123_v13 = vadd.f32 %v1109_v12, %v8057_v32  ;;  %1144 = vrot.lane.b32.xlu1 %v1109_v12, %s7692_s8  ;;  %v1116_v19 = vadd.f32 %v1109_v12, %v1068_v18 }
 0x60a   :  { %v1111_v14 = vpop.f32.mrf.mxu0 }
 0x60b   :  { %1125 = vrot.lane.b32.xlu0 %v1123_v13, %s7688_s7  ;;  %v1165_v16 = vadd.f32 %v8049_v21, %v1111_v14  ;;  %v6466_v20 = vmul.f32 -1.442695, %v1116_v19 }
 0x60c   :  { %v1113_v15 = vpop.f32.mrf.mxu0 }
 0x60d   :  { %7061 = vpow2.f32 %v6466_v20 }
 0x60e   :  { %v1114_v17 = vpop.f32.mrf.mxu0 }
 0x60f   :  { %1167 = vrot.lane.b32.xlu0 %v1165_v16, %s7691_s29 }
 0x61a   :  { %v7062_v24 = vpop.eup %7061 }
 0x61b   :  { %v1120_v25 = vadd.f32 1.0, %v7062_v24 }
 0x61d   :  { %7063 = vrcp.f32 %v1120_v25 }
 0x62a   :  { %v7064_v28 = vpop.eup %7063 }
 0x62b   :  { %v1135_v59 = vsub.f32 1.0, %v7064_v28  ;;  %v1141_v23 = vmul.f32 %v7064_v28, %v8119_v55 }
 0x67b   :  { %v1145_v22 = vpop.permute.xlu1 %1144 }
 0x67c   :  { %v1147_v27 = vadd.f32 %v1145_v22, %v1069_v26  ;;  %v1195_v22 = vld [vmem:[#allocation3 + $0x4] sm:$0x3] }
 0x67d   :  { %v1126_v29 = vpop.permute.xlu0 %1125 }
 0x67e   :  { %v6467_v30 = vmul.f32 -1.442695, %v1147_v27  ;;  %v1128_v31 = vmul.f32 %v7064_v28, %v1126_v29 }
 0x680   :  { %7065 = vpow2.f32 %v6467_v30  ;;  %1130 = vrot.lane.b32.xlu1 %v1128_v31, %s7688_s7  ;;  %v1196_v31 = vld [vmem:[#allocation4 + $0x1a] sm:$0x3] }
 0x681   :  { %v1168_v42 = vpop.permute.xlu0 %1167 }
 0x68d   :  { %v7066_v33 = vpop.eup %7065 }
 0x68e   :  { %v1151_v34 = vadd.f32 1.0, %v7066_v33 }
 0x690   :  { %7067 = vrcp.f32 %v1151_v34 }
 0x69d   :  { %v7068_v41 = vpop.eup %7067 }
 0x69e   :  { %v1170_v47 = vmul.f32 %v7068_v41, %v1168_v42 }
 0x6a0   :  { %1172 = vrot.lane.b32.xlu0 %v1170_v47, %s7688_s7 }
 0x6a4   :  { %1155 = vrot.lane.b32.xlu0 %v1111_v14, %s7692_s8 }
 0x6f2   :  { %v1131_v48 = vpop.permute.xlu1 %1130 }
 0x6f3   :  { %v1133_v49 = vadd.f32 %v1131_v48, %v1068_v18 }
 0x6f5   :  { %7069 = vtanh.f32 %v1133_v49 }
 0x702   :  { %v7070_v50 = vpop.eup %7069 }
 0x703   :  { %1137 = vrot.lane.b32.xlu1 %v7070_v50, %s7691_s29 }
 0x712   :  { %v1173_v53 = vpop.permute.xlu0 %1172 }
 0x713   :  { %v1175_v56 = vadd.f32 %v1173_v53, %v1069_v26 }
 0x715   :  { %7071 = vtanh.f32 %v1175_v56 }
 0x716   :  { %v1156_v3 = vpop.permute.xlu0 %1155 }
 0x717   :  { %v1158_v4 = vadd.f32 %v1156_v3, %v1069_v26 }
 0x719   :  { %v6468_v5 = vmul.f32 -1.442695, %v1158_v4 }
 0x71b   :  { %7073 = vpow2.f32 %v6468_v5 }
 0x722   :  { %v7072_v57 = vpop.eup %7071 }
 0x723   :  { %1179 = vrot.lane.b32.xlu1 %v7072_v57, %s7691_s29 }
 0x728   :  { %v7074_v7 = vpop.eup %7073 }
 0x729   :  { %v1162_v8 = vadd.f32 1.0, %v7074_v7 }
 0x72b   :  { %7075 = vrcp.f32 %v1162_v8 }
 0x738   :  { %v7076_v10 = vpop.eup %7075 }
 0x739   :  { %v1177_v12 = vsub.f32 1.0, %v7076_v10  ;;  %v1183_v14 = vmul.f32 %v7076_v10, %v8125_v9 }
 0x775   :  { %v1138_v61 = vpop.permute.xlu1 %1137 }
 0x776   :  { %v1140_v63 = vmul.f32 %v1138_v61, %v1135_v59 }
 0x778   :  { %v8150_v1 = vadd.f32 %v1141_v23, %v1140_v63 }
 0x77a   :  { %1186 = vrot.lane.b32.xlu0 %v8150_v1, %s7691_s29 }
 0x795   :  { %v1180_v11 = vpop.permute.xlu1 %1179 }
 0x796   :  { %v1182_v13 = vmul.f32 %v1180_v11, %v1177_v12 }
 0x798   :  { %v8155_v55 = vadd.f32 %v1183_v14, %v1182_v13 }
 0x7ec   :  { %v1187_v15 = vpop.permute.xlu0 %1186 }
 0x7ed   :  { %1189 = vst.msk [vmem:[#allocation5 + $0x2] sm:$0x3] %vm1061_vm4, %v1187_v15  ;;  %v1197_v16 = vsel %vm782_vm2, %v1187_v15, %v8155_v55 }
 0x7ee   :  { %v1198_v17 = vpack.c.bf16 %v1197_v16, %v1197_v16 }
 0x7f0   :  { %6469 = vmatmul.mubr.msk.bf16.vlgmr.msra.gmra.mxu1 %vm131_vm0, %v1198_v17 }
 0x7f1   :  { %1465 = vmatpush1.bf16.msra.mxu1 %v7974_v37  ;;  %1488 = vmatprep.mubr.bf16.mxu1 %v7689_v36 }
 0x7f2   :  { %1466 = vmatprep.subr.bf16.mxu1 %v7980_v38 }
 0x7f5   :  { %1467 = vmatpush1.bf16.msra.mxu1 %v7986_v39 }
 0x7f6   :  { %1468 = vmatprep.subr.bf16.mxu1 %v7992_v40 }
 0x7f9   :  { %1469 = vmatpush1.bf16.msra.mxu1 %v8004_v43 }
 0x7fa   :  { %1470 = vmatprep.subr.bf16.mxu1 %v8010_v44 }
 0x7fd   :  { %1471 = vmatpush1.bf16.msra.mxu1 %v8016_v45 }
 0x7fe   :  { %1718 = vmatprep.subr.bf16.mxu1 %v7967_v35 }
 0x8b0   :  { %v1236_v18 = vpop.f32.mrf.mxu1 }
 0x8b1   :  { %v1250_v19 = vadd.f32 %v1236_v18, %v8057_v32  ;;  %1271 = vrot.lane.b32.xlu0 %v1236_v18, %s7692_s8  ;;  %v1243_v27 = vadd.f32 %v1236_v18, %v1195_v22 }
 0x8b2   :  { %v1238_v20 = vpop.f32.mrf.mxu1 }
 0x8b3   :  { %1252 = vrot.lane.b32.xlu1 %v1250_v19, %s7688_s7  ;;  %v1292_v25 = vadd.f32 %v8049_v21, %v1238_v20  ;;  %v6470_v28 = vmul.f32 -1.442695, %v1243_v27 }
 0x8b4   :  { %v1240_v24 = vpop.f32.mrf.mxu1 }
 0x8b5   :  { %7077 = vpow2.f32 %v6470_v28 }
 0x8b6   :  { %v1241_v26 = vpop.f32.mrf.mxu1 }
 0x8b7   :  { %1294 = vrot.lane.b32.xlu1 %v1292_v25, %s7691_s29 }
 0x8c2   :  { %v7078_v29 = vpop.eup %7077 }
 0x8c3   :  { %v1247_v30 = vadd.f32 1.0, %v7078_v29 }
 0x8c5   :  { %7079 = vrcp.f32 %v1247_v30 }
 0x8d2   :  { %v7080_v41 = vpop.eup %7079 }
 0x8d3   :  { %v1262_v5 = vsub.f32 1.0, %v7080_v41  ;;  %v1268_v8 = vmul.f32 %v7080_v41, %v8150_v1 }
 0x923   :  { %v1272_v33 = vpop.permute.xlu0 %1271 }
 0x924   :  { %v1274_v34 = vadd.f32 %v1272_v33, %v1196_v31 }
 0x925   :  { %v1253_v42 = vpop.permute.xlu1 %1252 }
 0x926   :  { %v6471_v47 = vmul.f32 -1.442695, %v1274_v34  ;;  %v1255_v48 = vmul.f32 %v7080_v41, %v1253_v42  ;;  %v1322_v34 = vld [vmem:[#allocation3 + $0x6] sm:$0x3] }
 0x928   :  { %7081 = vpow2.f32 %v6471_v47  ;;  %1257 = vrot.lane.b32.xlu0 %v1255_v48, %s7688_s7 }
 0x929   :  { %v1295_v56 = vpop.permute.xlu1 %1294 }
 0x935   :  { %v7082_v49 = vpop.eup %7081 }
 0x936   :  { %v1278_v50 = vadd.f32 1.0, %v7082_v49  ;;  %v1323_v49 = vld [vmem:[#allocation4 + $0x18] sm:$0x3] }
 0x938   :  { %7083 = vrcp.f32 %v1278_v50 }
 0x945   :  { %v7084_v53 = vpop.eup %7083 }
 0x946   :  { %v1297_v57 = vmul.f32 %v7084_v53, %v1295_v56 }
 0x948   :  { %1299 = vrot.lane.b32.xlu1 %v1297_v57, %s7688_s7 }
 0x94c   :  { %1282 = vrot.lane.b32.xlu1 %v1238_v20, %s7692_s8 }
 0x99a   :  { %v1258_v59 = vpop.permute.xlu0 %1257 }
 0x99b   :  { %v1260_v61 = vadd.f32 %v1258_v59, %v1195_v22 }
 0x99d   :  { %7085 = vtanh.f32 %v1260_v61 }
 0x9aa   :  { %v7086_v23 = vpop.eup %7085 }
 0x9ab   :  { %1264 = vrot.lane.b32.xlu0 %v7086_v23, %s7691_s29 }
 0x9ba   :  { %v1300_v63 = vpop.permute.xlu1 %1299 }
 0x9bb   :  { %v1302_v3 = vadd.f32 %v1300_v63, %v1196_v31 }
 0x9bd   :  { %7087 = vtanh.f32 %v1302_v3 }
 0x9be   :  { %v1283_v12 = vpop.permute.xlu1 %1282 }
 0x9bf   :  { %v1285_v13 = vadd.f32 %v1283_v12, %v1196_v31 }
 0x9c1   :  { %v6472_v14 = vmul.f32 -1.442695, %v1285_v13 }
 0x9c3   :  { %7089 = vpow2.f32 %v6472_v14 }
 0x9ca   :  { %v7088_v4 = vpop.eup %7087 }
 0x9cb   :  { %1306 = vrot.lane.b32.xlu0 %v7088_v4, %s7691_s29 }
 0x9d0   :  { %v7090_v15 = vpop.eup %7089 }
 0x9d1   :  { %v1289_v16 = vadd.f32 1.0, %v7090_v15 }
 0x9d3   :  { %7091 = vrcp.f32 %v1289_v16 }
 0x9e0   :  { %v7092_v17 = vpop.eup %7091 }
 0x9e1   :  { %v1304_v19 = vsub.f32 1.0, %v7092_v17  ;;  %v1310_v24 = vmul.f32 %v7092_v17, %v8155_v55 }
 0xa1d   :  { %v1265_v7 = vpop.permute.xlu0 %1264 }
 0xa1e   :  { %v1267_v10 = vmul.f32 %v1265_v7, %v1262_v5 }
 0xa20   :  { %v8181_v11 = vadd.f32 %v1268_v8, %v1267_v10 }
 0xa22   :  { %1313 = vrot.lane.b32.xlu1 %v8181_v11, %s7691_s29 }
 0xa3d   :  { %v1307_v18 = vpop.permute.xlu0 %1306 }
 0xa3e   :  { %v1309_v20 = vmul.f32 %v1307_v18, %v1304_v19 }
 0xa40   :  { %v8186_v1 = vadd.f32 %v1310_v24, %v1309_v20 }
 0xa94   :  { %v1314_v25 = vpop.permute.xlu1 %1313 }
 0xa95   :  { %1316 = vst.msk [vmem:[#allocation5 + $0x4] sm:$0x3] %vm1061_vm4, %v1314_v25  ;;  %v1324_v26 = vsel %vm782_vm2, %v1314_v25, %v8186_v1 }
 0xa96   :  { %v1325_v22 = vpack.c.bf16 %v1324_v26, %v1324_v26 }
 0xa98   :  { %6473 = vmatmul.mubr.msk.bf16.vlgmr.msra.gmra.mxu0 %vm131_vm0, %v1325_v22 }
 0xa99   :  { %1592 = vmatpush1.bf16.msra.mxu0 %v7974_v37  ;;  %1615 = vmatprep.mubr.bf16.mxu0 %v7689_v36 }
 0xa9a   :  { %1593 = vmatprep.subr.bf16.mxu0 %v7980_v38 }
 0xa9d   :  { %1594 = vmatpush1.bf16.msra.mxu0 %v7986_v39 }
 0xa9e   :  { %1595 = vmatprep.subr.bf16.mxu0 %v7992_v40 }
 0xaa1   :  { %1596 = vmatpush1.bf16.msra.mxu0 %v8004_v43 }
 0xaa2   :  { %1597 = vmatprep.subr.bf16.mxu0 %v8010_v44 }
 0xaa5   :  { %1598 = vmatpush1.bf16.msra.mxu0 %v8016_v45 }
 0xaa6   :  { %1845 = vmatprep.subr.bf16.mxu0 %v7967_v35 }
 0xb58   :  { %v1363_v27 = vpop.f32.mrf.mxu0 }
 0xb59   :  { %v1377_v28 = vadd.f32 %v1363_v27, %v8057_v32  ;;  %1398 = vrot.lane.b32.xlu1 %v1363_v27, %s7692_s8  ;;  %v1370_v41 = vadd.f32 %v1363_v27, %v1322_v34 }
 0xb5a   :  { %v1365_v29 = vpop.f32.mrf.mxu0 }
 0xb5b   :  { %1379 = vrot.lane.b32.xlu0 %v1377_v28, %s7688_s7  ;;  %v1419_v31 = vadd.f32 %v8049_v21, %v1365_v29  ;;  %v6474_v42 = vmul.f32 -1.442695, %v1370_v41 }
 0xb5c   :  { %v1367_v30 = vpop.f32.mrf.mxu0 }
 0xb5d   :  { %7093 = vpow2.f32 %v6474_v42 }
 0xb5e   :  { %v1368_v33 = vpop.f32.mrf.mxu0 }
 0xb5f   :  { %1421 = vrot.lane.b32.xlu0 %v1419_v31, %s7691_s29 }
 0xb6a   :  { %v7094_v47 = vpop.eup %7093 }
 0xb6b   :  { %v1374_v48 = vadd.f32 1.0, %v7094_v47 }
 0xb6d   :  { %7095 = vrcp.f32 %v1374_v48 }
 0xb7a   :  { %v7096_v56 = vpop.eup %7095 }
 0xb7b   :  { %v1389_v15 = vsub.f32 1.0, %v7096_v56  ;;  %v1395_v17 = vmul.f32 %v7096_v56, %v8181_v11 }
 0xbcb   :  { %v1399_v50 = vpop.permute.xlu1 %1398 }
 0xbcc   :  { %v1401_v53 = vadd.f32 %v1399_v50, %v1323_v49 }
 0xbcd   :  { %v1380_v57 = vpop.permute.xlu0 %1379 }
 0xbce   :  { %v6475_v59 = vmul.f32 -1.442695, %v1401_v53  ;;  %v1382_v61 = vmul.f32 %v7096_v56, %v1380_v57 }
 0xbd0   :  { %7097 = vpow2.f32 %v6475_v59  ;;  %1384 = vrot.lane.b32.xlu1 %v1382_v61, %s7688_s7 }
 0xbd1   :  { %v1422_v4 = vpop.permute.xlu0 %1421 }
 0xbdd   :  { %v7098_v23 = vpop.eup %7097 }
 0xbde   :  { %v1405_v63 = vadd.f32 1.0, %v7098_v23 }
 0xbe0   :  { %7099 = vrcp.f32 %v1405_v63 }
 0xbed   :  { %v7100_v3 = vpop.eup %7099 }
 0xbee   :  { %v1424_v5 = vmul.f32 %v7100_v3, %v1422_v4 }
 0xbf0   :  { %1426 = vrot.lane.b32.xlu0 %v1424_v5, %s7688_s7 }
 0xbf4   :  { %1409 = vrot.lane.b32.xlu0 %v1365_v29, %s7692_s8 }
 0xc42   :  { %v1385_v7 = vpop.permute.xlu1 %1384 }
 0xc43   :  { %v1387_v8 = vadd.f32 %v1385_v7, %v1322_v34 }
 0xc45   :  { %7101 = vtanh.f32 %v1387_v8 }
 0xc52   :  { %v7102_v10 = vpop.eup %7101 }
 0xc53   :  { %1391 = vrot.lane.b32.xlu1 %v7102_v10, %s7691_s29 }
 0xc62   :  { %v1427_v12 = vpop.permute.xlu0 %1426 }
 0xc63   :  { %v1429_v13 = vadd.f32 %v1427_v12, %v1323_v49 }
 0xc65   :  { %7103 = vtanh.f32 %v1429_v13 }
 0xc66   :  { %v1410_v20 = vpop.permute.xlu0 %1409 }
 0xc67   :  { %v1412_v24 = vadd.f32 %v1410_v20, %v1323_v49 }
 0xc69   :  { %v6476_v25 = vmul.f32 -1.442695, %v1412_v24 }
 0xc6b   :  { %7105 = vpow2.f32 %v6476_v25 }
 0xc72   :  { %v7104_v14 = vpop.eup %7103 }
 0xc73   :  { %1433 = vrot.lane.b32.xlu1 %v7104_v14, %s7691_s29 }
 0xc78   :  { %v7106_v26 = vpop.eup %7105 }
 0xc79   :  { %v1416_v22 = vadd.f32 1.0, %v7106_v26 }
 0xc7b   :  { %7107 = vrcp.f32 %v1416_v22 }
 0xc88   :  { %v7108_v27 = vpop.eup %7107 }
 0xc89   :  { %v1431_v29 = vsub.f32 1.0, %v7108_v27  ;;  %v1437_v30 = vmul.f32 %v7108_v27, %v8186_v1 }
 0xcc5   :  { %v1392_v16 = vpop.permute.xlu1 %1391 }
 0xcc6   :  { %v1394_v18 = vmul.f32 %v1392_v16, %v1389_v15 }
 0xcc8   :  { %v8212_v19 = vadd.f32 %v1395_v17, %v1394_v18 }
 0xcca   :  { %1440 = vrot.lane.b32.xlu0 %v8212_v19, %s7691_s29 }
 0xcce   :  { %863 = vrot.lane.b32.xlu0 %v8097_v2, %s7692_s8 }
 0xce5   :  { %v1434_v28 = vpop.permute.xlu1 %1433 }
 0xce6   :  { %v1436_v11 = vmul.f32 %v1434_v28, %v1431_v29 }
 0xce8   :  { %v8219_v31 = vadd.f32 %v1437_v30, %v1436_v11 }
 0xd3c   :  { %v1441_v33 = vpop.permute.xlu0 %1440 }
 0xd3d   :  { %1443 = vst.msk [vmem:[#allocation5 + $0x6] sm:$0x3] %vm1061_vm4, %v1441_v33  ;;  %v1451_v2 = vsel %vm782_vm2, %v1441_v33, %v8219_v31 }
 0xd3e   :  { %v1452_v34 = vpack.c.bf16 %v1451_v2, %v1451_v2 }
 0xd40   :  { %6477 = vmatmul.mubr.msk.bf16.vlgmr.msra.gmra.mxu1 %vm131_vm0, %v1452_v34  ;;  %v864_v56 = vpop.permute.xlu0 %863 }
 0xd41   :  { %1719 = vmatpush1.bf16.msra.mxu1 %v7974_v37  ;;  %1742 = vmatprep.mubr.bf16.mxu1 %v7689_v36 }
 0xd42   :  { %1720 = vmatprep.subr.bf16.mxu1 %v7980_v38 }
 0xd45   :  { %1721 = vmatpush1.bf16.msra.mxu1 %v7986_v39 }
 0xd46   :  { %1722 = vmatprep.subr.bf16.mxu1 %v7992_v40 }
 0xd49   :  { %1723 = vmatpush1.bf16.msra.mxu1 %v8004_v43  ;;  %v1449_v43 = vld [vmem:[#allocation3 + $0x8] sm:$0x3] }
 0xd4a   :  { %1724 = vmatprep.subr.bf16.mxu1 %v8010_v44 }
 0xd4d   :  { %1725 = vmatpush1.bf16.msra.mxu1 %v8016_v45 }
 0xd4e   :  { %1972 = vmatprep.subr.bf16.mxu1 %v7967_v35 }
 0xe00   :  { %v1490_v41 = vpop.f32.mrf.mxu1 }
 0xe01   :  { %v1504_v42 = vadd.f32 %v1490_v41, %v8057_v32  ;;  %1525 = vrot.lane.b32.xlu0 %v1490_v41, %s7692_s8  ;;  %v1497_v44 = vadd.f32 %v1490_v41, %v1449_v43 }
 0xe02   :  { %v1492_v37 = vpop.f32.mrf.mxu1 }
 0xe03   :  { %1506 = vrot.lane.b32.xlu1 %v1504_v42, %s7688_s7  ;;  %v1546_v40 = vadd.f32 %v8049_v21, %v1492_v37  ;;  %v6478_v35 = vmul.f32 -1.442695, %v1497_v44  ;;  %v8288_v44 = vld [vmem:[%s9740_s0 + $0x10] ss:$8 sps:$4 sm:$0xff]  }
 0xe04   :  { %v1494_v38 = vpop.f32.mrf.mxu1 }
 0xe05   :  { %7109 = vpow2.f32 %v6478_v35  ;;  %v8263_v38 = vld [vmem:[%s9740_s0 + $0x30] ss:$8 sps:$4 sm:$0xff]   ;;  %v8294_v35 = vld [vmem:[%s9740_s0 + $0x4] ss:$8 sps:$4 sm:$0xff]  }
 0xe06   :  { %v1495_v39 = vpop.f32.mrf.mxu1 }
 0xe07   :  { %865 = vrot.lane.b32.xlu1 %v8102_v6, %s7692_s8  ;;  %v8270_v39 = vld [vmem:[%s9740_s0 + $0x24] ss:$8 sps:$4 sm:$0xff]  }
 0xe0b   :  { %1548 = vrot.lane.b32.xlu1 %v1546_v40, %s7691_s29  ;;  %v8276_v40 = vld [vmem:[%s9740_s0 + $0x20] ss:$8 sps:$4 sm:$0xff]  }
 0xe12   :  { %v7110_v47 = vpop.eup %7109 }
 0xe13   :  { %v1501_v48 = vadd.f32 1.0, %v7110_v47  ;;  %v8301_v47 = vld [vmem:[%s9740_s0 + $0x34] ss:$8 sps:$4 sm:$0xff]  }
 0xe15   :  { %7111 = vrcp.f32 %v1501_v48 }
 0xe22   :  { %v7112_v49 = vpop.eup %7111 }
 0xe23   :  { %v1516_v17 = vsub.f32 1.0, %v7112_v49  ;;  %v1522_v20 = vmul.f32 %v7112_v49, %v8212_v19 }
 0xe73   :  { %v1526_v59 = vpop.permute.xlu0 %1525 }
 0xe75   :  { %v1507_v50 = vpop.permute.xlu1 %1506 }
 0xe76   :  { %v1509_v53 = vmul.f32 %v7112_v49, %v1507_v50 }
 0xe78   :  { %1511 = vrot.lane.b32.xlu0 %v1509_v53, %s7688_s7 }
 0xe79   :  { %v866_v57 = vpop.permute.xlu1 %865 }
 0xe7a   :  { %v873_v6 = vsel %vm782_vm2, %v864_v56, %v866_v57 }
 0xe7b   :  { %881 = vst.msk [vmem:[#allocation4 + $0x10] sm:$0xff] %vm842_vm3, %v873_v6 }
 0xe7d   :  { %v1549_v7 = vpop.permute.xlu1 %1548 }
 0xe82   :  { %v1450_v61 = vld [vmem:[#allocation4 + $0x16] sm:$0x3] }
 0xe83   :  { %v1528_v23 = vadd.f32 %v1526_v59, %v1450_v61 }
 0xe85   :  { %v6479_v63 = vmul.f32 -1.442695, %v1528_v23 }
 0xe87   :  { %7113 = vpow2.f32 %v6479_v63  ;;  %v1577_v63 = vld [vmem:[#allocation4 + $0x14] sm:$0x3] }
 0xe94   :  { %v7114_v3 = vpop.eup %7113 }
 0xe95   :  { %v1532_v4 = vadd.f32 1.0, %v7114_v3 }
 0xe97   :  { %7115 = vrcp.f32 %v1532_v4 }
 0xea4   :  { %v7116_v5 = vpop.eup %7115 }
 0xea5   :  { %v1551_v8 = vmul.f32 %v7116_v5, %v1549_v7 }
 0xea7   :  { %1553 = vrot.lane.b32.xlu1 %v1551_v8, %s7688_s7 }
 0xeab   :  { %1536 = vrot.lane.b32.xlu1 %v1492_v37, %s7692_s8 }
 0xeea   :  { %v1512_v10 = vpop.permute.xlu0 %1511 }
 0xeeb   :  { %v1514_v12 = vadd.f32 %v1512_v10, %v1449_v43  ;;  %v8282_v43 = vld [vmem:[%s9740_s0 + $0x14] ss:$8 sps:$4 sm:$0xff]  }
 0xeed   :  { %7117 = vtanh.f32 %v1514_v12 }
 0xefa   :  { %v7118_v13 = vpop.eup %7117 }
 0xefb   :  { %1518 = vrot.lane.b32.xlu0 %v7118_v13, %s7691_s29 }
 0xf19   :  { %v1554_v14 = vpop.permute.xlu1 %1553 }
 0xf1a   :  { %v1556_v15 = vadd.f32 %v1554_v14, %v1450_v61 }
 0xf1c   :  { %7119 = vtanh.f32 %v1556_v15 }
 0xf1d   :  { %v1537_v26 = vpop.permute.xlu1 %1536 }
 0xf1e   :  { %v1539_v22 = vadd.f32 %v1537_v26, %v1450_v61 }
 0xf20   :  { %v6480_v27 = vmul.f32 -1.442695, %v1539_v22 }
 0xf22   :  { %7121 = vpow2.f32 %v6480_v27 }
 0xf29   :  { %v7120_v16 = vpop.eup %7119 }
 0xf2a   :  { %1560 = vrot.lane.b32.xlu0 %v7120_v16, %s7691_s29 }
 0xf2f   :  { %v7122_v28 = vpop.eup %7121 }
 0xf30   :  { %v1543_v29 = vadd.f32 1.0, %v7122_v28 }
 0xf32   :  { %7123 = vrcp.f32 %v1543_v29 }
 0xf3f   :  { %v7124_v11 = vpop.eup %7123 }
 0xf40   :  { %v1558_v33 = vsub.f32 1.0, %v7124_v11  ;;  %v1564_v34 = vmul.f32 %v7124_v11, %v8219_v31 }
 0xf6d   :  { %v1519_v18 = vpop.permute.xlu0 %1518 }
 0xf6e   :  { %v1521_v24 = vmul.f32 %v1519_v18, %v1516_v17 }
 0xf70   :  { %v8249_v25 = vadd.f32 %v1522_v20, %v1521_v24 }
 0xf72   :  { %1567 = vrot.lane.b32.xlu1 %v8249_v25, %s7691_s29 }
 0xf9c   :  { %v1561_v30 = vpop.permute.xlu0 %1560 }
 0xf9d   :  { %v1563_v2 = vmul.f32 %v1561_v30, %v1558_v33 }
 0xf9f   :  { %v8254_v19 = vadd.f32 %v1564_v34, %v1563_v2 }
 0xfe4   :  { %v1568_v41 = vpop.permute.xlu1 %1567 }
 0xfe5   :  { %1570 = vst.msk [vmem:[#allocation5 + $0x8] sm:$0x3] %vm1061_vm4, %v1568_v41  ;;  %v1578_v42 = vsel %vm782_vm2, %v1568_v41, %v8254_v19 }
 0xfe6   :  { %v1579_v37 = vpack.c.bf16 %v1578_v42, %v1578_v42 }
 0xfe8   :  { %6481 = vmatmul.mubr.msk.bf16.vlgmr.msra.gmra.mxu0 %vm131_vm0, %v1579_v37 }
 0xfe9   :  { %1846 = vmatpush1.bf16.msra.mxu0 %v8263_v38  ;;  %1869 = vmatprep.mubr.bf16.mxu0 %v7689_v36 }
 0xfea   :  { %1847 = vmatprep.subr.bf16.mxu0 %v8270_v39 }
 0xfed   :  { %1848 = vmatpush1.bf16.msra.mxu0 %v8276_v40 }
 0xfee   :  { %1849 = vmatprep.subr.bf16.mxu0 %v8282_v43 }
 0xff1   :  { %1850 = vmatpush1.bf16.msra.mxu0 %v8288_v44 }
 0xff2   :  { %1851 = vmatprep.subr.bf16.mxu0 %v8294_v35 }
 0xff5   :  { %1852 = vmatpush1.bf16.msra.mxu0 %v8016_v45  ;;  %v1576_v45 = vld [vmem:[#allocation3 + $0xa] sm:$0x3] }
 0xff6   :  { %2099 = vmatprep.subr.bf16.mxu0 %v8301_v47 }
0x10a8   :  { %v1617_v48 = vpop.f32.mrf.mxu0 }
0x10a9   :  { %v1631_v49 = vadd.f32 %v1617_v48, %v8057_v32  ;;  %1652 = vrot.lane.b32.xlu1 %v1617_v48, %s7692_s8  ;;  %v1624_v6 = vadd.f32 %v1617_v48, %v1576_v45 }
0x10aa   :  { %v1619_v50 = vpop.f32.mrf.mxu0 }
0x10ab   :  { %1633 = vrot.lane.b32.xlu0 %v1631_v49, %s7688_s7  ;;  %v1673_v56 = vadd.f32 %v8049_v21, %v1619_v50  ;;  %v6482_v59 = vmul.f32 -1.442695, %v1624_v6 }
0x10ac   :  { %v1621_v53 = vpop.f32.mrf.mxu0 }
0x10ad   :  { %7125 = vpow2.f32 %v6482_v59 }
0x10ae   :  { %v1622_v57 = vpop.f32.mrf.mxu0 }
0x10af   :  { %1675 = vrot.lane.b32.xlu0 %v1673_v56, %s7691_s29 }
0x10ba   :  { %v7126_v61 = vpop.eup %7125 }
0x10bb   :  { %v1628_v23 = vadd.f32 1.0, %v7126_v61 }
0x10bd   :  { %7127 = vrcp.f32 %v1628_v23 }
0x10ca   :  { %v7128_v5 = vpop.eup %7127 }
0x10cb   :  { %v1643_v22 = vsub.f32 1.0, %v7128_v5  ;;  %v1649_v28 = vmul.f32 %v7128_v5, %v8249_v25 }
0x111b   :  { %v1653_v3 = vpop.permute.xlu1 %1652 }
0x111c   :  { %v1655_v4 = vadd.f32 %v1653_v3, %v1577_v63 }
0x111d   :  { %v1634_v7 = vpop.permute.xlu0 %1633 }
0x111e   :  { %v6483_v8 = vmul.f32 -1.442695, %v1655_v4  ;;  %v1636_v10 = vmul.f32 %v7128_v5, %v1634_v7  ;;  %v1703_v5 = vld [vmem:[#allocation3 + $0xc] sm:$0x3] }
0x1120   :  { %7129 = vpow2.f32 %v6483_v8  ;;  %1638 = vrot.lane.b32.xlu1 %v1636_v10, %s7688_s7 }
0x1121   :  { %v1676_v14 = vpop.permute.xlu0 %1675 }
0x112d   :  { %v7130_v21 = vpop.eup %7129 }
0x112e   :  { %v1659_v12 = vadd.f32 1.0, %v7130_v21 }
0x1130   :  { %7131 = vrcp.f32 %v1659_v12  ;;  %v1704_v12 = vld [vmem:[#allocation4 + $0x12] sm:$0x3] }
0x113d   :  { %v7132_v13 = vpop.eup %7131 }
0x113e   :  { %v1678_v15 = vmul.f32 %v7132_v13, %v1676_v14 }
0x1140   :  { %1680 = vrot.lane.b32.xlu0 %v1678_v15, %s7688_s7 }
0x1144   :  { %1663 = vrot.lane.b32.xlu0 %v1619_v50, %s7692_s8 }
0x1192   :  { %v1639_v16 = vpop.permute.xlu1 %1638 }
0x1193   :  { %v1641_v17 = vadd.f32 %v1639_v16, %v1576_v45  ;;  %v8336_v45 = vld [vmem:[%s9740_s0] ss:$8 sps:$4 sm:$0xff]  }
0x1195   :  { %7133 = vtanh.f32 %v1641_v17 }
0x11a2   :  { %v7134_v18 = vpop.eup %7133 }
0x11a3   :  { %1645 = vrot.lane.b32.xlu1 %v7134_v18, %s7691_s29 }
0x11b2   :  { %v1681_v20 = vpop.permute.xlu0 %1680 }
0x11b3   :  { %v1683_v24 = vadd.f32 %v1681_v20, %v1577_v63 }
0x11b5   :  { %7135 = vtanh.f32 %v1683_v24 }
0x11b6   :  { %v1664_v30 = vpop.permute.xlu0 %1663 }
0x11b7   :  { %v1666_v33 = vadd.f32 %v1664_v30, %v1577_v63  ;;  %v8346_v63 = vld [vmem:[%s9705_s10] ss:$0 sm:$0xff] }
0x11b9   :  { %v6484_v2 = vmul.f32 -1.442695, %v1666_v33 }
0x11bb   :  { %7137 = vpow2.f32 %v6484_v2 }
0x11c2   :  { %v7136_v26 = vpop.eup %7135 }
0x11c3   :  { %1687 = vrot.lane.b32.xlu1 %v7136_v26, %s7691_s29 }
0x11c8   :  { %v7138_v34 = vpop.eup %7137 }
0x11c9   :  { %v1670_v41 = vadd.f32 1.0, %v7138_v34 }
0x11cb   :  { %7139 = vrcp.f32 %v1670_v41 }
0x11d8   :  { %v7140_v42 = vpop.eup %7139 }
0x11d9   :  { %v1685_v48 = vsub.f32 1.0, %v7140_v42  ;;  %v1691_v50 = vmul.f32 %v7140_v42, %v8254_v19 }
0x1215   :  { %v1646_v27 = vpop.permute.xlu1 %1645 }
0x1216   :  { %v1648_v29 = vmul.f32 %v1646_v27, %v1643_v22 }
0x1218   :  { %v8315_v11 = vadd.f32 %v1649_v28, %v1648_v29 }
0x121a   :  { %1694 = vrot.lane.b32.xlu0 %v8315_v11, %s7691_s29 }
0x1235   :  { %v1688_v37 = vpop.permute.xlu1 %1687 }
0x1236   :  { %v1690_v49 = vmul.f32 %v1688_v37, %v1685_v48 }
0x1238   :  { %v8320_v25 = vadd.f32 %v1691_v50, %v1690_v49 }
0x128c   :  { %v1695_v53 = vpop.permute.xlu0 %1694 }
0x128d   :  { %1697 = vst.msk [vmem:[#allocation5 + $0xa] sm:$0x3] %vm1061_vm4, %v1695_v53  ;;  %v1705_v56 = vsel %vm782_vm2, %v1695_v53, %v8320_v25 }
0x128e   :  { %v1706_v57 = vpack.c.bf16 %v1705_v56, %v1705_v56 }
0x1290   :  { %6485 = vmatmul.mubr.msk.bf16.vlgmr.msra.gmra.mxu1 %vm131_vm0, %v1706_v57 }
0x1291   :  { %1973 = vmatpush1.bf16.msra.mxu1 %v8263_v38  ;;  %1996 = vmatprep.mubr.bf16.mxu1 %v7689_v36 }
0x1292   :  { %1974 = vmatprep.subr.bf16.mxu1 %v8270_v39 }
0x1295   :  { %1975 = vmatpush1.bf16.msra.mxu1 %v8276_v40 }
0x1296   :  { %1976 = vmatprep.subr.bf16.mxu1 %v8282_v43 }
0x1299   :  { %1977 = vmatpush1.bf16.msra.mxu1 %v8288_v44 }
0x129a   :  { %1978 = vmatprep.subr.bf16.mxu1 %v8294_v35 }
0x129d   :  { %1979 = vmatpush1.bf16.msra.mxu1 %v8336_v45 }
0x129e   :  { %2226 = vmatprep.subr.bf16.mxu1 %v8301_v47 }
0x1350   :  { %v1744_v6 = vpop.f32.mrf.mxu1 }
0x1351   :  { %v1758_v59 = vadd.f32 %v1744_v6, %v8057_v32  ;;  %1779 = vrot.lane.b32.xlu0 %v1744_v6, %s7692_s8  ;;  %v1751_v7 = vadd.f32 %v1744_v6, %v1703_v5 }
0x1352   :  { %v1746_v61 = vpop.f32.mrf.mxu1 }
0x1353   :  { %1760 = vrot.lane.b32.xlu1 %v1758_v59, %s7688_s7  ;;  %v1800_v3 = vadd.f32 %v8346_v63, %v1746_v61  ;;  %v6486_v8 = vmul.f32 -1.442695, %v1751_v7 }
0x1354   :  { %v1748_v23 = vpop.f32.mrf.mxu1 }
0x1355   :  { %7141 = vpow2.f32 %v6486_v8 }
0x1356   :  { %v1749_v4 = vpop.f32.mrf.mxu1 }
0x1357   :  { %1802 = vrot.lane.b32.xlu1 %v1800_v3, %s7691_s29 }
0x1362   :  { %v7142_v10 = vpop.eup %7141 }
0x1363   :  { %v1755_v21 = vadd.f32 1.0, %v7142_v10 }
0x1365   :  { %7143 = vrcp.f32 %v1755_v21 }
0x1372   :  { %v7144_v15 = vpop.eup %7143 }
0x1373   :  { %v1770_v41 = vsub.f32 1.0, %v7144_v15  ;;  %v1776_v37 = vmul.f32 %v7144_v15, %v8315_v11 }
0x13c3   :  { %v1780_v13 = vpop.permute.xlu0 %1779 }
0x13c4   :  { %v1782_v14 = vadd.f32 %v1780_v13, %v1704_v12 }
0x13c5   :  { %v1761_v16 = vpop.permute.xlu1 %1760 }
0x13c6   :  { %v6487_v17 = vmul.f32 -1.442695, %v1782_v14  ;;  %v1763_v18 = vmul.f32 %v7144_v15, %v1761_v16  ;;  %v1830_v16 = vld [vmem:[#allocation3 + $0xe] sm:$0x3] }
0x13c8   :  { %7145 = vpow2.f32 %v6487_v17  ;;  %1765 = vrot.lane.b32.xlu0 %v1763_v18, %s7688_s7 }
0x13c9   :  { %v1803_v22 = vpop.permute.xlu1 %1802 }
0x13d5   :  { %v7146_v20 = vpop.eup %7145 }
0x13d6   :  { %v1786_v24 = vadd.f32 1.0, %v7146_v20 }
0x13d8   :  { %7147 = vrcp.f32 %v1786_v24 }
0x13e5   :  { %v7148_v26 = vpop.eup %7147 }
0x13e6   :  { %v1805_v27 = vmul.f32 %v7148_v26, %v1803_v22  ;;  %v1831_v26 = vld [vmem:[#allocation4 + $0x10] sm:$0x3] }
0x13e8   :  { %1807 = vrot.lane.b32.xlu1 %v1805_v27, %s7688_s7 }
0x13ec   :  { %1790 = vrot.lane.b32.xlu1 %v1746_v61, %s7692_s8 }
0x143a   :  { %v1766_v28 = vpop.permute.xlu0 %1765 }
0x143b   :  { %v1768_v29 = vadd.f32 %v1766_v28, %v1703_v5 }
0x143d   :  { %7149 = vtanh.f32 %v1768_v29 }
0x144a   :  { %v7150_v30 = vpop.eup %7149 }
0x144b   :  { %1772 = vrot.lane.b32.xlu0 %v7150_v30, %s7691_s29 }
0x145a   :  { %v1808_v33 = vpop.permute.xlu1 %1807 }
0x145b   :  { %v1810_v2 = vadd.f32 %v1808_v33, %v1704_v12 }
0x145d   :  { %7151 = vtanh.f32 %v1810_v2 }
0x145e   :  { %v1791_v50 = vpop.permute.xlu1 %1790 }
0x145f   :  { %v1793_v53 = vadd.f32 %v1791_v50, %v1704_v12 }
0x1461   :  { %v6488_v56 = vmul.f32 -1.442695, %v1793_v53 }
0x1463   :  { %7153 = vpow2.f32 %v6488_v56 }
0x146a   :  { %v7152_v34 = vpop.eup %7151 }
0x146b   :  { %1814 = vrot.lane.b32.xlu0 %v7152_v34, %s7691_s29 }
0x1470   :  { %v7154_v57 = vpop.eup %7153 }
0x1471   :  { %v1797_v6 = vadd.f32 1.0, %v7154_v57 }
0x1473   :  { %7155 = vrcp.f32 %v1797_v6 }
0x1480   :  { %v7156_v59 = vpop.eup %7155 }
0x1481   :  { %v1812_v23 = vsub.f32 1.0, %v7156_v59  ;;  %v1818_v4 = vmul.f32 %v7156_v59, %v8320_v25 }
0x14bd   :  { %v1773_v42 = vpop.permute.xlu0 %1772 }
0x14be   :  { %v1775_v48 = vmul.f32 %v1773_v42, %v1770_v41 }
0x14c0   :  { %v8356_v49 = vadd.f32 %v1776_v37, %v1775_v48 }
0x14c2   :  { %1821 = vrot.lane.b32.xlu1 %v8356_v49, %s7691_s29 }
0x14dd   :  { %v1815_v61 = vpop.permute.xlu0 %1814 }
0x14de   :  { %v1817_v3 = vmul.f32 %v1815_v61, %v1812_v23 }
0x14e0   :  { %v8361_v11 = vadd.f32 %v1818_v4, %v1817_v3 }
0x1534   :  { %v1822_v5 = vpop.permute.xlu1 %1821 }
0x1535   :  { %1824 = vst.msk [vmem:[#allocation5 + $0xc] sm:$0x3] %vm1061_vm4, %v1822_v5  ;;  %v1832_v7 = vsel %vm782_vm2, %v1822_v5, %v8361_v11 }
0x1536   :  { %v1833_v8 = vpack.c.bf16 %v1832_v7, %v1832_v7 }
0x1538   :  { %6489 = vmatmul.mubr.msk.bf16.vlgmr.msra.gmra.mxu0 %vm131_vm0, %v1833_v8 }
0x1539   :  { %2100 = vmatpush1.bf16.msra.mxu0 %v8263_v38  ;;  %2123 = vmatprep.mubr.bf16.mxu0 %v7689_v36 }
0x153a   :  { %2101 = vmatprep.subr.bf16.mxu0 %v8270_v39 }
0x153d   :  { %2102 = vmatpush1.bf16.msra.mxu0 %v8276_v40 }
0x153e   :  { %2103 = vmatprep.subr.bf16.mxu0 %v8282_v43 }
0x1541   :  { %2104 = vmatpush1.bf16.msra.mxu0 %v8288_v44 }
0x1542   :  { %2105 = vmatprep.subr.bf16.mxu0 %v8294_v35 }
0x1545   :  { %2106 = vmatpush1.bf16.msra.mxu0 %v8336_v45 }
0x1546   :  { %2353 = vmatprep.subr.bf16.mxu0 %v8301_v47 }
0x15f8   :  { %v1871_v10 = vpop.f32.mrf.mxu0 }
0x15f9   :  { %v1885_v21 = vadd.f32 %v1871_v10, %v8057_v32  ;;  %1906 = vrot.lane.b32.xlu1 %v1871_v10, %s7692_s8  ;;  %v1878_v17 = vadd.f32 %v1871_v10, %v1830_v16 }
0x15fa   :  { %v1873_v12 = vpop.f32.mrf.mxu0 }
0x15fb   :  { %1887 = vrot.lane.b32.xlu0 %v1885_v21, %s7688_s7  ;;  %v1927_v14 = vadd.f32 %v8346_v63, %v1873_v12  ;;  %v6490_v18 = vmul.f32 -1.442695, %v1878_v17 }
0x15fc   :  { %v1875_v13 = vpop.f32.mrf.mxu0 }
0x15fd   :  { %7157 = vpow2.f32 %v6490_v18 }
0x15fe   :  { %v1876_v15 = vpop.f32.mrf.mxu0 }
0x15ff   :  { %1929 = vrot.lane.b32.xlu0 %v1927_v14, %s7691_s29 }
0x160a   :  { %v7158_v20 = vpop.eup %7157 }
0x160b   :  { %v1882_v24 = vadd.f32 1.0, %v7158_v20 }
0x160d   :  { %7159 = vrcp.f32 %v1882_v24 }
0x161a   :  { %v7160_v28 = vpop.eup %7159 }
0x161b   :  { %v1897_v59 = vsub.f32 1.0, %v7160_v28  ;;  %v1903_v23 = vmul.f32 %v7160_v28, %v8356_v49 }
0x166b   :  { %v1907_v22 = vpop.permute.xlu1 %1906 }
0x166c   :  { %v1909_v27 = vadd.f32 %v1907_v22, %v1831_v26 }
0x166d   :  { %v1888_v29 = vpop.permute.xlu0 %1887 }
0x166e   :  { %v6491_v30 = vmul.f32 -1.442695, %v1909_v27  ;;  %v1890_v33 = vmul.f32 %v7160_v28, %v1888_v29  ;;  %v1957_v29 = vld [vmem:[#allocation3 + $0x10] sm:$0x3] }
0x1670   :  { %7161 = vpow2.f32 %v6491_v30  ;;  %1892 = vrot.lane.b32.xlu1 %v1890_v33, %s7688_s7 }
0x1671   :  { %v1930_v42 = vpop.permute.xlu0 %1929 }
0x167d   :  { %v7162_v2 = vpop.eup %7161 }
0x167e   :  { %v1913_v34 = vadd.f32 1.0, %v7162_v2 }
0x1680   :  { %7163 = vrcp.f32 %v1913_v34 }
0x168d   :  { %v7164_v41 = vpop.eup %7163 }
0x168e   :  { %v1932_v37 = vmul.f32 %v7164_v41, %v1930_v42 }
0x1690   :  { %1934 = vrot.lane.b32.xlu0 %v1932_v37, %s7688_s7 }
0x1694   :  { %1917 = vrot.lane.b32.xlu0 %v1873_v12, %s7692_s8 }
0x16e2   :  { %v1893_v48 = vpop.permute.xlu1 %1892 }
0x16e3   :  { %v1895_v50 = vadd.f32 %v1893_v48, %v1830_v16 }
0x16e5   :  { %7165 = vtanh.f32 %v1895_v50 }
0x16f2   :  { %v7166_v53 = vpop.eup %7165 }
0x16f3   :  { %1899 = vrot.lane.b32.xlu1 %v7166_v53, %s7691_s29 }
0x1702   :  { %v1935_v56 = vpop.permute.xlu0 %1934 }
0x1703   :  { %v1937_v57 = vadd.f32 %v1935_v56, %v1831_v26 }
0x1705   :  { %7167 = vtanh.f32 %v1937_v57 }
0x1706   :  { %v1918_v5 = vpop.permute.xlu0 %1917 }
0x1707   :  { %v1920_v7 = vadd.f32 %v1918_v5, %v1831_v26 }
0x1709   :  { %v6492_v8 = vmul.f32 -1.442695, %v1920_v7 }
0x170b   :  { %7169 = vpow2.f32 %v6492_v8 }
0x1712   :  { %v7168_v6 = vpop.eup %7167 }
0x1713   :  { %1941 = vrot.lane.b32.xlu1 %v7168_v6, %s7691_s29 }
0x1718   :  { %v7170_v10 = vpop.eup %7169 }
0x1719   :  { %v1924_v21 = vadd.f32 1.0, %v7170_v10 }
0x171b   :  { %7171 = vrcp.f32 %v1924_v21 }
0x1728   :  { %v7172_v12 = vpop.eup %7171 }
0x1729   :  { %v1939_v14 = vsub.f32 1.0, %v7172_v12  ;;  %v1945_v15 = vmul.f32 %v7172_v12, %v8361_v11 }
0x1765   :  { %v1900_v61 = vpop.permute.xlu1 %1899 }
0x1766   :  { %v1902_v3 = vmul.f32 %v1900_v61, %v1897_v59 }
0x1768   :  { %v8387_v4 = vadd.f32 %v1903_v23, %v1902_v3 }
0x176a   :  { %1948 = vrot.lane.b32.xlu0 %v8387_v4, %s7691_s29 }
0x176e   :  { %859 = vrot.lane.b32.xlu0 %v8091_v62, %s7692_s8 }
0x1785   :  { %v1942_v13 = vpop.permute.xlu1 %1941 }
0x1786   :  { %v1944_v49 = vmul.f32 %v1942_v13, %v1939_v14 }
0x1788   :  { %v8394_v16 = vadd.f32 %v1945_v15, %v1944_v49 }
0x17dc   :  { %v1949_v17 = vpop.permute.xlu0 %1948 }
0x17dd   :  { %1951 = vst.msk [vmem:[#allocation5 + $0xe] sm:$0x3] %vm1061_vm4, %v1949_v17  ;;  %v1959_v62 = vsel %vm782_vm2, %v1949_v17, %v8394_v16 }
0x17de   :  { %v1960_v18 = vpack.c.bf16 %v1959_v62, %v1959_v62 }
0x17e0   :  { %6493 = vmatmul.mubr.msk.bf16.vlgmr.msra.gmra.mxu1 %vm131_vm0, %v1960_v18  ;;  %v860_v48 = vpop.permute.xlu0 %859 }
0x17e1   :  { %2227 = vmatpush1.bf16.msra.mxu1 %v8263_v38  ;;  %2250 = vmatprep.mubr.bf16.mxu1 %v7689_v36 }
0x17e2   :  { %2228 = vmatprep.subr.bf16.mxu1 %v8270_v39 }
0x17e5   :  { %2229 = vmatpush1.bf16.msra.mxu1 %v8276_v40 }
0x17e6   :  { %2230 = vmatprep.subr.bf16.mxu1 %v8282_v43 }
0x17e9   :  { %2231 = vmatpush1.bf16.msra.mxu1 %v8288_v44 }
0x17ea   :  { %2232 = vmatprep.subr.bf16.mxu1 %v8294_v35 }
0x17ed   :  { %2233 = vmatpush1.bf16.msra.mxu1 %v8336_v45 }
0x17ee   :  { %2480 = vmatprep.subr.bf16.mxu1 %v8301_v47 }
0x18a0   :  { %v1998_v20 = vpop.f32.mrf.mxu1 }
0x18a1   :  { %v2012_v24 = vadd.f32 %v1998_v20, %v8057_v32  ;;  %2033 = vrot.lane.b32.xlu0 %v1998_v20, %s7692_s8  ;;  %v2005_v30 = vadd.f32 %v1998_v20, %v1957_v29 }
0x18a2   :  { %v2000_v26 = vpop.f32.mrf.mxu1 }
0x18a3   :  { %2014 = vrot.lane.b32.xlu1 %v2012_v24, %s7688_s7  ;;  %v2054_v28 = vadd.f32 %v8346_v63, %v2000_v26  ;;  %v6494_v33 = vmul.f32 -1.442695, %v2005_v30 }
0x18a4   :  { %v2002_v22 = vpop.f32.mrf.mxu1 }
0x18a5   :  { %7173 = vpow2.f32 %v6494_v33 }
0x18a6   :  { %v2003_v27 = vpop.f32.mrf.mxu1 }
0x18a7   :  { %861 = vrot.lane.b32.xlu1 %v8095_v0, %s7692_s8 }
0x18ab   :  { %2056 = vrot.lane.b32.xlu1 %v2054_v28, %s7691_s29 }
0x18b2   :  { %v7174_v2 = vpop.eup %7173 }
0x18b3   :  { %v2009_v34 = vadd.f32 1.0, %v7174_v2 }
0x18b5   :  { %7175 = vrcp.f32 %v2009_v34 }
0x18c2   :  { %v7176_v41 = vpop.eup %7175 }
0x18c3   :  { %v2024_v14 = vsub.f32 1.0, %v7176_v41  ;;  %v2030_v15 = vmul.f32 %v7176_v41, %v8387_v4 }
0x1913   :  { %v2034_v53 = vpop.permute.xlu0 %2033 }
0x1915   :  { %v2015_v42 = vpop.permute.xlu1 %2014 }
0x1916   :  { %v2017_v37 = vmul.f32 %v7176_v41, %v2015_v42 }
0x1918   :  { %2019 = vrot.lane.b32.xlu0 %v2017_v37, %s7688_s7 }
0x1919   :  { %v862_v50 = vpop.permute.xlu1 %861 }
0x191a   :  { %v872_v0 = vsel %vm782_vm2, %v860_v48, %v862_v50 }
0x191b   :  { %880 = vst.msk [vmem:[#allocation4 + $0x8] sm:$0xff] %vm842_vm3, %v872_v0 }
0x191d   :  { %v2057_v3 = vpop.permute.xlu1 %2056 }
0x1922   :  { %v1958_v56 = vld [vmem:[#allocation4 + $0xe] sm:$0x3] }
0x1923   :  { %v2036_v57 = vadd.f32 %v2034_v53, %v1958_v56 }
0x1925   :  { %v6495_v6 = vmul.f32 -1.442695, %v2036_v57 }
0x1927   :  { %7177 = vpow2.f32 %v6495_v6 }
0x1934   :  { %v7178_v59 = vpop.eup %7177 }
0x1935   :  { %v2040_v61 = vadd.f32 1.0, %v7178_v59 }
0x1937   :  { %7179 = vrcp.f32 %v2040_v61 }
0x1944   :  { %v7180_v23 = vpop.eup %7179 }
0x1945   :  { %v2059_v5 = vmul.f32 %v7180_v23, %v2057_v3  ;;  %v2085_v23 = vld [vmem:[#allocation4 + $0xc] sm:$0x3] }
0x1947   :  { %2061 = vrot.lane.b32.xlu1 %v2059_v5, %s7688_s7 }
0x194b   :  { %2044 = vrot.lane.b32.xlu1 %v2000_v26, %s7692_s8 }
0x198a   :  { %v2020_v7 = vpop.permute.xlu0 %2019 }
0x198b   :  { %v2022_v8 = vadd.f32 %v2020_v7, %v1957_v29 }
0x198d   :  { %7181 = vtanh.f32 %v2022_v8 }
0x199a   :  { %v7182_v10 = vpop.eup %7181 }
0x199b   :  { %2026 = vrot.lane.b32.xlu0 %v7182_v10, %s7691_s29 }
0x19b9   :  { %v2062_v21 = vpop.permute.xlu1 %2061 }
0x19ba   :  { %v2064_v12 = vadd.f32 %v2062_v21, %v1958_v56 }
0x19bc   :  { %7183 = vtanh.f32 %v2064_v12 }
0x19bd   :  { %v2045_v18 = vpop.permute.xlu1 %2044 }
0x19be   :  { %v2047_v20 = vadd.f32 %v2045_v18, %v1958_v56  ;;  %v2084_v56 = vld [vmem:[#allocation3 + $0x12] sm:$0x3] }
0x19c0   :  { %v6496_v24 = vmul.f32 -1.442695, %v2047_v20 }
0x19c2   :  { %7185 = vpow2.f32 %v6496_v24 }
0x19c9   :  { %v7184_v13 = vpop.eup %7183 }
0x19ca   :  { %2068 = vrot.lane.b32.xlu0 %v7184_v13, %s7691_s29 }
0x19cf   :  { %v7186_v26 = vpop.eup %7185 }
0x19d0   :  { %v2051_v22 = vadd.f32 1.0, %v7186_v26 }
0x19d2   :  { %7187 = vrcp.f32 %v2051_v22 }
0x19df   :  { %v7188_v27 = vpop.eup %7187 }
0x19e0   :  { %v2066_v29 = vsub.f32 1.0, %v7188_v27  ;;  %v2072_v33 = vmul.f32 %v7188_v27, %v8394_v16 }
0x1a0d   :  { %v2027_v49 = vpop.permute.xlu0 %2026 }
0x1a0e   :  { %v2029_v17 = vmul.f32 %v2027_v49, %v2024_v14 }
0x1a10   :  { %v8424_v62 = vadd.f32 %v2030_v15, %v2029_v17 }
0x1a12   :  { %2075 = vrot.lane.b32.xlu1 %v8424_v62, %s7691_s29 }
0x1a3c   :  { %v2069_v28 = vpop.permute.xlu0 %2068 }
0x1a3d   :  { %v2071_v30 = vmul.f32 %v2069_v28, %v2066_v29 }
0x1a3f   :  { %v8429_v4 = vadd.f32 %v2072_v33, %v2071_v30 }
0x1a84   :  { %v2076_v2 = vpop.permute.xlu1 %2075 }
0x1a85   :  { %2078 = vst.msk [vmem:[#allocation5 + $0x10] sm:$0x3] %vm1061_vm4, %v2076_v2  ;;  %v2086_v34 = vsel %vm782_vm2, %v2076_v2, %v8429_v4 }
0x1a86   :  { %v2087_v41 = vpack.c.bf16 %v2086_v34, %v2086_v34 }
0x1a88   :  { %6497 = vmatmul.mubr.msk.bf16.vlgmr.msra.gmra.mxu0 %vm131_vm0, %v2087_v41 }
0x1a89   :  { %2354 = vmatpush1.bf16.msra.mxu0 %v8263_v38  ;;  %2377 = vmatprep.mubr.bf16.mxu0 %v7689_v36 }
0x1a8a   :  { %2355 = vmatprep.subr.bf16.mxu0 %v8270_v39 }
0x1a8d   :  { %2356 = vmatpush1.bf16.msra.mxu0 %v8276_v40 }
0x1a8e   :  { %2357 = vmatprep.subr.bf16.mxu0 %v8282_v43 }
0x1a91   :  { %2358 = vmatpush1.bf16.msra.mxu0 %v8288_v44 }
0x1a92   :  { %2359 = vmatprep.subr.bf16.mxu0 %v8294_v35 }
0x1a95   :  { %2360 = vmatpush1.bf16.msra.mxu0 %v8336_v45 }
0x1a96   :  { %2607 = vmatprep.subr.bf16.mxu0 %v8301_v47 }
0x1b48   :  { %v2125_v42 = vpop.f32.mrf.mxu0 }
0x1b49   :  { %v2139_v37 = vadd.f32 %v2125_v42, %v8057_v32  ;;  %2160 = vrot.lane.b32.xlu1 %v2125_v42, %s7692_s8  ;;  %v2132_v57 = vadd.f32 %v2125_v42, %v2084_v56 }
0x1b4a   :  { %v2127_v48 = vpop.f32.mrf.mxu0 }
0x1b4b   :  { %2141 = vrot.lane.b32.xlu0 %v2139_v37, %s7688_s7  ;;  %v2181_v0 = vadd.f32 %v8346_v63, %v2127_v48  ;;  %v6498_v6 = vmul.f32 -1.442695, %v2132_v57 }
0x1b4c   :  { %v2129_v50 = vpop.f32.mrf.mxu0 }
0x1b4d   :  { %7189 = vpow2.f32 %v6498_v6 }
0x1b4e   :  { %v2130_v53 = vpop.f32.mrf.mxu0 }
0x1b4f   :  { %2183 = vrot.lane.b32.xlu0 %v2181_v0, %s7691_s29 }
0x1b5a   :  { %v7190_v59 = vpop.eup %7189 }
0x1b5b   :  { %v2136_v61 = vadd.f32 1.0, %v7190_v59 }
0x1b5d   :  { %7191 = vrcp.f32 %v2136_v61 }
0x1b6a   :  { %v7192_v7 = vpop.eup %7191 }
0x1b6b   :  { %v2151_v27 = vsub.f32 1.0, %v7192_v7  ;;  %v2157_v29 = vmul.f32 %v7192_v7, %v8424_v62 }
0x1bbb   :  { %v2161_v3 = vpop.permute.xlu1 %2160 }
0x1bbc   :  { %v2163_v5 = vadd.f32 %v2161_v3, %v2085_v23 }
0x1bbd   :  { %v2142_v8 = vpop.permute.xlu0 %2141 }
0x1bbe   :  { %v6499_v10 = vmul.f32 -1.442695, %v2163_v5  ;;  %v2144_v21 = vmul.f32 %v7192_v7, %v2142_v8 }
0x1bc0   :  { %7193 = vpow2.f32 %v6499_v10  ;;  %2146 = vrot.lane.b32.xlu1 %v2144_v21, %s7688_s7  ;;  %v2211_v10 = vld [vmem:[#allocation3 + $0x14] sm:$0x3] }
0x1bc1   :  { %v2184_v49 = vpop.permute.xlu0 %2183 }
0x1bcd   :  { %v7194_v12 = vpop.eup %7193 }
0x1bce   :  { %v2167_v13 = vadd.f32 1.0, %v7194_v12 }
0x1bd0   :  { %7195 = vrcp.f32 %v2167_v13 }
0x1bdd   :  { %v7196_v14 = vpop.eup %7195 }
0x1bde   :  { %v2186_v15 = vmul.f32 %v7196_v14, %v2184_v49  ;;  %v2212_v49 = vld [vmem:[#allocation4 + $0xa] sm:$0x3] }
0x1be0   :  { %2188 = vrot.lane.b32.xlu0 %v2186_v15, %s7688_s7 }
0x1be4   :  { %2171 = vrot.lane.b32.xlu0 %v2127_v48, %s7692_s8 }
0x1c32   :  { %v2147_v17 = vpop.permute.xlu1 %2146 }
0x1c33   :  { %v2149_v18 = vadd.f32 %v2147_v17, %v2084_v56 }
0x1c35   :  { %7197 = vtanh.f32 %v2149_v18 }
0x1c42   :  { %v7198_v20 = vpop.eup %7197 }
0x1c43   :  { %2153 = vrot.lane.b32.xlu1 %v7198_v20, %s7691_s29 }
0x1c52   :  { %v2189_v24 = vpop.permute.xlu0 %2188 }
0x1c53   :  { %v2191_v26 = vadd.f32 %v2189_v24, %v2085_v23 }
0x1c55   :  { %7199 = vtanh.f32 %v2191_v26 }
0x1c56   :  { %v2172_v2 = vpop.permute.xlu0 %2171 }
0x1c57   :  { %v2174_v34 = vadd.f32 %v2172_v2, %v2085_v23 }
0x1c59   :  { %v6500_v41 = vmul.f32 -1.442695, %v2174_v34 }
0x1c5b   :  { %7201 = vpow2.f32 %v6500_v41 }
0x1c62   :  { %v7200_v22 = vpop.eup %7199 }
0x1c63   :  { %2195 = vrot.lane.b32.xlu1 %v7200_v22, %s7691_s29 }
0x1c68   :  { %v7202_v42 = vpop.eup %7201 }
0x1c69   :  { %v2178_v37 = vadd.f32 1.0, %v7202_v42 }
0x1c6b   :  { %7203 = vrcp.f32 %v2178_v37 }
0x1c78   :  { %v7204_v48 = vpop.eup %7203 }
0x1c79   :  { %v2193_v0 = vsub.f32 1.0, %v7204_v48  ;;  %v2199_v56 = vmul.f32 %v7204_v48, %v8429_v4 }
0x1cb5   :  { %v2154_v28 = vpop.permute.xlu1 %2153 }
0x1cb6   :  { %v2156_v30 = vmul.f32 %v2154_v28, %v2151_v27 }
0x1cb8   :  { %v8455_v33 = vadd.f32 %v2157_v29, %v2156_v30 }
0x1cba   :  { %2202 = vrot.lane.b32.xlu0 %v8455_v33, %s7691_s29 }
0x1cd5   :  { %v2196_v50 = vpop.permute.xlu1 %2195 }
0x1cd6   :  { %v2198_v53 = vmul.f32 %v2196_v50, %v2193_v0 }
0x1cd8   :  { %v8460_v62 = vadd.f32 %v2199_v56, %v2198_v53 }
0x1d2c   :  { %v2203_v57 = vpop.permute.xlu0 %2202 }
0x1d2d   :  { %2205 = vst.msk [vmem:[#allocation5 + $0x12] sm:$0x3] %vm1061_vm4, %v2203_v57  ;;  %v2213_v6 = vsel %vm782_vm2, %v2203_v57, %v8460_v62 }
0x1d2e   :  { %v2214_v59 = vpack.c.bf16 %v2213_v6, %v2213_v6 }
0x1d30   :  { %6501 = vmatmul.mubr.msk.bf16.vlgmr.msra.gmra.mxu1 %vm131_vm0, %v2214_v59 }
0x1d31   :  { %2481 = vmatpush1.bf16.msra.mxu1 %v8263_v38  ;;  %2504 = vmatprep.mubr.bf16.mxu1 %v7689_v36 }
0x1d32   :  { %2482 = vmatprep.subr.bf16.mxu1 %v8270_v39 }
0x1d35   :  { %2483 = vmatpush1.bf16.msra.mxu1 %v8276_v40 }
0x1d36   :  { %2484 = vmatprep.subr.bf16.mxu1 %v8282_v43 }
0x1d39   :  { %2485 = vmatpush1.bf16.msra.mxu1 %v8288_v44 }
0x1d3a   :  { %2486 = vmatprep.subr.bf16.mxu1 %v8294_v35 }
0x1d3d   :  { %2487 = vmatpush1.bf16.msra.mxu1 %v8336_v45 }
0x1d3e   :  { %2734 = vmatprep.subr.bf16.mxu1 %v8301_v47 }
0x1df0   :  { %v2252_v61 = vpop.f32.mrf.mxu1 }
0x1df1   :  { %v2266_v23 = vadd.f32 %v2252_v61, %v8057_v32  ;;  %2287 = vrot.lane.b32.xlu0 %v2252_v61, %s7692_s8  ;;  %v2259_v21 = vadd.f32 %v2252_v61, %v2211_v10 }
0x1df2   :  { %v2254_v3 = vpop.f32.mrf.mxu1 }
0x1df3   :  { %2268 = vrot.lane.b32.xlu1 %v2266_v23, %s7688_s7  ;;  %v2308_v7 = vadd.f32 %v8346_v63, %v2254_v3  ;;  %v6502_v12 = vmul.f32 -1.442695, %v2259_v21 }
0x1df4   :  { %v2256_v5 = vpop.f32.mrf.mxu1 }
0x1df5   :  { %7205 = vpow2.f32 %v6502_v12 }
0x1df6   :  { %v2257_v8 = vpop.f32.mrf.mxu1 }
0x1df7   :  { %2310 = vrot.lane.b32.xlu1 %v2308_v7, %s7691_s29 }
0x1e02   :  { %v7206_v13 = vpop.eup %7205 }
0x1e03   :  { %v2263_v14 = vadd.f32 1.0, %v7206_v13 }
0x1e05   :  { %7207 = vrcp.f32 %v2263_v14 }
0x1e12   :  { %v7208_v18 = vpop.eup %7207 }
0x1e13   :  { %v2278_v50 = vsub.f32 1.0, %v7208_v18  ;;  %v2284_v53 = vmul.f32 %v7208_v18, %v8455_v33 }
0x1e63   :  { %v2288_v15 = vpop.permute.xlu0 %2287 }
0x1e64   :  { %v2290_v17 = vadd.f32 %v2288_v15, %v2212_v49 }
0x1e65   :  { %v2269_v20 = vpop.permute.xlu1 %2268 }
0x1e66   :  { %v6503_v24 = vmul.f32 -1.442695, %v2290_v17  ;;  %v2271_v26 = vmul.f32 %v7208_v18, %v2269_v20  ;;  %v2339_v20 = vld [vmem:[#allocation4 + $0x8] sm:$0x3] }
0x1e68   :  { %7209 = vpow2.f32 %v6503_v24  ;;  %2273 = vrot.lane.b32.xlu0 %v2271_v26, %s7688_s7 }
0x1e69   :  { %v2311_v29 = vpop.permute.xlu1 %2310 }
0x1e75   :  { %v7210_v22 = vpop.eup %7209 }
0x1e76   :  { %v2294_v27 = vadd.f32 1.0, %v7210_v22 }
0x1e78   :  { %7211 = vrcp.f32 %v2294_v27 }
0x1e85   :  { %v7212_v28 = vpop.eup %7211 }
0x1e86   :  { %v2313_v30 = vmul.f32 %v7212_v28, %v2311_v29 }
0x1e88   :  { %2315 = vrot.lane.b32.xlu1 %v2313_v30, %s7688_s7 }
0x1e8c   :  { %2298 = vrot.lane.b32.xlu1 %v2254_v3, %s7692_s8 }
0x1eda   :  { %v2274_v2 = vpop.permute.xlu0 %2273 }
0x1edb   :  { %v2276_v34 = vadd.f32 %v2274_v2, %v2211_v10 }
0x1edd   :  { %7213 = vtanh.f32 %v2276_v34 }
0x1eea   :  { %v7214_v41 = vpop.eup %7213 }
0x1eeb   :  { %2280 = vrot.lane.b32.xlu0 %v7214_v41, %s7691_s29 }
0x1efa   :  { %v2316_v42 = vpop.permute.xlu1 %2315 }
0x1efb   :  { %v2318_v37 = vadd.f32 %v2316_v42, %v2212_v49 }
0x1efd   :  { %7215 = vtanh.f32 %v2318_v37 }
0x1efe   :  { %v2299_v6 = vpop.permute.xlu1 %2298 }
0x1eff   :  { %v2301_v59 = vadd.f32 %v2299_v6, %v2212_v49 }
0x1f01   :  { %v6504_v61 = vmul.f32 -1.442695, %v2301_v59 }
0x1f03   :  { %7217 = vpow2.f32 %v6504_v61 }
0x1f0a   :  { %v7216_v48 = vpop.eup %7215 }
0x1f0b   :  { %2322 = vrot.lane.b32.xlu0 %v7216_v48, %s7691_s29 }
0x1f10   :  { %v7218_v23 = vpop.eup %7217 }
0x1f11   :  { %v2305_v3 = vadd.f32 1.0, %v7218_v23 }
0x1f13   :  { %7219 = vrcp.f32 %v2305_v3 }
0x1f20   :  { %v7220_v5 = vpop.eup %7219 }
0x1f21   :  { %v2320_v8 = vsub.f32 1.0, %v7220_v5  ;;  %v2326_v21 = vmul.f32 %v7220_v5, %v8460_v62 }
0x1f5d   :  { %v2281_v0 = vpop.permute.xlu0 %2280 }
0x1f5e   :  { %v2283_v56 = vmul.f32 %v2281_v0, %v2278_v50 }
0x1f60   :  { %v8486_v57 = vadd.f32 %v2284_v53, %v2283_v56 }
0x1f62   :  { %2329 = vrot.lane.b32.xlu1 %v8486_v57, %s7691_s29 }
0x1f7d   :  { %v2323_v7 = vpop.permute.xlu0 %2322 }
0x1f7e   :  { %v2325_v10 = vmul.f32 %v2323_v7, %v2320_v8 }
0x1f80   :  { %v8491_v33 = vadd.f32 %v2326_v21, %v2325_v10 }
0x1fd4   :  { %v2330_v12 = vpop.permute.xlu1 %2329 }
0x1fd5   :  { %2332 = vst.msk [vmem:[#allocation5 + $0x14] sm:$0x3] %vm1061_vm4, %v2330_v12  ;;  %v2340_v13 = vsel %vm782_vm2, %v2330_v12, %v8491_v33 }
0x1fd6   :  { %v2341_v14 = vpack.c.bf16 %v2340_v13, %v2340_v13 }
0x1fd8   :  { %6505 = vmatmul.mubr.msk.bf16.vlgmr.msra.gmra.mxu0 %vm131_vm0, %v2341_v14 }
0x1fd9   :  { %2608 = vmatpush1.bf16.msra.mxu0 %v8263_v38  ;;  %2631 = vmatprep.mubr.bf16.mxu0 %v7689_v36 }
0x1fda   :  { %2609 = vmatprep.subr.bf16.mxu0 %v8270_v39 }
0x1fdd   :  { %2610 = vmatpush1.bf16.msra.mxu0 %v8276_v40 }
0x1fde   :  { %2611 = vmatprep.subr.bf16.mxu0 %v8282_v43 }
0x1fe1   :  { %2612 = vmatpush1.bf16.msra.mxu0 %v8288_v44  ;;  %v2338_v44 = vld [vmem:[#allocation3 + $0x16] sm:$0x3] }
0x1fe2   :  { %2613 = vmatprep.subr.bf16.mxu0 %v8294_v35 }
0x1fe5   :  { %2614 = vmatpush1.bf16.msra.mxu0 %v8336_v45 }
0x1fe6   :  { %2861 = vmatprep.subr.bf16.mxu0 %v8301_v47 }
0x2098   :  { %v2379_v49 = vpop.f32.mrf.mxu0 }
0x2099   :  { %v2393_v15 = vadd.f32 %v2379_v49, %v8057_v32  ;;  %2414 = vrot.lane.b32.xlu1 %v2379_v49, %s7692_s8  ;;  %v2386_v35 = vadd.f32 %v2379_v49, %v2338_v44 }
0x209a   :  { %v2381_v38 = vpop.f32.mrf.mxu0 }
0x209b   :  { %2395 = vrot.lane.b32.xlu0 %v2393_v15, %s7688_s7  ;;  %v2435_v40 = vadd.f32 %v8346_v63, %v2381_v38  ;;  %v6506_v17 = vmul.f32 -1.442695, %v2386_v35  ;;  %v8552_v35 = vld [vmem:[%s9740_s0 + $0x14] ss:$8 sps:$4 sm:$0xff]  }
0x209c   :  { %v2383_v39 = vpop.f32.mrf.mxu0 }
0x209d   :  { %7221 = vpow2.f32 %v6506_v17  ;;  %v8558_v17 = vld [vmem:[%s9740_s0 + $0x10] ss:$8 sps:$4 sm:$0xff]  }
0x209e   :  { %v2384_v43 = vpop.f32.mrf.mxu0 }
0x209f   :  { %2437 = vrot.lane.b32.xlu0 %v2435_v40, %s7691_s29  ;;  %v8533_v40 = vld [vmem:[%s9740_s0 + $0x30] ss:$8 sps:$4 sm:$0xff]   ;;  %v8540_v43 = vld [vmem:[%s9740_s0 + $0x24] ss:$8 sps:$4 sm:$0xff]  }
0x20aa   :  { %v7222_v18 = vpop.eup %7221 }
0x20ab   :  { %v2390_v47 = vadd.f32 1.0, %v7222_v18  ;;  %v8564_v18 = vld [vmem:[%s9740_s0 + $0x4] ss:$8 sps:$4 sm:$0xff]  }
0x20ad   :  { %7223 = vrcp.f32 %v2390_v47 }
0x20ba   :  { %v7224_v22 = vpop.eup %7223 }
0x20bb   :  { %v2405_v6 = vsub.f32 1.0, %v7224_v22  ;;  %v2411_v61 = vmul.f32 %v7224_v22, %v8486_v57 }
0x210b   :  { %v2415_v24 = vpop.permute.xlu1 %2414 }
0x210c   :  { %v2417_v26 = vadd.f32 %v2415_v24, %v2339_v20 }
0x210d   :  { %v2396_v27 = vpop.permute.xlu0 %2395 }
0x210e   :  { %v6507_v28 = vmul.f32 -1.442695, %v2417_v26  ;;  %v2398_v29 = vmul.f32 %v7224_v22, %v2396_v27 }
0x2110   :  { %7225 = vpow2.f32 %v6507_v28  ;;  %2400 = vrot.lane.b32.xlu1 %v2398_v29, %s7688_s7  ;;  %v2465_v28 = vld [vmem:[#allocation3 + $0x18] sm:$0x3] }
0x2111   :  { %v2438_v41 = vpop.permute.xlu0 %2437 }
0x211d   :  { %v7226_v30 = vpop.eup %7225 }
0x211e   :  { %v2421_v2 = vadd.f32 1.0, %v7226_v30 }
0x2120   :  { %7227 = vrcp.f32 %v2421_v2 }
0x212d   :  { %v7228_v34 = vpop.eup %7227 }
0x212e   :  { %v2440_v42 = vmul.f32 %v7228_v34, %v2438_v41 }
0x2130   :  { %2442 = vrot.lane.b32.xlu0 %v2440_v42, %s7688_s7 }
0x2134   :  { %2425 = vrot.lane.b32.xlu0 %v2381_v38, %s7692_s8 }
0x2182   :  { %v2401_v37 = vpop.permute.xlu1 %2400 }
0x2183   :  { %v2403_v48 = vadd.f32 %v2401_v37, %v2338_v44  ;;  %v8546_v44 = vld [vmem:[%s9740_s0 + $0x20] ss:$8 sps:$4 sm:$0xff]  }
0x2185   :  { %7229 = vtanh.f32 %v2403_v48 }
0x2192   :  { %v7230_v50 = vpop.eup %7229 }
0x2193   :  { %2407 = vrot.lane.b32.xlu1 %v7230_v50, %s7691_s29 }
0x21a2   :  { %v2443_v0 = vpop.permute.xlu0 %2442 }
0x21a3   :  { %v2445_v53 = vadd.f32 %v2443_v0, %v2339_v20 }
0x21a5   :  { %7231 = vtanh.f32 %v2445_v53 }
0x21a6   :  { %v2426_v5 = vpop.permute.xlu0 %2425 }
0x21a7   :  { %v2428_v7 = vadd.f32 %v2426_v5, %v2339_v20 }
0x21a9   :  { %v6508_v8 = vmul.f32 -1.442695, %v2428_v7 }
0x21ab   :  { %7233 = vpow2.f32 %v6508_v8 }
0x21b2   :  { %v7232_v56 = vpop.eup %7231 }
0x21b3   :  { %2449 = vrot.lane.b32.xlu1 %v7232_v56, %s7691_s29 }
0x21b8   :  { %v7234_v10 = vpop.eup %7233 }
0x21b9   :  { %v2432_v21 = vadd.f32 1.0, %v7234_v10 }
0x21bb   :  { %7235 = vrcp.f32 %v2432_v21 }
0x21c8   :  { %v7236_v12 = vpop.eup %7235 }
0x21c9   :  { %v2447_v14 = vsub.f32 1.0, %v7236_v12  ;;  %v2453_v49 = vmul.f32 %v7236_v12, %v8491_v33 }
0x2205   :  { %v2408_v59 = vpop.permute.xlu1 %2407 }
0x2206   :  { %v2410_v23 = vmul.f32 %v2408_v59, %v2405_v6 }
0x2208   :  { %v8517_v3 = vadd.f32 %v2411_v61, %v2410_v23 }
0x220a   :  { %2456 = vrot.lane.b32.xlu0 %v8517_v3, %s7691_s29 }
0x220e   :  { %855 = vrot.lane.b32.xlu0 %v8085_v58, %s7692_s8 }
0x2225   :  { %v2450_v13 = vpop.permute.xlu1 %2449 }
0x2226   :  { %v2452_v57 = vmul.f32 %v2450_v13, %v2447_v14 }
0x2228   :  { %v8524_v15 = vadd.f32 %v2453_v49, %v2452_v57 }
0x227c   :  { %v2457_v38 = vpop.permute.xlu0 %2456 }
0x227d   :  { %2459 = vst.msk [vmem:[#allocation5 + $0x16] sm:$0x3] %vm1061_vm4, %v2457_v38  ;;  %v2467_v58 = vsel %vm782_vm2, %v2457_v38, %v8524_v15 }
0x227e   :  { %v2468_v39 = vpack.c.bf16 %v2467_v58, %v2467_v58 }
0x2280   :  { %6509 = vmatmul.mubr.msk.bf16.vlgmr.msra.gmra.mxu1 %vm131_vm0, %v2468_v39  ;;  %v856_v37 = vpop.permute.xlu0 %855 }
0x2281   :  { %2735 = vmatpush1.bf16.msra.mxu1 %v8533_v40  ;;  %2758 = vmatprep.mubr.bf16.mxu1 %v7689_v36 }
0x2282   :  { %2736 = vmatprep.subr.bf16.mxu1 %v8540_v43 }
0x2285   :  { %2737 = vmatpush1.bf16.msra.mxu1 %v8546_v44 }
0x2286   :  { %2738 = vmatprep.subr.bf16.mxu1 %v8552_v35 }
0x2289   :  { %2739 = vmatpush1.bf16.msra.mxu1 %v8558_v17 }
0x228a   :  { %2740 = vmatprep.subr.bf16.mxu1 %v8564_v18 }
0x228d   :  { %2741 = vmatpush1.bf16.msra.mxu1 %v8336_v45 }
0x2340   :  { %v2506_v47 = vpop.f32.mrf.mxu1 }
0x2341   :  { %v2520_v20 = vadd.f32 %v2506_v47, %v8057_v32  ;;  %2541 = vrot.lane.b32.xlu0 %v2506_v47, %s7692_s8  ;;  %v2513_v29 = vadd.f32 %v2506_v47, %v2465_v28 }
0x2342   :  { %v2508_v24 = vpop.f32.mrf.mxu1 }
0x2343   :  { %2522 = vrot.lane.b32.xlu1 %v2520_v20, %s7688_s7  ;;  %v2562_v27 = vadd.f32 %v8346_v63, %v2508_v24  ;;  %v6510_v45 = vmul.f32 -1.442695, %v2513_v29 }
0x2344   :  { %v2510_v26 = vpop.f32.mrf.mxu1 }
0x2345   :  { %7237 = vpow2.f32 %v6510_v45 }
0x2346   :  { %v2511_v22 = vpop.f32.mrf.mxu1 }
0x2347   :  { %857 = vrot.lane.b32.xlu1 %v8089_v60, %s7692_s8 }
0x234b   :  { %2564 = vrot.lane.b32.xlu1 %v2562_v27, %s7691_s29 }
0x2352   :  { %v7238_v30 = vpop.eup %7237 }
0x2353   :  { %v2517_v2 = vadd.f32 1.0, %v7238_v30 }
0x2355   :  { %7239 = vrcp.f32 %v2517_v2 }
0x2362   :  { %v7240_v34 = vpop.eup %7239 }
0x2363   :  { %v2532_v13 = vsub.f32 1.0, %v7240_v34  ;;  %v2538_v57 = vmul.f32 %v7240_v34, %v8517_v3 }
0x23b3   :  { %v2542_v63 = vpop.permute.xlu0 %2541 }
0x23b5   :  { %v2523_v41 = vpop.permute.xlu1 %2522 }
0x23b6   :  { %v2525_v42 = vmul.f32 %v7240_v34, %v2523_v41  ;;  %v7668_v34 = vld [vmem:[%s9740_s0] ss:$8 sps:$4 sm:$0xff]  }
0x23b8   :  { %2527 = vrot.lane.b32.xlu0 %v2525_v42, %s7688_s7 }
0x23b9   :  { %v858_v48 = vpop.permute.xlu1 %857 }
0x23ba   :  { %v871_v60 = vsel %vm782_vm2, %v856_v37, %v858_v48 }
0x23bb   :  { %879 = vst.msk [vmem:[#allocation4] sm:$0xff] %vm842_vm3, %v871_v60 }
0x23bd   :  { %v2565_v61 = vpop.permute.xlu1 %2564 }
0x23c2   :  { %v2466_v50 = vld [vmem:[#allocation4 + $0x6] sm:$0x3] }
0x23c3   :  { %v2544_v0 = vadd.f32 %v2542_v63, %v2466_v50 }
0x23c5   :  { %v6511_v53 = vmul.f32 -1.442695, %v2544_v0 }
0x23c7   :  { %7241 = vpow2.f32 %v6511_v53 }
0x23d4   :  { %v7242_v56 = vpop.eup %7241 }
0x23d5   :  { %v2548_v6 = vadd.f32 1.0, %v7242_v56 }
0x23d7   :  { %7243 = vrcp.f32 %v2548_v6 }
0x23e4   :  { %v7244_v59 = vpop.eup %7243 }
0x23e5   :  { %v2567_v23 = vmul.f32 %v7244_v59, %v2565_v61 }
0x23e7   :  { %2569 = vrot.lane.b32.xlu1 %v2567_v23, %s7688_s7 }
0x23eb   :  { %2552 = vrot.lane.b32.xlu1 %v2508_v24, %s7692_s8 }
0x242a   :  { %v2528_v5 = vpop.permute.xlu0 %2527 }
0x242b   :  { %v2530_v7 = vadd.f32 %v2528_v5, %v2465_v28 }
0x242d   :  { %7245 = vtanh.f32 %v2530_v7 }
0x243a   :  { %v7246_v8 = vpop.eup %7245 }
0x243b   :  { %2534 = vrot.lane.b32.xlu0 %v7246_v8, %s7691_s29 }
0x2459   :  { %v2570_v10 = vpop.permute.xlu1 %2569 }
0x245a   :  { %v2572_v21 = vadd.f32 %v2570_v10, %v2466_v50 }
0x245c   :  { %7247 = vtanh.f32 %v2572_v21 }
0x245d   :  { %v2553_v58 = vpop.permute.xlu1 %2552 }
0x245e   :  { %v2555_v39 = vadd.f32 %v2553_v58, %v2466_v50  ;;  %v2593_v50 = vld [vmem:[#allocation4 + $0x4] sm:$0x3] }
0x2460   :  { %v6512_v47 = vmul.f32 -1.442695, %v2555_v39 }
0x2462   :  { %7249 = vpow2.f32 %v6512_v47 }
0x2469   :  { %v7248_v12 = vpop.eup %7247 }
0x246a   :  { %2576 = vrot.lane.b32.xlu0 %v7248_v12, %s7691_s29 }
0x246f   :  { %v7250_v20 = vpop.eup %7249 }
0x2470   :  { %v2559_v24 = vadd.f32 1.0, %v7250_v20 }
0x2472   :  { %7251 = vrcp.f32 %v2559_v24 }
0x247f   :  { %v7252_v26 = vpop.eup %7251 }
0x2480   :  { %v2574_v27 = vsub.f32 1.0, %v7252_v26  ;;  %v2580_v29 = vmul.f32 %v7252_v26, %v8524_v15 }
0x24ad   :  { %v2535_v14 = vpop.permute.xlu0 %2534 }
0x24ae   :  { %v2537_v49 = vmul.f32 %v2535_v14, %v2532_v13 }
0x24b0   :  { %v8583_v38 = vadd.f32 %v2538_v57, %v2537_v49 }
0x24b2   :  { %2583 = vrot.lane.b32.xlu1 %v8583_v38, %s7691_s29 }
0x24dc   :  { %v2577_v22 = vpop.permute.xlu0 %2576 }
0x24dd   :  { %v2579_v28 = vmul.f32 %v2577_v22, %v2574_v27 }
0x24df   :  { %v8588_v3 = vadd.f32 %v2580_v29, %v2579_v28 }
0x2524   :  { %v2584_v45 = vpop.permute.xlu1 %2583 }
0x2525   :  { %2586 = vst.msk [vmem:[#allocation5 + $0x18] sm:$0x3] %vm1061_vm4, %v2584_v45  ;;  %v2594_v30 = vsel %vm782_vm2, %v2584_v45, %v8588_v3 }
0x2526   :  { %v2595_v2 = vpack.c.bf16 %v2594_v30, %v2594_v30 }
0x2528   :  { %6513 = vmatmul.mubr.msk.bf16.vlgmr.msra.gmra.mxu0 %vm131_vm0, %v2595_v2 }
0x2529   :  { %2862 = vmatpush1.bf16.msra.mxu0 %v8533_v40  ;;  %2885 = vmatprep.mubr.bf16.mxu0 %v7689_v36 }
0x252a   :  { %2863 = vmatprep.subr.bf16.mxu0 %v8540_v43 }
0x252d   :  { %2864 = vmatpush1.bf16.msra.mxu0 %v8546_v44  ;;  %v8610_v44 = vld [vmem:[%s9705_s10] ss:$0 sm:$0xff] }
0x252e   :  { %2865 = vmatprep.subr.bf16.mxu0 %v8552_v35 }
0x2531   :  { %2866 = vmatpush1.bf16.msra.mxu0 %v8558_v17 }
0x2532   :  { %2867 = vmatprep.subr.bf16.mxu0 %v8564_v18  ;;  %v2592_v18 = vld [vmem:[#allocation3 + $0x1a] sm:$0x3] }
0x2535   :  { %2868 = vmatpush1.bf16.msra.mxu0 %v7668_v34 }
0x25e8   :  { %v2633_v41 = vpop.f32.mrf.mxu0 }
0x25e9   :  { %v2647_v40 = vadd.f32 %v2633_v41, %v8057_v32  ;;  %2668 = vrot.lane.b32.xlu1 %v2633_v41, %s7692_s8  ;;  %v2640_v37 = vadd.f32 %v2633_v41, %v2592_v18 }
0x25ea   :  { %v2635_v42 = vpop.f32.mrf.mxu0 }
0x25eb   :  { %2649 = vrot.lane.b32.xlu0 %v2647_v40, %s7688_s7  ;;  %v2689_v35 = vadd.f32 %v8610_v44, %v2635_v42  ;;  %v6514_v48 = vmul.f32 -1.442695, %v2640_v37 }
0x25ec   :  { %v2637_v43 = vpop.f32.mrf.mxu0 }
0x25ed   :  { %7253 = vpow2.f32 %v6514_v48 }
0x25ee   :  { %v2638_v17 = vpop.f32.mrf.mxu0 }
0x25ef   :  { %2691 = vrot.lane.b32.xlu0 %v2689_v35, %s7691_s29 }
0x25fa   :  { %v7254_v60 = vpop.eup %7253 }
0x25fb   :  { %v2644_v63 = vadd.f32 1.0, %v7254_v60 }
0x25fd   :  { %7255 = vrcp.f32 %v2644_v63  ;;  %v2719_v63 = vld [vmem:[#allocation3 + $0x1c] sm:$0x3] }
0x260a   :  { %v7256_v56 = vpop.eup %7255 }
0x260b   :  { %v2659_v58 = vsub.f32 1.0, %v7256_v56  ;;  %v2665_v47 = vmul.f32 %v7256_v56, %v8583_v38 }
0x265b   :  { %v2669_v0 = vpop.permute.xlu1 %2668 }
0x265c   :  { %v2671_v53 = vadd.f32 %v2669_v0, %v2593_v50 }
0x265d   :  { %v2650_v6 = vpop.permute.xlu0 %2649 }
0x265e   :  { %v6515_v59 = vmul.f32 -1.442695, %v2671_v53  ;;  %v2652_v61 = vmul.f32 %v7256_v56, %v2650_v6  ;;  %v2720_v6 = vld [vmem:[#allocation4 + $0x2] sm:$0x3] }
0x2660   :  { %7257 = vpow2.f32 %v6515_v59  ;;  %2654 = vrot.lane.b32.xlu1 %v2652_v61, %s7688_s7 }
0x2661   :  { %v2692_v8 = vpop.permute.xlu0 %2691 }
0x266d   :  { %v7258_v23 = vpop.eup %7257 }
0x266e   :  { %v2675_v5 = vadd.f32 1.0, %v7258_v23 }
0x2670   :  { %7259 = vrcp.f32 %v2675_v5 }
0x267d   :  { %v7260_v7 = vpop.eup %7259 }
0x267e   :  { %v2694_v10 = vmul.f32 %v7260_v7, %v2692_v8 }
0x2680   :  { %2696 = vrot.lane.b32.xlu0 %v2694_v10, %s7688_s7 }
0x2684   :  { %2679 = vrot.lane.b32.xlu0 %v2635_v42, %s7692_s8 }
0x26d2   :  { %v2655_v21 = vpop.permute.xlu1 %2654 }
0x26d3   :  { %v2657_v12 = vadd.f32 %v2655_v21, %v2592_v18 }
0x26d5   :  { %7261 = vtanh.f32 %v2657_v12 }
0x26e2   :  { %v7262_v13 = vpop.eup %7261 }
0x26e3   :  { %2661 = vrot.lane.b32.xlu1 %v7262_v13, %s7691_s29 }
0x26f2   :  { %v2697_v14 = vpop.permute.xlu0 %2696 }
0x26f3   :  { %v2699_v57 = vadd.f32 %v2697_v14, %v2593_v50 }
0x26f5   :  { %7263 = vtanh.f32 %v2699_v57 }
0x26f6   :  { %v2680_v26 = vpop.permute.xlu0 %2679 }
0x26f7   :  { %v2682_v22 = vadd.f32 %v2680_v26, %v2593_v50 }
0x26f9   :  { %v6516_v27 = vmul.f32 -1.442695, %v2682_v22 }
0x26fb   :  { %7265 = vpow2.f32 %v6516_v27 }
0x2702   :  { %v7264_v49 = vpop.eup %7263 }
0x2703   :  { %2703 = vrot.lane.b32.xlu1 %v7264_v49, %s7691_s29 }
0x2708   :  { %v7266_v28 = vpop.eup %7265 }
0x2709   :  { %v2686_v29 = vadd.f32 1.0, %v7266_v28 }
0x270b   :  { %7267 = vrcp.f32 %v2686_v29 }
0x2718   :  { %v7268_v45 = vpop.eup %7267 }
0x2719   :  { %v2701_v2 = vsub.f32 1.0, %v7268_v45  ;;  %v2707_v41 = vmul.f32 %v7268_v45, %v8588_v3 }
0x2755   :  { %v2662_v39 = vpop.permute.xlu1 %2661 }
0x2756   :  { %v2664_v20 = vmul.f32 %v2662_v39, %v2659_v58 }
0x2758   :  { %v8620_v24 = vadd.f32 %v2665_v47, %v2664_v20 }
0x275a   :  { %2710 = vrot.lane.b32.xlu0 %v8620_v24, %s7691_s29 }
0x2775   :  { %v2704_v30 = vpop.permute.xlu1 %2703 }
0x2776   :  { %v2706_v34 = vmul.f32 %v2704_v30, %v2701_v2 }
0x2778   :  { %v8625_v38 = vadd.f32 %v2707_v41, %v2706_v34 }
0x27cc   :  { %v2711_v40 = vpop.permute.xlu0 %2710 }
0x27cd   :  { %2713 = vst.msk [vmem:[#allocation5 + $0x1a] sm:$0x3] %vm1061_vm4, %v2711_v40  ;;  %v2721_v42 = vsel %vm782_vm2, %v2711_v40, %v8625_v38 }
0x27ce   :  { %v2722_v43 = vpack.c.bf16 %v2721_v42, %v2721_v42 }
0x27d0   :  { %6517 = vmatmul.mubr.msk.bf16.vlgmr.msra.gmra.mxu1 %vm131_vm0, %v2722_v43 }
0x27d1   :  { %3101 = vmatprep.mubr.bf16.mxu1 %v7689_v36 }
0x2890   :  { %v2760_v35 = vpop.f32.mrf.mxu1 }
0x2891   :  { %v2774_v17 = vadd.f32 %v2760_v35, %v8057_v32  ;;  %2795 = vrot.lane.b32.xlu0 %v2760_v35, %s7692_s8  ;;  %v2767_v50 = vadd.f32 %v2760_v35, %v2719_v63 }
0x2892   :  { %v2762_v18 = vpop.f32.mrf.mxu1 }
0x2893   :  { %2776 = vrot.lane.b32.xlu1 %v2774_v17, %s7688_s7  ;;  %v2816_v48 = vadd.f32 %v8610_v44, %v2762_v18  ;;  %v6518_v0 = vmul.f32 -1.442695, %v2767_v50 }
0x2894   :  { %v2764_v37 = vpop.f32.mrf.mxu1 }
0x2895   :  { %7269 = vpow2.f32 %v6518_v0 }
0x2896   :  { %v2765_v60 = vpop.f32.mrf.mxu1 }
0x2897   :  { %2818 = vrot.lane.b32.xlu1 %v2816_v48, %s7691_s29 }
0x28a2   :  { %v7270_v53 = vpop.eup %7269 }
0x28a3   :  { %v2771_v56 = vadd.f32 1.0, %v7270_v53 }
0x28a5   :  { %7271 = vrcp.f32 %v2771_v56 }
0x28b2   :  { %v7272_v23 = vpop.eup %7271 }
0x28b3   :  { %v2786_v26 = vsub.f32 1.0, %v7272_v23  ;;  %v2792_v27 = vmul.f32 %v7272_v23, %v8620_v24 }
0x2903   :  { %v2796_v59 = vpop.permute.xlu0 %2795 }
0x2904   :  { %v2798_v61 = vadd.f32 %v2796_v59, %v2720_v6 }
0x2905   :  { %v2777_v5 = vpop.permute.xlu1 %2776 }
0x2906   :  { %v6519_v7 = vmul.f32 -1.442695, %v2798_v61  ;;  %v2779_v8 = vmul.f32 %v7272_v23, %v2777_v5 }
0x2908   :  { %7273 = vpow2.f32 %v6519_v7  ;;  %2781 = vrot.lane.b32.xlu0 %v2779_v8, %s7688_s7  ;;  %v2847_v7 = vld [vmem:[#allocation4] sm:$0x3] }
0x2909   :  { %v2819_v13 = vpop.permute.xlu1 %2818 }
0x2915   :  { %v7274_v10 = vpop.eup %7273 }
0x2916   :  { %v2802_v21 = vadd.f32 1.0, %v7274_v10 }
0x2918   :  { %7275 = vrcp.f32 %v2802_v21 }
0x2925   :  { %v7276_v12 = vpop.eup %7275 }
0x2926   :  { %v2821_v14 = vmul.f32 %v7276_v12, %v2819_v13 }
0x2928   :  { %2823 = vrot.lane.b32.xlu1 %v2821_v14, %s7688_s7 }
0x292c   :  { %2806 = vrot.lane.b32.xlu1 %v2762_v18, %s7692_s8 }
0x297a   :  { %v2782_v57 = vpop.permute.xlu0 %2781 }
0x297b   :  { %v2784_v49 = vadd.f32 %v2782_v57, %v2719_v63 }
0x297d   :  { %7277 = vtanh.f32 %v2784_v49 }
0x298a   :  { %v7278_v58 = vpop.eup %7277 }
0x298b   :  { %2788 = vrot.lane.b32.xlu0 %v7278_v58, %s7691_s29 }
0x299a   :  { %v2824_v39 = vpop.permute.xlu1 %2823 }
0x299b   :  { %v2826_v47 = vadd.f32 %v2824_v39, %v2720_v6 }
0x299d   :  { %7279 = vtanh.f32 %v2826_v47 }
0x299e   :  { %v2807_v45 = vpop.permute.xlu1 %2806 }
0x299f   :  { %v2809_v30 = vadd.f32 %v2807_v45, %v2720_v6  ;;  %v2846_v6 = vld [vmem:[#allocation3 + $0x1e] sm:$0x3] }
0x29a1   :  { %v6520_v2 = vmul.f32 -1.442695, %v2809_v30 }
0x29a3   :  { %7281 = vpow2.f32 %v6520_v2 }
0x29aa   :  { %v7280_v20 = vpop.eup %7279 }
0x29ab   :  { %2830 = vrot.lane.b32.xlu0 %v7280_v20, %s7691_s29 }
0x29b0   :  { %v7282_v34 = vpop.eup %7281 }
0x29b1   :  { %v2813_v41 = vadd.f32 1.0, %v7282_v34 }
0x29b3   :  { %7283 = vrcp.f32 %v2813_v41 }
0x29c0   :  { %v7284_v40 = vpop.eup %7283 }
0x29c1   :  { %v2828_v43 = vsub.f32 1.0, %v7284_v40  ;;  %v2834_v17 = vmul.f32 %v7284_v40, %v8625_v38 }
0x29fd   :  { %v2789_v22 = vpop.permute.xlu0 %2788 }
0x29fe   :  { %v2791_v28 = vmul.f32 %v2789_v22, %v2786_v26 }
0x2a00   :  { %v8643_v29 = vadd.f32 %v2792_v27, %v2791_v28 }
0x2a02   :  { %2837 = vrot.lane.b32.xlu1 %v8643_v29, %s7691_s29 }
0x2a1d   :  { %v2831_v42 = vpop.permute.xlu0 %2830 }
0x2a1e   :  { %v2833_v35 = vmul.f32 %v2831_v42, %v2828_v43 }
0x2a20   :  { %v8648_v24 = vadd.f32 %v2834_v17, %v2833_v35 }
0x2a74   :  { %v2838_v18 = vpop.permute.xlu1 %2837 }
0x2a75   :  { %2840 = vst.msk [vmem:[#allocation5 + $0x1c] sm:$0x3] %vm1061_vm4, %v2838_v18  ;;  %v2848_v37 = vsel %vm782_vm2, %v2838_v18, %v8648_v24 }
0x2a76   :  { %v2849_v48 = vpack.c.bf16 %v2848_v37, %v2848_v37 }
0x2a78   :  { %6521 = vmatmul.mubr.msk.bf16.vlgmr.msra.gmra.mxu0 %vm131_vm0, %v2849_v48  ;;  %v8717_v48 = vld [vmem:[%s9707_s13 + $0x30] ss:$8 sps:$4 sm:$0xff]  }
0x2a79   :  { %3245 = vmatprep.mubr.bf16.mxu0 %v7689_v36 }
0x2b38   :  { %v2887_v60 = vpop.f32.mrf.mxu0 }
0x2b39   :  { %2922 = vrot.lane.b32.xlu0 %v2887_v60, %s7692_s8  ;;  %v2901_v56 = vadd.f32 %v2887_v60, %v8057_v32  ;;  %v2894_v59 = vadd.f32 %v2887_v60, %v2846_v6 }
0x2b3a   :  { %v2889_v63 = vpop.f32.mrf.mxu0 }
0x2b3b   :  { %v2943_v50 = vadd.f32 %v8610_v44, %v2889_v63  ;;  %v6522_v61 = vmul.f32 -1.442695, %v2894_v59  ;;  %v7030_v59 = vld [vmem:[%s9708_s11 + $0x24] ss:$8 sps:$4 sm:$0xff]  }
0x2b3c   :  { %v2891_v0 = vpop.f32.mrf.mxu0 }
0x2b3d   :  { %2945 = vrot.lane.b32.xlu1 %v2943_v50, %s7691_s29  ;;  %7285 = vpow2.f32 %v6522_v61  ;;  %v8745_v0 = vld [vmem:[%s9707_s13 + $0x10] ss:$8 sps:$4 sm:$0xff]  }
0x2b3e   :  { %v2892_v53 = vpop.f32.mrf.mxu0 }
0x2b3f   :  { %v7025_v53 = vld [vmem:[%s9708_s11 + $0x30] ss:$8 sps:$4 sm:$0xff]  }
0x2b41   :  { %2903 = vrot.lane.b32.xlu1 %v2901_v56, %s7688_s7  ;;  %v7027_v56 = vld [vmem:[%s9708_s11 + $0x34] ss:$8 sps:$4 sm:$0xff]  }
0x2b42   :  { %3077 = vmatprep.subr.bf16.mxu1 %v7027_v56 }
0x2b43   :  { %3078 = vmatpush1.bf16.msra.mxu1 %v7025_v53 }
0x2b44   :  { %3079 = vmatprep.subr.bf16.mxu1 %v7030_v59 }
0x2b4a   :  { %v7286_v23 = vpop.eup %7285 }
0x2b4b   :  { %v2898_v5 = vadd.f32 1.0, %v7286_v23  ;;  %v7028_v23 = vld [vmem:[%s9708_s11 + $0x20] ss:$8 sps:$4 sm:$0xff]  }
0x2b4c   :  { %3080 = vmatpush1.bf16.msra.mxu1 %v7028_v23 }
0x2b4d   :  { %7287 = vrcp.f32 %v2898_v5  ;;  %v7033_v5 = vld [vmem:[%s9708_s11 + $0x14] ss:$8 sps:$4 sm:$0xff]  }
0x2b4e   :  { %3081 = vmatprep.subr.bf16.mxu1 %v7033_v5 }
0x2b5a   :  { %v8660_v12 = vpop.eup %7287 }
0x2b5b   :  { %v2913_v17 = vsub.f32 1.0, %v8660_v12  ;;  %v2919_v60 = vmul.f32 %v8660_v12, %v8643_v29 }
0x2bab   :  { %v2923_v8 = vpop.permute.xlu0 %2922 }
0x2bac   :  { %v2925_v10 = vadd.f32 %v2923_v8, %v2847_v7  ;;  %v7031_v8 = vld [vmem:[%s9708_s11 + $0x10] ss:$8 sps:$4 sm:$0xff]  }
0x2bad   :  { %3082 = vmatpush1.bf16.msra.mxu1 %v7031_v8 }
0x2bae   :  { %v6523_v21 = vmul.f32 -1.442695, %v2925_v10  ;;  %v7034_v10 = vld [vmem:[%s9708_s11] ss:$8 sps:$4 sm:$0xff]  }
0x2baf   :  { %v2946_v44 = vpop.permute.xlu1 %2945 }
0x2bb0   :  { %7289 = vpow2.f32 %v6523_v21 }
0x2bb3   :  { %v2904_v13 = vpop.permute.xlu1 %2903 }
0x2bb4   :  { %v2906_v32 = vmul.f32 %v8660_v12, %v2904_v13 }
0x2bb6   :  { %2908 = vrot.lane.b32.xlu1 %v2906_v32, %s7688_s7 }
0x2bba   :  { %2080 = vrot.lane.b32.xlu1 %v8429_v4, %s7691_s29 }
0x2bbd   :  { %v7290_v14 = vpop.eup %7289 }
0x2bbe   :  { %v2929_v57 = vadd.f32 1.0, %v7290_v14  ;;  %2334 = vrot.lane.b32.xlu1 %v8491_v33, %s7691_s29 }
0x2bc0   :  { %7291 = vrcp.f32 %v2929_v57 }
0x2bc2   :  { %2588 = vrot.lane.b32.xlu1 %v8588_v3, %s7691_s29 }
0x2bc6   :  { %2842 = vrot.lane.b32.xlu1 %v8648_v24, %s7691_s29 }
0x2bcd   :  { %v7292_v49 = vpop.eup %7291 }
0x2bce   :  { %v2948_v58 = vmul.f32 %v7292_v49, %v2946_v44  ;;  %v8808_v49 = vld [vmem:[%s9709_s14] ss:$0 sm:$0xff] }
0x2bd0   :  { %2950 = vrot.lane.b32.xlu0 %v2948_v58, %s7688_s7 }
0x2bd4   :  { %2933 = vrot.lane.b32.xlu0 %v2889_v63, %s7692_s8  ;;  %v8734_v63 = vld [vmem:[%s9707_s13 + $0x20] ss:$8 sps:$4 sm:$0xff]  }
0x2c28   :  { %v2909_v39 = vpop.permute.xlu1 %2908 }
0x2c29   :  { %v2911_v4 = vadd.f32 %v2909_v39, %v2846_v6  ;;  %v8759_v6 = vld [vmem:[%s9707_s13 + $0x4] ss:$8 sps:$4 sm:$0xff]  }
0x2c2b   :  { %7293 = vtanh.f32 %v2911_v4 }
0x2c2c   :  { %v2081_v47 = vpop.permute.xlu1 %2080 }
0x2c2d   :  { %2083 = vst.msk [vmem:[#allocation6 + $0xe] sm:$0x3] %vm1061_vm4, %v2081_v47 }
0x2c30   :  { %v2335_v33 = vpop.permute.xlu1 %2334 }
0x2c31   :  { %2337 = vst.msk [vmem:[#allocation6 + $0xa] sm:$0x3] %vm1061_vm4, %v2335_v33 }
0x2c34   :  { %v2589_v20 = vpop.permute.xlu1 %2588 }
0x2c35   :  { %2591 = vst.msk [vmem:[#allocation6 + $0x6] sm:$0x3] %vm1061_vm4, %v2589_v20 }
0x2c38   :  { %v7294_v3 = vpop.eup %7293  ;;  %v2843_v26 = vpop.permute.xlu1 %2842 }
0x2c39   :  { %2845 = vst.msk [vmem:[#allocation6 + $0x2] sm:$0x3] %vm1061_vm4, %v2843_v26  ;;  %2915 = vrot.lane.b32.xlu1 %v7294_v3, %s7691_s29 }
0x2c3d   :  { %1191 = vrot.lane.b32.xlu1 %v8155_v55, %s7691_s29 }
0x2c41   :  { %1445 = vrot.lane.b32.xlu1 %v8219_v31, %s7691_s29 }
0x2c42   :  { %v2951_v22 = vpop.permute.xlu0 %2950 }
0x2c43   :  { %v2953_v27 = vadd.f32 %v2951_v22, %v2847_v7 }
0x2c45   :  { %7295 = vtanh.f32 %v2953_v27  ;;  %1699 = vrot.lane.b32.xlu1 %v8320_v25, %s7691_s29 }
0x2c46   :  { %v2934_v55 = vpop.permute.xlu0 %2933 }
0x2c47   :  { %v2936_v31 = vadd.f32 %v2934_v55, %v2847_v7  ;;  %v8776_v7 = vld [vmem:[%s9707_s13] ss:$8 sps:$4 sm:$0xff]   ;;  %v2974_v55 = vld [vmem:[#allocation5 + $0x8] sm:$0xff] }
0x2c49   :  { %1953 = vrot.lane.b32.xlu1 %v8394_v16, %s7691_s29  ;;  %v6524_v25 = vmul.f32 -1.442695, %v2936_v31 }
0x2c4b   :  { %7297 = vpow2.f32 %v6524_v25 }
0x2c52   :  { %v7296_v28 = vpop.eup %7295 }
0x2c53   :  { %2957 = vrot.lane.b32.xlu0 %v7296_v28, %s7691_s29  ;;  %v2973_v28 = vld [vmem:[#allocation5] sm:$0xff] }
0x2c57   :  { %2207 = vrot.lane.b32.xlu0 %v8460_v62, %s7691_s29 }
0x2c58   :  { %v7298_v45 = vpop.eup %7297 }
0x2c59   :  { %v2940_v62 = vadd.f32 1.0, %v7298_v45 }
0x2c5b   :  { %2461 = vrot.lane.b32.xlu0 %v8524_v15, %s7691_s29  ;;  %7299 = vrcp.f32 %v2940_v62 }
0x2c5f   :  { %2715 = vrot.lane.b32.xlu0 %v8625_v38, %s7691_s29 }
0x2c63   :  { %1064 = vrot.lane.b32.xlu0 %v8125_v9, %s7691_s29 }
0x2c67   :  { %1318 = vrot.lane.b32.xlu0 %v8186_v1, %s7691_s29 }
0x2c68   :  { %v7300_v1 = vpop.eup %7299 }
0x2c69   :  { %v2955_v2 = vsub.f32 1.0, %v7300_v1  ;;  %v2961_v41 = vmul.f32 %v7300_v1, %v8648_v24  ;;  %v8712_v24 = vld [vmem:[%s9707_s13 + $0x34] ss:$8 sps:$4 sm:$0xff]  }
0x2c6a   :  { %3221 = vmatprep.subr.bf16.mxu0 %v8712_v24 }
0x2c6b   :  { %3222 = vmatpush1.bf16.msra.mxu0 %v8717_v48 }
0x2cab   :  { %v2916_v16 = vpop.permute.xlu1 %2915 }
0x2cac   :  { %v2918_v18 = vmul.f32 %v2916_v16, %v2913_v17 }
0x2cae   :  { %v2920_v29 = vadd.f32 %v2919_v60, %v2918_v18 }
0x2caf   :  { %v1192_v30 = vpop.permute.xlu1 %1191 }
0x2cb0   :  { %1194 = vst.msk [vmem:[#allocation6 + $0x1c] sm:$0x3] %vm1061_vm4, %v1192_v30 }
0x2cb3   :  { %v1446_v15 = vpop.permute.xlu1 %1445 }
0x2cb4   :  { %1448 = vst.msk [vmem:[#allocation6 + $0x18] sm:$0x3] %vm1061_vm4, %v1446_v15 }
0x2cb7   :  { %v1700_v38 = vpop.permute.xlu1 %1699 }
0x2cb8   :  { %1702 = vst.msk [vmem:[#allocation6 + $0x14] sm:$0x3] %vm1061_vm4, %v1700_v38 }
0x2cbb   :  { %v1954_v9 = vpop.permute.xlu1 %1953 }
0x2cbc   :  { %1956 = vst.msk [vmem:[#allocation6 + $0x10] sm:$0x3] %vm1061_vm4, %v1954_v9  ;;  %v2975_v9 = vld [vmem:[#allocation5 + $0x10] sm:$0xff] }
0x2cc5   :  { %v2958_v34 = vpop.permute.xlu0 %2957 }
0x2cc6   :  { %v2960_v40 = vmul.f32 %v2958_v34, %v2955_v2 }
0x2cc8   :  { %v2962_v42 = vadd.f32 %v2961_v41, %v2960_v40  ;;  %v3011_v40 = vld [vmem:[%s9710_s12] sm:$0x3]  ;;  %s7701_s12 = smov 40  }
0x2cc9   :  { %v2208_v43 = vpop.permute.xlu0 %2207 }
0x2cca   :  { %2210 = vst.msk [vmem:[#allocation6 + $0xc] sm:$0x3] %vm1061_vm4, %v2208_v43  ;;  %2969 = vrot.lane.b32.xlu0 %v2962_v42, %s7691_s29  ;;  %v3016_v42 = vrot.slane %v3011_v40, %v754_v52  ;;  %v3020_v43 = vrot.slane %v3011_v40, %v758_v54 }
0x2ccd   :  { %v2462_v35 = vpop.permute.xlu0 %2461 }
0x2cce   :  { %2464 = vst.msk [vmem:[#allocation6 + $0x8] sm:$0x3] %vm1061_vm4, %v2462_v35  ;;  %1572 = vrot.lane.b32.xlu0 %v8254_v19, %s7691_s29  ;;  %v8728_v19 = vld [vmem:[%s9707_s13 + $0x24] ss:$8 sps:$4 sm:$0xff]  }
0x2ccf   :  { %3223 = vmatprep.subr.bf16.mxu0 %v8728_v19 }
0x2cd0   :  { %3224 = vmatpush1.bf16.msra.mxu0 %v8734_v63 }
0x2cd1   :  { %v2716_v37 = vpop.permute.xlu0 %2715 }
0x2cd2   :  { %2718 = vst.msk [vmem:[#allocation6 + $0x4] sm:$0x3] %vm1061_vm4, %v2716_v37  ;;  %1826 = vrot.lane.b32.xlu0 %v8361_v11, %s7691_s29  ;;  %v8740_v11 = vld [vmem:[%s9707_s13 + $0x14] ss:$8 sps:$4 sm:$0xff]  }
0x2cd3   :  { %3225 = vmatprep.subr.bf16.mxu0 %v8740_v11 }
0x2cd4   :  { %3226 = vmatpush1.bf16.msra.mxu0 %v8745_v0 }
0x2cd5   :  { %v1065_v50 = vpop.permute.xlu0 %1064  ;;  %3227 = vmatprep.subr.bf16.mxu0 %v8759_v6  ;;  %v2978_v32 = vld [vmem:[#allocation6 + $0x8] sm:$0xff] }
0x2cd6   :  { %1067 = vst.msk [vmem:[#allocation6 + $0x1e] sm:$0x3] %vm1061_vm4, %v1065_v50  ;;  %2964 = vrot.lane.b32.xlu0 %v2920_v29, %s7691_s29 }
0x2cd8   :  { %3228 = vmatpush1.bf16.msra.mxu0 %v8776_v7 }
0x2cd9   :  { %v1319_v61 = vpop.permute.xlu0 %1318  ;;  %3484 = vmatprep.subr.bf16.mxu0 %v8712_v24 }
0x2cda   :  { %1321 = vst.msk [vmem:[#allocation6 + $0x1a] sm:$0x3] %vm1061_vm4, %v1319_v61 }
0x2cdb   :  { %3246 = vmatmul.mubr.bf16.vlgmr.msra.gmra.mxu0 %v7690_v46  ;;  %v7036_v46 = vld [vmem:[%s9708_s11 + $0x4] ss:$8 sps:$4 sm:$0xff]   ;;  %s7697_s11 = smov 112  }
0x2cdc   :  { %3485 = vmatpush1.bf16.msra.mxu0 %v8717_v48  ;;  %3508 = vmatprep.mubr.bf16.mxu0 %v7689_v36 }
0x2cdd   :  { %3486 = vmatprep.subr.bf16.mxu0 %v8728_v19  ;;  %3083 = vmatprep.subr.bf16.mxu1 %v7036_v46 }
0x2cde   :  { %3084 = vmatpush1.bf16.msra.mxu1 %v7034_v10 }
0x2cdf   :  { %3357 = vmatprep.subr.bf16.mxu1 %v8712_v24 }
0x2ce0   :  { %3487 = vmatpush1.bf16.msra.mxu0 %v8734_v63 }
0x2ce1   :  { %3488 = vmatprep.subr.bf16.mxu0 %v8740_v11  ;;  %v2980_v39 = vld [vmem:[#allocation6 + $0x18] sm:$0xff] }
0x2ce4   :  { %3489 = vmatpush1.bf16.msra.mxu0 %v8745_v0 }
0x2ce5   :  { %3490 = vmatprep.subr.bf16.mxu0 %v8759_v6 }
0x2ce8   :  { %3491 = vmatpush1.bf16.msra.mxu0 %v8776_v7 }
0x2ce9   :  { %3738 = vmatprep.subr.bf16.mxu0 %v8712_v24 }
0x2d3c   :  { %v2970_v21 = vpop.permute.xlu0 %2969 }
0x2d3d   :  { %2972 = vst.msk [vmem:[#allocation6] sm:$0x3] %vm1061_vm4, %v2970_v21 }
0x2d40   :  { %v1573_v44 = vpop.permute.xlu0 %1572 }
0x2d41   :  { %1575 = vst.msk [vmem:[#allocation6 + $0x16] sm:$0x3] %vm1061_vm4, %v1573_v44 }
0x2d44   :  { %v1827_v12 = vpop.permute.xlu0 %1826  ;;  %v2977_v13 = vld [vmem:[#allocation6] sm:$0xff] }
0x2d45   :  { %1829 = vst.msk [vmem:[#allocation6 + $0x12] sm:$0x3] %vm1061_vm4, %v1827_v12  ;;  %v6931_v14 = vpack.i.bf16 %v2978_v32, %v2977_v13 }
0x2d47   :  { %6932 = vrot.lane.b32.xlu1 %v6931_v14, %s7692_s8 }
0x2d48   :  { %v2965_v57 = vpop.permute.xlu0 %2964 }
0x2d49   :  { %2967 = vst.msk [vmem:[#allocation5 + $0x1e] sm:$0x3] %vm1061_vm4, %v2965_v57 }
0x2d4b   :  { %3266 = vrot.lane.b32.xlu1 %v8808_v49, %s7688_s7 }
0x2d4c   :  { %v2979_v58 = vld [vmem:[#allocation6 + $0x10] sm:$0xff] }
0x2d4d   :  { %v6936_v4 = vpack.i.bf16 %v2980_v39, %v2979_v58 }
0x2d4f   :  { %6937 = vrot.lane.b32.xlu0 %v6936_v4, %s7692_s8 }
0x2d50   :  { %v2976_v1 = vld [vmem:[#allocation5 + $0x18] sm:$0xff] }
0x2d9b   :  { %v8814_v47 = vpop.f32.mrf.mxu0 }
0x2d9d   :  { %v8816_v33 = vpop.f32.mrf.mxu0 }
0x2d9e   :  { %v3312_v21 = vadd.f32 %v8808_v49, %v8816_v33 }
0x2d9f   :  { %v3251_v20 = vpop.f32.mrf.mxu0 }
0x2da1   :  { %v3252_v3 = vpop.f32.mrf.mxu0 }
0x2db9   :  { %v6933_v26 = vpop.permute.xlu1 %6932 }
0x2dba   :  { %v6935_v22 = vunpack.i.h.bf16 %v6933_v26  ;;  %v6934_v27 = vunpack.i.l.bf16 %v6933_v26 }
0x2dbc   :  { %v2998_v31 = vsel %vm782_vm2, %v2974_v55, %v6935_v22  ;;  %v2997_v25 = vsel %vm782_vm2, %v2973_v28, %v6934_v27 }
0x2dbd   :  { %v3001_v16 = vpack.c.bf16 %v2998_v31, %v2997_v25  ;;  %v8820_v45 = vpop.permute.xlu1 %3266 }
0x2dbe   :  { %v3269_v30 = vadd.f32 %v8820_v45, %v8814_v47 }
0x2dbf   :  { %6533 = vmatmul.mubr.msk.bf16.vlgmr.msra.gmra.mxu1 %vm131_vm0, %v3001_v16 }
0x2dc0   :  { %3111 = vmatprep.mubr.bf16.mxu1 %v7689_v36  ;;  %3271 = vrot.lane.b32.xlu0 %v3269_v30, %s7688_s7 }
0x2dc1   :  { %v6938_v62 = vpop.permute.xlu0 %6937  ;;  %3358 = vmatpush1.bf16.msra.mxu1 %v8717_v48 }
0x2dc2   :  { %v6940_v15 = vunpack.i.h.bf16 %v6938_v62  ;;  %v6939_v38 = vunpack.i.l.bf16 %v6938_v62  ;;  %3359 = vmatprep.subr.bf16.mxu1 %v8728_v19 }
0x2dc4   :  { %v3000_v2 = vsel %vm782_vm2, %v2976_v1, %v6940_v15  ;;  %v2999_v34 = vsel %vm782_vm2, %v2975_v9, %v6939_v38 }
0x2dc5   :  { %v3002_v41 = vpack.c.bf16 %v3000_v2, %v2999_v34  ;;  %3360 = vmatpush1.bf16.msra.mxu1 %v8734_v63 }
0x2dc6   :  { %3361 = vmatprep.subr.bf16.mxu1 %v8740_v11 }
0x2dc7   :  { %6534 = vmatmul.mubr.msk.bf16.gmra.mxu1 %vm131_vm0, %v3002_v41 }
0x2dc8   :  { %3381 = vmatprep.mubr.bf16.mxu1 %v7689_v36 }
0x2dc9   :  { %3362 = vmatpush1.bf16.msra.mxu1 %v8745_v0 }
0x2dca   :  { %3363 = vmatprep.subr.bf16.mxu1 %v8759_v6 }
0x2dcd   :  { %3364 = vmatpush1.bf16.msra.mxu1 %v8776_v7 }
0x2dce   :  { %3611 = vmatprep.subr.bf16.mxu1 %v8712_v24 }
0x2e32   :  { %v3272_v13 = vpop.permute.xlu0 %3271 }
0x2e7f   :  { %v3103_v35 = vpop.f32.mrf.mxu1 }
0x2e80   :  { %v8846_v17 = vadd.f32 %v3103_v35, %v3016_v42 }
0x2e81   :  { %v3105_v18 = vpop.f32.mrf.mxu1 }
0x2e82   :  { %3122 = vst.msk [vmem:[#allocation3] sm:$0xff] %vm842_vm3, %v8846_v17  ;;  %v8850_v37 = vadd.f32 %v3105_v18, %v3020_v43 }
0x2e83   :  { %v3107_v60 = vpop.f32.mrf.mxu1 }
0x2e84   :  { %v8852_v29 = vadd.f32 %v3107_v60, %v3016_v42 }
0x2e85   :  { %v3109_v50 = vpop.f32.mrf.mxu1 }
0x2e86   :  { %3123 = vst.msk [vmem:[#allocation3 + $0x8] sm:$0xff] %vm842_vm3, %v8852_v29  ;;  %v8856_v52 = vadd.f32 %v3109_v50, %v3020_v43 }
0x2e87   :  { %v3113_v51 = vpop.f32.mrf.mxu1 }
0x2e88   :  { %v8858_v54 = vadd.f32 %v3113_v51, %v3016_v42 }
0x2e89   :  { %v3115_v53 = vpop.f32.mrf.mxu1  ;;  %v3171_v56 = vld [vmem:[#allocation3] sm:$0x3] }
0x2e8a   :  { %3124 = vst.msk [vmem:[#allocation3 + $0x10] sm:$0xff] %vm842_vm3, %v8858_v54  ;;  %v8862_v59 = vadd.f32 %v3115_v53, %v3020_v43  ;;  %v3254_v61 = vadd.f32 %v8814_v47, %v3171_v56 }
0x2e8b   :  { %v3117_v23 = vpop.f32.mrf.mxu1 }
0x2e8c   :  { %v3118_v5 = vadd.f32 %v3117_v23, %v3016_v42  ;;  %v6543_v8 = vmul.f32 -1.442695, %v3254_v61 }
0x2e8d   :  { %v3119_v46 = vpop.f32.mrf.mxu1 }
0x2e8e   :  { %3125 = vst.msk [vmem:[#allocation3 + $0x18] sm:$0xff] %vm842_vm3, %v3118_v5  ;;  %v3120_v10 = vadd.f32 %v3119_v46, %v3020_v43  ;;  %3146 = vrot.lane.b32.xlu1 %v3118_v5, %s7692_s8  ;;  %7301 = vpow2.f32 %v6543_v8 }
0x2e90   :  { %3148 = vrot.lane.b32.xlu0 %v3120_v10, %s7692_s8 }
0x2e92   :  { %3290 = vrot.lane.b32.xlu1 %v8814_v47, %s7692_s8 }
0x2e94   :  { %3314 = vrot.lane.b32.xlu0 %v3312_v21, %s7691_s29 }
0x2e9b   :  { %v7302_v44 = vpop.eup %7301 }
0x2e9c   :  { %v3258_v12 = vadd.f32 1.0, %v7302_v44 }
0x2e9e   :  { %7303 = vrcp.f32 %v3258_v12  ;;  %v3342_v12 = vld [vmem:[#allocation3 + $0x2] sm:$0x3] }
0x2eab   :  { %v7304_v32 = vpop.eup %7303 }
0x2eac   :  { %v3274_v14 = vmul.f32 %v7304_v32, %v3272_v13  ;;  %v3281_v62 = vsub.f32 1.0, %v7304_v32  ;;  %v3287_v9 = vmul.f32 0.0, %v7304_v32 }
0x2eae   :  { %3276 = vrot.lane.b32.xlu1 %v3274_v14, %s7688_s7 }
0x2f00   :  { %v3147_v57 = vpop.permute.xlu1 %3146 }
0x2f02   :  { %v3149_v58 = vpop.permute.xlu0 %3148 }
0x2f03   :  { %v3153_v39 = vsel %vm782_vm2, %v3147_v57, %v3149_v58 }
0x2f04   :  { %3161 = vst.msk [vmem:[#allocation4 + $0x18] sm:$0xff] %vm842_vm3, %v3153_v39  ;;  %v3291_v4 = vpop.permute.xlu1 %3290 }
0x2f06   :  { %v3315_v31 = vpop.permute.xlu0 %3314 }
0x2f0b   :  { %v3172_v20 = vld [vmem:[#allocation4 + $0x1e] sm:$0x3]  ;;  %v3343_v58 = vld [vmem:[#allocation4 + $0x1c] sm:$0x3] }
0x2f0c   :  { %v3293_v3 = vadd.f32 %v3291_v4, %v3172_v20 }
0x2f0e   :  { %v6545_v47 = vmul.f32 -1.442695, %v3293_v3 }
0x2f10   :  { %7305 = vpow2.f32 %v6545_v47 }
0x2f1d   :  { %v7306_v26 = vpop.eup %7305 }
0x2f1e   :  { %v3297_v22 = vadd.f32 1.0, %v7306_v26 }
0x2f20   :  { %7307 = vrcp.f32 %v3297_v22  ;;  %v3277_v27 = vpop.permute.xlu1 %3276 }
0x2f21   :  { %v3279_v28 = vadd.f32 %v3277_v27, %v3171_v56 }
0x2f23   :  { %7309 = vtanh.f32 %v3279_v28 }
0x2f2d   :  { %v7308_v55 = vpop.eup %7307 }
0x2f2e   :  { %v3317_v25 = vmul.f32 %v7308_v55, %v3315_v31 }
0x2f30   :  { %v7310_v16 = vpop.eup %7309  ;;  %3319 = vrot.lane.b32.xlu0 %v3317_v25, %s7688_s7 }
0x2f31   :  { %3283 = vrot.lane.b32.xlu1 %v7310_v16, %s7691_s29 }
0x2f34   :  { %3301 = vrot.lane.b32.xlu0 %v8816_v33, %s7692_s8 }
0x2fa2   :  { %v3320_v30 = vpop.permute.xlu0 %3319 }
0x2fa3   :  { %v3322_v15 = vadd.f32 %v3320_v30, %v3172_v20  ;;  %v3284_v38 = vpop.permute.xlu1 %3283 }
0x2fa4   :  { %v3286_v1 = vmul.f32 %v3284_v38, %v3281_v62 }
0x2fa5   :  { %7311 = vtanh.f32 %v3322_v15 }
0x2fa6   :  { %v8880_v2 = vadd.f32 %v3287_v9, %v3286_v1  ;;  %v3302_v41 = vpop.permute.xlu0 %3301 }
0x2fa7   :  { %v3304_v40 = vadd.f32 %v3302_v41, %v3172_v20 }
0x2fa8   :  { %3333 = vrot.lane.b32.xlu0 %v8880_v2, %s7691_s29 }
0x2fa9   :  { %v6546_v42 = vmul.f32 -1.442695, %v3304_v40 }
0x2fab   :  { %7313 = vpow2.f32 %v6546_v42 }
0x2fb2   :  { %v7312_v34 = vpop.eup %7311 }
0x2fb3   :  { %3326 = vrot.lane.b32.xlu1 %v7312_v34, %s7691_s29 }
0x2fb8   :  { %v7314_v33 = vpop.eup %7313 }
0x2fb9   :  { %v3308_v43 = vadd.f32 1.0, %v7314_v33 }
0x2fbb   :  { %7315 = vrcp.f32 %v3308_v43 }
0x2fc8   :  { %v7316_v18 = vpop.eup %7315 }
0x2fc9   :  { %v3324_v60 = vsub.f32 1.0, %v7316_v18  ;;  %v3330_v53 = vmul.f32 0.0, %v7316_v18 }
0x301a   :  { %v3334_v35 = vpop.permute.xlu0 %3333 }
0x301b   :  { %3336 = vst.msk [vmem:[#allocation5] sm:$0x3] %vm1061_vm4, %v3334_v35 }
0x3025   :  { %v3327_v50 = vpop.permute.xlu1 %3326 }
0x3026   :  { %v3329_v51 = vmul.f32 %v3327_v50, %v3324_v60 }
0x3028   :  { %v8886_v56 = vadd.f32 %v3330_v53, %v3329_v51 }
0x302a   :  { %v3344_v61 = vsel %vm782_vm2, %v3334_v35, %v8886_v56 }
0x302b   :  { %v3345_v23 = vpack.c.bf16 %v3344_v61, %v3344_v61 }
0x302d   :  { %6547 = vmatmul.mubr.msk.bf16.vlgmr.msra.gmra.mxu1 %vm131_vm0, %v3345_v23 }
0x302e   :  { %3612 = vmatpush1.bf16.msra.mxu1 %v8717_v48  ;;  %3635 = vmatprep.mubr.bf16.mxu1 %v7689_v36 }
0x302f   :  { %3613 = vmatprep.subr.bf16.mxu1 %v8728_v19 }
0x3032   :  { %3614 = vmatpush1.bf16.msra.mxu1 %v8734_v63 }
0x3033   :  { %3615 = vmatprep.subr.bf16.mxu1 %v8740_v11 }
0x3036   :  { %3616 = vmatpush1.bf16.msra.mxu1 %v8745_v0 }
0x3037   :  { %3617 = vmatprep.subr.bf16.mxu1 %v8759_v6 }
0x303a   :  { %3618 = vmatpush1.bf16.msra.mxu1 %v8776_v7 }
0x303b   :  { %3865 = vmatprep.subr.bf16.mxu1 %v8712_v24 }
0x30ed   :  { %v3383_v5 = vpop.f32.mrf.mxu1 }
0x30ee   :  { %v3397_v8 = vadd.f32 %v3383_v5, %v8820_v45  ;;  %3418 = vrot.lane.b32.xlu0 %v3383_v5, %s7692_s8  ;;  %v3390_v13 = vadd.f32 %v3383_v5, %v3342_v12 }
0x30ef   :  { %v3385_v46 = vpop.f32.mrf.mxu1 }
0x30f0   :  { %3399 = vrot.lane.b32.xlu1 %v3397_v8, %s7688_s7  ;;  %v3439_v21 = vadd.f32 %v8808_v49, %v3385_v46  ;;  %v6548_v32 = vmul.f32 -1.442695, %v3390_v13 }
0x30f1   :  { %v3387_v10 = vpop.f32.mrf.mxu1 }
0x30f2   :  { %7317 = vpow2.f32 %v6548_v32  ;;  %v3469_v32 = vld [vmem:[#allocation3 + $0x4] sm:$0x3] }
0x30f3   :  { %v3388_v44 = vpop.f32.mrf.mxu1 }
0x30f4   :  { %3441 = vrot.lane.b32.xlu1 %v3439_v21, %s7691_s29 }
0x30ff   :  { %v7318_v14 = vpop.eup %7317 }
0x3100   :  { %v3394_v57 = vadd.f32 1.0, %v7318_v14 }
0x3102   :  { %7319 = vrcp.f32 %v3394_v57 }
0x310f   :  { %v7320_v20 = vpop.eup %7319 }
0x3110   :  { %v3409_v9 = vsub.f32 1.0, %v7320_v20  ;;  %v3415_v34 = vmul.f32 %v7320_v20, %v8880_v2 }
0x3160   :  { %v3419_v39 = vpop.permute.xlu0 %3418 }
0x3161   :  { %v3421_v4 = vadd.f32 %v3419_v39, %v3343_v58 }
0x3162   :  { %v3400_v3 = vpop.permute.xlu1 %3399 }
0x3163   :  { %v6549_v47 = vmul.f32 -1.442695, %v3421_v4  ;;  %v3402_v26 = vmul.f32 %v7320_v20, %v3400_v3  ;;  %v3470_v4 = vld [vmem:[#allocation4 + $0x1a] sm:$0x3] }
0x3165   :  { %7321 = vpow2.f32 %v6549_v47  ;;  %3404 = vrot.lane.b32.xlu0 %v3402_v26, %s7688_s7 }
0x3166   :  { %v3442_v55 = vpop.permute.xlu1 %3441 }
0x3172   :  { %v7322_v22 = vpop.eup %7321 }
0x3173   :  { %v3425_v27 = vadd.f32 1.0, %v7322_v22 }
0x3175   :  { %7323 = vrcp.f32 %v3425_v27 }
0x3182   :  { %v7324_v28 = vpop.eup %7323 }
0x3183   :  { %v3444_v31 = vmul.f32 %v7324_v28, %v3442_v55 }
0x3185   :  { %3446 = vrot.lane.b32.xlu1 %v3444_v31, %s7688_s7 }
0x3189   :  { %3429 = vrot.lane.b32.xlu1 %v3385_v46, %s7692_s8 }
0x31d7   :  { %v3405_v25 = vpop.permute.xlu0 %3404 }
0x31d8   :  { %v3407_v16 = vadd.f32 %v3405_v25, %v3342_v12 }
0x31da   :  { %7325 = vtanh.f32 %v3407_v16 }
0x31e7   :  { %v7326_v30 = vpop.eup %7325 }
0x31e8   :  { %3411 = vrot.lane.b32.xlu0 %v7326_v30, %s7691_s29 }
0x31f7   :  { %v3447_v62 = vpop.permute.xlu1 %3446 }
0x31f8   :  { %v3449_v15 = vadd.f32 %v3447_v62, %v3343_v58 }
0x31fa   :  { %7327 = vtanh.f32 %v3449_v15 }
0x31fb   :  { %v3430_v42 = vpop.permute.xlu1 %3429 }
0x31fc   :  { %v3432_v33 = vadd.f32 %v3430_v42, %v3343_v58 }
0x31fe   :  { %v6550_v43 = vmul.f32 -1.442695, %v3432_v33 }
0x3200   :  { %7329 = vpow2.f32 %v6550_v43 }
0x3207   :  { %v7328_v38 = vpop.eup %7327 }
0x3208   :  { %3453 = vrot.lane.b32.xlu0 %v7328_v38, %s7691_s29 }
0x320d   :  { %v7330_v35 = vpop.eup %7329 }
0x320e   :  { %v3436_v18 = vadd.f32 1.0, %v7330_v35 }
0x3210   :  { %7331 = vrcp.f32 %v3436_v18 }
0x321d   :  { %v7332_v60 = vpop.eup %7331 }
0x321e   :  { %v3451_v51 = vsub.f32 1.0, %v7332_v60  ;;  %v3457_v61 = vmul.f32 %v7332_v60, %v8886_v56 }
0x325a   :  { %v3412_v1 = vpop.permute.xlu0 %3411 }
0x325b   :  { %v3414_v41 = vmul.f32 %v3412_v1, %v3409_v9 }
0x325d   :  { %v8911_v40 = vadd.f32 %v3415_v34, %v3414_v41 }
0x325f   :  { %3460 = vrot.lane.b32.xlu1 %v8911_v40, %s7691_s29 }
0x327a   :  { %v3454_v50 = vpop.permute.xlu0 %3453 }
0x327b   :  { %v3456_v53 = vmul.f32 %v3454_v50, %v3451_v51 }
0x327d   :  { %v8916_v2 = vadd.f32 %v3457_v61, %v3456_v53 }
0x32d1   :  { %v3461_v23 = vpop.permute.xlu1 %3460 }
0x32d2   :  { %3463 = vst.msk [vmem:[#allocation5 + $0x2] sm:$0x3] %vm1061_vm4, %v3461_v23  ;;  %v3471_v5 = vsel %vm782_vm2, %v3461_v23, %v8916_v2 }
0x32d3   :  { %v3472_v8 = vpack.c.bf16 %v3471_v5, %v3471_v5 }
0x32d5   :  { %6551 = vmatmul.mubr.msk.bf16.vlgmr.msra.gmra.mxu0 %vm131_vm0, %v3472_v8 }
0x32d6   :  { %3739 = vmatpush1.bf16.msra.mxu0 %v8717_v48  ;;  %3762 = vmatprep.mubr.bf16.mxu0 %v7689_v36 }
0x32d7   :  { %3740 = vmatprep.subr.bf16.mxu0 %v8728_v19 }
0x32da   :  { %3741 = vmatpush1.bf16.msra.mxu0 %v8734_v63 }
0x32db   :  { %3742 = vmatprep.subr.bf16.mxu0 %v8740_v11 }
0x32de   :  { %3743 = vmatpush1.bf16.msra.mxu0 %v8745_v0 }
0x32df   :  { %3744 = vmatprep.subr.bf16.mxu0 %v8759_v6 }
0x32e2   :  { %3745 = vmatpush1.bf16.msra.mxu0 %v8776_v7 }
0x32e3   :  { %3992 = vmatprep.subr.bf16.mxu0 %v8712_v24 }
0x3395   :  { %v3510_v46 = vpop.f32.mrf.mxu0 }
0x3396   :  { %v3524_v10 = vadd.f32 %v3510_v46, %v8820_v45  ;;  %3545 = vrot.lane.b32.xlu1 %v3510_v46, %s7692_s8  ;;  %v3517_v14 = vadd.f32 %v3510_v46, %v3469_v32 }
0x3397   :  { %v3512_v21 = vpop.f32.mrf.mxu0 }
0x3398   :  { %3526 = vrot.lane.b32.xlu0 %v3524_v10, %s7688_s7  ;;  %v3566_v12 = vadd.f32 %v8808_v49, %v3512_v21  ;;  %v6552_v57 = vmul.f32 -1.442695, %v3517_v14 }
0x3399   :  { %v3514_v44 = vpop.f32.mrf.mxu0 }
0x339a   :  { %7333 = vpow2.f32 %v6552_v57 }
0x339b   :  { %v3515_v13 = vpop.f32.mrf.mxu0 }
0x339c   :  { %3568 = vrot.lane.b32.xlu0 %v3566_v12, %s7691_s29 }
0x33a7   :  { %v7334_v58 = vpop.eup %7333 }
0x33a8   :  { %v3521_v39 = vadd.f32 1.0, %v7334_v58  ;;  %v3596_v58 = vld [vmem:[#allocation3 + $0x6] sm:$0x3] }
0x33aa   :  { %7335 = vrcp.f32 %v3521_v39 }
0x33b7   :  { %v7336_v47 = vpop.eup %7335 }
0x33b8   :  { %v3536_v34 = vsub.f32 1.0, %v7336_v47  ;;  %v3542_v42 = vmul.f32 %v7336_v47, %v8911_v40 }
0x3408   :  { %v3546_v20 = vpop.permute.xlu1 %3545 }
0x3409   :  { %v3548_v3 = vadd.f32 %v3546_v20, %v3470_v4 }
0x340a   :  { %v3527_v26 = vpop.permute.xlu0 %3526 }
0x340b   :  { %v6553_v22 = vmul.f32 -1.442695, %v3548_v3  ;;  %v3529_v27 = vmul.f32 %v7336_v47, %v3527_v26  ;;  %v3597_v47 = vld [vmem:[#allocation4 + $0x18] sm:$0x3] }
0x340d   :  { %7337 = vpow2.f32 %v6553_v22  ;;  %3531 = vrot.lane.b32.xlu1 %v3529_v27, %s7688_s7 }
0x340e   :  { %v3569_v25 = vpop.permute.xlu0 %3568 }
0x341a   :  { %v7338_v28 = vpop.eup %7337 }
0x341b   :  { %v3552_v55 = vadd.f32 1.0, %v7338_v28 }
0x341d   :  { %7339 = vrcp.f32 %v3552_v55 }
0x342a   :  { %v7340_v31 = vpop.eup %7339 }
0x342b   :  { %v3571_v16 = vmul.f32 %v7340_v31, %v3569_v25 }
0x342d   :  { %3573 = vrot.lane.b32.xlu0 %v3571_v16, %s7688_s7 }
0x3431   :  { %3556 = vrot.lane.b32.xlu0 %v3512_v21, %s7692_s8 }
0x347f   :  { %v3532_v30 = vpop.permute.xlu1 %3531 }
0x3480   :  { %v3534_v62 = vadd.f32 %v3532_v30, %v3469_v32 }
0x3482   :  { %7341 = vtanh.f32 %v3534_v62 }
0x348f   :  { %v7342_v15 = vpop.eup %7341 }
0x3490   :  { %3538 = vrot.lane.b32.xlu1 %v7342_v15, %s7691_s29 }
0x349f   :  { %v3574_v38 = vpop.permute.xlu0 %3573 }
0x34a0   :  { %v3576_v9 = vadd.f32 %v3574_v38, %v3470_v4 }
0x34a2   :  { %7343 = vtanh.f32 %v3576_v9 }
0x34a3   :  { %v3557_v35 = vpop.permute.xlu0 %3556 }
0x34a4   :  { %v3559_v18 = vadd.f32 %v3557_v35, %v3470_v4 }
0x34a6   :  { %v6554_v60 = vmul.f32 -1.442695, %v3559_v18 }
0x34a8   :  { %7345 = vpow2.f32 %v6554_v60 }
0x34af   :  { %v7344_v1 = vpop.eup %7343 }
0x34b0   :  { %3580 = vrot.lane.b32.xlu1 %v7344_v1, %s7691_s29 }
0x34b5   :  { %v7346_v50 = vpop.eup %7345 }
0x34b6   :  { %v3563_v51 = vadd.f32 1.0, %v7346_v50 }
0x34b8   :  { %7347 = vrcp.f32 %v3563_v51 }
0x34c5   :  { %v7348_v53 = vpop.eup %7347 }
0x34c6   :  { %v3578_v23 = vsub.f32 1.0, %v7348_v53  ;;  %v3584_v8 = vmul.f32 %v7348_v53, %v8916_v2 }
0x3502   :  { %v3539_v41 = vpop.permute.xlu1 %3538 }
0x3503   :  { %v3541_v33 = vmul.f32 %v3539_v41, %v3536_v34 }
0x3505   :  { %v8942_v43 = vadd.f32 %v3542_v42, %v3541_v33 }
0x3507   :  { %3587 = vrot.lane.b32.xlu0 %v8942_v43, %s7691_s29 }
0x3522   :  { %v3581_v61 = vpop.permute.xlu1 %3580 }
0x3523   :  { %v3583_v5 = vmul.f32 %v3581_v61, %v3578_v23 }
0x3525   :  { %v8947_v40 = vadd.f32 %v3584_v8, %v3583_v5 }
0x3579   :  { %v3588_v46 = vpop.permute.xlu0 %3587 }
0x357a   :  { %3590 = vst.msk [vmem:[#allocation5 + $0x4] sm:$0x3] %vm1061_vm4, %v3588_v46  ;;  %v3598_v10 = vsel %vm782_vm2, %v3588_v46, %v8947_v40 }
0x357b   :  { %v3599_v21 = vpack.c.bf16 %v3598_v10, %v3598_v10 }
0x357d   :  { %6555 = vmatmul.mubr.msk.bf16.vlgmr.msra.gmra.mxu1 %vm131_vm0, %v3599_v21 }
0x357e   :  { %3866 = vmatpush1.bf16.msra.mxu1 %v8717_v48  ;;  %3889 = vmatprep.mubr.bf16.mxu1 %v7689_v36 }
0x357f   :  { %3867 = vmatprep.subr.bf16.mxu1 %v8728_v19 }
0x3582   :  { %3868 = vmatpush1.bf16.msra.mxu1 %v8734_v63 }
0x3583   :  { %3869 = vmatprep.subr.bf16.mxu1 %v8740_v11 }
0x3586   :  { %3870 = vmatpush1.bf16.msra.mxu1 %v8745_v0 }
0x3587   :  { %3871 = vmatprep.subr.bf16.mxu1 %v8759_v6 }
0x358a   :  { %3872 = vmatpush1.bf16.msra.mxu1 %v8776_v7 }
0x358b   :  { %4119 = vmatprep.subr.bf16.mxu1 %v8712_v24 }
0x363d   :  { %v3637_v44 = vpop.f32.mrf.mxu1 }
0x363e   :  { %v3651_v12 = vadd.f32 %v3637_v44, %v8820_v45  ;;  %3672 = vrot.lane.b32.xlu0 %v3637_v44, %s7692_s8  ;;  %v3644_v39 = vadd.f32 %v3637_v44, %v3596_v58 }
0x363f   :  { %v3639_v13 = vpop.f32.mrf.mxu1 }
0x3640   :  { %3653 = vrot.lane.b32.xlu1 %v3651_v12, %s7688_s7  ;;  %v3693_v14 = vadd.f32 %v8808_v49, %v3639_v13  ;;  %v6556_v4 = vmul.f32 -1.442695, %v3644_v39 }
0x3641   :  { %v3641_v32 = vpop.f32.mrf.mxu1 }
0x3642   :  { %7349 = vpow2.f32 %v6556_v4 }
0x3643   :  { %v3642_v57 = vpop.f32.mrf.mxu1 }
0x3644   :  { %3695 = vrot.lane.b32.xlu1 %v3693_v14, %s7691_s29 }
0x364f   :  { %v7350_v20 = vpop.eup %7349 }
0x3650   :  { %v3648_v3 = vadd.f32 1.0, %v7350_v20 }
0x3652   :  { %7351 = vrcp.f32 %v3648_v3 }
0x365f   :  { %v7352_v27 = vpop.eup %7351 }
0x3660   :  { %v3663_v33 = vsub.f32 1.0, %v7352_v27  ;;  %v3669_v18 = vmul.f32 %v7352_v27, %v8942_v43 }
0x36b0   :  { %v3673_v26 = vpop.permute.xlu0 %3672 }
0x36b1   :  { %v3675_v22 = vadd.f32 %v3673_v26, %v3597_v47 }
0x36b2   :  { %v3654_v28 = vpop.permute.xlu1 %3653 }
0x36b3   :  { %v6557_v55 = vmul.f32 -1.442695, %v3675_v22  ;;  %v3656_v31 = vmul.f32 %v7352_v27, %v3654_v28 }
0x36b5   :  { %7353 = vpow2.f32 %v6557_v55  ;;  %3658 = vrot.lane.b32.xlu0 %v3656_v31, %s7688_s7 }
0x36b6   :  { %v3696_v62 = vpop.permute.xlu1 %3695 }
0x36c2   :  { %v7354_v25 = vpop.eup %7353 }
0x36c3   :  { %v3679_v16 = vadd.f32 1.0, %v7354_v25 }
0x36c5   :  { %7355 = vrcp.f32 %v3679_v16 }
0x36d2   :  { %v7356_v30 = vpop.eup %7355 }
0x36d3   :  { %v3698_v15 = vmul.f32 %v7356_v30, %v3696_v62 }
0x36d5   :  { %3700 = vrot.lane.b32.xlu1 %v3698_v15, %s7688_s7 }
0x36d9   :  { %3683 = vrot.lane.b32.xlu1 %v3639_v13, %s7692_s8 }
0x3727   :  { %v3659_v38 = vpop.permute.xlu0 %3658 }
0x3728   :  { %v3661_v9 = vadd.f32 %v3659_v38, %v3596_v58  ;;  %v3723_v58 = vld [vmem:[#allocation3 + $0x8] sm:$0x3] }
0x372a   :  { %7357 = vtanh.f32 %v3661_v9 }
0x3737   :  { %v7358_v1 = vpop.eup %7357 }
0x3738   :  { %3665 = vrot.lane.b32.xlu0 %v7358_v1, %s7691_s29 }
0x3747   :  { %v3701_v34 = vpop.permute.xlu1 %3700 }
0x3748   :  { %v3703_v41 = vadd.f32 %v3701_v34, %v3597_v47 }
0x374a   :  { %7359 = vtanh.f32 %v3703_v41 }
0x374b   :  { %v3684_v51 = vpop.permute.xlu1 %3683 }
0x374c   :  { %v3686_v53 = vadd.f32 %v3684_v51, %v3597_v47 }
0x374e   :  { %v6558_v61 = vmul.f32 -1.442695, %v3686_v53 }
0x3750   :  { %7361 = vpow2.f32 %v6558_v61 }
0x3757   :  { %v7360_v42 = vpop.eup %7359 }
0x3758   :  { %3707 = vrot.lane.b32.xlu0 %v7360_v42, %s7691_s29 }
0x375d   :  { %v7362_v23 = vpop.eup %7361 }
0x375e   :  { %v3690_v5 = vadd.f32 1.0, %v7362_v23 }
0x3760   :  { %7363 = vrcp.f32 %v3690_v5 }
0x376d   :  { %v7364_v8 = vpop.eup %7363 }
0x376e   :  { %v3705_v10 = vsub.f32 1.0, %v7364_v8  ;;  %v3711_v21 = vmul.f32 %v7364_v8, %v8947_v40 }
0x37aa   :  { %v3666_v35 = vpop.permute.xlu0 %3665 }
0x37ab   :  { %v3668_v60 = vmul.f32 %v3666_v35, %v3663_v33 }
0x37ad   :  { %v8973_v50 = vadd.f32 %v3669_v18, %v3668_v60 }
0x37af   :  { %3714 = vrot.lane.b32.xlu1 %v8973_v50, %s7691_s29 }
0x37b3   :  { %3142 = vrot.lane.b32.xlu1 %v8858_v54, %s7692_s8 }
0x37ca   :  { %v3708_v46 = vpop.permute.xlu0 %3707 }
0x37cb   :  { %v3710_v43 = vmul.f32 %v3708_v46, %v3705_v10 }
0x37cd   :  { %v8980_v44 = vadd.f32 %v3711_v21, %v3710_v43 }
0x3821   :  { %v3715_v12 = vpop.permute.xlu1 %3714 }
0x3822   :  { %3717 = vst.msk [vmem:[#allocation5 + $0x6] sm:$0x3] %vm1061_vm4, %v3715_v12  ;;  %v3725_v54 = vsel %vm782_vm2, %v3715_v12, %v8980_v44 }
0x3823   :  { %v3726_v13 = vpack.c.bf16 %v3725_v54, %v3725_v54 }
0x3825   :  { %6559 = vmatmul.mubr.msk.bf16.vlgmr.msra.gmra.mxu0 %vm131_vm0, %v3726_v13  ;;  %v3143_v22 = vpop.permute.xlu1 %3142 }
0x3826   :  { %3993 = vmatpush1.bf16.msra.mxu0 %v8717_v48  ;;  %4016 = vmatprep.mubr.bf16.mxu0 %v7689_v36 }
0x3827   :  { %3994 = vmatprep.subr.bf16.mxu0 %v8728_v19 }
0x382a   :  { %3995 = vmatpush1.bf16.msra.mxu0 %v8734_v63 }
0x382b   :  { %3996 = vmatprep.subr.bf16.mxu0 %v8740_v11 }
0x382e   :  { %3997 = vmatpush1.bf16.msra.mxu0 %v8745_v0 }
0x382f   :  { %3998 = vmatprep.subr.bf16.mxu0 %v8759_v6 }
0x3832   :  { %3999 = vmatpush1.bf16.msra.mxu0 %v8776_v7 }
0x3833   :  { %4246 = vmatprep.subr.bf16.mxu0 %v8712_v24 }
0x38e5   :  { %v3764_v32 = vpop.f32.mrf.mxu0 }
0x38e6   :  { %v3778_v14 = vadd.f32 %v3764_v32, %v8820_v45  ;;  %3799 = vrot.lane.b32.xlu1 %v3764_v32, %s7692_s8  ;;  %v3771_v39 = vadd.f32 %v3764_v32, %v3723_v58 }
0x38e7   :  { %v3766_v48 = vpop.f32.mrf.mxu0 }
0x38e8   :  { %3780 = vrot.lane.b32.xlu0 %v3778_v14, %s7688_s7  ;;  %v3820_v57 = vadd.f32 %v8808_v49, %v3766_v48  ;;  %v6560_v24 = vmul.f32 -1.442695, %v3771_v39 }
0x38e9   :  { %v3768_v19 = vpop.f32.mrf.mxu0 }
0x38ea   :  { %7365 = vpow2.f32 %v6560_v24  ;;  %v9031_v19 = vld [vmem:[%s9707_s13 + $0x24] ss:$8 sps:$4 sm:$0xff]  }
0x38eb   :  { %v3769_v63 = vpop.f32.mrf.mxu0 }
0x38ec   :  { %3144 = vrot.lane.b32.xlu0 %v8862_v59, %s7692_s8  ;;  %v9037_v63 = vld [vmem:[%s9707_s13 + $0x20] ss:$8 sps:$4 sm:$0xff]  }
0x38f0   :  { %3822 = vrot.lane.b32.xlu0 %v3820_v57, %s7691_s29  ;;  %v9047_v57 = vld [vmem:[%s9707_s13 + $0x34] ss:$8 sps:$4 sm:$0xff]  }
0x38f7   :  { %v7366_v4 = vpop.eup %7365 }
0x38f8   :  { %v3775_v20 = vadd.f32 1.0, %v7366_v4 }
0x38fa   :  { %7367 = vrcp.f32 %v3775_v20 }
0x3907   :  { %v7368_v3 = vpop.eup %7367 }
0x3908   :  { %v3790_v35 = vsub.f32 1.0, %v7368_v3  ;;  %v3796_v60 = vmul.f32 %v7368_v3, %v8973_v50 }
0x3958   :  { %v3800_v28 = vpop.permute.xlu1 %3799 }
0x395a   :  { %v3781_v47 = vpop.permute.xlu0 %3780 }
0x395b   :  { %v3783_v26 = vmul.f32 %v7368_v3, %v3781_v47 }
0x395d   :  { %3785 = vrot.lane.b32.xlu1 %v3783_v26, %s7688_s7 }
0x395e   :  { %v3145_v27 = vpop.permute.xlu0 %3144 }
0x395f   :  { %v3152_v59 = vsel %vm782_vm2, %v3143_v22, %v3145_v27 }
0x3960   :  { %3160 = vst.msk [vmem:[#allocation4 + $0x10] sm:$0xff] %vm842_vm3, %v3152_v59 }
0x3962   :  { %v3823_v15 = vpop.permute.xlu0 %3822 }
0x3967   :  { %v3724_v55 = vld [vmem:[#allocation4 + $0x16] sm:$0x3]  ;;  %v3851_v26 = vld [vmem:[#allocation4 + $0x14] sm:$0x3] }
0x3968   :  { %v3802_v31 = vadd.f32 %v3800_v28, %v3724_v55 }
0x396a   :  { %v6561_v25 = vmul.f32 -1.442695, %v3802_v31 }
0x396c   :  { %7369 = vpow2.f32 %v6561_v25 }
0x3979   :  { %v7370_v16 = vpop.eup %7369 }
0x397a   :  { %v3806_v30 = vadd.f32 1.0, %v7370_v16 }
0x397c   :  { %7371 = vrcp.f32 %v3806_v30 }
0x3989   :  { %v7372_v62 = vpop.eup %7371 }
0x398a   :  { %v3825_v38 = vmul.f32 %v7372_v62, %v3823_v15 }
0x398c   :  { %3827 = vrot.lane.b32.xlu0 %v3825_v38, %s7688_s7 }
0x3990   :  { %3810 = vrot.lane.b32.xlu0 %v3766_v48, %s7692_s8  ;;  %v9024_v48 = vld [vmem:[%s9707_s13 + $0x30] ss:$8 sps:$4 sm:$0xff]  }
0x39cf   :  { %v3786_v9 = vpop.permute.xlu1 %3785 }
0x39d0   :  { %v3788_v1 = vadd.f32 %v3786_v9, %v3723_v58 }
0x39d2   :  { %7373 = vtanh.f32 %v3788_v1 }
0x39df   :  { %v7374_v34 = vpop.eup %7373 }
0x39e0   :  { %3792 = vrot.lane.b32.xlu1 %v7374_v34, %s7691_s29 }
0x39fe   :  { %v3828_v41 = vpop.permute.xlu0 %3827 }
0x39ff   :  { %v3830_v42 = vadd.f32 %v3828_v41, %v3724_v55 }
0x3a01   :  { %7375 = vtanh.f32 %v3830_v42 }
0x3a02   :  { %v3811_v61 = vpop.permute.xlu0 %3810 }
0x3a03   :  { %v3813_v23 = vadd.f32 %v3811_v61, %v3724_v55 }
0x3a05   :  { %v6562_v5 = vmul.f32 -1.442695, %v3813_v23 }
0x3a07   :  { %7377 = vpow2.f32 %v6562_v5 }
0x3a0e   :  { %v7376_v33 = vpop.eup %7375 }
0x3a0f   :  { %3834 = vrot.lane.b32.xlu1 %v7376_v33, %s7691_s29 }
0x3a14   :  { %v7378_v8 = vpop.eup %7377 }
0x3a15   :  { %v3817_v46 = vadd.f32 1.0, %v7378_v8 }
0x3a17   :  { %7379 = vrcp.f32 %v3817_v46 }
0x3a24   :  { %v7380_v10 = vpop.eup %7379 }
0x3a25   :  { %v3832_v21 = vsub.f32 1.0, %v7380_v10  ;;  %v3838_v54 = vmul.f32 %v7380_v10, %v8980_v44 }
0x3a52   :  { %v3793_v18 = vpop.permute.xlu1 %3792 }
0x3a53   :  { %v3795_v51 = vmul.f32 %v3793_v18, %v3790_v35 }
0x3a55   :  { %v9010_v53 = vadd.f32 %v3796_v60, %v3795_v51 }
0x3a57   :  { %3841 = vrot.lane.b32.xlu0 %v9010_v53, %s7691_s29 }
0x3a81   :  { %v3835_v43 = vpop.permute.xlu1 %3834 }
0x3a82   :  { %v3837_v12 = vmul.f32 %v3835_v43, %v3832_v21 }
0x3a84   :  { %v9015_v50 = vadd.f32 %v3838_v54, %v3837_v12 }
0x3ac9   :  { %v3842_v13 = vpop.permute.xlu0 %3841 }
0x3aca   :  { %3844 = vst.msk [vmem:[#allocation5 + $0x8] sm:$0x3] %vm1061_vm4, %v3842_v13  ;;  %v3852_v32 = vsel %vm782_vm2, %v3842_v13, %v9015_v50 }
0x3acb   :  { %v3853_v14 = vpack.c.bf16 %v3852_v32, %v3852_v32 }
0x3acd   :  { %6563 = vmatmul.mubr.msk.bf16.vlgmr.msra.gmra.mxu1 %vm131_vm0, %v3853_v14  ;;  %v9079_v14 = vld [vmem:[%s9707_s13 + $0x14] ss:$8 sps:$4 sm:$0xff]  }
0x3ace   :  { %4120 = vmatpush1.bf16.msra.mxu1 %v9024_v48  ;;  %4143 = vmatprep.mubr.bf16.mxu1 %v7689_v36 }
0x3acf   :  { %4121 = vmatprep.subr.bf16.mxu1 %v9031_v19 }
0x3ad2   :  { %4122 = vmatpush1.bf16.msra.mxu1 %v9037_v63 }
0x3ad3   :  { %4123 = vmatprep.subr.bf16.mxu1 %v8740_v11 }
0x3ad6   :  { %4124 = vmatpush1.bf16.msra.mxu1 %v8745_v0 }
0x3ad7   :  { %4125 = vmatprep.subr.bf16.mxu1 %v8759_v6 }
0x3ada   :  { %4126 = vmatpush1.bf16.msra.mxu1 %v8776_v7  ;;  %v3850_v7 = vld [vmem:[#allocation3 + $0xa] sm:$0x3] }
0x3adb   :  { %4373 = vmatprep.subr.bf16.mxu1 %v9047_v57 }
0x3b8d   :  { %v3891_v58 = vpop.f32.mrf.mxu1 }
0x3b8e   :  { %v3905_v39 = vadd.f32 %v3891_v58, %v8820_v45  ;;  %3926 = vrot.lane.b32.xlu0 %v3891_v58, %s7692_s8  ;;  %v3898_v4 = vadd.f32 %v3891_v58, %v3850_v7  ;;  %v9085_v58 = vld [vmem:[%s9707_s13 + $0x10] ss:$8 sps:$4 sm:$0xff]  }
0x3b8f   :  { %v3893_v24 = vpop.f32.mrf.mxu1 }
0x3b90   :  { %3907 = vrot.lane.b32.xlu1 %v3905_v39, %s7688_s7  ;;  %v3947_v0 = vadd.f32 %v8808_v49, %v3893_v24  ;;  %v6564_v20 = vmul.f32 -1.442695, %v3898_v4  ;;  %v9091_v39 = vld [vmem:[%s9707_s13 + $0x4] ss:$8 sps:$4 sm:$0xff]   ;;  %v9107_v4 = vld [vmem:[%s9709_s14] ss:$0 sm:$0xff] }
0x3b91   :  { %v3895_v11 = vpop.f32.mrf.mxu1 }
0x3b92   :  { %7381 = vpow2.f32 %v6564_v20 }
0x3b93   :  { %v3896_v6 = vpop.f32.mrf.mxu1 }
0x3b94   :  { %3949 = vrot.lane.b32.xlu1 %v3947_v0, %s7691_s29 }
0x3b9f   :  { %v7382_v3 = vpop.eup %7381 }
0x3ba0   :  { %v3902_v47 = vadd.f32 1.0, %v7382_v3 }
0x3ba2   :  { %7383 = vrcp.f32 %v3902_v47  ;;  %v3977_v47 = vld [vmem:[#allocation3 + $0xc] sm:$0x3] }
0x3baf   :  { %v7384_v59 = vpop.eup %7383 }
0x3bb0   :  { %v3917_v42 = vsub.f32 1.0, %v7384_v59  ;;  %v3923_v35 = vmul.f32 %v7384_v59, %v9010_v53 }
0x3c00   :  { %v3927_v22 = vpop.permute.xlu0 %3926 }
0x3c01   :  { %v3929_v27 = vadd.f32 %v3927_v22, %v3851_v26 }
0x3c02   :  { %v3908_v28 = vpop.permute.xlu1 %3907 }
0x3c03   :  { %v6565_v55 = vmul.f32 -1.442695, %v3929_v27  ;;  %v3910_v31 = vmul.f32 %v7384_v59, %v3908_v28  ;;  %v3978_v28 = vld [vmem:[#allocation4 + $0x12] sm:$0x3] }
0x3c05   :  { %7385 = vpow2.f32 %v6565_v55  ;;  %3912 = vrot.lane.b32.xlu0 %v3910_v31, %s7688_s7 }
0x3c06   :  { %v3950_v30 = vpop.permute.xlu1 %3949 }
0x3c12   :  { %v7386_v49 = vpop.eup %7385 }
0x3c13   :  { %v3933_v25 = vadd.f32 1.0, %v7386_v49 }
0x3c15   :  { %7387 = vrcp.f32 %v3933_v25 }
0x3c22   :  { %v7388_v16 = vpop.eup %7387 }
0x3c23   :  { %v3952_v62 = vmul.f32 %v7388_v16, %v3950_v30 }
0x3c25   :  { %3954 = vrot.lane.b32.xlu1 %v3952_v62, %s7688_s7 }
0x3c29   :  { %3937 = vrot.lane.b32.xlu1 %v3893_v24, %s7692_s8  ;;  %v9097_v24 = vld [vmem:[%s9707_s13] ss:$8 sps:$4 sm:$0xff]  }
0x3c77   :  { %v3913_v15 = vpop.permute.xlu0 %3912 }
0x3c78   :  { %v3915_v38 = vadd.f32 %v3913_v15, %v3850_v7 }
0x3c7a   :  { %7389 = vtanh.f32 %v3915_v38 }
0x3c87   :  { %v7390_v9 = vpop.eup %7389 }
0x3c88   :  { %3919 = vrot.lane.b32.xlu0 %v7390_v9, %s7691_s29 }
0x3c97   :  { %v3955_v1 = vpop.permute.xlu1 %3954 }
0x3c98   :  { %v3957_v34 = vadd.f32 %v3955_v1, %v3851_v26 }
0x3c9a   :  { %7391 = vtanh.f32 %v3957_v34 }
0x3c9b   :  { %v3938_v51 = vpop.permute.xlu1 %3937 }
0x3c9c   :  { %v3940_v61 = vadd.f32 %v3938_v51, %v3851_v26 }
0x3c9e   :  { %v6566_v23 = vmul.f32 -1.442695, %v3940_v61 }
0x3ca0   :  { %7393 = vpow2.f32 %v6566_v23 }
0x3ca7   :  { %v7392_v41 = vpop.eup %7391 }
0x3ca8   :  { %3961 = vrot.lane.b32.xlu0 %v7392_v41, %s7691_s29 }
0x3cad   :  { %v7394_v5 = vpop.eup %7393 }
0x3cae   :  { %v3944_v8 = vadd.f32 1.0, %v7394_v5 }
0x3cb0   :  { %7395 = vrcp.f32 %v3944_v8 }
0x3cbd   :  { %v7396_v46 = vpop.eup %7395 }
0x3cbe   :  { %v3959_v43 = vsub.f32 1.0, %v7396_v46  ;;  %v3965_v12 = vmul.f32 %v7396_v46, %v9015_v50 }
0x3cfa   :  { %v3920_v33 = vpop.permute.xlu0 %3919 }
0x3cfb   :  { %v3922_v18 = vmul.f32 %v3920_v33, %v3917_v42 }
0x3cfd   :  { %v9061_v60 = vadd.f32 %v3923_v35, %v3922_v18 }
0x3cff   :  { %3968 = vrot.lane.b32.xlu1 %v9061_v60, %s7691_s29 }
0x3d1a   :  { %v3962_v10 = vpop.permute.xlu0 %3961 }
0x3d1b   :  { %v3964_v21 = vmul.f32 %v3962_v10, %v3959_v43 }
0x3d1d   :  { %v9066_v53 = vadd.f32 %v3965_v12, %v3964_v21 }
0x3d71   :  { %v3969_v54 = vpop.permute.xlu1 %3968 }
0x3d72   :  { %3971 = vst.msk [vmem:[#allocation5 + $0xa] sm:$0x3] %vm1061_vm4, %v3969_v54  ;;  %v3979_v13 = vsel %vm782_vm2, %v3969_v54, %v9066_v53 }
0x3d73   :  { %v3980_v32 = vpack.c.bf16 %v3979_v13, %v3979_v13 }
0x3d75   :  { %6567 = vmatmul.mubr.msk.bf16.vlgmr.msra.gmra.mxu0 %vm131_vm0, %v3980_v32 }
0x3d76   :  { %4247 = vmatpush1.bf16.msra.mxu0 %v9024_v48  ;;  %4270 = vmatprep.mubr.bf16.mxu0 %v7689_v36 }
0x3d77   :  { %4248 = vmatprep.subr.bf16.mxu0 %v9031_v19 }
0x3d7a   :  { %4249 = vmatpush1.bf16.msra.mxu0 %v9037_v63 }
0x3d7b   :  { %4250 = vmatprep.subr.bf16.mxu0 %v9079_v14 }
0x3d7e   :  { %4251 = vmatpush1.bf16.msra.mxu0 %v9085_v58 }
0x3d7f   :  { %4252 = vmatprep.subr.bf16.mxu0 %v9091_v39 }
0x3d82   :  { %4253 = vmatpush1.bf16.msra.mxu0 %v9097_v24 }
0x3d83   :  { %4500 = vmatprep.subr.bf16.mxu0 %v9047_v57 }
0x3e35   :  { %v4018_v11 = vpop.f32.mrf.mxu0 }
0x3e36   :  { %v4032_v0 = vadd.f32 %v4018_v11, %v8820_v45  ;;  %4053 = vrot.lane.b32.xlu1 %v4018_v11, %s7692_s8  ;;  %v4025_v26 = vadd.f32 %v4018_v11, %v3977_v47 }
0x3e37   :  { %v4020_v6 = vpop.f32.mrf.mxu0 }
0x3e38   :  { %4034 = vrot.lane.b32.xlu0 %v4032_v0, %s7688_s7  ;;  %v4074_v20 = vadd.f32 %v9107_v4, %v4020_v6  ;;  %v6568_v22 = vmul.f32 -1.442695, %v4025_v26 }
0x3e39   :  { %v4022_v7 = vpop.f32.mrf.mxu0 }
0x3e3a   :  { %7397 = vpow2.f32 %v6568_v22 }
0x3e3b   :  { %v4023_v3 = vpop.f32.mrf.mxu0 }
0x3e3c   :  { %4076 = vrot.lane.b32.xlu0 %v4074_v20, %s7691_s29 }
0x3e47   :  { %v7398_v27 = vpop.eup %7397 }
0x3e48   :  { %v4029_v59 = vadd.f32 1.0, %v7398_v27 }
0x3e4a   :  { %7399 = vrcp.f32 %v4029_v59 }
0x3e57   :  { %v7400_v49 = vpop.eup %7399 }
0x3e58   :  { %v4044_v51 = vsub.f32 1.0, %v7400_v49  ;;  %v4050_v23 = vmul.f32 %v7400_v49, %v9061_v60 }
0x3ea8   :  { %v4054_v55 = vpop.permute.xlu1 %4053 }
0x3ea9   :  { %v4056_v31 = vadd.f32 %v4054_v55, %v3978_v28 }
0x3eaa   :  { %v4035_v25 = vpop.permute.xlu0 %4034 }
0x3eab   :  { %v6569_v16 = vmul.f32 -1.442695, %v4056_v31  ;;  %v4037_v30 = vmul.f32 %v7400_v49, %v4035_v25 }
0x3ead   :  { %7401 = vpow2.f32 %v6569_v16  ;;  %4039 = vrot.lane.b32.xlu1 %v4037_v30, %s7688_s7  ;;  %v4105_v16 = vld [vmem:[#allocation4 + $0x10] sm:$0x3] }
0x3eae   :  { %v4077_v9 = vpop.permute.xlu0 %4076 }
0x3eba   :  { %v7402_v62 = vpop.eup %7401 }
0x3ebb   :  { %v4060_v15 = vadd.f32 1.0, %v7402_v62 }
0x3ebd   :  { %7403 = vrcp.f32 %v4060_v15 }
0x3eca   :  { %v7404_v38 = vpop.eup %7403 }
0x3ecb   :  { %v4079_v1 = vmul.f32 %v7404_v38, %v4077_v9 }
0x3ecd   :  { %4081 = vrot.lane.b32.xlu0 %v4079_v1, %s7688_s7 }
0x3ed1   :  { %4064 = vrot.lane.b32.xlu0 %v4020_v6, %s7692_s8 }
0x3f1f   :  { %v4040_v34 = vpop.permute.xlu1 %4039 }
0x3f20   :  { %v4042_v41 = vadd.f32 %v4040_v34, %v3977_v47 }
0x3f22   :  { %7405 = vtanh.f32 %v4042_v41 }
0x3f2f   :  { %v7406_v42 = vpop.eup %7405 }
0x3f30   :  { %4046 = vrot.lane.b32.xlu1 %v7406_v42, %s7691_s29 }
0x3f3f   :  { %v4082_v33 = vpop.permute.xlu0 %4081 }
0x3f40   :  { %v4084_v35 = vadd.f32 %v4082_v33, %v3978_v28 }
0x3f42   :  { %7407 = vtanh.f32 %v4084_v35 }
0x3f43   :  { %v4065_v46 = vpop.permute.xlu0 %4064 }
0x3f44   :  { %v4067_v10 = vadd.f32 %v4065_v46, %v3978_v28  ;;  %v4104_v28 = vld [vmem:[#allocation3 + $0xe] sm:$0x3] }
0x3f46   :  { %v6570_v43 = vmul.f32 -1.442695, %v4067_v10 }
0x3f48   :  { %7409 = vpow2.f32 %v6570_v43 }
0x3f4f   :  { %v7408_v18 = vpop.eup %7407 }
0x3f50   :  { %4088 = vrot.lane.b32.xlu1 %v7408_v18, %s7691_s29 }
0x3f55   :  { %v7410_v21 = vpop.eup %7409 }
0x3f56   :  { %v4071_v12 = vadd.f32 1.0, %v7410_v21 }
0x3f58   :  { %7411 = vrcp.f32 %v4071_v12 }
0x3f65   :  { %v7412_v54 = vpop.eup %7411 }
0x3f66   :  { %v4086_v32 = vsub.f32 1.0, %v7412_v54  ;;  %v4092_v0 = vmul.f32 %v7412_v54, %v9066_v53 }
0x3fa2   :  { %v4047_v61 = vpop.permute.xlu1 %4046 }
0x3fa3   :  { %v4049_v5 = vmul.f32 %v4047_v61, %v4044_v51 }
0x3fa5   :  { %v9117_v8 = vadd.f32 %v4050_v23, %v4049_v5 }
0x3fa7   :  { %4095 = vrot.lane.b32.xlu0 %v9117_v8, %s7691_s29 }
0x3fc2   :  { %v4089_v13 = vpop.permute.xlu1 %4088 }
0x3fc3   :  { %v4091_v11 = vmul.f32 %v4089_v13, %v4086_v32 }
0x3fc5   :  { %v9122_v60 = vadd.f32 %v4092_v0, %v4091_v11 }
0x4019   :  { %v4096_v6 = vpop.permute.xlu0 %4095 }
0x401a   :  { %4098 = vst.msk [vmem:[#allocation5 + $0xc] sm:$0x3] %vm1061_vm4, %v4096_v6  ;;  %v4106_v7 = vsel %vm782_vm2, %v4096_v6, %v9122_v60 }
0x401b   :  { %v4107_v20 = vpack.c.bf16 %v4106_v7, %v4106_v7 }
0x401d   :  { %6571 = vmatmul.mubr.msk.bf16.vlgmr.msra.gmra.mxu1 %vm131_vm0, %v4107_v20 }
0x401e   :  { %4374 = vmatpush1.bf16.msra.mxu1 %v9024_v48  ;;  %4397 = vmatprep.mubr.bf16.mxu1 %v7689_v36 }
0x401f   :  { %4375 = vmatprep.subr.bf16.mxu1 %v9031_v19 }
0x4022   :  { %4376 = vmatpush1.bf16.msra.mxu1 %v9037_v63 }
0x4023   :  { %4377 = vmatprep.subr.bf16.mxu1 %v9079_v14 }
0x4026   :  { %4378 = vmatpush1.bf16.msra.mxu1 %v9085_v58 }
0x4027   :  { %4379 = vmatprep.subr.bf16.mxu1 %v9091_v39 }
0x402a   :  { %4380 = vmatpush1.bf16.msra.mxu1 %v9097_v24 }
0x402b   :  { %4627 = vmatprep.subr.bf16.mxu1 %v9047_v57 }
0x40dd   :  { %v4145_v3 = vpop.f32.mrf.mxu1 }
0x40de   :  { %v4159_v47 = vadd.f32 %v4145_v3, %v8820_v45  ;;  %4180 = vrot.lane.b32.xlu0 %v4145_v3, %s7692_s8  ;;  %v4152_v55 = vadd.f32 %v4145_v3, %v4104_v28 }
0x40df   :  { %v4147_v26 = vpop.f32.mrf.mxu1 }
0x40e0   :  { %4161 = vrot.lane.b32.xlu1 %v4159_v47, %s7688_s7  ;;  %v4201_v27 = vadd.f32 %v9107_v4, %v4147_v26  ;;  %v6572_v31 = vmul.f32 -1.442695, %v4152_v55 }
0x40e1   :  { %v4149_v22 = vpop.f32.mrf.mxu1 }
0x40e2   :  { %7413 = vpow2.f32 %v6572_v31 }
0x40e3   :  { %v4150_v59 = vpop.f32.mrf.mxu1 }
0x40e4   :  { %4203 = vrot.lane.b32.xlu1 %v4201_v27, %s7691_s29 }
0x40ef   :  { %v7414_v49 = vpop.eup %7413 }
0x40f0   :  { %v4156_v25 = vadd.f32 1.0, %v7414_v49 }
0x40f2   :  { %7415 = vrcp.f32 %v4156_v25 }
0x40ff   :  { %v7416_v15 = vpop.eup %7415 }
0x4100   :  { %v4171_v10 = vsub.f32 1.0, %v7416_v15  ;;  %v4177_v21 = vmul.f32 %v7416_v15, %v9117_v8 }
0x4150   :  { %v4181_v30 = vpop.permute.xlu0 %4180 }
0x4151   :  { %v4183_v62 = vadd.f32 %v4181_v30, %v4105_v16 }
0x4152   :  { %v4162_v38 = vpop.permute.xlu1 %4161 }
0x4153   :  { %v6573_v9 = vmul.f32 -1.442695, %v4183_v62  ;;  %v4164_v1 = vmul.f32 %v7416_v15, %v4162_v38 }
0x4155   :  { %7417 = vpow2.f32 %v6573_v9  ;;  %4166 = vrot.lane.b32.xlu0 %v4164_v1, %s7688_s7 }
0x4156   :  { %v4204_v33 = vpop.permute.xlu1 %4203 }
0x4162   :  { %v7418_v34 = vpop.eup %7417 }
0x4163   :  { %v4187_v41 = vadd.f32 1.0, %v7418_v34 }
0x4165   :  { %7419 = vrcp.f32 %v4187_v41 }
0x4172   :  { %v7420_v42 = vpop.eup %7419 }
0x4173   :  { %v4206_v35 = vmul.f32 %v7420_v42, %v4204_v33 }
0x4175   :  { %4208 = vrot.lane.b32.xlu1 %v4206_v35, %s7688_s7 }
0x4179   :  { %4191 = vrot.lane.b32.xlu1 %v4147_v26, %s7692_s8 }
0x41c7   :  { %v4167_v18 = vpop.permute.xlu0 %4166 }
0x41c8   :  { %v4169_v51 = vadd.f32 %v4167_v18, %v4104_v28 }
0x41ca   :  { %7421 = vtanh.f32 %v4169_v51 }
0x41d7   :  { %v7422_v61 = vpop.eup %7421 }
0x41d8   :  { %4173 = vrot.lane.b32.xlu0 %v7422_v61, %s7691_s29 }
0x41e7   :  { %v4209_v23 = vpop.permute.xlu1 %4208 }
0x41e8   :  { %v4211_v5 = vadd.f32 %v4209_v23, %v4105_v16 }
0x41ea   :  { %7423 = vtanh.f32 %v4211_v5 }
0x41eb   :  { %v4192_v13 = vpop.permute.xlu1 %4191 }
0x41ec   :  { %v4194_v32 = vadd.f32 %v4192_v13, %v4105_v16  ;;  %v4231_v16 = vld [vmem:[#allocation3 + $0x10] sm:$0x3] }
0x41ee   :  { %v6574_v11 = vmul.f32 -1.442695, %v4194_v32 }
0x41f0   :  { %7425 = vpow2.f32 %v6574_v11 }
0x41f7   :  { %v7424_v46 = vpop.eup %7423 }
0x41f8   :  { %4215 = vrot.lane.b32.xlu0 %v7424_v46, %s7691_s29 }
0x41fd   :  { %v7426_v0 = vpop.eup %7425 }
0x41fe   :  { %v4198_v6 = vadd.f32 1.0, %v7426_v0 }
0x4200   :  { %7427 = vrcp.f32 %v4198_v6 }
0x420d   :  { %v7428_v7 = vpop.eup %7427 }
0x420e   :  { %v4213_v3 = vsub.f32 1.0, %v7428_v7  ;;  %v4219_v47 = vmul.f32 %v7428_v7, %v9122_v60 }
0x424a   :  { %v4174_v43 = vpop.permute.xlu0 %4173 }
0x424b   :  { %v4176_v12 = vmul.f32 %v4174_v43, %v4171_v10 }
0x424d   :  { %v9148_v54 = vadd.f32 %v4177_v21, %v4176_v12 }
0x424f   :  { %4222 = vrot.lane.b32.xlu1 %v9148_v54, %s7691_s29 }
0x4253   :  { %3138 = vrot.lane.b32.xlu1 %v8852_v29, %s7692_s8 }
0x426a   :  { %v4216_v20 = vpop.permute.xlu0 %4215 }
0x426b   :  { %v4218_v8 = vmul.f32 %v4216_v20, %v4213_v3 }
0x426d   :  { %v9155_v26 = vadd.f32 %v4219_v47, %v4218_v8 }
0x42c1   :  { %v4223_v22 = vpop.permute.xlu1 %4222 }
0x42c2   :  { %4225 = vst.msk [vmem:[#allocation5 + $0xe] sm:$0x3] %vm1061_vm4, %v4223_v22  ;;  %v4233_v29 = vsel %vm782_vm2, %v4223_v22, %v9155_v26 }
0x42c3   :  { %v4234_v27 = vpack.c.bf16 %v4233_v29, %v4233_v29 }
0x42c5   :  { %6575 = vmatmul.mubr.msk.bf16.vlgmr.msra.gmra.mxu0 %vm131_vm0, %v4234_v27  ;;  %v3139_v41 = vpop.permute.xlu1 %3138 }
0x42c6   :  { %4501 = vmatpush1.bf16.msra.mxu0 %v9024_v48  ;;  %4524 = vmatprep.mubr.bf16.mxu0 %v7689_v36 }
0x42c7   :  { %4502 = vmatprep.subr.bf16.mxu0 %v9031_v19 }
0x42ca   :  { %4503 = vmatpush1.bf16.msra.mxu0 %v9037_v63 }
0x42cb   :  { %4504 = vmatprep.subr.bf16.mxu0 %v9079_v14 }
0x42ce   :  { %4505 = vmatpush1.bf16.msra.mxu0 %v9085_v58 }
0x42cf   :  { %4506 = vmatprep.subr.bf16.mxu0 %v9091_v39 }
0x42d2   :  { %4507 = vmatpush1.bf16.msra.mxu0 %v9097_v24 }
0x42d3   :  { %4754 = vmatprep.subr.bf16.mxu0 %v9047_v57 }
0x4385   :  { %v4272_v59 = vpop.f32.mrf.mxu0 }
0x4386   :  { %v4286_v28 = vadd.f32 %v4272_v59, %v8820_v45  ;;  %4307 = vrot.lane.b32.xlu1 %v4272_v59, %s7692_s8  ;;  %v4279_v30 = vadd.f32 %v4272_v59, %v4231_v16 }
0x4387   :  { %v4274_v55 = vpop.f32.mrf.mxu0 }
0x4388   :  { %4288 = vrot.lane.b32.xlu0 %v4286_v28, %s7688_s7  ;;  %v4328_v25 = vadd.f32 %v9107_v4, %v4274_v55  ;;  %v6576_v62 = vmul.f32 -1.442695, %v4279_v30 }
0x4389   :  { %v4276_v31 = vpop.f32.mrf.mxu0 }
0x438a   :  { %7429 = vpow2.f32 %v6576_v62 }
0x438b   :  { %v4277_v49 = vpop.f32.mrf.mxu0 }
0x438c   :  { %3140 = vrot.lane.b32.xlu0 %v8856_v52, %s7692_s8 }
0x4390   :  { %4330 = vrot.lane.b32.xlu0 %v4328_v25, %s7691_s29 }
0x4397   :  { %v7430_v15 = vpop.eup %7429 }
0x4398   :  { %v4283_v38 = vadd.f32 1.0, %v7430_v15 }
0x439a   :  { %7431 = vrcp.f32 %v4283_v38 }
0x43a7   :  { %v7432_v9 = vpop.eup %7431 }
0x43a8   :  { %v4298_v0 = vsub.f32 1.0, %v7432_v9  ;;  %v4304_v7 = vmul.f32 %v7432_v9, %v9148_v54 }
0x43f8   :  { %v4308_v33 = vpop.permute.xlu1 %4307 }
0x43fa   :  { %v4289_v1 = vpop.permute.xlu0 %4288 }
0x43fb   :  { %v4291_v34 = vmul.f32 %v7432_v9, %v4289_v1 }
0x43fd   :  { %4293 = vrot.lane.b32.xlu1 %v4291_v34, %s7688_s7 }
0x43fe   :  { %v3141_v42 = vpop.permute.xlu0 %3140 }
0x43ff   :  { %v3151_v52 = vsel %vm782_vm2, %v3139_v41, %v3141_v42  ;;  %v4358_v41 = vld [vmem:[#allocation3 + $0x12] sm:$0x3] }
0x4400   :  { %3159 = vst.msk [vmem:[#allocation4 + $0x8] sm:$0xff] %vm842_vm3, %v3151_v52 }
0x4402   :  { %v4331_v46 = vpop.permute.xlu0 %4330 }
0x4407   :  { %v4232_v35 = vld [vmem:[#allocation4 + $0xe] sm:$0x3] }
0x4408   :  { %v4310_v18 = vadd.f32 %v4308_v33, %v4232_v35 }
0x440a   :  { %v6577_v51 = vmul.f32 -1.442695, %v4310_v18  ;;  %v4359_v18 = vld [vmem:[#allocation4 + $0xc] sm:$0x3] }
0x440c   :  { %7433 = vpow2.f32 %v6577_v51 }
0x4419   :  { %v7434_v61 = vpop.eup %7433 }
0x441a   :  { %v4314_v23 = vadd.f32 1.0, %v7434_v61 }
0x441c   :  { %7435 = vrcp.f32 %v4314_v23 }
0x4429   :  { %v7436_v5 = vpop.eup %7435 }
0x442a   :  { %v4333_v10 = vmul.f32 %v7436_v5, %v4331_v46 }
0x442c   :  { %4335 = vrot.lane.b32.xlu0 %v4333_v10, %s7688_s7 }
0x4430   :  { %4318 = vrot.lane.b32.xlu0 %v4274_v55, %s7692_s8 }
0x446f   :  { %v4294_v43 = vpop.permute.xlu1 %4293 }
0x4470   :  { %v4296_v21 = vadd.f32 %v4294_v43, %v4231_v16 }
0x4472   :  { %7437 = vtanh.f32 %v4296_v21 }
0x447f   :  { %v7438_v12 = vpop.eup %7437 }
0x4480   :  { %4300 = vrot.lane.b32.xlu1 %v7438_v12, %s7691_s29 }
0x449e   :  { %v4336_v13 = vpop.permute.xlu0 %4335 }
0x449f   :  { %v4338_v32 = vadd.f32 %v4336_v13, %v4232_v35 }
0x44a1   :  { %7439 = vtanh.f32 %v4338_v32 }
0x44a2   :  { %v4319_v8 = vpop.permute.xlu0 %4318 }
0x44a3   :  { %v4321_v47 = vadd.f32 %v4319_v8, %v4232_v35 }
0x44a5   :  { %v6578_v22 = vmul.f32 -1.442695, %v4321_v47 }
0x44a7   :  { %7441 = vpow2.f32 %v6578_v22 }
0x44ae   :  { %v7440_v11 = vpop.eup %7439 }
0x44af   :  { %4342 = vrot.lane.b32.xlu1 %v7440_v11, %s7691_s29 }
0x44b4   :  { %v7442_v29 = vpop.eup %7441 }
0x44b5   :  { %v4325_v27 = vadd.f32 1.0, %v7442_v29 }
0x44b7   :  { %7443 = vrcp.f32 %v4325_v27 }
0x44c4   :  { %v7444_v59 = vpop.eup %7443 }
0x44c5   :  { %v4340_v55 = vsub.f32 1.0, %v7444_v59  ;;  %v4346_v49 = vmul.f32 %v7444_v59, %v9155_v26 }
0x44f2   :  { %v4301_v6 = vpop.permute.xlu1 %4300 }
0x44f3   :  { %v4303_v20 = vmul.f32 %v4301_v6, %v4298_v0 }
0x44f5   :  { %v9185_v3 = vadd.f32 %v4304_v7, %v4303_v20 }
0x44f7   :  { %4349 = vrot.lane.b32.xlu0 %v9185_v3, %s7691_s29 }
0x4521   :  { %v4343_v28 = vpop.permute.xlu1 %4342 }
0x4522   :  { %v4345_v31 = vmul.f32 %v4343_v28, %v4340_v55 }
0x4524   :  { %v9190_v54 = vadd.f32 %v4346_v49, %v4345_v31 }
0x4569   :  { %v4350_v25 = vpop.permute.xlu0 %4349 }
0x456a   :  { %4352 = vst.msk [vmem:[#allocation5 + $0x10] sm:$0x3] %vm1061_vm4, %v4350_v25  ;;  %v4360_v16 = vsel %vm782_vm2, %v4350_v25, %v9190_v54 }
0x456b   :  { %v4361_v30 = vpack.c.bf16 %v4360_v16, %v4360_v16 }
0x456d   :  { %6579 = vmatmul.mubr.msk.bf16.vlgmr.msra.gmra.mxu1 %vm131_vm0, %v4361_v30 }
0x456e   :  { %4628 = vmatpush1.bf16.msra.mxu1 %v9024_v48  ;;  %4651 = vmatprep.mubr.bf16.mxu1 %v7689_v36 }
0x456f   :  { %4629 = vmatprep.subr.bf16.mxu1 %v9031_v19 }
0x4572   :  { %4630 = vmatpush1.bf16.msra.mxu1 %v9037_v63 }
0x4573   :  { %4631 = vmatprep.subr.bf16.mxu1 %v9079_v14 }
0x4576   :  { %4632 = vmatpush1.bf16.msra.mxu1 %v9085_v58 }
0x4577   :  { %4633 = vmatprep.subr.bf16.mxu1 %v9091_v39 }
0x457a   :  { %4634 = vmatpush1.bf16.msra.mxu1 %v9097_v24 }
0x457b   :  { %4881 = vmatprep.subr.bf16.mxu1 %v9047_v57 }
0x462d   :  { %v4399_v62 = vpop.f32.mrf.mxu1 }
0x462e   :  { %v4413_v15 = vadd.f32 %v4399_v62, %v8820_v45  ;;  %4434 = vrot.lane.b32.xlu0 %v4399_v62, %s7692_s8  ;;  %v4406_v42 = vadd.f32 %v4399_v62, %v4358_v41 }
0x462f   :  { %v4401_v38 = vpop.f32.mrf.mxu1 }
0x4630   :  { %4415 = vrot.lane.b32.xlu1 %v4413_v15, %s7688_s7  ;;  %v4455_v1 = vadd.f32 %v9107_v4, %v4401_v38  ;;  %v6580_v52 = vmul.f32 -1.442695, %v4406_v42 }
0x4631   :  { %v4403_v9 = vpop.f32.mrf.mxu1 }
0x4632   :  { %7445 = vpow2.f32 %v6580_v52 }
0x4633   :  { %v4404_v34 = vpop.f32.mrf.mxu1 }
0x4634   :  { %4457 = vrot.lane.b32.xlu1 %v4455_v1, %s7691_s29 }
0x463f   :  { %v7446_v33 = vpop.eup %7445 }
0x4640   :  { %v4410_v35 = vadd.f32 1.0, %v7446_v33 }
0x4642   :  { %7447 = vrcp.f32 %v4410_v35 }
0x464f   :  { %v7448_v23 = vpop.eup %7447 }
0x4650   :  { %v4425_v47 = vsub.f32 1.0, %v7448_v23  ;;  %v4431_v29 = vmul.f32 %v7448_v23, %v9185_v3 }
0x46a0   :  { %v4435_v51 = vpop.permute.xlu0 %4434 }
0x46a1   :  { %v4437_v61 = vadd.f32 %v4435_v51, %v4359_v18  ;;  %v4485_v51 = vld [vmem:[#allocation3 + $0x14] sm:$0x3] }
0x46a2   :  { %v4416_v5 = vpop.permute.xlu1 %4415 }
0x46a3   :  { %v6581_v46 = vmul.f32 -1.442695, %v4437_v61  ;;  %v4418_v10 = vmul.f32 %v7448_v23, %v4416_v5 }
0x46a5   :  { %7449 = vpow2.f32 %v6581_v46  ;;  %4420 = vrot.lane.b32.xlu0 %v4418_v10, %s7688_s7  ;;  %v4486_v10 = vld [vmem:[#allocation4 + $0xa] sm:$0x3] }
0x46a6   :  { %v4458_v13 = vpop.permute.xlu1 %4457 }
0x46b2   :  { %v7450_v43 = vpop.eup %7449 }
0x46b3   :  { %v4441_v21 = vadd.f32 1.0, %v7450_v43 }
0x46b5   :  { %7451 = vrcp.f32 %v4441_v21 }
0x46c2   :  { %v7452_v12 = vpop.eup %7451 }
0x46c3   :  { %v4460_v32 = vmul.f32 %v7452_v12, %v4458_v13 }
0x46c5   :  { %4462 = vrot.lane.b32.xlu1 %v4460_v32, %s7688_s7 }
0x46c9   :  { %4445 = vrot.lane.b32.xlu1 %v4401_v38, %s7692_s8 }
0x4717   :  { %v4421_v11 = vpop.permute.xlu0 %4420 }
0x4718   :  { %v4423_v0 = vadd.f32 %v4421_v11, %v4358_v41 }
0x471a   :  { %7453 = vtanh.f32 %v4423_v0 }
0x4727   :  { %v7454_v6 = vpop.eup %7453 }
0x4728   :  { %4427 = vrot.lane.b32.xlu0 %v7454_v6, %s7691_s29 }
0x4737   :  { %v4463_v7 = vpop.permute.xlu1 %4462 }
0x4738   :  { %v4465_v20 = vadd.f32 %v4463_v7, %v4359_v18 }
0x473a   :  { %7455 = vtanh.f32 %v4465_v20 }
0x473b   :  { %v4446_v28 = vpop.permute.xlu1 %4445 }
0x473c   :  { %v4448_v55 = vadd.f32 %v4446_v28, %v4359_v18 }
0x473e   :  { %v6582_v31 = vmul.f32 -1.442695, %v4448_v55 }
0x4740   :  { %7457 = vpow2.f32 %v6582_v31 }
0x4747   :  { %v7456_v8 = vpop.eup %7455 }
0x4748   :  { %4469 = vrot.lane.b32.xlu0 %v7456_v8, %s7691_s29 }
0x474d   :  { %v7458_v49 = vpop.eup %7457 }
0x474e   :  { %v4452_v25 = vadd.f32 1.0, %v7458_v49 }
0x4750   :  { %7459 = vrcp.f32 %v4452_v25 }
0x475d   :  { %v7460_v16 = vpop.eup %7459 }
0x475e   :  { %v4467_v62 = vsub.f32 1.0, %v7460_v16  ;;  %v4473_v38 = vmul.f32 %v7460_v16, %v9190_v54 }
0x479a   :  { %v4428_v22 = vpop.permute.xlu0 %4427 }
0x479b   :  { %v4430_v27 = vmul.f32 %v4428_v22, %v4425_v47 }
0x479d   :  { %v9216_v59 = vadd.f32 %v4431_v29, %v4430_v27 }
0x479f   :  { %4476 = vrot.lane.b32.xlu1 %v9216_v59, %s7691_s29 }
0x47ba   :  { %v4470_v30 = vpop.permute.xlu0 %4469 }
0x47bb   :  { %v4472_v15 = vmul.f32 %v4470_v30, %v4467_v62 }
0x47bd   :  { %v9221_v3 = vadd.f32 %v4473_v38, %v4472_v15 }
0x4811   :  { %v4477_v9 = vpop.permute.xlu1 %4476 }
0x4812   :  { %4479 = vst.msk [vmem:[#allocation5 + $0x12] sm:$0x3] %vm1061_vm4, %v4477_v9  ;;  %v4487_v1 = vsel %vm782_vm2, %v4477_v9, %v9221_v3 }
0x4813   :  { %v4488_v34 = vpack.c.bf16 %v4487_v1, %v4487_v1 }
0x4815   :  { %6583 = vmatmul.mubr.msk.bf16.vlgmr.msra.gmra.mxu0 %vm131_vm0, %v4488_v34 }
0x4816   :  { %4755 = vmatpush1.bf16.msra.mxu0 %v9024_v48  ;;  %4778 = vmatprep.mubr.bf16.mxu0 %v7689_v36 }
0x4817   :  { %4756 = vmatprep.subr.bf16.mxu0 %v9031_v19 }
0x481a   :  { %4757 = vmatpush1.bf16.msra.mxu0 %v9037_v63 }
0x481b   :  { %4758 = vmatprep.subr.bf16.mxu0 %v9079_v14 }
0x481e   :  { %4759 = vmatpush1.bf16.msra.mxu0 %v9085_v58 }
0x481f   :  { %4760 = vmatprep.subr.bf16.mxu0 %v9091_v39 }
0x4822   :  { %4761 = vmatpush1.bf16.msra.mxu0 %v9097_v24 }
0x4823   :  { %5008 = vmatprep.subr.bf16.mxu0 %v9047_v57 }
0x48d5   :  { %v4526_v41 = vpop.f32.mrf.mxu0 }
0x48d6   :  { %v4540_v42 = vadd.f32 %v4526_v41, %v8820_v45  ;;  %4561 = vrot.lane.b32.xlu1 %v4526_v41, %s7692_s8  ;;  %v4533_v61 = vadd.f32 %v4526_v41, %v4485_v51 }
0x48d7   :  { %v4528_v52 = vpop.f32.mrf.mxu0 }
0x48d8   :  { %4542 = vrot.lane.b32.xlu0 %v4540_v42, %s7688_s7  ;;  %v4582_v35 = vadd.f32 %v9107_v4, %v4528_v52  ;;  %v6584_v23 = vmul.f32 -1.442695, %v4533_v61 }
0x48d9   :  { %v4530_v33 = vpop.f32.mrf.mxu0 }
0x48da   :  { %7461 = vpow2.f32 %v6584_v23 }
0x48db   :  { %v4531_v18 = vpop.f32.mrf.mxu0 }
0x48dc   :  { %4584 = vrot.lane.b32.xlu0 %v4582_v35, %s7691_s29 }
0x48e7   :  { %v7462_v5 = vpop.eup %7461 }
0x48e8   :  { %v4537_v46 = vadd.f32 1.0, %v7462_v5 }
0x48ea   :  { %7463 = vrcp.f32 %v4537_v46  ;;  %v4612_v46 = vld [vmem:[#allocation3 + $0x16] sm:$0x3] }
0x48f7   :  { %v7464_v12 = vpop.eup %7463 }
0x48f8   :  { %v4552_v31 = vsub.f32 1.0, %v7464_v12  ;;  %v4558_v25 = vmul.f32 %v7464_v12, %v9216_v59 }
0x4948   :  { %v4562_v43 = vpop.permute.xlu1 %4561 }
0x4949   :  { %v4564_v21 = vadd.f32 %v4562_v43, %v4486_v10 }
0x494a   :  { %v4543_v13 = vpop.permute.xlu0 %4542 }
0x494b   :  { %v6585_v32 = vmul.f32 -1.442695, %v4564_v21  ;;  %v4545_v11 = vmul.f32 %v7464_v12, %v4543_v13  ;;  %v4613_v12 = vld [vmem:[#allocation4 + $0x8] sm:$0x3] }
0x494d   :  { %7465 = vpow2.f32 %v6585_v32  ;;  %4547 = vrot.lane.b32.xlu1 %v4545_v11, %s7688_s7 }
0x494e   :  { %v4585_v20 = vpop.permute.xlu0 %4584 }
0x495a   :  { %v7466_v0 = vpop.eup %7465 }
0x495b   :  { %v4568_v6 = vadd.f32 1.0, %v7466_v0 }
0x495d   :  { %7467 = vrcp.f32 %v4568_v6 }
0x496a   :  { %v7468_v7 = vpop.eup %7467 }
0x496b   :  { %v4587_v8 = vmul.f32 %v7468_v7, %v4585_v20 }
0x496d   :  { %4589 = vrot.lane.b32.xlu0 %v4587_v8, %s7688_s7 }
0x4971   :  { %4572 = vrot.lane.b32.xlu0 %v4528_v52, %s7692_s8 }
0x49bf   :  { %v4548_v47 = vpop.permute.xlu1 %4547 }
0x49c0   :  { %v4550_v22 = vadd.f32 %v4548_v47, %v4485_v51 }
0x49c2   :  { %7469 = vtanh.f32 %v4550_v22 }
0x49cf   :  { %v7470_v29 = vpop.eup %7469 }
0x49d0   :  { %4554 = vrot.lane.b32.xlu1 %v7470_v29, %s7691_s29 }
0x49df   :  { %v4590_v27 = vpop.permute.xlu0 %4589 }
0x49e0   :  { %v4592_v28 = vadd.f32 %v4590_v27, %v4486_v10 }
0x49e2   :  { %7471 = vtanh.f32 %v4592_v28 }
0x49e3   :  { %v4573_v62 = vpop.permute.xlu0 %4572 }
0x49e4   :  { %v4575_v15 = vadd.f32 %v4573_v62, %v4486_v10 }
0x49e6   :  { %v6586_v38 = vmul.f32 -1.442695, %v4575_v15 }
0x49e8   :  { %7473 = vpow2.f32 %v6586_v38 }
0x49ef   :  { %v7472_v55 = vpop.eup %7471 }
0x49f0   :  { %4596 = vrot.lane.b32.xlu1 %v7472_v55, %s7691_s29 }
0x49f5   :  { %v7474_v9 = vpop.eup %7473 }
0x49f6   :  { %v4579_v1 = vadd.f32 1.0, %v7474_v9 }
0x49f8   :  { %7475 = vrcp.f32 %v4579_v1 }
0x4a05   :  { %v7476_v34 = vpop.eup %7475 }
0x4a06   :  { %v4594_v42 = vsub.f32 1.0, %v7476_v34  ;;  %v4600_v33 = vmul.f32 %v7476_v34, %v9221_v3 }
0x4a42   :  { %v4555_v49 = vpop.permute.xlu1 %4554 }
0x4a43   :  { %v4557_v16 = vmul.f32 %v4555_v49, %v4552_v31 }
0x4a45   :  { %v9247_v30 = vadd.f32 %v4558_v25, %v4557_v16 }
0x4a47   :  { %4603 = vrot.lane.b32.xlu0 %v9247_v30, %s7691_s29 }
0x4a62   :  { %v4597_v41 = vpop.permute.xlu1 %4596 }
0x4a63   :  { %v4599_v52 = vmul.f32 %v4597_v41, %v4594_v42 }
0x4a65   :  { %v9252_v59 = vadd.f32 %v4600_v33, %v4599_v52 }
0x4ab9   :  { %v4604_v35 = vpop.permute.xlu0 %4603 }
0x4aba   :  { %4606 = vst.msk [vmem:[#allocation5 + $0x14] sm:$0x3] %vm1061_vm4, %v4604_v35  ;;  %v4614_v18 = vsel %vm782_vm2, %v4604_v35, %v9252_v59 }
0x4abb   :  { %v4615_v51 = vpack.c.bf16 %v4614_v18, %v4614_v18 }
0x4abd   :  { %6587 = vmatmul.mubr.msk.bf16.vlgmr.msra.gmra.mxu1 %vm131_vm0, %v4615_v51 }
0x4abe   :  { %4882 = vmatpush1.bf16.msra.mxu1 %v9024_v48  ;;  %4905 = vmatprep.mubr.bf16.mxu1 %v7689_v36 }
0x4abf   :  { %4883 = vmatprep.subr.bf16.mxu1 %v9031_v19 }
0x4ac2   :  { %4884 = vmatpush1.bf16.msra.mxu1 %v9037_v63 }
0x4ac3   :  { %4885 = vmatprep.subr.bf16.mxu1 %v9079_v14 }
0x4ac6   :  { %4886 = vmatpush1.bf16.msra.mxu1 %v9085_v58 }
0x4ac7   :  { %4887 = vmatprep.subr.bf16.mxu1 %v9091_v39 }
0x4aca   :  { %4888 = vmatpush1.bf16.msra.mxu1 %v9097_v24 }
0x4acb   :  { %5135 = vmatprep.subr.bf16.mxu1 %v9047_v57 }
0x4b7d   :  { %v4653_v61 = vpop.f32.mrf.mxu1 }
0x4b7e   :  { %v4667_v23 = vadd.f32 %v4653_v61, %v8820_v45  ;;  %4688 = vrot.lane.b32.xlu0 %v4653_v61, %s7692_s8  ;;  %v4660_v10 = vadd.f32 %v4653_v61, %v4612_v46 }
0x4b7f   :  { %v4655_v48 = vpop.f32.mrf.mxu1 }
0x4b80   :  { %4669 = vrot.lane.b32.xlu1 %v4667_v23, %s7688_s7  ;;  %v4709_v63 = vadd.f32 %v9107_v4, %v4655_v48  ;;  %v6588_v43 = vmul.f32 -1.442695, %v4660_v10 }
0x4b81   :  { %v4657_v19 = vpop.f32.mrf.mxu1 }
0x4b82   :  { %7477 = vpow2.f32 %v6588_v43  ;;  %v9294_v19 = vld [vmem:[%s9707_s13 + $0x30] ss:$8 sps:$4 sm:$0xff]  }
0x4b83   :  { %v4658_v5 = vpop.f32.mrf.mxu1 }
0x4b84   :  { %4711 = vrot.lane.b32.xlu1 %v4709_v63, %s7691_s29  ;;  %v9301_v63 = vld [vmem:[%s9707_s13 + $0x24] ss:$8 sps:$4 sm:$0xff]   ;;  %v9307_v5 = vld [vmem:[%s9707_s13 + $0x20] ss:$8 sps:$4 sm:$0xff]  }
0x4b8f   :  { %v7478_v21 = vpop.eup %7477 }
0x4b90   :  { %v4664_v57 = vadd.f32 1.0, %v7478_v21 }
0x4b92   :  { %7479 = vrcp.f32 %v4664_v57 }
0x4b9f   :  { %v7480_v11 = vpop.eup %7479 }
0x4ba0   :  { %v4679_v16 = vsub.f32 1.0, %v7480_v11  ;;  %v4685_v15 = vmul.f32 %v7480_v11, %v9247_v30 }
0x4bf0   :  { %v4689_v13 = vpop.permute.xlu0 %4688 }
0x4bf1   :  { %v4691_v32 = vadd.f32 %v4689_v13, %v4613_v12 }
0x4bf2   :  { %v4670_v0 = vpop.permute.xlu1 %4669 }
0x4bf3   :  { %v6589_v6 = vmul.f32 -1.442695, %v4691_v32  ;;  %v4672_v7 = vmul.f32 %v7480_v11, %v4670_v0 }
0x4bf5   :  { %7481 = vpow2.f32 %v6589_v6  ;;  %4674 = vrot.lane.b32.xlu0 %v4672_v7, %s7688_s7 }
0x4bf6   :  { %v4712_v22 = vpop.permute.xlu1 %4711 }
0x4c02   :  { %v7482_v20 = vpop.eup %7481 }
0x4c03   :  { %v4695_v8 = vadd.f32 1.0, %v7482_v20 }
0x4c05   :  { %7483 = vrcp.f32 %v4695_v8 }
0x4c12   :  { %v7484_v47 = vpop.eup %7483 }
0x4c13   :  { %v4714_v29 = vmul.f32 %v7484_v47, %v4712_v22 }
0x4c15   :  { %4716 = vrot.lane.b32.xlu1 %v4714_v29, %s7688_s7 }
0x4c19   :  { %4699 = vrot.lane.b32.xlu1 %v4655_v48, %s7692_s8 }
0x4c67   :  { %v4675_v27 = vpop.permute.xlu0 %4674 }
0x4c68   :  { %v4677_v28 = vadd.f32 %v4675_v27, %v4612_v46 }
0x4c6a   :  { %7485 = vtanh.f32 %v4677_v28 }
0x4c77   :  { %v7486_v55 = vpop.eup %7485 }
0x4c78   :  { %4681 = vrot.lane.b32.xlu0 %v7486_v55, %s7691_s29 }
0x4c87   :  { %v4717_v31 = vpop.permute.xlu1 %4716 }
0x4c88   :  { %v4719_v49 = vadd.f32 %v4717_v31, %v4613_v12 }
0x4c8a   :  { %7487 = vtanh.f32 %v4719_v49 }
0x4c8b   :  { %v4700_v1 = vpop.permute.xlu1 %4699 }
0x4c8c   :  { %v4702_v34 = vadd.f32 %v4700_v1, %v4613_v12 }
0x4c8e   :  { %v6590_v41 = vmul.f32 -1.442695, %v4702_v34 }
0x4c90   :  { %7489 = vpow2.f32 %v6590_v41 }
0x4c97   :  { %v7488_v25 = vpop.eup %7487 }
0x4c98   :  { %4723 = vrot.lane.b32.xlu0 %v7488_v25, %s7691_s29 }
0x4c9d   :  { %v7490_v42 = vpop.eup %7489 }
0x4c9e   :  { %v4706_v52 = vadd.f32 1.0, %v7490_v42 }
0x4ca0   :  { %7491 = vrcp.f32 %v4706_v52 }
0x4cad   :  { %v7492_v33 = vpop.eup %7491 }
0x4cae   :  { %v4721_v18 = vsub.f32 1.0, %v7492_v33  ;;  %v4727_v51 = vmul.f32 %v7492_v33, %v9252_v59 }
0x4cea   :  { %v4682_v62 = vpop.permute.xlu0 %4681 }
0x4ceb   :  { %v4684_v38 = vmul.f32 %v4682_v62, %v4679_v16 }
0x4ced   :  { %v9278_v9 = vadd.f32 %v4685_v15, %v4684_v38 }
0x4cef   :  { %4730 = vrot.lane.b32.xlu1 %v9278_v9, %s7691_s29 }
0x4cf3   :  { %3134 = vrot.lane.b32.xlu1 %v8846_v17, %s7692_s8 }
0x4d0a   :  { %v4724_v35 = vpop.permute.xlu0 %4723 }
0x4d0b   :  { %v4726_v30 = vmul.f32 %v4724_v35, %v4721_v18 }
0x4d0d   :  { %v9285_v61 = vadd.f32 %v4727_v51, %v4726_v30 }
0x4d61   :  { %v4731_v23 = vpop.permute.xlu1 %4730 }
0x4d62   :  { %4733 = vst.msk [vmem:[#allocation5 + $0x16] sm:$0x3] %vm1061_vm4, %v4731_v23  ;;  %v4741_v17 = vsel %vm782_vm2, %v4731_v23, %v9285_v61 }
0x4d63   :  { %v4742_v48 = vpack.c.bf16 %v4741_v17, %v4741_v17 }
0x4d65   :  { %6591 = vmatmul.mubr.msk.bf16.vlgmr.msra.gmra.mxu0 %vm131_vm0, %v4742_v48  ;;  %v3135_v6 = vpop.permute.xlu1 %3134 }
0x4d66   :  { %5009 = vmatpush1.bf16.msra.mxu0 %v9294_v19  ;;  %5032 = vmatprep.mubr.bf16.mxu0 %v7689_v36 }
0x4d67   :  { %5010 = vmatprep.subr.bf16.mxu0 %v9301_v63 }
0x4d6a   :  { %5011 = vmatpush1.bf16.msra.mxu0 %v9307_v5 }
0x4d6b   :  { %5012 = vmatprep.subr.bf16.mxu0 %v9079_v14 }
0x4d6e   :  { %5013 = vmatpush1.bf16.msra.mxu0 %v9085_v58  ;;  %v4739_v58 = vld [vmem:[#allocation3 + $0x18] sm:$0x3] }
0x4d6f   :  { %5014 = vmatprep.subr.bf16.mxu0 %v9091_v39 }
0x4d72   :  { %5015 = vmatpush1.bf16.msra.mxu0 %v9097_v24 }
0x4e25   :  { %v4780_v46 = vpop.f32.mrf.mxu0 }
0x4e26   :  { %v4794_v10 = vadd.f32 %v4780_v46, %v8820_v45  ;;  %4815 = vrot.lane.b32.xlu1 %v4780_v46, %s7692_s8  ;;  %v4787_v39 = vadd.f32 %v4780_v46, %v4739_v58 }
0x4e27   :  { %v4782_v43 = vpop.f32.mrf.mxu0 }
0x4e28   :  { %4796 = vrot.lane.b32.xlu0 %v4794_v10, %s7688_s7  ;;  %v4836_v14 = vadd.f32 %v9107_v4, %v4782_v43  ;;  %v6592_v24 = vmul.f32 -1.442695, %v4787_v39 }
0x4e29   :  { %v4784_v21 = vpop.f32.mrf.mxu0 }
0x4e2a   :  { %7493 = vpow2.f32 %v6592_v24  ;;  %v9362_v24 = vld [vmem:[%s9709_s14] ss:$0 sm:$0xff] }
0x4e2b   :  { %v4785_v57 = vpop.f32.mrf.mxu0 }
0x4e2c   :  { %3136 = vrot.lane.b32.xlu0 %v8850_v37, %s7692_s8  ;;  %v7682_v57 = vld [vmem:[%s9707_s13 + $0x14] ss:$8 sps:$4 sm:$0xff]  }
0x4e30   :  { %4838 = vrot.lane.b32.xlu0 %v4836_v14, %s7691_s29  ;;  %v7683_v14 = vld [vmem:[%s9707_s13 + $0x10] ss:$8 sps:$4 sm:$0xff]  }
0x4e37   :  { %v7494_v12 = vpop.eup %7493 }
0x4e38   :  { %v4791_v13 = vadd.f32 1.0, %v7494_v12 }
0x4e3a   :  { %7495 = vrcp.f32 %v4791_v13 }
0x4e47   :  { %v7496_v32 = vpop.eup %7495 }
0x4e48   :  { %v4806_v38 = vsub.f32 1.0, %v7496_v32  ;;  %v4812_v34 = vmul.f32 %v7496_v32, %v9278_v9 }
0x4e98   :  { %v4816_v4 = vpop.permute.xlu1 %4815 }
0x4e9a   :  { %v4797_v11 = vpop.permute.xlu0 %4796 }
0x4e9b   :  { %v4799_v0 = vmul.f32 %v7496_v32, %v4797_v11  ;;  %v4866_v32 = vld [vmem:[#allocation3 + $0x1a] sm:$0x3] }
0x4e9d   :  { %4801 = vrot.lane.b32.xlu1 %v4799_v0, %s7688_s7 }
0x4e9e   :  { %v3137_v7 = vpop.permute.xlu0 %3136 }
0x4e9f   :  { %v3150_v37 = vsel %vm782_vm2, %v3135_v6, %v3137_v7 }
0x4ea0   :  { %3158 = vst.msk [vmem:[#allocation4] sm:$0xff] %vm842_vm3, %v3150_v37 }
0x4ea2   :  { %v4839_v28 = vpop.permute.xlu0 %4838 }
0x4ea7   :  { %v4740_v20 = vld [vmem:[#allocation4 + $0x6] sm:$0x3]  ;;  %v4867_v37 = vld [vmem:[#allocation4 + $0x4] sm:$0x3] }
0x4ea8   :  { %v4818_v8 = vadd.f32 %v4816_v4, %v4740_v20 }
0x4eaa   :  { %v6593_v47 = vmul.f32 -1.442695, %v4818_v8 }
0x4eac   :  { %7497 = vpow2.f32 %v6593_v47 }
0x4eb9   :  { %v7498_v22 = vpop.eup %7497 }
0x4eba   :  { %v4822_v29 = vadd.f32 1.0, %v7498_v22 }
0x4ebc   :  { %7499 = vrcp.f32 %v4822_v29 }
0x4ec9   :  { %v7500_v27 = vpop.eup %7499 }
0x4eca   :  { %v4841_v55 = vmul.f32 %v7500_v27, %v4839_v28 }
0x4ecc   :  { %4843 = vrot.lane.b32.xlu0 %v4841_v55, %s7688_s7 }
0x4ed0   :  { %4826 = vrot.lane.b32.xlu0 %v4782_v43, %s7692_s8 }
0x4f0f   :  { %v4802_v31 = vpop.permute.xlu1 %4801 }
0x4f10   :  { %v4804_v49 = vadd.f32 %v4802_v31, %v4739_v58 }
0x4f12   :  { %7501 = vtanh.f32 %v4804_v49 }
0x4f1f   :  { %v7502_v25 = vpop.eup %7501 }
0x4f20   :  { %4808 = vrot.lane.b32.xlu1 %v7502_v25, %s7691_s29 }
0x4f3e   :  { %v4844_v16 = vpop.permute.xlu0 %4843 }
0x4f3f   :  { %v4846_v62 = vadd.f32 %v4844_v16, %v4740_v20 }
0x4f41   :  { %7503 = vtanh.f32 %v4846_v62 }
0x4f42   :  { %v4827_v52 = vpop.permute.xlu0 %4826 }
0x4f43   :  { %v4829_v33 = vadd.f32 %v4827_v52, %v4740_v20 }
0x4f45   :  { %v6594_v35 = vmul.f32 -1.442695, %v4829_v33 }
0x4f47   :  { %7505 = vpow2.f32 %v6594_v35 }
0x4f4e   :  { %v7504_v15 = vpop.eup %7503 }
0x4f4f   :  { %4850 = vrot.lane.b32.xlu1 %v7504_v15, %s7691_s29 }
0x4f54   :  { %v7506_v18 = vpop.eup %7505 }
0x4f55   :  { %v4833_v30 = vadd.f32 1.0, %v7506_v18 }
0x4f57   :  { %7507 = vrcp.f32 %v4833_v30 }
0x4f64   :  { %v7508_v51 = vpop.eup %7507 }
0x4f65   :  { %v4848_v17 = vsub.f32 1.0, %v7508_v51  ;;  %v4854_v46 = vmul.f32 %v7508_v51, %v9285_v61 }
0x4f92   :  { %v4809_v1 = vpop.permute.xlu1 %4808 }
0x4f93   :  { %v4811_v41 = vmul.f32 %v4809_v1, %v4806_v38 }
0x4f95   :  { %v9329_v42 = vadd.f32 %v4812_v34, %v4811_v41 }
0x4f97   :  { %4857 = vrot.lane.b32.xlu0 %v9329_v42, %s7691_s29 }
0x4fc1   :  { %v4851_v23 = vpop.permute.xlu1 %4850 }
0x4fc2   :  { %v4853_v48 = vmul.f32 %v4851_v23, %v4848_v17 }
0x4fc4   :  { %v9334_v9 = vadd.f32 %v4854_v46, %v4853_v48 }
0x5009   :  { %v4858_v10 = vpop.permute.xlu0 %4857 }
0x500a   :  { %4860 = vst.msk [vmem:[#allocation5 + $0x18] sm:$0x3] %vm1061_vm4, %v4858_v10  ;;  %v4868_v43 = vsel %vm782_vm2, %v4858_v10, %v9334_v9 }
0x500b   :  { %v4869_v21 = vpack.c.bf16 %v4868_v43, %v4868_v43 }
0x500d   :  { %6595 = vmatmul.mubr.msk.bf16.vlgmr.msra.gmra.mxu1 %vm131_vm0, %v4869_v21 }
0x500e   :  { %5136 = vmatpush1.bf16.msra.mxu1 %v9294_v19  ;;  %5159 = vmatprep.mubr.bf16.mxu1 %v7689_v36  ;;  %v7684_v19 = vld [vmem:[%s9707_s13 + $0x4] ss:$8 sps:$4 sm:$0xff]   ;;  %v7685_v36 = vld [vmem:[%s9707_s13] ss:$8 sps:$4 sm:$0xff]   ;;  %s7703_s13 = smov 16  }
0x500f   :  { %5137 = vmatprep.subr.bf16.mxu1 %v9301_v63 }
0x5012   :  { %5138 = vmatpush1.bf16.msra.mxu1 %v9307_v5 }
0x5013   :  { %5139 = vmatprep.subr.bf16.mxu1 %v7682_v57 }
0x5016   :  { %5140 = vmatpush1.bf16.msra.mxu1 %v7683_v14 }
0x5017   :  { %5141 = vmatprep.subr.bf16.mxu1 %v7684_v19 }
0x501a   :  { %5142 = vmatpush1.bf16.msra.mxu1 %v7685_v36 }
0x50cd   :  { %v4907_v63 = vpop.f32.mrf.mxu1 }
0x50ce   :  { %v4921_v5 = vadd.f32 %v4907_v63, %v8820_v45  ;;  %4942 = vrot.lane.b32.xlu0 %v4907_v63, %s7692_s8  ;;  %v4914_v11 = vadd.f32 %v4907_v63, %v4866_v32 }
0x50cf   :  { %v4909_v58 = vpop.f32.mrf.mxu1 }
0x50d0   :  { %4923 = vrot.lane.b32.xlu1 %v4921_v5, %s7688_s7  ;;  %v4963_v12 = vadd.f32 %v9362_v24, %v4909_v58  ;;  %v6596_v0 = vmul.f32 -1.442695, %v4914_v11 }
0x50d1   :  { %v4911_v39 = vpop.f32.mrf.mxu1 }
0x50d2   :  { %7509 = vpow2.f32 %v6596_v0 }
0x50d3   :  { %v4912_v13 = vpop.f32.mrf.mxu1 }
0x50d4   :  { %4965 = vrot.lane.b32.xlu1 %v4963_v12, %s7691_s29  ;;  %v4993_v13 = vld [vmem:[#allocation3 + $0x1c] sm:$0x3] }
0x50df   :  { %v7510_v6 = vpop.eup %7509 }
0x50e0   :  { %v4918_v7 = vadd.f32 1.0, %v7510_v6 }
0x50e2   :  { %7511 = vrcp.f32 %v4918_v7  ;;  %v4994_v7 = vld [vmem:[#allocation4 + $0x2] sm:$0x3] }
0x50ef   :  { %v7512_v8 = vpop.eup %7511 }
0x50f0   :  { %v4933_v34 = vsub.f32 1.0, %v7512_v8  ;;  %v4939_v52 = vmul.f32 %v7512_v8, %v9329_v42 }
0x5140   :  { %v4943_v4 = vpop.permute.xlu0 %4942 }
0x5141   :  { %v4945_v20 = vadd.f32 %v4943_v4, %v4867_v37 }
0x5142   :  { %v4924_v47 = vpop.permute.xlu1 %4923 }
0x5143   :  { %v6597_v22 = vmul.f32 -1.442695, %v4945_v20  ;;  %v4926_v29 = vmul.f32 %v7512_v8, %v4924_v47 }
0x5145   :  { %7513 = vpow2.f32 %v6597_v22  ;;  %4928 = vrot.lane.b32.xlu0 %v4926_v29, %s7688_s7 }
0x5146   :  { %v4966_v31 = vpop.permute.xlu1 %4965 }
0x5152   :  { %v7514_v27 = vpop.eup %7513 }
0x5153   :  { %v4949_v28 = vadd.f32 1.0, %v7514_v27 }
0x5155   :  { %7515 = vrcp.f32 %v4949_v28 }
0x5162   :  { %v7516_v55 = vpop.eup %7515 }
0x5163   :  { %v4968_v49 = vmul.f32 %v7516_v55, %v4966_v31 }
0x5165   :  { %4970 = vrot.lane.b32.xlu1 %v4968_v49, %s7688_s7 }
0x5169   :  { %4953 = vrot.lane.b32.xlu1 %v4909_v58, %s7692_s8 }
0x51b7   :  { %v4929_v25 = vpop.permute.xlu0 %4928 }
0x51b8   :  { %v4931_v16 = vadd.f32 %v4929_v25, %v4866_v32 }
0x51ba   :  { %7517 = vtanh.f32 %v4931_v16 }
0x51c7   :  { %v7518_v62 = vpop.eup %7517 }
0x51c8   :  { %4935 = vrot.lane.b32.xlu0 %v7518_v62, %s7691_s29 }
0x51d7   :  { %v4971_v15 = vpop.permute.xlu1 %4970 }
0x51d8   :  { %v4973_v38 = vadd.f32 %v4971_v15, %v4867_v37 }
0x51da   :  { %7519 = vtanh.f32 %v4973_v38 }
0x51db   :  { %v4954_v18 = vpop.permute.xlu1 %4953 }
0x51dc   :  { %v4956_v30 = vadd.f32 %v4954_v18, %v4867_v37 }
0x51de   :  { %v6598_v51 = vmul.f32 -1.442695, %v4956_v30 }
0x51e0   :  { %7521 = vpow2.f32 %v6598_v51 }
0x51e7   :  { %v7520_v1 = vpop.eup %7519 }
0x51e8   :  { %4977 = vrot.lane.b32.xlu0 %v7520_v1, %s7691_s29 }
0x51ed   :  { %v7522_v23 = vpop.eup %7521 }
0x51ee   :  { %v4960_v17 = vadd.f32 1.0, %v7522_v23 }
0x51f0   :  { %7523 = vrcp.f32 %v4960_v17 }
0x51fd   :  { %v7524_v48 = vpop.eup %7523 }
0x51fe   :  { %v4975_v10 = vsub.f32 1.0, %v7524_v48  ;;  %v4981_v21 = vmul.f32 %v7524_v48, %v9334_v9 }
0x523a   :  { %v4936_v41 = vpop.permute.xlu0 %4935 }
0x523b   :  { %v4938_v33 = vmul.f32 %v4936_v41, %v4933_v34 }
0x523d   :  { %v9372_v35 = vadd.f32 %v4939_v52, %v4938_v33 }
0x523f   :  { %4984 = vrot.lane.b32.xlu1 %v9372_v35, %s7691_s29 }
0x525a   :  { %v4978_v46 = vpop.permute.xlu0 %4977 }
0x525b   :  { %v4980_v43 = vmul.f32 %v4978_v46, %v4975_v10 }
0x525d   :  { %v9377_v42 = vadd.f32 %v4981_v21, %v4980_v43 }
0x52b1   :  { %v4985_v57 = vpop.permute.xlu1 %4984 }
0x52b2   :  { %4987 = vst.msk [vmem:[#allocation5 + $0x1a] sm:$0x3] %vm1061_vm4, %v4985_v57  ;;  %v4995_v14 = vsel %vm782_vm2, %v4985_v57, %v9377_v42 }
0x52b3   :  { %v4996_v19 = vpack.c.bf16 %v4995_v14, %v4995_v14 }
0x52b5   :  { %6599 = vmatmul.mubr.msk.bf16.vlgmr.msra.gmra.mxu0 %vm131_vm0, %v4996_v19 }
0x5375   :  { %v5034_v36 = vpop.f32.mrf.mxu0 }
0x5376   :  { %v5048_v63 = vadd.f32 %v5034_v36, %v8820_v45  ;;  %5069 = vrot.lane.b32.xlu1 %v5034_v36, %s7692_s8  ;;  %v5041_v32 = vadd.f32 %v5034_v36, %v4993_v13 }
0x5377   :  { %v5036_v5 = vpop.f32.mrf.mxu0 }
0x5378   :  { %5050 = vrot.lane.b32.xlu0 %v5048_v63, %s7688_s7  ;;  %v5090_v39 = vadd.f32 %v9362_v24, %v5036_v5  ;;  %v6600_v11 = vmul.f32 -1.442695, %v5041_v32 }
0x5379   :  { %v5038_v58 = vpop.f32.mrf.mxu0 }
0x537a   :  { %7525 = vpow2.f32 %v6600_v11 }
0x537b   :  { %v5039_v12 = vpop.f32.mrf.mxu0 }
0x537c   :  { %5092 = vrot.lane.b32.xlu0 %v5090_v39, %s7691_s29 }
0x5387   :  { %v7526_v0 = vpop.eup %7525 }
0x5388   :  { %v5045_v6 = vadd.f32 1.0, %v7526_v0 }
0x538a   :  { %7527 = vrcp.f32 %v5045_v6 }
0x5397   :  { %v7528_v20 = vpop.eup %7527 }
0x5398   :  { %v5060_v1 = vsub.f32 1.0, %v7528_v20  ;;  %v5066_v41 = vmul.f32 %v7528_v20, %v9372_v35 }
0x53e8   :  { %v5070_v37 = vpop.permute.xlu1 %5069 }
0x53e9   :  { %v5072_v4 = vadd.f32 %v5070_v37, %v4994_v7 }
0x53ea   :  { %v5051_v8 = vpop.permute.xlu0 %5050 }
0x53eb   :  { %v6601_v47 = vmul.f32 -1.442695, %v5072_v4  ;;  %v5053_v22 = vmul.f32 %v7528_v20, %v5051_v8 }
0x53ed   :  { %7529 = vpow2.f32 %v6601_v47  ;;  %5055 = vrot.lane.b32.xlu1 %v5053_v22, %s7688_s7 }
0x53ee   :  { %v5093_v55 = vpop.permute.xlu0 %5092 }
0x53fa   :  { %v7530_v29 = vpop.eup %7529 }
0x53fb   :  { %v5076_v27 = vadd.f32 1.0, %v7530_v29 }
0x53fd   :  { %7531 = vrcp.f32 %v5076_v27 }
0x540a   :  { %v7532_v28 = vpop.eup %7531 }
0x540b   :  { %v5095_v31 = vmul.f32 %v7532_v28, %v5093_v55 }
0x540d   :  { %5097 = vrot.lane.b32.xlu0 %v5095_v31, %s7688_s7 }
0x5411   :  { %5080 = vrot.lane.b32.xlu0 %v5036_v5, %s7692_s8 }
0x545f   :  { %v5056_v49 = vpop.permute.xlu1 %5055 }
0x5460   :  { %v5058_v25 = vadd.f32 %v5056_v49, %v4993_v13  ;;  %v5120_v13 = vld [vmem:[#allocation3 + $0x1e] sm:$0x3] }
0x5462   :  { %7533 = vtanh.f32 %v5058_v25 }
0x546f   :  { %v7534_v16 = vpop.eup %7533 }
0x5470   :  { %5062 = vrot.lane.b32.xlu1 %v7534_v16, %s7691_s29 }
0x547f   :  { %v5098_v62 = vpop.permute.xlu0 %5097 }
0x5480   :  { %v5100_v15 = vadd.f32 %v5098_v62, %v4994_v7 }
0x5482   :  { %7535 = vtanh.f32 %v5100_v15 }
0x5483   :  { %v5081_v18 = vpop.permute.xlu0 %5080 }
0x5484   :  { %v5083_v30 = vadd.f32 %v5081_v18, %v4994_v7  ;;  %v5121_v7 = vld [vmem:[#allocation4] sm:$0x3] }
0x5486   :  { %v6602_v51 = vmul.f32 -1.442695, %v5083_v30 }
0x5488   :  { %7537 = vpow2.f32 %v6602_v51 }
0x548f   :  { %v7536_v38 = vpop.eup %7535 }
0x5490   :  { %5104 = vrot.lane.b32.xlu1 %v7536_v38, %s7691_s29 }
0x5495   :  { %v7538_v23 = vpop.eup %7537 }
0x5496   :  { %v5087_v17 = vadd.f32 1.0, %v7538_v23 }
0x5498   :  { %7539 = vrcp.f32 %v5087_v17 }
0x54a5   :  { %v7540_v48 = vpop.eup %7539 }
0x54a6   :  { %v5102_v10 = vsub.f32 1.0, %v7540_v48  ;;  %v5108_v21 = vmul.f32 %v7540_v48, %v9377_v42 }
0x54e2   :  { %v5063_v34 = vpop.permute.xlu1 %5062 }
0x54e3   :  { %v5065_v52 = vmul.f32 %v5063_v34, %v5060_v1 }
0x54e5   :  { %v9394_v33 = vadd.f32 %v5066_v41, %v5065_v52  ;;  %v7037_v41 = vld [vmem:[%s9711_s15 + $0x8] sm:$0xff]   ;;  %v7038_v52 = vld [vmem:[%s9711_s15] sm:$0xff]  }
0x54e6   :  { %6799 = vmatprep.subr.bf16.mxu0 %v7037_v41 }
0x54e7   :  { %5111 = vrot.lane.b32.xlu0 %v9394_v33, %s7691_s29  ;;  %6800 = vmatpush3.bf16.msra.mxu0 %v7037_v41  ;;  %v9514_v41 = vld [vmem:[%s9713_s17 + $0x18] sm:$0xff] }
0x54e8   :  { %6801 = vmatprep.subr.bf16.mxu0 %v7038_v52 }
0x54eb   :  { %6802 = vmatpush3.bf16.msra.mxu0 %v7038_v52 }
0x5502   :  { %v5105_v46 = vpop.permute.xlu1 %5104 }
0x5503   :  { %v5107_v43 = vmul.f32 %v5105_v46, %v5102_v10 }
0x5505   :  { %v9399_v35 = vadd.f32 %v5108_v21, %v5107_v43 }
0x5559   :  { %v5112_v57 = vpop.permute.xlu0 %5111 }
0x555a   :  { %5114 = vst.msk [vmem:[#allocation5 + $0x1c] sm:$0x3] %vm1061_vm4, %v5112_v57  ;;  %v5122_v14 = vsel %vm782_vm2, %v5112_v57, %v9399_v35 }
0x555b   :  { %v5123_v19 = vpack.c.bf16 %v5122_v14, %v5122_v14 }
0x555d   :  { %6603 = vmatmul.mubr.msk.bf16.vlgmr.msra.gmra.mxu1 %vm131_vm0, %v5123_v19  ;;  %v5255_v19 = vld [vmem:[#allocation5] sm:$0xff] }
0x561d   :  { %v5161_v36 = vpop.f32.mrf.mxu1 }
0x561e   :  { %5196 = vrot.lane.b32.xlu1 %v5161_v36, %s7692_s8  ;;  %v5175_v5 = vadd.f32 %v5161_v36, %v8820_v45  ;;  %v5168_v32 = vadd.f32 %v5161_v36, %v5120_v13 }
0x561f   :  { %v5163_v63 = vpop.f32.mrf.mxu1 }
0x5620   :  { %v5217_v58 = vadd.f32 %v9362_v24, %v5163_v63  ;;  %v6604_v11 = vmul.f32 -1.442695, %v5168_v32 }
0x5621   :  { %v5165_v39 = vpop.f32.mrf.mxu1 }
0x5622   :  { %5177 = vrot.lane.b32.xlu1 %v5175_v5, %s7688_s7  ;;  %5219 = vrot.lane.b32.xlu0 %v5217_v58, %s7691_s29  ;;  %7541 = vpow2.f32 %v6604_v11  ;;  %v5256_v5 = vld [vmem:[#allocation5 + $0x8] sm:$0xff]  ;;  %v5257_v58 = vld [vmem:[#allocation5 + $0x10] sm:$0xff] }
0x5623   :  { %v5166_v12 = vpop.f32.mrf.mxu1 }
0x562f   :  { %v7542_v0 = vpop.eup %7541 }
0x5630   :  { %v5172_v6 = vadd.f32 1.0, %v7542_v0 }
0x5632   :  { %7543 = vrcp.f32 %v5172_v6 }
0x563f   :  { %v7544_v45 = vpop.eup %7543 }
0x5690   :  { %v5197_v37 = vpop.permute.xlu1 %5196 }
0x5691   :  { %v5199_v4 = vadd.f32 %v5197_v37, %v5121_v7 }
0x5693   :  { %v6605_v20 = vmul.f32 -1.442695, %v5199_v4 }
0x5694   :  { %v5178_v8 = vpop.permute.xlu1 %5177  ;;  %v5220_v27 = vpop.permute.xlu0 %5219 }
0x5695   :  { %7545 = vpow2.f32 %v6605_v20  ;;  %v5180_v24 = vmul.f32 %v7544_v45, %v5178_v8 }
0x5697   :  { %5182 = vrot.lane.b32.xlu1 %v5180_v24, %s7688_s7 }
0x56a2   :  { %v7546_v47 = vpop.eup %7545 }
0x56a3   :  { %v5203_v22 = vadd.f32 1.0, %v7546_v47 }
0x56a5   :  { %7547 = vrcp.f32 %v5203_v22 }
0x56b2   :  { %v7548_v29 = vpop.eup %7547 }
0x56b3   :  { %v5222_v28 = vmul.f32 %v7548_v29, %v5220_v27 }
0x56b5   :  { %5224 = vrot.lane.b32.xlu0 %v5222_v28, %s7688_s7 }
0x56b9   :  { %5207 = vrot.lane.b32.xlu0 %v5163_v63, %s7692_s8 }
0x5709   :  { %v5183_v55 = vpop.permute.xlu1 %5182 }
0x570a   :  { %v5185_v31 = vadd.f32 %v5183_v55, %v5120_v13  ;;  %v6607_v55 = vld [vmem:[%s9712_s16] ss:$0 sm:$0xff] }
0x570c   :  { %7549 = vtanh.f32 %v5185_v31 }
0x5719   :  { %v7550_v49 = vpop.eup %7549 }
0x571a   :  { %5189 = vrot.lane.b32.xlu0 %v7550_v49, %s7691_s29 }
0x571e   :  { %4481 = vrot.lane.b32.xlu0 %v9221_v3, %s7691_s29 }
0x5722   :  { %4735 = vrot.lane.b32.xlu0 %v9285_v61, %s7691_s29 }
0x5726   :  { %4989 = vrot.lane.b32.xlu0 %v9377_v42, %s7691_s29 }
0x5727   :  { %v5225_v25 = vpop.permute.xlu0 %5224 }
0x5728   :  { %v5227_v16 = vadd.f32 %v5225_v25, %v5121_v7 }
0x572a   :  { %7551 = vtanh.f32 %v5227_v16  ;;  %3465 = vrot.lane.b32.xlu0 %v8916_v2, %s7691_s29 }
0x572b   :  { %v5208_v2 = vpop.permute.xlu0 %5207 }
0x572e   :  { %3719 = vrot.lane.b32.xlu0 %v8980_v44, %s7691_s29  ;;  %v5210_v44 = vadd.f32 %v5208_v2, %v5121_v7 }
0x5732   :  { %3973 = vrot.lane.b32.xlu0 %v9066_v53, %s7691_s29  ;;  %v6606_v53 = vmul.f32 -1.442695, %v5210_v44 }
0x5734   :  { %7553 = vpow2.f32 %v6606_v53 }
0x5737   :  { %v7552_v62 = vpop.eup %7551 }
0x5738   :  { %5231 = vrot.lane.b32.xlu1 %v7552_v62, %s7691_s29 }
0x573c   :  { %4354 = vrot.lane.b32.xlu1 %v9190_v54, %s7691_s29  ;;  %v5187_v54 = vsub.f32 1.0, %v7544_v45 }
0x5740   :  { %4608 = vrot.lane.b32.xlu1 %v9252_v59, %s7691_s29  ;;  %v5193_v59 = vmul.f32 %v7544_v45, %v9394_v33 }
0x5744   :  { %4862 = vrot.lane.b32.xlu1 %v9334_v9, %s7691_s29 }
0x5748   :  { %5116 = vrot.lane.b32.xlu1 %v9399_v35, %s7691_s29 }
0x574c   :  { %3338 = vrot.lane.b32.xlu1 %v8886_v56, %s7691_s29 }
0x5750   :  { %3592 = vrot.lane.b32.xlu1 %v8947_v40, %s7691_s29  ;;  %v7554_v40 = vpop.eup %7553 }
0x5751   :  { %v5214_v42 = vadd.f32 1.0, %v7554_v40  ;;  %v9496_v40 = vld [vmem:[%s9713_s17] sm:$0xff] }
0x5753   :  { %7555 = vrcp.f32 %v5214_v42 }
0x5754   :  { %3846 = vrot.lane.b32.xlu1 %v9015_v50, %s7691_s29  ;;  %7557 = vtanh.f32 %v5255_v19 }
0x5758   :  { %4100 = vrot.lane.b32.xlu1 %v9122_v60, %s7691_s29 }
0x5760   :  { %v7556_v34 = vpop.eup %7555 }
0x5761   :  { %v5229_v33 = vsub.f32 1.0, %v7556_v34  ;;  %v5235_v51 = vmul.f32 %v7556_v34, %v9399_v35  ;;  %v7558_v11 = vpop.eup %7557 }
0x578c   :  { %v5190_v3 = vpop.permute.xlu0 %5189 }
0x578d   :  { %v5192_v61 = vmul.f32 %v5190_v3, %v5187_v54 }
0x578f   :  { %v5194_v9 = vadd.f32 %v5193_v59, %v5192_v61 }
0x5790   :  { %v4482_v56 = vpop.permute.xlu0 %4481 }
0x5791   :  { %4484 = vst.msk [vmem:[#allocation6 + $0xc] sm:$0x3] %vm1061_vm4, %v4482_v56  ;;  %5238 = vrot.lane.b32.xlu1 %v5194_v9, %s7691_s29 }
0x5794   :  { %v4736_v50 = vpop.permute.xlu0 %4735 }
0x5795   :  { %4738 = vst.msk [vmem:[#allocation6 + $0x8] sm:$0x3] %vm1061_vm4, %v4736_v50  ;;  %v9501_v50 = vld [vmem:[%s9713_s17 + $0x10] sm:$0xff] }
0x5798   :  { %v4990_v60 = vpop.permute.xlu0 %4989 }
0x5799   :  { %4992 = vst.msk [vmem:[#allocation6 + $0x4] sm:$0x3] %vm1061_vm4, %v4990_v60 }
0x579c   :  { %v3466_v15 = vpop.permute.xlu0 %3465 }
0x579d   :  { %3468 = vst.msk [vmem:[#allocation6 + $0x1c] sm:$0x3] %vm1061_vm4, %v3466_v15 }
0x57a0   :  { %v3720_v38 = vpop.permute.xlu0 %3719 }
0x57a1   :  { %3722 = vst.msk [vmem:[#allocation6 + $0x18] sm:$0x3] %vm1061_vm4, %v3720_v38  ;;  %v9507_v38 = vld [vmem:[%s9713_s17 + $0x8] sm:$0xff]  ;;  %s7693_s17 = smov 88  }
0x57a4   :  { %v3974_v1 = vpop.permute.xlu0 %3973 }
0x57a5   :  { %3976 = vst.msk [vmem:[#allocation6 + $0x14] sm:$0x3] %vm1061_vm4, %v3974_v1 }
0x57aa   :  { %v5232_v18 = vpop.permute.xlu1 %5231 }
0x57ab   :  { %v5234_v30 = vmul.f32 %v5232_v18, %v5229_v33 }
0x57ad   :  { %v5236_v23 = vadd.f32 %v5235_v51, %v5234_v30 }
0x57ae   :  { %v4355_v17 = vpop.permute.xlu1 %4354 }
0x57af   :  { %4357 = vst.msk [vmem:[#allocation6 + $0xe] sm:$0x3] %vm1061_vm4, %v4355_v17  ;;  %5243 = vrot.lane.b32.xlu0 %v5236_v23, %s7691_s29 }
0x57b2   :  { %v4609_v48 = vpop.permute.xlu1 %4608 }
0x57b3   :  { %4611 = vst.msk [vmem:[#allocation6 + $0xa] sm:$0x3] %vm1061_vm4, %v4609_v48  ;;  %4227 = vrot.lane.b32.xlu0 %v9155_v26, %s7691_s29 }
0x57b6   :  { %v4863_v46 = vpop.permute.xlu1 %4862 }
0x57b7   :  { %4865 = vst.msk [vmem:[#allocation6 + $0x6] sm:$0x3] %vm1061_vm4, %v4863_v46 }
0x57ba   :  { %v5117_v10 = vpop.permute.xlu1 %5116  ;;  %v5248_v63 = vld [vmem:[#allocation6 + $0x8] sm:$0xff] }
0x57bb   :  { %5119 = vst.msk [vmem:[#allocation6 + $0x2] sm:$0x3] %vm1061_vm4, %v5117_v10  ;;  %7559 = vtanh.f32 %v5248_v63 }
0x57bc   :  { %7561 = vtanh.f32 %v5256_v5 }
0x57be   :  { %v3339_v43 = vpop.permute.xlu1 %3338 }
0x57bf   :  { %3341 = vst.msk [vmem:[#allocation6 + $0x1e] sm:$0x3] %vm1061_vm4, %v3339_v43 }
0x57c2   :  { %v3593_v21 = vpop.permute.xlu1 %3592 }
0x57c3   :  { %3595 = vst.msk [vmem:[#allocation6 + $0x1a] sm:$0x3] %vm1061_vm4, %v3593_v21 }
0x57c6   :  { %v3847_v35 = vpop.permute.xlu1 %3846 }
0x57c7   :  { %3849 = vst.msk [vmem:[#allocation6 + $0x16] sm:$0x3] %vm1061_vm4, %v3847_v35 }
0x57c8   :  { %v7560_v0 = vpop.eup %7559 }
0x57c9   :  { %v7562_v6 = vpop.eup %7561 }
0x57ca   :  { %v4101_v57 = vpop.permute.xlu1 %4100  ;;  %v5250_v13 = vld [vmem:[#allocation6 + $0x18] sm:$0xff]  ;;  %v5264_v20 = vmul.f32 %v7562_v6, %v7560_v0 }
0x57cb   :  { %4103 = vst.msk [vmem:[#allocation6 + $0x12] sm:$0x3] %vm1061_vm4, %v4101_v57 }
0x5803   :  { %v5239_v14 = vpop.permute.xlu1 %5238 }
0x5804   :  { %5241 = vst.msk [vmem:[#allocation5 + $0x1e] sm:$0x3] %vm1061_vm4, %v5239_v14 }
0x580b   :  { %v5258_v12 = vld [vmem:[#allocation5 + $0x18] sm:$0xff] }
0x5821   :  { %v5244_v26 = vpop.permute.xlu0 %5243 }
0x5822   :  { %5246 = vst.msk [vmem:[#allocation6] sm:$0x3] %vm1061_vm4, %v5244_v26 }
0x5825   :  { %v4228_v36 = vpop.permute.xlu0 %4227 }
0x5826   :  { %4230 = vst.msk [vmem:[#allocation6 + $0x10] sm:$0x3] %vm1061_vm4, %v4228_v36 }
0x5829   :  { %v5247_v39 = vld [vmem:[#allocation6] sm:$0xff] }
0x582a   :  { %7563 = vtanh.f32 %v5247_v39 }
0x582b   :  { %7565 = vtanh.f32 %v5257_v58 }
0x582c   :  { %7567 = vtanh.f32 %v5258_v12 }
0x582d   :  { %v5249_v32 = vld [vmem:[#allocation6 + $0x10] sm:$0xff]  ;;  %7569 = vtanh.f32 %v5250_v13 }
0x582e   :  { %7571 = vtanh.f32 %v5249_v32 }
0x5837   :  { %v7564_v7 = vpop.eup %7563 }
0x5838   :  { %v7566_v37 = vpop.eup %7565  ;;  %v5263_v4 = vmul.f32 %v7564_v7, %v7558_v11 }
0x5839   :  { %v7568_v45 = vpop.eup %7567 }
0x583a   :  { %v7570_v8 = vpop.eup %7569  ;;  %v5267_v24 = vpack.c.bf16 %v5264_v20, %v5263_v4 }
0x583b   :  { %v7572_v47 = vpop.eup %7571  ;;  %v5266_v29 = vmul.f32 %v7570_v8, %v7568_v45 }
0x583c   :  { %6803 = vmatprep.mubr.msk.bf16.mxu0 %vm782_vm2, %v5267_v24  ;;  %v5265_v22 = vmul.f32 %v7572_v47, %v7566_v37 }
0x583e   :  { %v5268_v27 = vpack.c.bf16 %v5266_v29, %v5265_v22 }
0x5840   :  { %6804 = vmatmul.mubr.msk.bf16.vlgmr.msra.gmra.mxu0 %vm782_vm2, %v5268_v27 }
0x5900   :  { %v6805_v28 = vpop.f32.mrf.mxu0 }
0x5901   :  { %v5341_v25 = vadd.f32 %v6805_v28, %v6607_v55 }
0x5902   :  { %v5332_v31 = vpop.f32.mrf.mxu0 }
0x5903   :  { %v5333_v2 = vadd.f32 %v6607_v55, %v5332_v31 }
0x5904   :  { %v6806_v49 = vpop.f32.mrf.mxu0 }
0x5905   :  { %v5344_v16 = vadd.f32 %v6806_v49, %v6607_v55 }
0x5906   :  { %v5335_v62 = vpop.f32.mrf.mxu0 }
0x5907   :  { %v9477_v44 = vpack.c.bf16 %v5344_v16, %v5341_v25  ;;  %v5336_v53 = vadd.f32 %v6607_v55, %v5335_v62 }
0x5909   :  { %v9479_v54 = vpack.c.bf16 %v5336_v53, %v5333_v2  ;;  %5357 = vrot.lane.b32.xlu0 %v9477_v44, %s7691_s29 }
0x590b   :  { %5355 = vrot.lane.b32.xlu1 %v9479_v54, %s7691_s29  ;;  %6811 = vmatprep.mubr.msk.bf16.mxu0 %vm5359_vm5, %v9479_v54 }
0x597b   :  { %v5358_v3 = vpop.permute.xlu0 %5357 }
0x597c   :  { %v5370_v59 = vsel %vm5359_vm5, %v5358_v3, 0  ;;  %6895 = vmatprep.subr.msk.bf16.mxu0 %vm5359_vm5, %v5358_v3 }
0x597d   :  { %6808 = vmatpush3.bf16.xpose.msra.mxu0 %v5370_v59  ;;  %v5356_v61 = vpop.permute.xlu1 %5355 }
0x597e   :  { %6896 = vmatprep.subr.msk.bf16.mxu0 %vm5359_vm5, %v5356_v61  ;;  %v5367_v9 = vsel %vm5359_vm5, %v5356_v61, 0 }
0x5985   :  { %6810 = vmatpush3.bf16.xpose.msra.mxu0 %v5367_v9 }
0x598c   :  { %6812 = vmatmul.mubr.msk.bf16.vlgmr.msra.gmra.mxu0 %vm5359_vm5, %v9477_v44 }
0x5a4c   :  { %v6813_v56 = vpop.f32.mrf.mxu0 }
0x5a4d   :  { %v5415_v1 = vadd.f32 %v6813_v56, %v9501_v50 }
0x5a4e   :  { %v5406_v42 = vpop.f32.mrf.mxu0 }
0x5a4f   :  { %v5407_v60 = vadd.f32 %v5406_v42, %v9496_v40  ;;  %v5427_v51 = vsel %vm782_vm2, %v5415_v1, -inf }
0x5a50   :  { %v6814_v15 = vpop.f32.mrf.mxu0 }
0x5a51   :  { %v5421_v34 = vsel %vm782_vm2, %v5407_v60, -inf  ;;  %v5418_v18 = vadd.f32 %v6814_v15, %v9514_v41 }
0x5a52   :  { %v5409_v52 = vpop.f32.mrf.mxu0  ;;  %5422 = vmax.xlane.f32.xlu0 %v5421_v34 }
0x5a53   :  { %v5410_v33 = vadd.f32 %v5409_v52, %v9507_v38  ;;  %v5430_v23 = vsel %vm782_vm2, %v5418_v18, -inf }
0x5a55   :  { %v5424_v30 = vsel %vm782_vm2, %v5410_v33, -inf }
0x5a56   :  { %5425 = vmax.xlane.f32.xlu1 %v5424_v30  ;;  %5428 = vmax.xlane.f32.xlu0 %v5427_v51 }
0x5a5a   :  { %5431 = vmax.xlane.f32.xlu0 %v5430_v23 }
0x5a67   :  { %5469 = vrot.lane.b32.xlu1 %v9477_v44, %s7688_s7 }
0x5adb   :  { %v5423_v17 = vpop.xlane.xlu0 %5422 }
0x5adc   :  { %v5433_v48 = vsub.f32 %v5407_v60, %v5423_v17 }
0x5ade   :  { %v5437_v57 = vmul.f32 1.442695, %v5433_v48 }
0x5adf   :  { %v5426_v46 = vpop.xlane.xlu1 %5425  ;;  %v5429_v10 = vpop.xlane.xlu0 %5428 }
0x5ae0   :  { %v5435_v43 = vsub.f32 %v5415_v1, %v5429_v10  ;;  %v5434_v21 = vsub.f32 %v5410_v33, %v5426_v46 }
0x5ae2   :  { %v5441_v35 = vmul.f32 1.442695, %v5435_v43  ;;  %v5439_v36 = vmul.f32 1.442695, %v5434_v21 }
0x5ae3   :  { %v5470_v14 = vpop.permute.xlu1 %5469  ;;  %v5432_v26 = vpop.xlane.xlu0 %5431 }
0x5ae4   :  { %v5436_v19 = vsub.f32 %v5418_v18, %v5432_v26  ;;  %6815 = vmatprep.subr.bf16.mxu1 %v5470_v14  ;;  %7573 = vpow2.f32 %v5441_v35 }
0x5ae5   :  { %6816 = vmatpush3.bf16.msra.mxu1 %v5470_v14  ;;  %7575 = vpow2.f32 %v5437_v57 }
0x5ae6   :  { %v5443_v63 = vmul.f32 1.442695, %v5436_v19 }
0x5ae8   :  { %7577 = vpow2.f32 %v5443_v63 }
0x5ae9   :  { %7579 = vpow2.f32 %v5439_v36 }
0x5af1   :  { %v7574_v5 = vpop.eup %7573 }
0x5af2   :  { %v5451_v58 = vsel %vm782_vm2, %v7574_v5, 0.0  ;;  %v7576_v39 = vpop.eup %7575 }
0x5af3   :  { %5452 = vadd.xlane.f32.xlu1 %v5451_v58  ;;  %v5445_v11 = vsel %vm782_vm2, %v7576_v39, 0.0 }
0x5af5   :  { %v7578_v12 = vpop.eup %7577 }
0x5af6   :  { %v5454_v13 = vsel %vm782_vm2, %v7578_v12, 0.0  ;;  %v7580_v32 = vpop.eup %7579 }
0x5af7   :  { %5455 = vadd.xlane.f32.xlu0 %v5454_v13  ;;  %5446 = vadd.xlane.f32.xlu1 %v5445_v11  ;;  %v5448_v0 = vsel %vm782_vm2, %v7580_v32, 0.0 }
0x5afb   :  { %5449 = vadd.xlane.f32.xlu0 %v5448_v0 }
0x5b08   :  { %5534 = vrot.lane.b32.xlu1 %v9477_v44, %s7693_s17 }
0x5b0c   :  { %5532 = vrot.lane.b32.xlu1 %v9479_v54, %s7693_s17 }
0x5b10   :  { %5530 = vrot.lane.b32.xlu1 %v9477_v44, %s7694_s5 }
0x5b11   :  { %5467 = vrot.lane.b32.xlu0 %v9479_v54, %s7688_s7  ;;  %s7695_s7 = smov 56  }
0x5b15   :  { %5528 = vrot.lane.b32.xlu0 %v9479_v54, %s7694_s5 }
0x5b7c   :  { %v5453_v6 = vpop.xlane.xlu1 %5452 }
0x5b80   :  { %v5456_v7 = vpop.xlane.xlu0 %5455  ;;  %v5447_v37 = vpop.xlane.xlu1 %5446 }
0x5b81   :  { %7581 = vrcp.f32 %v5456_v7 }
0x5b82   :  { %7583 = vrcp.f32 %v5447_v37 }
0x5b83   :  { %7585 = vrcp.f32 %v5453_v6 }
0x5b84   :  { %v5450_v4 = vpop.xlane.xlu0 %5449  ;;  %v5535_v45 = vpop.permute.xlu1 %5534 }
0x5b85   :  { %7587 = vrcp.f32 %v5450_v4  ;;  %v5546_v25 = vsel %vm5359_vm5, %v5535_v45, 0 }
0x5b88   :  { %v5468_v20 = vpop.permute.xlu0 %5467  ;;  %v5533_v62 = vpop.permute.xlu1 %5532 }
0x5b89   :  { %6817 = vmatprep.subr.bf16.mxu1 %v5468_v20  ;;  %v5543_v2 = vsel %vm5359_vm5, %v5533_v62, 0 }
0x5b8a   :  { %6818 = vmatpush3.bf16.msra.mxu1 %v5468_v20 }
0x5b8b   :  { %6897 = vmatprep.subr.msk.bf16.mxu1 %vm5359_vm5, %v5535_v45 }
0x5b8c   :  { %v5529_v16 = vpop.permute.xlu0 %5528  ;;  %v5531_v53 = vpop.permute.xlu1 %5530 }
0x5b8e   :  { %v7582_v8 = vpop.eup %7581 }
0x5b8f   :  { %v7584_v24 = vpop.eup %7583  ;;  %v5464_v29 = vmul.f32 %v7582_v8, %v7578_v12 }
0x5b90   :  { %v7586_v47 = vpop.eup %7585  ;;  %v5461_v27 = vmul.f32 %v7584_v24, %v7576_v39 }
0x5b91   :  { %v5463_v55 = vmul.f32 %v7586_v47, %v7574_v5 }
0x5b92   :  { %v7588_v22 = vpop.eup %7587 }
0x5b93   :  { %v5462_v28 = vmul.f32 %v7588_v22, %v7580_v32  ;;  %v5466_v49 = vpack.c.bf16 %v5464_v29, %v5463_v55 }
0x5b95   :  { %v5465_v31 = vpack.c.bf16 %v5462_v28, %v5461_v27 }
0x5b97   :  { %6819 = vmatprep.mubr.msk.bf16.mxu1 %vm782_vm2, %v5465_v31 }
0x5b98   :  { %6820 = vmatmul.mubr.msk.bf16.vlgmr.msra.gmra.mxu1 %vm782_vm2, %v5466_v49 }
0x5b99   :  { %6824 = vmatpush3.bf16.xpose.msra.mxu1 %v5546_v25  ;;  %6827 = vmatprep.mubr.msk.bf16.mxu1 %vm5359_vm5, %v5529_v16 }
0x5b9a   :  { %6898 = vmatprep.subr.msk.bf16.mxu1 %vm5359_vm5, %v5533_v62 }
0x5ba1   :  { %6826 = vmatpush3.bf16.xpose.msra.mxu1 %v5543_v2 }
0x5ba8   :  { %6828 = vmatmul.mubr.msk.bf16.vlgmr.msra.gmra.mxu1 %vm5359_vm5, %v5531_v53 }
0x5c58   :  { %v9541_v3 = vpop.f32.mrf.mxu1 }
0x5c5a   :  { %v9543_v59 = vpop.f32.mrf.mxu1 }
0x5c5c   :  { %v9545_v61 = vpop.f32.mrf.mxu1 }
0x5c5e   :  { %v9547_v9 = vpop.f32.mrf.mxu1 }
0x5c68   :  { %v6829_v56 = vpop.f32.mrf.mxu1 }
0x5c69   :  { %v5591_v1 = vadd.f32 %v6829_v56, %v9501_v50 }
0x5c6a   :  { %v5582_v42 = vpop.f32.mrf.mxu1 }
0x5c6b   :  { %v5583_v60 = vadd.f32 %v5582_v42, %v9496_v40  ;;  %v5603_v51 = vsel %vm782_vm2, %v5591_v1, -inf }
0x5c6c   :  { %v6830_v15 = vpop.f32.mrf.mxu1 }
0x5c6d   :  { %v5597_v34 = vsel %vm782_vm2, %v5583_v60, -inf  ;;  %v5594_v18 = vadd.f32 %v6830_v15, %v9514_v41 }
0x5c6e   :  { %v5585_v52 = vpop.f32.mrf.mxu1  ;;  %5598 = vmax.xlane.f32.xlu0 %v5597_v34 }
0x5c6f   :  { %v5586_v33 = vadd.f32 %v5585_v52, %v9507_v38  ;;  %v5606_v23 = vsel %vm782_vm2, %v5594_v18, -inf }
0x5c71   :  { %v5600_v30 = vsel %vm782_vm2, %v5586_v33, -inf }
0x5c72   :  { %5601 = vmax.xlane.f32.xlu1 %v5600_v30  ;;  %5604 = vmax.xlane.f32.xlu0 %v5603_v51 }
0x5c76   :  { %5607 = vmax.xlane.f32.xlu0 %v5606_v23 }
0x5c83   :  { %5645 = vrot.lane.b32.xlu1 %v9477_v44, %s7695_s7 }
0x5cf7   :  { %v5599_v17 = vpop.xlane.xlu0 %5598 }
0x5cf8   :  { %v5609_v48 = vsub.f32 %v5583_v60, %v5599_v17 }
0x5cfa   :  { %v5613_v57 = vmul.f32 1.442695, %v5609_v48 }
0x5cfb   :  { %v5602_v46 = vpop.xlane.xlu1 %5601  ;;  %v5605_v10 = vpop.xlane.xlu0 %5604 }
0x5cfc   :  { %v5611_v43 = vsub.f32 %v5591_v1, %v5605_v10  ;;  %v5610_v21 = vsub.f32 %v5586_v33, %v5602_v46 }
0x5cfe   :  { %v5617_v35 = vmul.f32 1.442695, %v5611_v43  ;;  %v5615_v36 = vmul.f32 1.442695, %v5610_v21 }
0x5cff   :  { %v5646_v14 = vpop.permute.xlu1 %5645  ;;  %v5608_v26 = vpop.xlane.xlu0 %5607 }
0x5d00   :  { %v5612_v19 = vsub.f32 %v5594_v18, %v5608_v26  ;;  %6831 = vmatprep.subr.bf16.mxu0 %v5646_v14  ;;  %7589 = vpow2.f32 %v5617_v35 }
0x5d01   :  { %6832 = vmatpush3.bf16.msra.mxu0 %v5646_v14  ;;  %7591 = vpow2.f32 %v5613_v57 }
0x5d02   :  { %v5619_v63 = vmul.f32 1.442695, %v5612_v19 }
0x5d04   :  { %7593 = vpow2.f32 %v5619_v63 }
0x5d05   :  { %7595 = vpow2.f32 %v5615_v36 }
0x5d0d   :  { %v7590_v5 = vpop.eup %7589 }
0x5d0e   :  { %v5627_v58 = vsel %vm782_vm2, %v7590_v5, 0.0  ;;  %v7592_v39 = vpop.eup %7591 }
0x5d0f   :  { %5628 = vadd.xlane.f32.xlu1 %v5627_v58  ;;  %v5621_v11 = vsel %vm782_vm2, %v7592_v39, 0.0 }
0x5d11   :  { %v7594_v12 = vpop.eup %7593 }
0x5d12   :  { %v5630_v13 = vsel %vm782_vm2, %v7594_v12, 0.0  ;;  %v7596_v32 = vpop.eup %7595 }
0x5d13   :  { %5631 = vadd.xlane.f32.xlu0 %v5630_v13  ;;  %5622 = vadd.xlane.f32.xlu1 %v5621_v11  ;;  %v5624_v0 = vsel %vm782_vm2, %v7596_v32, 0.0 }
0x5d17   :  { %5625 = vadd.xlane.f32.xlu0 %v5624_v0 }
0x5d24   :  { %5710 = vrot.lane.b32.xlu1 %v9477_v44, %s7696_s30 }
0x5d28   :  { %5708 = vrot.lane.b32.xlu1 %v9479_v54, %s7696_s30 }
0x5d2c   :  { %5706 = vrot.lane.b32.xlu1 %v9477_v44, %s7697_s11 }
0x5d2d   :  { %5643 = vrot.lane.b32.xlu0 %v9479_v54, %s7695_s7 }
0x5d31   :  { %5704 = vrot.lane.b32.xlu0 %v9479_v54, %s7697_s11 }
0x5d98   :  { %v5629_v6 = vpop.xlane.xlu1 %5628 }
0x5d9c   :  { %v5632_v7 = vpop.xlane.xlu0 %5631  ;;  %v5623_v37 = vpop.xlane.xlu1 %5622 }
0x5d9d   :  { %7597 = vrcp.f32 %v5632_v7 }
0x5d9e   :  { %7599 = vrcp.f32 %v5623_v37 }
0x5d9f   :  { %7601 = vrcp.f32 %v5629_v6 }
0x5da0   :  { %v5626_v4 = vpop.xlane.xlu0 %5625  ;;  %v5711_v45 = vpop.permute.xlu1 %5710 }
0x5da1   :  { %7603 = vrcp.f32 %v5626_v4  ;;  %v5722_v25 = vsel %vm5359_vm5, %v5711_v45, 0 }
0x5da4   :  { %v5644_v20 = vpop.permute.xlu0 %5643  ;;  %v5709_v62 = vpop.permute.xlu1 %5708 }
0x5da5   :  { %6833 = vmatprep.subr.bf16.mxu0 %v5644_v20  ;;  %v5719_v2 = vsel %vm5359_vm5, %v5709_v62, 0 }
0x5da6   :  { %6834 = vmatpush3.bf16.msra.mxu0 %v5644_v20 }
0x5da7   :  { %6899 = vmatprep.subr.msk.bf16.mxu0 %vm5359_vm5, %v5711_v45 }
0x5da8   :  { %v5705_v16 = vpop.permute.xlu0 %5704  ;;  %v5707_v53 = vpop.permute.xlu1 %5706 }
0x5daa   :  { %v7598_v8 = vpop.eup %7597 }
0x5dab   :  { %v7600_v24 = vpop.eup %7599  ;;  %v5640_v29 = vmul.f32 %v7598_v8, %v7594_v12 }
0x5dac   :  { %v7602_v47 = vpop.eup %7601  ;;  %v5637_v27 = vmul.f32 %v7600_v24, %v7592_v39 }
0x5dad   :  { %v5639_v55 = vmul.f32 %v7602_v47, %v7590_v5 }
0x5dae   :  { %v7604_v22 = vpop.eup %7603 }
0x5daf   :  { %v5638_v28 = vmul.f32 %v7604_v22, %v7596_v32  ;;  %v5642_v49 = vpack.c.bf16 %v5640_v29, %v5639_v55 }
0x5db1   :  { %v5641_v31 = vpack.c.bf16 %v5638_v28, %v5637_v27 }
0x5db3   :  { %6835 = vmatprep.mubr.msk.bf16.mxu0 %vm782_vm2, %v5641_v31 }
0x5db4   :  { %6836 = vmatmul.mubr.msk.bf16.vlgmr.msra.gmra.mxu0 %vm782_vm2, %v5642_v49 }
0x5db5   :  { %6840 = vmatpush3.bf16.xpose.msra.mxu0 %v5722_v25  ;;  %6843 = vmatprep.mubr.msk.bf16.mxu0 %vm5359_vm5, %v5705_v16 }
0x5db6   :  { %6900 = vmatprep.subr.msk.bf16.mxu0 %vm5359_vm5, %v5709_v62 }
0x5dbd   :  { %6842 = vmatpush3.bf16.xpose.msra.mxu0 %v5719_v2 }
0x5dc4   :  { %6844 = vmatmul.mubr.msk.bf16.vlgmr.msra.gmra.mxu0 %vm5359_vm5, %v5707_v53 }
0x5e74   :  { %v9577_v56 = vpop.f32.mrf.mxu0 }
0x5e76   :  { %v9579_v42 = vpop.f32.mrf.mxu0 }
0x5e78   :  { %v9581_v60 = vpop.f32.mrf.mxu0 }
0x5e79   :  { %v6946_v15 = vpack.i.bf16 %v9581_v60, %v9577_v56 }
0x5e7a   :  { %v9585_v1 = vpop.f32.mrf.mxu0 }
0x5e7b   :  { %v6941_v34 = vpack.i.bf16 %v9585_v1, %v9579_v42 }
0x5e84   :  { %v6845_v52 = vpop.f32.mrf.mxu0 }
0x5e85   :  { %v5767_v51 = vadd.f32 %v6845_v52, %v9501_v50 }
0x5e86   :  { %v5758_v33 = vpop.f32.mrf.mxu0 }
0x5e87   :  { %v5759_v18 = vadd.f32 %v5758_v33, %v9496_v40  ;;  %v5779_v43 = vsel %vm782_vm2, %v5767_v51, -inf }
0x5e88   :  { %v6846_v30 = vpop.f32.mrf.mxu0 }
0x5e89   :  { %v5773_v23 = vsel %vm782_vm2, %v5759_v18, -inf  ;;  %v5770_v46 = vadd.f32 %v6846_v30, %v9514_v41 }
0x5e8a   :  { %v5761_v17 = vpop.f32.mrf.mxu0  ;;  %5774 = vmax.xlane.f32.xlu0 %v5773_v23 }
0x5e8b   :  { %v5762_v48 = vadd.f32 %v5761_v17, %v9507_v38  ;;  %v5782_v21 = vsel %vm782_vm2, %v5770_v46, -inf }
0x5e8d   :  { %v5776_v10 = vsel %vm782_vm2, %v5762_v48, -inf }
0x5e8e   :  { %5777 = vmax.xlane.f32.xlu1 %v5776_v10  ;;  %5780 = vmax.xlane.f32.xlu0 %v5779_v43 }
0x5e92   :  { %5783 = vmax.xlane.f32.xlu0 %v5782_v21 }
0x5e9f   :  { %5821 = vrot.lane.b32.xlu1 %v9477_v44, %s7698_s2 }
0x5f13   :  { %v5775_v35 = vpop.xlane.xlu0 %5774 }
0x5f14   :  { %v5785_v57 = vsub.f32 %v5759_v18, %v5775_v35 }
0x5f16   :  { %v5789_v5 = vmul.f32 1.442695, %v5785_v57 }
0x5f17   :  { %v5778_v14 = vpop.xlane.xlu1 %5777  ;;  %v5781_v26 = vpop.xlane.xlu0 %5780 }
0x5f18   :  { %v5787_v19 = vsub.f32 %v5767_v51, %v5781_v26  ;;  %v5786_v36 = vsub.f32 %v5762_v48, %v5778_v14 }
0x5f1a   :  { %v5793_v63 = vmul.f32 1.442695, %v5787_v19  ;;  %v5791_v13 = vmul.f32 1.442695, %v5786_v36 }
0x5f1b   :  { %v5822_v58 = vpop.permute.xlu1 %5821  ;;  %v5784_v39 = vpop.xlane.xlu0 %5783 }
0x5f1c   :  { %v5788_v12 = vsub.f32 %v5770_v46, %v5784_v39  ;;  %6847 = vmatprep.subr.bf16.mxu1 %v5822_v58  ;;  %7605 = vpow2.f32 %v5793_v63 }
0x5f1d   :  { %6848 = vmatpush3.bf16.msra.mxu1 %v5822_v58  ;;  %7607 = vpow2.f32 %v5789_v5 }
0x5f1e   :  { %v5795_v32 = vmul.f32 1.442695, %v5788_v12 }
0x5f20   :  { %7609 = vpow2.f32 %v5795_v32 }
0x5f21   :  { %7611 = vpow2.f32 %v5791_v13 }
0x5f29   :  { %v7606_v11 = vpop.eup %7605 }
0x5f2a   :  { %v5803_v0 = vsel %vm782_vm2, %v7606_v11, 0.0  ;;  %v7608_v6 = vpop.eup %7607 }
0x5f2b   :  { %5804 = vadd.xlane.f32.xlu1 %v5803_v0  ;;  %v5797_v20 = vsel %vm782_vm2, %v7608_v6, 0.0 }
0x5f2d   :  { %v7610_v7 = vpop.eup %7609 }
0x5f2e   :  { %v5806_v37 = vsel %vm782_vm2, %v7610_v7, 0.0  ;;  %v7612_v4 = vpop.eup %7611 }
0x5f2f   :  { %5807 = vadd.xlane.f32.xlu0 %v5806_v37  ;;  %5798 = vadd.xlane.f32.xlu1 %v5797_v20  ;;  %v5800_v45 = vsel %vm782_vm2, %v7612_v4, 0.0 }
0x5f33   :  { %5801 = vadd.xlane.f32.xlu0 %v5800_v45 }
0x5f40   :  { %5886 = vrot.lane.b32.xlu1 %v9477_v44, %s7699_s25 }
0x5f44   :  { %5884 = vrot.lane.b32.xlu1 %v9479_v54, %s7699_s25 }
0x5f48   :  { %5882 = vrot.lane.b32.xlu1 %v9477_v44, %s7700_s27 }
0x5f49   :  { %5819 = vrot.lane.b32.xlu0 %v9479_v54, %s7698_s2 }
0x5f4d   :  { %5880 = vrot.lane.b32.xlu0 %v9479_v54, %s7700_s27 }
0x5fb4   :  { %v5805_v8 = vpop.xlane.xlu1 %5804 }
0x5fb8   :  { %v5808_v24 = vpop.xlane.xlu0 %5807  ;;  %v5799_v47 = vpop.xlane.xlu1 %5798 }
0x5fb9   :  { %7613 = vrcp.f32 %v5808_v24 }
0x5fba   :  { %7615 = vrcp.f32 %v5799_v47 }
0x5fbb   :  { %7617 = vrcp.f32 %v5805_v8 }
0x5fbc   :  { %v5802_v22 = vpop.xlane.xlu0 %5801  ;;  %v5887_v27 = vpop.permute.xlu1 %5886 }
0x5fbd   :  { %7619 = vrcp.f32 %v5802_v22  ;;  %v5898_v33 = vsel %vm5359_vm5, %v5887_v27, 0 }
0x5fc0   :  { %v5820_v29 = vpop.permute.xlu0 %5819  ;;  %v5885_v30 = vpop.permute.xlu1 %5884 }
0x5fc1   :  { %6849 = vmatprep.subr.bf16.mxu1 %v5820_v29  ;;  %v5895_v51 = vsel %vm5359_vm5, %v5885_v30, 0 }
0x5fc2   :  { %6850 = vmatpush3.bf16.msra.mxu1 %v5820_v29 }
0x5fc3   :  { %6901 = vmatprep.subr.msk.bf16.mxu1 %vm5359_vm5, %v5887_v27 }
0x5fc4   :  { %v5881_v18 = vpop.permute.xlu0 %5880  ;;  %v5883_v23 = vpop.permute.xlu1 %5882 }
0x5fc6   :  { %v7614_v28 = vpop.eup %7613 }
0x5fc7   :  { %v7616_v55 = vpop.eup %7615  ;;  %v5816_v25 = vmul.f32 %v7614_v28, %v7610_v7 }
0x5fc8   :  { %v7618_v31 = vpop.eup %7617  ;;  %v5813_v16 = vmul.f32 %v7616_v55, %v7608_v6 }
0x5fc9   :  { %v5815_v2 = vmul.f32 %v7618_v31, %v7606_v11 }
0x5fca   :  { %v7620_v49 = vpop.eup %7619 }
0x5fcb   :  { %v5814_v62 = vmul.f32 %v7620_v49, %v7612_v4  ;;  %v5818_v52 = vpack.c.bf16 %v5816_v25, %v5815_v2 }
0x5fcd   :  { %v5817_v53 = vpack.c.bf16 %v5814_v62, %v5813_v16 }
0x5fcf   :  { %6851 = vmatprep.mubr.msk.bf16.mxu1 %vm782_vm2, %v5817_v53 }
0x5fd0   :  { %6852 = vmatmul.mubr.msk.bf16.vlgmr.msra.gmra.mxu1 %vm782_vm2, %v5818_v52  ;;  %v7039_v52 = vld [vmem:[%s9714_s18 + $0x8] sm:$0xff]  }
0x5fd1   :  { %6856 = vmatpush3.bf16.xpose.msra.mxu1 %v5898_v33  ;;  %6859 = vmatprep.mubr.msk.bf16.mxu1 %vm5359_vm5, %v5881_v18  ;;  %v7040_v33 = vld [vmem:[%s9714_s18] sm:$0xff]  }
0x5fd2   :  { %6902 = vmatprep.subr.msk.bf16.mxu1 %vm5359_vm5, %v5885_v30 }
0x5fd9   :  { %6858 = vmatpush3.bf16.xpose.msra.mxu1 %v5895_v51 }
0x5fe0   :  { %6860 = vmatmul.mubr.msk.bf16.vlgmr.msra.gmra.mxu1 %vm5359_vm5, %v5883_v23 }
0x6090   :  { %v6853_v17 = vpop.f32.mrf.mxu1 }
0x6092   :  { %v5865_v48 = vpop.f32.mrf.mxu1 }
0x6094   :  { %v6854_v46 = vpop.f32.mrf.mxu1 }
0x6095   :  { %v6956_v10 = vpack.i.bf16 %v6854_v46, %v6853_v17 }
0x6096   :  { %v5868_v43 = vpop.f32.mrf.mxu1 }
0x6097   :  { %v6951_v21 = vpack.i.bf16 %v5868_v43, %v5865_v48 }
0x60a0   :  { %v6861_v35 = vpop.f32.mrf.mxu1 }
0x60a1   :  { %v5943_v19 = vadd.f32 %v6861_v35, %v9501_v50 }
0x60a2   :  { %v5934_v57 = vpop.f32.mrf.mxu1 }
0x60a3   :  { %v5935_v14 = vadd.f32 %v5934_v57, %v9496_v40  ;;  %v5955_v12 = vsel %vm782_vm2, %v5943_v19, -inf }
0x60a4   :  { %v6862_v26 = vpop.f32.mrf.mxu1 }
0x60a5   :  { %v5949_v36 = vsel %vm782_vm2, %v5935_v14, -inf  ;;  %v5946_v58 = vadd.f32 %v6862_v26, %v9514_v41 }
0x60a6   :  { %v5937_v63 = vpop.f32.mrf.mxu1  ;;  %5950 = vmax.xlane.f32.xlu0 %v5949_v36 }
0x60a7   :  { %v5938_v5 = vadd.f32 %v5937_v63, %v9507_v38  ;;  %v5958_v13 = vsel %vm782_vm2, %v5946_v58, -inf }
0x60a9   :  { %v5952_v39 = vsel %vm782_vm2, %v5938_v5, -inf }
0x60aa   :  { %5953 = vmax.xlane.f32.xlu1 %v5952_v39  ;;  %5956 = vmax.xlane.f32.xlu0 %v5955_v12 }
0x60ae   :  { %5959 = vmax.xlane.f32.xlu0 %v5958_v13 }
0x612f   :  { %v5951_v40 = vpop.xlane.xlu0 %5950 }
0x6130   :  { %v5961_v32 = vsub.f32 %v5935_v14, %v5951_v40 }
0x6132   :  { %v5965_v37 = vmul.f32 1.442695, %v5961_v32 }
0x6133   :  { %v5954_v50 = vpop.xlane.xlu1 %5953  ;;  %v5957_v11 = vpop.xlane.xlu0 %5956 }
0x6134   :  { %v5963_v0 = vsub.f32 %v5943_v19, %v5957_v11  ;;  %v5962_v6 = vsub.f32 %v5938_v5, %v5954_v50 }
0x6136   :  { %v5969_v7 = vmul.f32 1.442695, %v5963_v0  ;;  %v5967_v41 = vmul.f32 1.442695, %v5962_v6 }
0x6137   :  { %v5960_v38 = vpop.xlane.xlu0 %5959 }
0x6138   :  { %v5964_v4 = vsub.f32 %v5946_v58, %v5960_v38  ;;  %7621 = vpow2.f32 %v5969_v7 }
0x6139   :  { %7623 = vpow2.f32 %v5965_v37 }
0x613a   :  { %v5971_v20 = vmul.f32 1.442695, %v5964_v4 }
0x613c   :  { %7625 = vpow2.f32 %v5971_v20 }
0x613d   :  { %7627 = vpow2.f32 %v5967_v41 }
0x6145   :  { %v7622_v45 = vpop.eup %7621 }
0x6146   :  { %v5979_v8 = vsel %vm782_vm2, %v7622_v45, 0.0  ;;  %v7624_v24 = vpop.eup %7623 }
0x6147   :  { %5980 = vadd.xlane.f32.xlu1 %v5979_v8  ;;  %v5973_v27 = vsel %vm782_vm2, %v7624_v24, 0.0  ;;  %v7042_v8 = vld [vmem:[%s9715_s20] sm:$0xff]  }
0x6149   :  { %v7626_v47 = vpop.eup %7625 }
0x614a   :  { %v5982_v22 = vsel %vm782_vm2, %v7626_v47, 0.0  ;;  %v7628_v29 = vpop.eup %7627 }
0x614b   :  { %5983 = vadd.xlane.f32.xlu0 %v5982_v22  ;;  %5974 = vadd.xlane.f32.xlu1 %v5973_v27  ;;  %v5976_v28 = vsel %vm782_vm2, %v7628_v29, 0.0 }
0x614f   :  { %5977 = vadd.xlane.f32.xlu0 %v5976_v28 }
0x615c   :  { %5997 = vrot.lane.b32.xlu1 %v9477_v44, %s7701_s12 }
0x6160   :  { %6942 = vrot.lane.b32.xlu1 %v6941_v34, %s7702_s28 }
0x6164   :  { %6947 = vrot.lane.b32.xlu1 %v6946_v15, %s7702_s28 }
0x6165   :  { %5995 = vrot.lane.b32.xlu0 %v9479_v54, %s7701_s12 }
0x6168   :  { %6957 = vrot.lane.b32.xlu1 %v6956_v10, %s7703_s13 }
0x6169   :  { %6952 = vrot.lane.b32.xlu0 %v6951_v21, %s7703_s13 }
0x61d0   :  { %v5981_v55 = vpop.xlane.xlu1 %5980 }
0x61d4   :  { %v5984_v31 = vpop.xlane.xlu0 %5983  ;;  %v5975_v49 = vpop.xlane.xlu1 %5974 }
0x61d5   :  { %7629 = vrcp.f32 %v5984_v31 }
0x61d6   :  { %7631 = vrcp.f32 %v5975_v49 }
0x61d7   :  { %7633 = vrcp.f32 %v5981_v55 }
0x61d8   :  { %v5978_v44 = vpop.xlane.xlu0 %5977  ;;  %v5998_v25 = vpop.permute.xlu1 %5997 }
0x61d9   :  { %7635 = vrcp.f32 %v5978_v44  ;;  %6863 = vmatprep.subr.bf16.mxu0 %v5998_v25 }
0x61da   :  { %6864 = vmatpush3.bf16.msra.mxu0 %v5998_v25 }
0x61dc   :  { %v5996_v42 = vpop.permute.xlu0 %5995  ;;  %v6943_v46 = vpop.permute.xlu1 %6942 }
0x61dd   :  { %6865 = vmatprep.subr.bf16.mxu0 %v5996_v42  ;;  %v6945_v35 = vunpack.i.h.bf16 %v6943_v46  ;;  %v6944_v57 = vunpack.i.l.bf16 %v6943_v46 }
0x61de   :  { %6866 = vmatpush3.bf16.msra.mxu0 %v5996_v42 }
0x61df   :  { %6871 = vmatprep.subr.bf16.mxu0 %v7039_v52  ;;  %v6105_v13 = vsel %vm5359_vm5, %v9547_v9, %v6945_v35  ;;  %v6104_v40 = vsel %vm5359_vm5, %v9543_v59, %v6944_v57 }
0x61e0   :  { %v6948_v10 = vpop.permute.xlu1 %6947  ;;  %v6953_v21 = vpop.permute.xlu0 %6952 }
0x61e1   :  { %v6950_v14 = vunpack.i.h.bf16 %v6948_v10  ;;  %v6949_v26 = vunpack.i.l.bf16 %v6948_v10  ;;  %v6955_v63 = vunpack.i.h.bf16 %v6953_v21  ;;  %v6954_v5 = vunpack.i.l.bf16 %v6953_v21 }
0x61e2   :  { %v7630_v56 = vpop.eup %7629 }
0x61e3   :  { %v7632_v60 = vpop.eup %7631  ;;  %v5992_v1 = vmul.f32 %v7630_v56, %v7626_v47  ;;  %v6107_v32 = vsel %vm5359_vm5, %v9545_v61, %v6950_v14  ;;  %v6106_v50 = vsel %vm5359_vm5, %v9541_v3, %v6949_v26  ;;  %v6110_v38 = vsel %vm6108_vm6, %v6105_v13, %v6955_v63  ;;  %v7041_v3 = vld [vmem:[%s9715_s20 + $0x8] sm:$0xff]   ;;  %v6628_v47 = vld [vmem:[%s9716_s19] ss:$0 sm:$0xff] }
0x61e4   :  { %v7634_v54 = vpop.eup %7633  ;;  %v5989_v34 = vmul.f32 %v7632_v60, %v7624_v24  ;;  %v6958_v43 = vpop.permute.xlu1 %6957  ;;  %v6109_v4 = vsel %vm6108_vm6, %v6104_v40, %v6954_v5  ;;  %6879 = vmatprep.subr.bf16.mxu1 %v7041_v3 }
0x61e5   :  { %v5991_v62 = vmul.f32 %v7634_v54, %v7622_v45  ;;  %v6960_v19 = vunpack.i.h.bf16 %v6958_v43  ;;  %v6959_v36 = vunpack.i.l.bf16 %v6958_v43  ;;  %6880 = vmatpush3.bf16.msra.mxu1 %v7041_v3 }
0x61e6   :  { %v7636_v15 = vpop.eup %7635  ;;  %6881 = vmatprep.subr.bf16.mxu1 %v7042_v8 }
0x61e7   :  { %v5990_v16 = vmul.f32 %v7636_v15, %v7628_v29  ;;  %v5994_v53 = vpack.c.bf16 %v5992_v1, %v5991_v62  ;;  %v6111_v0 = vsel %vm6108_vm6, %v6106_v50, %v6959_v36  ;;  %v6112_v6 = vsel %vm6108_vm6, %v6107_v32, %v6960_v19  ;;  %v7043_v15 = vld [vmem:[%s9717_s22 + $0x8] sm:$0xff]   ;;  %v7044_v1 = vld [vmem:[%s9717_s22] sm:$0xff]  }
0x61e9   :  { %v5993_v2 = vpack.c.bf16 %v5990_v16, %v5989_v34  ;;  %6882 = vmatpush3.bf16.msra.mxu1 %v7042_v8 }
0x61eb   :  { %6867 = vmatprep.mubr.msk.bf16.mxu0 %vm782_vm2, %v5993_v2  ;;  %v6633_v2 = vld [vmem:[%s9718_s21] ss:$0 sm:$0xff] }
0x61ec   :  { %6868 = vmatmul.mubr.msk.bf16.vlgmr.msra.gmra.mxu0 %vm782_vm2, %v5994_v53 }
0x61ed   :  { %6872 = vmatpush3.bf16.msra.mxu0 %v7039_v52 }
0x61ee   :  { %6873 = vmatprep.subr.bf16.mxu0 %v7040_v33 }
0x61f1   :  { %6874 = vmatpush3.bf16.msra.mxu0 %v7040_v33 }
0x61f2   :  { %6887 = vmatprep.subr.bf16.mxu0 %v7043_v15 }
0x62ac   :  { %v6869_v18 = vpop.f32.mrf.mxu0 }
0x62ae   :  { %v6041_v30 = vpop.f32.mrf.mxu0 }
0x62b0   :  { %v6870_v51 = vpop.f32.mrf.mxu0 }
0x62b1   :  { %v6966_v23 = vpack.i.bf16 %v6870_v51, %v6869_v18 }
0x62b2   :  { %v6044_v17 = vpop.f32.mrf.mxu0 }
0x62b3   :  { %v6961_v48 = vpack.i.bf16 %v6044_v17, %v6041_v30  ;;  %6967 = vrot.lane.b32.xlu1 %v6966_v23, %s7704_s6  ;;  %v6638_v17 = vld [vmem:[%s9719_s23] ss:$0 sm:$0xff] }
0x62b5   :  { %6962 = vrot.lane.b32.xlu0 %v6961_v48, %s7704_s6 }
0x6325   :  { %v6968_v58 = vpop.permute.xlu1 %6967 }
0x6326   :  { %v6970_v39 = vunpack.i.h.bf16 %v6968_v58  ;;  %v6969_v12 = vunpack.i.l.bf16 %v6968_v58 }
0x6327   :  { %v6963_v11 = vpop.permute.xlu0 %6962 }
0x6328   :  { %v6965_v7 = vunpack.i.h.bf16 %v6963_v11  ;;  %v6964_v37 = vunpack.i.l.bf16 %v6963_v11  ;;  %v6117_v41 = vsel %vm6113_vm7, %v6112_v6, %v6970_v39  ;;  %v6116_v9 = vsel %vm6113_vm7, %v6111_v0, %v6969_v12 }
0x6329   :  { %v6119_v61 = vpack.c.bf16 %v6117_v41, %v6116_v9 }
0x632a   :  { %v6114_v20 = vsel %vm6113_vm7, %v6109_v4, %v6964_v37  ;;  %v6115_v59 = vsel %vm6113_vm7, %v6110_v38, %v6965_v7 }
0x632b   :  { %v6118_v45 = vpack.c.bf16 %v6115_v59, %v6114_v20 }
0x632d   :  { %6875 = vmatprep.mubr.msk.bf16.mxu0 %vm782_vm2, %v6118_v45 }
0x632e   :  { %6876 = vmatmul.mubr.msk.bf16.vlgmr.msra.gmra.mxu0 %vm782_vm2, %v6119_v61 }
0x632f   :  { %6888 = vmatpush3.bf16.msra.mxu0 %v7043_v15 }
0x6330   :  { %6889 = vmatprep.subr.bf16.mxu0 %v7044_v1 }
0x6333   :  { %6890 = vmatpush3.bf16.msra.mxu0 %v7044_v1 }
0x63ee   :  { %v6877_v24 = vpop.f32.mrf.mxu0 }
0x63ef   :  { %v6192_v55 = vadd.f32 %v6877_v24, %v6628_v47 }
0x63f0   :  { %v6183_v22 = vpop.f32.mrf.mxu0 }
0x63f1   :  { %v6184_v29 = vadd.f32 %v6628_v47, %v6183_v22 }
0x63f2   :  { %v6878_v27 = vpop.f32.mrf.mxu0 }
0x63f3   :  { %v6195_v28 = vadd.f32 %v6878_v27, %v6628_v47  ;;  %7637 = vtanh.f32 %v6184_v29 }
0x63f4   :  { %v6186_v31 = vpop.f32.mrf.mxu0 }
0x63f5   :  { %v6187_v49 = vadd.f32 %v6628_v47, %v6186_v31  ;;  %7639 = vtanh.f32 %v6195_v28 }
0x63f7   :  { %7641 = vtanh.f32 %v6187_v49 }
0x63f8   :  { %7643 = vtanh.f32 %v6192_v55 }
0x6400   :  { %v7638_v44 = vpop.eup %7637 }
0x6402   :  { %v7640_v25 = vpop.eup %7639 }
0x6404   :  { %v7642_v42 = vpop.eup %7641 }
0x6405   :  { %v7644_v56 = vpop.eup %7643  ;;  %v6202_v60 = vpack.c.bf16 %v7642_v42, %v7638_v44 }
0x6406   :  { %v6203_v54 = vpack.c.bf16 %v7640_v25, %v7644_v56 }
0x6407   :  { %6883 = vmatprep.mubr.msk.bf16.mxu1 %vm782_vm2, %v6202_v60 }
0x6408   :  { %6884 = vmatmul.mubr.msk.bf16.vlgmr.msra.gmra.mxu1 %vm782_vm2, %v6203_v54 }
0x64c8   :  { %v6885_v34 = vpop.f32.mrf.mxu1 }
0x64c9   :  { %v6276_v30 = vadd.f32 %v6885_v34, %v6633_v2 }
0x64ca   :  { %v6267_v16 = vpop.f32.mrf.mxu1 }
0x64cb   :  { %v6268_v33 = vadd.f32 %v6633_v2, %v6267_v16 }
0x64cc   :  { %v6886_v62 = vpop.f32.mrf.mxu1 }
0x64cd   :  { %v6279_v53 = vadd.f32 %v6886_v62, %v6633_v2 }
0x64ce   :  { %v6270_v52 = vpop.f32.mrf.mxu1 }
0x64cf   :  { %v6271_v18 = vadd.f32 %v6633_v2, %v6270_v52  ;;  %v6283_v23 = vpack.c.bf16 %v6279_v53, %v6276_v30 }
0x64d1   :  { %v6282_v51 = vpack.c.bf16 %v6271_v18, %v6268_v33 }
0x64d3   :  { %6891 = vmatprep.mubr.msk.bf16.mxu0 %vm782_vm2, %v6282_v51 }
0x64d4   :  { %6892 = vmatmul.mubr.msk.bf16.vlgmr.msra.gmra.mxu0 %vm782_vm2, %v6283_v23 }
0x6594   :  { %v6893_v48 = vpop.f32.mrf.mxu0 }
0x6595   :  { %v6356_v46 = vadd.f32 %v6893_v48, %v6638_v17 }
0x6596   :  { %v6347_v10 = vpop.f32.mrf.mxu0 }
0x6597   :  { %7645 = vtanh.f32 %v6356_v46  ;;  %v6348_v43 = vadd.f32 %v6638_v17, %v6347_v10 }
0x6598   :  { %v6894_v21 = vpop.f32.mrf.mxu0 }
0x6599   :  { %7647 = vtanh.f32 %v6348_v43  ;;  %v6359_v35 = vadd.f32 %v6894_v21, %v6638_v17 }
0x659a   :  { %v6350_v57 = vpop.f32.mrf.mxu0 }
0x659b   :  { %7649 = vtanh.f32 %v6359_v35  ;;  %v6351_v14 = vadd.f32 %v6638_v17, %v6350_v57 }
0x659d   :  { %7651 = vtanh.f32 %v6351_v14 }
0x65a4   :  { %v7646_v26 = vpop.eup %7645 }
0x65a5   :  { %6369 = vst.msk [vmem:[%s9720_s24 + $0x10] sm:$0xff] %vm6366_vm8, %v7646_v26 }
0x65a6   :  { %v7648_v19 = vpop.eup %7647 }
0x65a7   :  { %6367 = vst.msk [vmem:[%s9720_s24] sm:$0xff] %vm6366_vm8, %v7648_v19 }
0x65a8   :  { %v7650_v36 = vpop.eup %7649 }
0x65a9   :  { %6370 = vst.msk [vmem:[%s9720_s24 + $0x18] sm:$0xff] %vm6366_vm8, %v7650_v36 }
0x65aa   :  { %v7652_v63 = vpop.eup %7651 }
0x65ab   :  { %6368 = vst.msk [vmem:[%s9720_s24 + $0x8] sm:$0xff] %vm6366_vm8, %v7652_v63 }

</bundles_post_ra>
